<compile_context>
chip_gen: v5e
topology: v5e:2x2
jax: 0.10.0
libtpu: 0.0.40
codegen_flags: <defaults>
</compile_context>

<pallas_src>
import jax
import jax.numpy as jnp
from jax.experimental import pallas as pl
from jax.experimental.pallas import tpu as pltpu


def _theom_logit_kernel(goal_ref, thm_ref, g1_ref, t1_ref, w1m_ref,
                        w2_ref, b2_ref, w3t_ref, b3_ref, out_ref):
    tg, e = goal_ref.shape
    tt = thm_ref.shape[0]
    h0 = w1m_ref.shape[1]
    h1_dim = w2_ref.shape[1]

    goal = goal_ref[...]                                # (TG, E)  bf16
    thm = thm_ref[...]                                  # (TT, E)  bf16

    # ---- Layer 1 cross term: (goal * thm) @ W1_m  (bf16 MXU, f32 accum) ----
    prod = goal[:, None, :] * thm[None, :, :]           # (TG, TT, E) bf16
    m1 = jnp.dot(prod.reshape(tg * tt, e), w1m_ref[...],
                 preferred_element_type=jnp.float32)    # (TG*TT, H0) f32
    m1 = m1.reshape(tg, tt, h0)

    # Precomputed per-row terms (b1 already folded into g1); incremental adds.
    m1 = m1 + g1_ref[...][:, None, :]                   # + goal @ W1_g + b1
    m1 = m1 + t1_ref[...][None, :, :]                   # + thm  @ W1_t
    h = jnp.maximum(m1, 0.0)                            # ReLU
    h = h.astype(jnp.bfloat16).reshape(tg * tt, h0)     # cast at MXU boundary

    # ---- Layer 2: Linear(H0, H1) + ReLU (bf16 MXU, f32 accum) ----
    h2 = jnp.dot(h, w2_ref[...],
                 preferred_element_type=jnp.float32) + b2_ref[...]
    h2 = jnp.maximum(h2, 0.0).reshape(tg, tt, h1_dim)

    # ---- Layer 3: Linear(H1, 1) as a lane reduction -> lane-dense (TG, TT) ----
    w3 = w3t_ref[...].reshape(1, 1, h1_dim)
    scores = jnp.sum(h2 * w3, axis=-1) + b3_ref[0, 0]   # (TG, TT)
    out_ref[...] = scores.astype(out_ref.dtype)


def theom_logit_forward(batch_goal, batch_thm, params, *, tile_g=8, tile_t=256):
    """Pallas implementation of Theom_logit.forward (inference).

    Returns (num_goal, num_thm, 1) float32 logits, matching PyTorch.
    tile_g / tile_t can be raised on v5e/v6e (128 MiB VMEM); the defaults keep
    the per-step temporaries bounded for v7x's 64 MiB VMEM.
    """
    e = params["w1_g"].shape[0]
    h0 = params["w1_g"].shape[1]
    h1 = params["w2"].shape[1]

    goal = batch_goal.reshape(-1, e).astype(jnp.float32)
    thm = batch_thm.reshape(-1, e).astype(jnp.float32)
    num_goal, num_thm = goal.shape[0], thm.shape[0]

    # Pad to tile multiples (padded rows are sliced away afterwards).
    gp = -(-num_goal // tile_g) * tile_g
    tp = -(-num_thm // tile_t) * tile_t
    if gp != num_goal:
        goal = jnp.pad(goal, ((0, gp - num_goal), (0, 0)))
    if tp != num_thm:
        thm = jnp.pad(thm, ((0, tp - num_thm), (0, 0)))

    # Hoisted layer-1 per-row terms (computed once, HIGHEST precision, tiny
    # compared to the G*T pairwise work); b1 folded into g1.
    prec = jax.lax.Precision.HIGHEST
    g1_all = jnp.dot(goal, params["w1_g"], precision=prec) + params["b1"]   # (gp, H0)
    t1_all = jnp.dot(thm, params["w1_t"], precision=prec)                   # (tp, H0)

    # bf16 streaming copies / weights (f32 accumulation happens in-kernel).
    goal_bf = goal.astype(jnp.bfloat16)
    thm_bf = thm.astype(jnp.bfloat16)
    w1m_bf = params["w1_m"].astype(jnp.bfloat16)
    w2_bf = params["w2"].astype(jnp.bfloat16)
    b2 = params["b2"].astype(jnp.float32)
    w3_t = params["w3_t"].astype(jnp.float32)
    b3 = params["b3"].astype(jnp.float32)

    grid = (gp // tile_g, tp // tile_t)
    const = lambda gi, ti: (0, 0)   # weights: resident in VMEM, never re-tiled

    # --- explicit VMEM budget: double-buffered streams + resident weights +
    #     in-body temporaries, with headroom ------------------------------
    bfb, f4 = 2, 4
    rows = tile_g * tile_t
    vmem_est = (
        2 * (tile_g * e * bfb + tile_t * e * bfb            # goal / thm tiles
             + tile_g * h0 * f4 + tile_t * h0 * f4          # g1 / t1 tiles
             + tile_g * tile_t * f4)                        # output tile
        + 2 * (e * h0 * bfb + h0 * h1 * bfb + 2 * h1 * f4)  # resident weights
        + rows * e * bfb                                    # prod (bf16)
        + rows * h0 * f4                                    # m1 / h (f32)
        + rows * h0 * bfb                                   # h cast to bf16
        + rows * h1 * f4                                    # h2 (f32)
        + rows * f4                                         # scores
    )
    vmem_limit = int(min(max(2 * vmem_est, 32 * 1024 * 1024), 100 * 1024 * 1024))

    cost = pl.CostEstimate(
        flops=int(2 * gp * tp * (e * h0 + h0 * h1 + h1)),
        transcendentals=0,
        bytes_accessed=int(gp * e * bfb + tp * e * bfb
                           + gp * h0 * f4 + tp * h0 * f4
                           + e * h0 * bfb + h0 * h1 * bfb + 2 * h1 * f4 + f4
                           + gp * tp * f4))

    out = pl.pallas_call(
        _theom_logit_kernel,
        out_shape=jax.ShapeDtypeStruct((gp, tp), jnp.float32),
        grid=grid,
        in_specs=[
            pl.BlockSpec((tile_g, e), lambda gi, ti: (gi, 0)),    # goal tile (bf16)
            pl.BlockSpec((tile_t, e), lambda gi, ti: (ti, 0)),    # thm tile (bf16)
            pl.BlockSpec((tile_g, h0), lambda gi, ti: (gi, 0)),   # g1 = goal@W1_g + b1
            pl.BlockSpec((tile_t, h0), lambda gi, ti: (ti, 0)),   # t1 = thm@W1_t
            pl.BlockSpec((e, h0), const),                         # W1_m (bf16)
            pl.BlockSpec((h0, h1), const),                        # W2   (bf16)
            pl.BlockSpec((1, h1), const),                         # b2
            pl.BlockSpec((1, h1), const),                         # W3^T
            pl.BlockSpec(memory_space=pltpu.SMEM),                # b3 scalar
        ],
        out_specs=pl.BlockSpec((tile_g, tile_t), lambda gi, ti: (gi, ti)),
        compiler_params=pltpu.CompilerParams(
            dimension_semantics=("parallel", "parallel"),
            vmem_limit_bytes=vmem_limit),
        cost_estimate=cost,
    )(goal_bf, thm_bf, g1_all, t1_all,
      w1m_bf, w2_bf, b2, w3_t, b3)

    return out[:num_goal, :num_thm].reshape(num_goal, num_thm, 1)


def init_theom_logit_params(key, embed_size=1024, hidden_layers=(1024, 512, 1)):
    """Uniform(-0.1, 0.1) init, matching the PyTorch module's init.uniform_.

    Weights are stored in (in, out) layout for x @ W; the last-layer weight is
    stored transposed as (1, H1). (Values will not bit-match PyTorch's RNG.)
    """
    h0, h1, h2 = hidden_layers
    assert h2 == 1, "Theom_logit's last layer has a single output logit"
    ks = jax.random.split(key, 6)
    u = lambda k, shape: jax.random.uniform(k, shape, jnp.float32, -0.1, 0.1)
    w1 = u(ks[0], (3 * embed_size, h0))
    return {
        "w1_g": w1[:embed_size],
        "w1_t": w1[embed_size:2 * embed_size],
        "w1_m": w1[2 * embed_size:],
        "b1": u(ks[1], (1, h0)),
        "w2": u(ks[2], (h0, h1)),
        "b2": u(ks[3], (1, h1)),
        "w3_t": u(ks[4], (1, h1)),
        "b3": u(ks[5], (1, 1)),
    }


def _reference_forward(goal, thm, params):
    """Plain-JAX reference, mirrors the PyTorch forward (eval mode)."""
    g, t = goal.shape[0], thm.shape[0]
    e = goal.shape[1]
    gr = goal[:, None, :]
    tr = thm[None, :, :]
    feats = jnp.concatenate(
        [jnp.broadcast_to(gr, (g, t, e)),
         jnp.broadcast_to(tr, (g, t, e)),
         gr * tr], axis=-1)                                          # (G, T, 3E)
    w1 = jnp.concatenate([params["w1_g"], params["w1_t"], params["w1_m"]], axis=0)
    prec = jax.lax.Precision.HIGHEST
    h1 = jnp.maximum(jnp.matmul(feats, w1, precision=prec) + params["b1"][0], 0.0)
    h2 = jnp.maximum(jnp.matmul(h1, params["w2"], precision=prec) + params["b2"][0], 0.0)
    return jnp.matmul(h2, params["w3_t"].T, precision=prec) + params["b3"][0, 0]


if __name__ == "__main__":
    key = jax.random.PRNGKey(0)
    kg, kt, kp = jax.random.split(key, 3)

    # Small shapes consistent with the module (embed_size, [H0, H1, 1]).
    embed_size = 128
    hidden = (128, 128, 1)
    num_goal, num_thm = 16, 256

    batch_goal = jax.random.normal(kg, (num_goal, embed_size), jnp.float32)
    batch_thm = jax.random.normal(kt, (num_thm, embed_size), jnp.float32)
    params = init_theom_logit_params(kp, embed_size, hidden)

    out = theom_logit_forward(batch_goal, batch_thm, params)
    out = jax.block_until_ready(out)

    assert out.shape == (num_goal, num_thm, 1), out.shape
    assert out.dtype == jnp.float32, out.dtype

    expected = _reference_forward(batch_goal, batch_thm, params)
    assert jnp.all(jnp.isfinite(out))
    # bf16 MXU inputs (f32 accumulation) vs. the f32 HIGHEST-precision
    # reference: tolerance reflects the bf16 rounding of the matmul inputs.
    max_err = float(jnp.max(jnp.abs(out - expected)))
    assert jnp.allclose(out, expected, rtol=1e-1, atol=1e-1), max_err

    print("KERNEL_OK")
</pallas_src>

<mosaic_0001>
module attributes {stable_mosaic.version = 11 : i64} {
  func.func @_theom_logit_kernel(%arg0: i32, %arg1: i32, %arg2: memref<8x128xbf16, #tpu.memory_space<vmem>>, %arg3: memref<256x128xbf16, #tpu.memory_space<vmem>>, %arg4: memref<8x128xf32, #tpu.memory_space<vmem>>, %arg5: memref<256x128xf32, #tpu.memory_space<vmem>>, %arg6: memref<128x128xbf16, #tpu.memory_space<vmem>>, %arg7: memref<128x128xbf16, #tpu.memory_space<vmem>>, %arg8: memref<1x128xf32, #tpu.memory_space<vmem>>, %arg9: memref<1x128xf32, #tpu.memory_space<vmem>>, %arg10: memref<1x1xf32, #tpu.memory_space<smem>>, %arg11: memref<8x256xf32, #tpu.memory_space<vmem>>) attributes {dimension_semantics = [#tpu.dimension_semantics<parallel>, #tpu.dimension_semantics<parallel>], iteration_bounds = array<i64: 2, 1>, scalar_prefetch = 0 : i64, scratch_operands = 0 : i64, tpu.core_type = #tpu.core_type<tc>, window_params = [{transform_indices = @transform_0, window_bounds = array<i64: 8, 128>}, {transform_indices = @transform_1, window_bounds = array<i64: 256, 128>}, {transform_indices = @transform_2, window_bounds = array<i64: 8, 128>}, {transform_indices = @transform_3, window_bounds = array<i64: 256, 128>}, {pipeline_mode = #tpu.pipeline_mode<synchronous>, transform_indices = @transform_4, window_bounds = array<i64: 128, 128>}, {pipeline_mode = #tpu.pipeline_mode<synchronous>, transform_indices = @transform_5, window_bounds = array<i64: 128, 128>}, {pipeline_mode = #tpu.pipeline_mode<synchronous>, transform_indices = @transform_6, window_bounds = array<i64: 1, 128>}, {pipeline_mode = #tpu.pipeline_mode<synchronous>, transform_indices = @transform_7, window_bounds = array<i64: 1, 128>}, {transform_indices = @transform_8, window_bounds = array<i64: 1, 1>}, {transform_indices = @transform_9, window_bounds = array<i64: 8, 256>}]} {
    %c0 = arith.constant 0 : index
    %c0_0 = arith.constant 0 : index
    %0 = vector.load %arg2[%c0, %c0_0] : memref<8x128xbf16, #tpu.memory_space<vmem>>, vector<8x128xbf16>
    %c0_1 = arith.constant 0 : index
    %c0_2 = arith.constant 0 : index
    %1 = vector.load %arg3[%c0_1, %c0_2] : memref<256x128xbf16, #tpu.memory_space<vmem>>, vector<256x128xbf16>
    %2 = vector.shape_cast %0 : vector<8x128xbf16> to vector<8x1x128xbf16>
    %3 = vector.shape_cast %1 : vector<256x128xbf16> to vector<1x256x128xbf16>
    %4 = vector.broadcast %2 : vector<8x1x128xbf16> to vector<8x256x128xbf16>
    %5 = vector.broadcast %3 : vector<1x256x128xbf16> to vector<8x256x128xbf16>
    %6 = arith.mulf %4, %5 : vector<8x256x128xbf16>
    %7 = vector.shape_cast %6 : vector<8x256x128xbf16> to vector<2048x128xbf16>
    %c0_3 = arith.constant 0 : index
    %c0_4 = arith.constant 0 : index
    %8 = vector.load %arg6[%c0_3, %c0_4] : memref<128x128xbf16, #tpu.memory_space<vmem>>, vector<128x128xbf16>
    %cst = arith.constant dense<0.000000e+00> : vector<2048x128xf32>
    %9 = tpu.matmul %7, %8, %cst {dimension_numbers = #tpu.dot_dimension_numbers<[1], [0], [0], [1], [0, 0, 1, 1], [], []>} : vector<2048x128xbf16>, vector<128x128xbf16>, vector<2048x128xf32> -> vector<2048x128xf32>
    %10 = vector.shape_cast %9 : vector<2048x128xf32> to vector<8x256x128xf32>
    %c0_5 = arith.constant 0 : index
    %c0_6 = arith.constant 0 : index
    %11 = vector.load %arg4[%c0_5, %c0_6] : memref<8x128xf32, #tpu.memory_space<vmem>>, vector<8x128xf32>
    %12 = vector.shape_cast %11 : vector<8x128xf32> to vector<8x1x128xf32>
    %13 = vector.broadcast %12 : vector<8x1x128xf32> to vector<8x256x128xf32>
    %14 = arith.addf %10, %13 : vector<8x256x128xf32>
    %c0_7 = arith.constant 0 : index
    %c0_8 = arith.constant 0 : index
    %15 = vector.load %arg5[%c0_7, %c0_8] : memref<256x128xf32, #tpu.memory_space<vmem>>, vector<256x128xf32>
    %16 = vector.shape_cast %15 : vector<256x128xf32> to vector<1x256x128xf32>
    %17 = vector.broadcast %16 : vector<1x256x128xf32> to vector<8x256x128xf32>
    %18 = arith.addf %14, %17 : vector<8x256x128xf32>
    %cst_9 = arith.constant 0.000000e+00 : f32
    %19 = vector.broadcast %cst_9 : f32 to vector<8x256x128xf32>
    %20 = arith.maximumf %18, %19 : vector<8x256x128xf32>
    %21 = arith.truncf %20 : vector<8x256x128xf32> to vector<8x256x128xbf16>
    %22 = vector.shape_cast %21 : vector<8x256x128xbf16> to vector<2048x128xbf16>
    %c0_10 = arith.constant 0 : index
    %c0_11 = arith.constant 0 : index
    %23 = vector.load %arg7[%c0_10, %c0_11] : memref<128x128xbf16, #tpu.memory_space<vmem>>, vector<128x128xbf16>
    %cst_12 = arith.constant dense<0.000000e+00> : vector<2048x128xf32>
    %24 = tpu.matmul %22, %23, %cst_12 {dimension_numbers = #tpu.dot_dimension_numbers<[1], [0], [0], [1], [0, 0, 1, 1], [], []>} : vector<2048x128xbf16>, vector<128x128xbf16>, vector<2048x128xf32> -> vector<2048x128xf32>
    %c0_13 = arith.constant 0 : index
    %c0_14 = arith.constant 0 : index
    %25 = vector.load %arg8[%c0_13, %c0_14] : memref<1x128xf32, #tpu.memory_space<vmem>>, vector<1x128xf32>
    %26 = vector.broadcast %25 : vector<1x128xf32> to vector<2048x128xf32>
    %27 = arith.addf %24, %26 : vector<2048x128xf32>
    %cst_15 = arith.constant 0.000000e+00 : f32
    %28 = vector.broadcast %cst_15 : f32 to vector<2048x128xf32>
    %29 = arith.maximumf %27, %28 : vector<2048x128xf32>
    %30 = vector.shape_cast %29 : vector<2048x128xf32> to vector<8x256x128xf32>
    %c0_16 = arith.constant 0 : index
    %c0_17 = arith.constant 0 : index
    %31 = vector.load %arg9[%c0_16, %c0_17] : memref<1x128xf32, #tpu.memory_space<vmem>>, vector<1x128xf32>
    %32 = vector.shape_cast %31 : vector<1x128xf32> to vector<1x1x128xf32>
    %33 = vector.broadcast %32 : vector<1x1x128xf32> to vector<8x256x128xf32>
    %34 = arith.mulf %30, %33 : vector<8x256x128xf32>
    %cst_18 = arith.constant dense<0.000000e+00> : vector<8x256xf32>
    %35 = vector.multi_reduction <add>, %34, %cst_18 [2] : vector<8x256x128xf32> to vector<8x256xf32>
    %c0_19 = arith.constant 0 : index
    %c0_20 = arith.constant 0 : index
    %36 = memref.load %arg10[%c0_19, %c0_20] : memref<1x1xf32, #tpu.memory_space<smem>>
    %37 = vector.broadcast %36 : f32 to vector<8x256xf32>
    %38 = arith.addf %35, %37 : vector<8x256xf32>
    %c0_21 = arith.constant 0 : index
    %c0_22 = arith.constant 0 : index
    %39 = vector.load %arg11[%c0_21, %c0_22] : memref<8x256xf32, #tpu.memory_space<vmem>>, vector<8x256xf32>
    tpu.vector_store %arg11[%c0_21, %c0_22], %38 {strides = array<i32>} : memref<8x256xf32, #tpu.memory_space<vmem>>, vector<8x256xf32>,
    return
  }
  func.func @transform_0(%arg0: i32, %arg1: i32) -> (i32, i32) {
    %c0_i32 = arith.constant 0 : i32
    %c0_i32_0 = arith.constant 0 : i32
    return %arg0, %c0_i32 : i32, i32
  }
  func.func @transform_1(%arg0: i32, %arg1: i32) -> (i32, i32) {
    %c0_i32 = arith.constant 0 : i32
    %c0_i32_0 = arith.constant 0 : i32
    return %arg1, %c0_i32 : i32, i32
  }
  func.func @transform_2(%arg0: i32, %arg1: i32) -> (i32, i32) {
    %c0_i32 = arith.constant 0 : i32
    %c0_i32_0 = arith.constant 0 : i32
    return %arg0, %c0_i32 : i32, i32
  }
  func.func @transform_3(%arg0: i32, %arg1: i32) -> (i32, i32) {
    %c0_i32 = arith.constant 0 : i32
    %c0_i32_0 = arith.constant 0 : i32
    return %arg1, %c0_i32 : i32, i32
  }
  func.func @transform_4(%arg0: i32, %arg1: i32) -> (i32, i32) {
    %c0_i32 = arith.constant 0 : i32
    %c0_i32_0 = arith.constant 0 : i32
    %c0_i32_1 = arith.constant 0 : i32
    return %c0_i32, %c0_i32_0 : i32, i32
  }
  func.func @transform_5(%arg0: i32, %arg1: i32) -> (i32, i32) {
    %c0_i32 = arith.constant 0 : i32
    %c0_i32_0 = arith.constant 0 : i32
    %c0_i32_1 = arith.constant 0 : i32
    return %c0_i32, %c0_i32_0 : i32, i32
  }
  func.func @transform_6(%arg0: i32, %arg1: i32) -> (i32, i32) {
    %c0_i32 = arith.constant 0 : i32
    %c0_i32_0 = arith.constant 0 : i32
    %c0_i32_1 = arith.constant 0 : i32
    return %c0_i32, %c0_i32_0 : i32, i32
  }
  func.func @transform_7(%arg0: i32, %arg1: i32) -> (i32, i32) {
    %c0_i32 = arith.constant 0 : i32
    %c0_i32_0 = arith.constant 0 : i32
    %c0_i32_1 = arith.constant 0 : i32
    return %c0_i32, %c0_i32_0 : i32, i32
  }
  func.func @transform_8(%arg0: i32, %arg1: i32) -> (i32, i32) {
    %c0_i32 = arith.constant 0 : i32
    %c0_i32_0 = arith.constant 0 : i32
    %c0_i32_1 = arith.constant 0 : i32
    return %c0_i32, %c0_i32_0 : i32, i32
  }
  func.func @transform_9(%arg0: i32, %arg1: i32) -> (i32, i32) {
    %c0_i32 = arith.constant 0 : i32
    return %arg0, %arg1 : i32, i32
  }
}

</mosaic_0001>

<bundles_post_ra>
// kernel: tpu_custom_call.1
= control target key start
LH: loop header
LB: loop body
LE: loop exit
PB: predicated region body
PF: predicated region fallthrough
CT: control target
= control target key end

     0   :  { %s11299_s0 = inlined_call_operand.hbm [shape: bf16[16,128], index: 0, kind: input, shape index: {}]   ;;  %s11300_s1 = inlined_call_operand.hbm [shape: bf16[256,128], index: 1, kind: input, shape index: {}]   ;;  %s11301_s2 = inlined_call_operand.hbm [shape: f32[16,128], index: 2, kind: input, shape index: {}]   ;;  %s11302_s3 = inlined_call_operand.hbm [shape: f32[256,128], index: 3, kind: input, shape index: {}]   ;;  %s11303_s4 = inlined_call_operand.hbm [shape: bf16[128,128], index: 4, kind: input, shape index: {}]   ;;  %s11304_s5 = inlined_call_operand.hbm [shape: bf16[128,128], index: 5, kind: input, shape index: {}]   ;;  %s11305_s6 = inlined_call_operand.vmem [shape: f32[1,128], index: 6, kind: input, shape index: {}]   ;;  %s11306_s7 = inlined_call_operand.vmem [shape: f32[1,128], index: 7, kind: input, shape index: {}]   ;;  %s11307_s8 = inlined_call_operand.<no memory space> [shape: f32[1,1], index: 8, kind: input, shape index: {}]   ;;  %s11308_s9 = inlined_call_operand.hbm [shape: f32[16,256], index: 9, kind: output, shape index: {}]  }
   0x1   :  { %11353 = sst [smem:[#allocation129_spill]] %s11299_s0 }
   0x2   :  { %11354 = sst [smem:[#allocation130_spill]] %s11300_s1 }
   0x3   :  { %11355 = sst [smem:[#allocation131_spill]] %s11302_s3 }
   0x4   :  { %11356 = sst [smem:[#allocation132_spill]] %s11303_s4 }
   0x5   :  { %11357 = sst [smem:[#allocation133_spill]] %s11304_s5 }
   0x6   :  { %14 = sst [smem:[#allocation2]] %s11307_s8 }
   0x7   :  { %15 = vsyncpa [#allocation4], 0 }
   0x8   :  { %17 = vsyncpa [#allocation4 + $0x1], 0 }
   0x9   :  { %18 = vsyncpa [#allocation7], 0 }
   0xa   :  { %19 = vsyncpa [#allocation11], 0 }
   0xb   :  { %20 = vsyncpa [#allocation5], 0 }
   0xc   :  { %22 = vsyncpa [#allocation5 + $0x1], 0  ;;  %s8223_s11 = smov 0   ;;  %s8225_s12 = smov 0  }
   0xd   :  { %s8227_s13 = smov 0   ;;  %s8229_s14 = smov 0  }
   0xe   :  { %s8231_s15 = smov 0   ;;  %s8233_s16 = smov 0  }
   0xf LB: > { %11358 = sst [smem:[#allocation20_spill]] %s8140_s11  ;;  %s8254_s8 = sadd.s32 4294967295, %s8160_s16   ;;  %s8160_s16 = sphi %s8233_s16, %s28_s16   ;;  %s8156_s15 = sphi %s8231_s15, %s11632_s15   ;;  %s8152_s14 = sphi %s8229_s14, %s11631_s14   ;;  %s8148_s13 = sphi %s8227_s13, %s11627_s13   ;;  %s8144_s12 = sphi %s8225_s12, %s11630_s12   ;;  %s8140_s11 = sphi %s8223_s11, %s11629_s11  }
  0x10   : > { %11359 = sst [smem:[#allocation21_spill]] %s8148_s13  ;;  %p7449_p0 = scmp.ge.s32.totalorder %s8160_s16, 1 }
  0x11   : > { %11360 = sst [smem:[#allocation22_spill]] %s8160_s16  ;;  %p61_p1 = scmp.eq.s32.totalorder %s8254_s8, 0 }
  0x12   : > { %p282_p2 = scmp.lt.s32.totalorder %s8160_s16, 3  ;;  %s11361_s1 = sld [smem:[#allocation130_spill]] }
  0x13   : > { %s8162_s21 = smov [#allocation6]   ;;  %p7454_p6 = scmp.ge.s32.totalorder %s8160_s16, 2 }
  0x14   : > { %p8262_p3 = pnand %p7449_p0, %p282_p2  ;;  %s298_s22 = sshll.u32 %s8162_s21, 4  ;;  %s299_s22 = int_to_ptr.vmem [resolvable:$true] %s298_s22 }
  0x15   : > { %s11364_s4 = sld [smem:[#allocation132_spill]]  ;;  %s11309_s27 = smov 64  }
  0x16   : > { %p7674_p4 = pneg %p8262_p3  ;;  %s11310_s28 = smov 4  }
  0x17   : > { %s8165_s29 = smov [#allocation10]   ;;  %s7448_s10 = sadd.s32 4294967294, %s8160_s16  }
  0x18   : > { %s296_s19 = sshll.u32 %s11361_s1, 4  ;;  %p8270_p5 = pnand %p7674_p4, %p61_p1  ;;  %s297_s19 = int_to_ptr.hbm [resolvable:$true] %s296_s19 }
  0x19   : > { %s329_s30 = sshll.u32 %s8165_s29, 4  ;;  %s40_s17 = sadd.s32 1, %s8156_s15  ;;  %s330_s30 = int_to_ptr.vmem [resolvable:$true] %s329_s30 }
  0x1a   : > { %7677 = dma.hbm_to_vmem [thread:$0]  (!%p8270_p5), %s297_s19, 2048, %s299_s22, [#allocation7], %s11309_s27, %s11309_s27, %s11310_s28  }
  0x1b   : > { %s327_s26 = sshll.u32 %s11364_s4, 4  ;;  %p42_p7 = scmp.ge.s32.totalorder %s40_s17, 2  ;;  %s328_s26 = int_to_ptr.hbm [resolvable:$true] %s327_s26 }
  0x1c   : > { %7683 = dma.hbm_to_vmem [thread:$0]  (!%p8270_p5), %s328_s26, 1024, %s330_s30, [#allocation11], %s11309_s27, %s11309_s27, %s11310_s28  }
  0x1d   : > { %s47_s18 = sadd.s32 1, %s8148_s13  ;;  %p54_p8 = scmp.ne.s32.totalorder %s8148_s13, %s8144_s12 }
  0x1e   : > { %p55_p9 = scmp.eq.s32.totalorder %s8160_s16, 0  ;;  %s11634_s17 = smov (%p42_p7, %s40_s17), 0 }
  0x1f   : > { %11365 = sst [smem:[#allocation23_spill]] %s11634_s17  ;;  %p60_p11 = scmp.ne.s32.totalorder %s8144_s12, %s8140_s11 }
  0x20   : > { %p8296_p10 = por %p55_p9, %p54_p8  ;;  %s44_s21 = ssub.s32 %s8156_s15, %s11634_s17 }
  0x21   : > { %p269_p12 = scmp.eq.s32.totalorder %s8254_s8, 1  ;;  %p45_p13 = scmp.eq.s32.totalorder %s44_s21, 0 }
  0x22   : > { %p8307_p0 = por %p61_p1, %p60_p11  ;;  %p275_p4 = scmp.eq.s32.totalorder %s7448_s10, 1 }
  0x23   : > { %p8311_p2 = por %p269_p12, %p54_p8  ;;  %p7702_p9 = scmp.lt.s32.totalorder %s8160_s16, 2 }
  0x24   : > { %s8316_s25 = scalar_select %p45_p13, %s8148_s13, %s47_s18  }
  0x25   : > { %s11368_s24 = scalar_select %p8311_p2, 1, 0 }
  0x26   : > { %11370 = sst [smem:[#allocation25_spill]] %s8316_s25  ;;  %p8318_p7 = por %p275_p4, %p60_p11 }
  0x27   : > { %11369 = sst [smem:[#allocation24_spill]] %s11368_s24  ;;  %s366_s29 = sand.u32 1, %s8160_s16  }
  0x28   : > { %s368_s30 = sand.u32 1, %s8148_s13   ;;  %s7456_s27 = sshll.u32 %s8156_s15, 2 }
  0x29   : > { %s7455_s21 = sshll.u32 %s368_s30, 2  ;;  %s11372_s0 = sld [smem:[#allocation129_spill]] }
  0x2a   : > { %s370_s17 = scalar_lea.vmem [#allocation3], %s7455_s21  ;;  %p8331_p8 = pnand %p7702_p9, %p8296_p10 }
  0x2b   : > { %s378_s11 = sshll.u32 %s370_s17, 4  ;;  %s7457_s18 = sshll.u32 %s368_s30, 3  ;;  %s379_s11 = int_to_ptr.vmem [resolvable:$true] %s378_s11 }
  0x2c   : > { %s11374_s3 = sld [smem:[#allocation131_spill]]  ;;  %s367_s1 = scalar_lea.sflag [#allocation4], %s366_s29 }
  0x2d   : > { %s11375_s5 = sld [smem:[#allocation133_spill]]  ;;  %s8167_s21 = smov 128  }
  0x2e   : > { %s8168_s30 = smov 8   ;;  %s8169_s13 = smov [#allocation12]  }
  0x2f   : > { %s374_s4 = scalar_lea.hbm %s11372_s0, %s7456_s27  ;;  %s343_s25 = sshll.u32 %s8169_s13, 4  ;;  %s344_s25 = int_to_ptr.vmem [resolvable:$true] %s343_s25 }
  0x30   : > { %s376_s24 = sshll.u32 %s374_s4, 4  ;;  %s8166_s4 = smov [#allocation9]   ;;  %s377_s24 = int_to_ptr.hbm [resolvable:$true] %s376_s24 }
  0x31   : > { %7690 = dma.hbm_to_vmem [thread:$0]  (!%p8331_p8), %s377_s24, 64, %s379_s11, %s367_s1  }
  0x32   : > { %s313_s16 = sshll.u32 %s11374_s3, 4  ;;  %s315_s27 = sshll.u32 %s8166_s4, 4  ;;  %s314_s16 = int_to_ptr.hbm [resolvable:$true] %s313_s16  ;;  %s316_s27 = int_to_ptr.vmem [resolvable:$true] %s315_s27 }
  0x33   : > { %s341_s19 = sshll.u32 %s11375_s5, 4  ;;  %s7458_s0 = sshll.u32 %s8156_s15, 3  ;;  %s342_s19 = int_to_ptr.hbm [resolvable:$true] %s341_s19 }
  0x34   : > { %7680 = dma.hbm_to_vmem [thread:$0]  (!%p8270_p5), %s314_s16, 4096, %s316_s27, [#allocation7], %s8167_s21, %s8167_s21, %s8168_s30  }
  0x35   : > { %s11376_s29 = smov 4   ;;  %s11377_s11 = smov 64  }
  0x36   : > { %7686 = dma.hbm_to_vmem [thread:$0]  (!%p8270_p5), %s342_s19, 1024, %s344_s25, [#allocation11], %s11377_s11, %s11377_s11, %s11376_s29  }
  0x37   : > { %s393_s28 = scalar_lea.hbm %s11301_s2, %s7458_s0  ;;  %s389_s17 = scalar_lea.vmem [#allocation8], %s7457_s18 }
  0x38   : > { %s397_s3 = sshll.u32 %s389_s17, 4  ;;  %s395_s5 = sshll.u32 %s393_s28, 4  ;;  %s398_s3 = int_to_ptr.vmem [resolvable:$true] %s397_s3  ;;  %s396_s5 = int_to_ptr.hbm [resolvable:$true] %s395_s5 }
  0x39   : > { %7693 = dma.hbm_to_vmem [thread:$0]  (!%p8331_p8), %s396_s5, 128, %s398_s3, %s367_s1  }
  0x3a   : > { %406 = sbr.rel (%p8262_p3) target bundleno = 1539 (0x603), region = 56 }
  0x3f   : > { %s408_s16 = sand.u32 1, %s8254_s8   ;;  %s8360_s23 = sand.u32 1, %s8144_s12  }
  0x40   : > { %s7460_s27 = sshll.u32 %s8360_s23, 2  ;;  %s409_s19 = scalar_lea.sflag [#allocation4], %s408_s16 }
  0x41   : > { %s8363_s0 = scalar_lea.vmem [#allocation3], %s7460_s27 }
  0x42   : > { %8115 = dma.done.wait (%p8307_p0), %s409_s19, 64  }
  0x43   : > { %8117 = vsyncadd (%p8307_p0), %s409_s19, 4294967232 }
  0x44   : > { %8119 = dma.done.wait (%p61_p1), [#allocation7], 2048  }
  0x45   : > { %8121 = vsyncadd (%p61_p1), [#allocation7], 4294965248  ;;  %s7462_s3 = sshll.u32 %s8360_s23, 3 }
  0x46   : > { %s8374_s5 = scalar_lea.vmem [#allocation8], %s7462_s3 }
  0x47   : > { %8123 = dma.done.wait (%p8307_p0), %s409_s19, 128  }
  0x48   : > { %8125 = vsyncadd (%p8307_p0), %s409_s19, 4294967168 }
  0x49   : > { %8127 = dma.done.wait (%p61_p1), [#allocation7], 4096  }
  0x4a   : > { %8129 = vsyncadd (%p61_p1), [#allocation7], 4294963200 }
  0x4b   : > { %8131 = dma.done.wait (%p61_p1), [#allocation11], 2048  }
  0x4c   : > { %8133 = vsyncadd (%p61_p1), [#allocation11], 4294965248  ;;  %v7547_v0 = vld [vmem:[#allocation10 + $0x38] sm:$0xff]  ;;  %v7546_v1 = vld [vmem:[#allocation10 + $0x30] sm:$0xff]  ;;  %vm521_vm0 = vcmask 1040384   ;;  %vm11346_vm1 = vcmask 1042434  }
  0x4d   : > { %1978 = vmatpush.bf16.msra.mxu0 %v7547_v0  ;;  %7636 = vmatpush.bf16.msra.mxu2 %v7547_v0  ;;  %v486_v2 = vld [vmem:[%s8363_s0] sm:$0xf]  ;;  %v7544_v11 = vld [vmem:[#allocation10 + $0x20] sm:$0xff]  ;;  %v7558_v12 = vld [vmem:[#allocation6] sm:$0xff]   ;;  %vm11348_vm2 = vcmask 1041409   ;;  %vm11345_vm3 = vcmask 1043459  }
  0x4e   : > { %v8389_v3 = vrot.slane %v486_v2, 3  ;;  %v7545_v4 = vld [vmem:[#allocation10 + $0x28] sm:$0xff]  ;;  %v8402_v15 = vunpack.c.l.bf16 %v7558_v12  ;;  %v8404_v16 = vunpack.c.h.bf16 %v7558_v12  ;;  %v7543_v19 = vld [vmem:[#allocation10 + $0x18] sm:$0xff]  ;;  %v7542_v25 = vld [vmem:[#allocation10 + $0x10] sm:$0xff]  ;;  %s9566_s3 = sld [smem:[#allocation2]]  ;;  %vm6740_vm4 = vcmask 130112  }
  0x4f   : > { %v7541_v32 = vld [vmem:[#allocation10 + $0x8] sm:$0xff]  ;;  %v7621_v37 = vld [vmem:[#allocation6 + $0x8] sm:$0xff]   ;;  %v7540_v38 = vld [vmem:[#allocation10] sm:$0xff]  ;;  %vm6744_vm5 = vcmask 195712   ;;  %vm6748_vm6 = vcmask 261312   ;;  %vm6752_vm7 = vcmask 326912  }
  0x50   : > { %11378 = vst [vmem:[#allocation26_spill] sm:$0xff] %v8389_v3  ;;  %v8392_v5 = vsel %vm521_vm0, %v486_v2, %v8389_v3  ;;  %v531_v6 = vsel %vm11346_vm1, %v486_v2, %v8389_v3  ;;  %v8418_v39 = vunpack.c.l.bf16 %v7621_v37  ;;  %v8420_v42 = vunpack.c.h.bf16 %v7621_v37  ;;  %v7622_v55 = vld [vmem:[#allocation6 + $0x10] sm:$0xff]   ;;  %s7466_s17 = sshll.u32 %s8360_s23, 4  ;;  %s7556_s16 = sshll.u32 %s8152_s14, 4 }
  0x51   : > { %1979 = vmatpush.bf16.msra.mxu0 %v7546_v1  ;;  %7637 = vmatpush.bf16.msra.mxu2 %v7546_v1  ;;  %v7467_v7 = vpack.i.b16 %v8392_v5, %v8392_v5  ;;  %v8398_v8 = vrot.slane %v531_v6, 2  ;;  %11379 = vst [vmem:[#allocation27_spill] sm:$0xff] %v8404_v16  ;;  %v8430_v56 = vunpack.c.l.bf16 %v7622_v55  ;;  %v8432_v59 = vunpack.c.h.bf16 %v7622_v55  ;;  %s482_s14 = scalar_lea.vmem [#allocation13], %s7466_s17  ;;  %s7286_s22 = scalar_lea.sflag [#allocation5], %s8360_s23 }
  0x52   : > { %11380 = vst [vmem:[#allocation28_spill] sm:$0xff] %v8418_v39  ;;  %vm6756_vm8 = vcmask 392512   ;;  %vm6760_vm9 = vcmask 458112   ;;  %vm6764_vm10 = vcmask 523712   ;;  %vm6768_vm11 = vcmask 589312   ;;  %s7301_s8 = sshll.u32 %s482_s14, 4  ;;  %s7302_s8 = int_to_ptr.vmem [resolvable:$true] %s7301_s8 }
  0x53   : > { %v554_v9 = vperm.slane %v7467_v7, 0  ;;  %v7469_v10 = vpack.i.b16 %v8398_v8, %v8398_v8  ;;  %11381 = vst [vmem:[#allocation29_spill] sm:$0xff] %v8420_v42  ;;  %vm11352_vm12 = vcmask 654912   ;;  %vm11351_vm13 = vcmask 720512   ;;  %s8082_s21 = scalar_lea.hbm %s11308_s9, 32 }
  0x54   : > { %11382 = vst [vmem:[#allocation30_spill] sm:$0xff] %v8430_v56  ;;  %vm11349_vm14 = vcmask 786112   ;;  %vm11350_vm15 = vcmask 851712   ;;  %vm11347_vm0 = vcmask 917312   ;;  %vm6796_vm1 = vcmask 1048512  }
  0x55   : > { %1980 = vmatpush.bf16.msra.mxu0 %v7545_v4  ;;  %7638 = vmatpush.bf16.msra.mxu2 %v7545_v4  ;;  %v563_v13 = vpack.i.b16 %v554_v9, %v554_v9  ;;  %v558_v14 = vperm.slane %v7469_v10, 0  ;;  %11383 = vst [vmem:[#allocation31_spill] sm:$0xff] %v8432_v59 }
  0x57   : > { %v565_v17 = vperm.slane %v563_v13, 0  ;;  %v579_v18 = vpack.i.b16 %v558_v14, %v558_v14 }
  0x59   : > { %1981 = vmatpush.bf16.msra.mxu0 %v7544_v11  ;;  %7639 = vmatpush.bf16.msra.mxu2 %v7544_v11  ;;  %v8406_v20 = vunpack.c.l.bf16 %v565_v17  ;;  %v581_v21 = vperm.slane %v579_v18, 0  ;;  %v7623_v11 = vld [vmem:[#allocation6 + $0x18] sm:$0xff]  }
  0x5a   : > { %v8442_v12 = vunpack.c.l.bf16 %v7623_v11  ;;  %v8444_v17 = vunpack.c.h.bf16 %v7623_v11 }
  0x5b   : > { %v634_v22 = vmul.f32 %v8402_v15, %v8406_v20  ;;  %v635_v23 = vmul.f32 %v8404_v16, %v8406_v20  ;;  %v8412_v24 = vunpack.c.l.bf16 %v581_v21  ;;  %v636_v43 = vmul.f32 %v8418_v39, %v8406_v20 }
  0x5c   : > { %v637_v44 = vmul.f32 %v8420_v42, %v8406_v20  ;;  %v638_v60 = vmul.f32 %v8430_v56, %v8406_v20  ;;  %v639_v61 = vmul.f32 %v8432_v59, %v8406_v20  ;;  %v640_v18 = vmul.f32 %v8442_v12, %v8406_v20 }
  0x5d   : > { %1982 = vmatpush.bf16.msra.mxu0 %v7543_v19  ;;  %7640 = vmatpush.bf16.msra.mxu2 %v7543_v19  ;;  %v762_v26 = vmul.f32 %v8402_v15, %v8412_v24  ;;  %v763_v27 = vmul.f32 %v8404_v16, %v8412_v24  ;;  %v890_v28 = vpack.c.bf16 %v634_v22, %v634_v22 }
  0x5e   : > { %v891_v29 = vpack.c.bf16 %v635_v23, %v635_v23  ;;  %v764_v45 = vmul.f32 %v8418_v39, %v8412_v24  ;;  %v765_v46 = vmul.f32 %v8420_v42, %v8412_v24  ;;  %v892_v47 = vpack.c.bf16 %v636_v43, %v636_v43 }
  0x5f   : > { %v1018_v30 = vpack.c.bf16 %v762_v26, %v762_v26  ;;  %v1019_v31 = vpack.c.bf16 %v763_v27, %v763_v27  ;;  %v1418_v33 = vunpack.c.l.b16 %v890_v28  ;;  %v893_v48 = vpack.c.bf16 %v637_v44, %v637_v44 }
  0x60   : > { %v1419_v34 = vunpack.c.l.b16 %v891_v29  ;;  %v1020_v49 = vpack.c.bf16 %v764_v45, %v764_v45  ;;  %v1021_v50 = vpack.c.bf16 %v765_v46, %v765_v46  ;;  %v1420_v51 = vunpack.c.l.b16 %v892_v47 }
  0x61   : > { %1983 = vmatpush.bf16.msra.mxu0 %v7542_v25  ;;  %7641 = vmatpush.bf16.msra.mxu2 %v7542_v25  ;;  %v1546_v35 = vunpack.c.l.b16 %v1018_v30  ;;  %v1547_v36 = vunpack.c.l.b16 %v1019_v31  ;;  %v1421_v52 = vunpack.c.l.b16 %v893_v48  ;;  %v766_v62 = vmul.f32 %v8430_v56, %v8412_v24 }
  0x62   : > { %v1674_v40 = vpack.c.b16 %v1419_v34, %v1418_v33  ;;  %v1548_v53 = vunpack.c.l.b16 %v1020_v49  ;;  %v1549_v54 = vunpack.c.l.b16 %v1021_v50  ;;  %v767_v63 = vmul.f32 %v8432_v59, %v8412_v24 }
  0x63   : > { %v1738_v41 = vpack.c.b16 %v1547_v36, %v1546_v35  ;;  %v1675_v57 = vpack.c.b16 %v1421_v52, %v1420_v51  ;;  %v894_v0 = vpack.c.bf16 %v638_v60, %v638_v60  ;;  %v895_v1 = vpack.c.bf16 %v639_v61, %v639_v61  ;;  %v7625_v51 = vld [vmem:[#allocation6 + $0x28] sm:$0xff]  }
  0x64   : > { %v1739_v58 = vpack.c.b16 %v1549_v54, %v1548_v53  ;;  %v1022_v2 = vpack.c.bf16 %v766_v62, %v766_v62  ;;  %v1023_v4 = vpack.c.bf16 %v767_v63, %v767_v63  ;;  %v641_v19 = vmul.f32 %v8444_v17, %v8406_v20 }
  0x65   : > { %1984 = vmatpush.bf16.msra.mxu0 %v7541_v32  ;;  %7642 = vmatpush.bf16.msra.mxu2 %v7541_v32  ;;  %v1422_v6 = vunpack.c.l.b16 %v894_v0  ;;  %v1423_v7 = vunpack.c.l.b16 %v895_v1  ;;  %v768_v21 = vmul.f32 %v8442_v12, %v8412_v24  ;;  %v769_v22 = vmul.f32 %v8444_v17, %v8412_v24  ;;  %v7624_v32 = vld [vmem:[#allocation6 + $0x20] sm:$0xff]  }
  0x66   : > { %v1550_v9 = vunpack.c.l.b16 %v1022_v2  ;;  %v1551_v10 = vunpack.c.l.b16 %v1023_v4  ;;  %v896_v23 = vpack.c.bf16 %v640_v18, %v640_v18  ;;  %v897_v25 = vpack.c.bf16 %v641_v19, %v641_v19 }
  0x67   : > { %v1676_v13 = vpack.c.b16 %v1423_v7, %v1422_v6  ;;  %v1024_v26 = vpack.c.bf16 %v768_v21, %v768_v21  ;;  %v1025_v27 = vpack.c.bf16 %v769_v22, %v769_v22  ;;  %v8454_v33 = vunpack.c.l.bf16 %v7624_v32 }
  0x68   : > { %v1740_v14 = vpack.c.b16 %v1551_v10, %v1550_v9  ;;  %v1424_v28 = vunpack.c.l.b16 %v896_v23  ;;  %v1425_v29 = vunpack.c.l.b16 %v897_v25  ;;  %v8456_v36 = vunpack.c.h.bf16 %v7624_v32  ;;  %v7626_v9 = vld [vmem:[#allocation6 + $0x30] sm:$0xff]   ;;  %v7555_v23 = vld [vmem:[#allocation12 + $0x38] sm:$0xff]  ;;  %v7554_v25 = vld [vmem:[#allocation12 + $0x30] sm:$0xff] }
  0x69   : > { %1985 = vmatpush.bf16.msra.mxu0 %v7540_v38  ;;  %7643 = vmatpush.bf16.msra.mxu2 %v7540_v38  ;;  %v1552_v30 = vunpack.c.l.b16 %v1024_v26  ;;  %v1553_v31 = vunpack.c.l.b16 %v1025_v27  ;;  %v642_v37 = vmul.f32 %v8454_v33, %v8406_v20  ;;  %v8466_v52 = vunpack.c.l.bf16 %v7625_v51 }
  0x6a   : > { %v1677_v34 = vpack.c.b16 %v1425_v29, %v1424_v28  ;;  %11384 = vst [vmem:[#allocation32_spill] sm:$0xff] %v8456_v36  ;;  %v643_v38 = vmul.f32 %v8456_v36, %v8406_v20  ;;  %v8468_v55 = vunpack.c.h.bf16 %v7625_v51  ;;  %v8478_v10 = vunpack.c.l.bf16 %v7626_v9  ;;  %4544 = vmatpush.bf16.msra.mxu1 %v7555_v23  ;;  %7644 = vmatpush.bf16.msra.mxu3 %v7555_v23 }
  0x6b   : > { %v1741_v35 = vpack.c.b16 %v1553_v31, %v1552_v30  ;;  %v898_v43 = vpack.c.bf16 %v642_v37, %v642_v37  ;;  %v772_v60 = vmul.f32 %v8466_v52, %v8412_v24  ;;  %v7553_v30 = vld [vmem:[#allocation12 + $0x28] sm:$0xff] }
  0x6c   : > { %1986 = vmatmul.bf16.vlgmr.msra.gmra.mxu0 %v1674_v40  ;;  %2306 = vmatmul.bf16.vlgmr.msra.gmra.mxu2 %v1738_v41  ;;  %v770_v40 = vmul.f32 %v8454_v33, %v8412_v24  ;;  %v771_v41 = vmul.f32 %v8456_v36, %v8412_v24  ;;  %v899_v44 = vpack.c.bf16 %v643_v38, %v643_v38  ;;  %v7627_v37 = vld [vmem:[#allocation6 + $0x38] sm:$0xff]  }
  0x6d   : > { %v1426_v47 = vunpack.c.l.b16 %v898_v43  ;;  %v773_v61 = vmul.f32 %v8468_v55, %v8412_v24  ;;  %v1028_v0 = vpack.c.bf16 %v772_v60, %v772_v60  ;;  %v646_v18 = vmul.f32 %v8478_v10, %v8406_v20 }
  0x6e   : > { %v1026_v45 = vpack.c.bf16 %v770_v40, %v770_v40  ;;  %v1027_v46 = vpack.c.bf16 %v771_v41, %v771_v41  ;;  %v1427_v48 = vunpack.c.l.b16 %v899_v44  ;;  %v774_v21 = vmul.f32 %v8478_v10, %v8412_v24  ;;  %4545 = vmatpush.bf16.msra.mxu1 %v7554_v25  ;;  %7645 = vmatpush.bf16.msra.mxu3 %v7554_v25  ;;  %v7552_v44 = vld [vmem:[#allocation12 + $0x20] sm:$0xff]  ;;  %v2627_v25 = vld [vmem:[%s8374_s5] sm:$0xff] }
  0x6f   : > { %v1029_v1 = vpack.c.bf16 %v773_v61, %v773_v61  ;;  %v1556_v6 = vunpack.c.l.b16 %v1028_v0  ;;  %v902_v26 = vpack.c.bf16 %v646_v18, %v646_v18  ;;  %v8490_v38 = vunpack.c.l.bf16 %v7627_v37  ;;  %v7549_v0 = vld [vmem:[#allocation12 + $0x8] sm:$0xff] }
  0x70   : > { %v1554_v49 = vunpack.c.l.b16 %v1026_v45  ;;  %v1555_v50 = vunpack.c.l.b16 %v1027_v46  ;;  %v1678_v53 = vpack.c.b16 %v1427_v48, %v1426_v47  ;;  %v1030_v28 = vpack.c.bf16 %v774_v21, %v774_v21 }
  0x71   : > { %v1557_v7 = vunpack.c.l.b16 %v1029_v1  ;;  %v1430_v31 = vunpack.c.l.b16 %v902_v26  ;;  %v8492_v43 = vunpack.c.h.bf16 %v7627_v37  ;;  %v648_v45 = vmul.f32 %v8490_v38, %v8406_v20 }
  0x72   : > { %v1742_v54 = vpack.c.b16 %v1555_v50, %v1554_v49  ;;  %4546 = vmatpush.bf16.msra.mxu1 %v7553_v30  ;;  %7646 = vmatpush.bf16.msra.mxu3 %v7553_v30  ;;  %v776_v47 = vmul.f32 %v8490_v38, %v8412_v24  ;;  %v7551_v49 = vld [vmem:[#allocation12 + $0x18] sm:$0xff] }
  0x73   : > { %v649_v46 = vmul.f32 %v8492_v43, %v8406_v20  ;;  %v777_v48 = vmul.f32 %v8492_v43, %v8412_v24  ;;  %v904_v50 = vpack.c.bf16 %v648_v45, %v648_v45  ;;  %v7629_v30 = vld [vmem:[#allocation6 + $0x48] sm:$0xff]   ;;  %v2908_v45 = vld [vmem:[#allocation9] sm:$0xff] }
  0x75   : > { %v905_v51 = vpack.c.bf16 %v649_v46, %v649_v46 }
  0x76   : > { %4547 = vmatpush.bf16.msra.mxu1 %v7552_v44  ;;  %7647 = vmatpush.bf16.msra.mxu3 %v7552_v44 }
  0x77   : > { %v1433_v60 = vunpack.c.l.b16 %v905_v51 }
  0x7a   : > { %4548 = vmatpush.bf16.msra.mxu1 %v7551_v49  ;;  %7648 = vmatpush.bf16.msra.mxu3 %v7551_v49 }
  0x7c   : > { %1991 = vmatmul.bf16.gmra.mxu0 %v1675_v57  ;;  %2311 = vmatmul.bf16.gmra.mxu2 %v1739_v58  ;;  %v644_v57 = vmul.f32 %v8466_v52, %v8406_v20  ;;  %v645_v58 = vmul.f32 %v8468_v55, %v8406_v20 }
  0x7e   : > { %v900_v62 = vpack.c.bf16 %v644_v57, %v644_v57  ;;  %v901_v63 = vpack.c.bf16 %v645_v58, %v645_v58  ;;  %v7550_v57 = vld [vmem:[#allocation12 + $0x10] sm:$0xff]  ;;  %v1432_v58 = vunpack.c.l.b16 %v904_v50 }
  0x7f   : > { %4549 = vmatpush.bf16.msra.mxu1 %v7550_v57  ;;  %7649 = vmatpush.bf16.msra.mxu3 %v7550_v57 }
  0x80   : > { %v1428_v2 = vunpack.c.l.b16 %v900_v62  ;;  %v1429_v4 = vunpack.c.l.b16 %v901_v63  ;;  %v7628_v63 = vld [vmem:[#allocation6 + $0x40] sm:$0xff]  }
  0x81   : > { %v8502_v1 = vunpack.c.l.bf16 %v7628_v63 }
  0x82   : > { %v1679_v11 = vpack.c.b16 %v1429_v4, %v1428_v2  ;;  %v1681_v2 = vpack.c.b16 %v1433_v60, %v1432_v58 }
  0x83   : > { %4550 = vmatpush.bf16.msra.mxu1 %v7549_v0  ;;  %7650 = vmatpush.bf16.msra.mxu3 %v7549_v0 }
  0x8c   : > { %1996 = vmatmul.bf16.gmra.mxu0 %v1676_v13  ;;  %2316 = vmatmul.bf16.gmra.mxu2 %v1740_v14  ;;  %v1743_v13 = vpack.c.b16 %v1557_v7, %v1556_v6  ;;  %v8480_v14 = vunpack.c.h.bf16 %v7626_v9  ;;  %v8504_v6 = vunpack.c.h.bf16 %v7628_v63  ;;  %v7548_v7 = vld [vmem:[#allocation12] sm:$0xff]  ;;  %v650_v9 = vmul.f32 %v8502_v1, %v8406_v20  ;;  %v2909_v63 = vld [vmem:[#allocation9 + $0x8] sm:$0xff] }
  0x8d   : > { %4551 = vmatpush.bf16.msra.mxu1 %v7548_v7  ;;  %7651 = vmatpush.bf16.msra.mxu3 %v7548_v7 }
  0x8e   : > { %v647_v19 = vmul.f32 %v8480_v14, %v8406_v20  ;;  %v775_v22 = vmul.f32 %v8480_v14, %v8412_v24  ;;  %v779_v18 = vmul.f32 %v8504_v6, %v8412_v24 }
  0x90   : > { %v903_v27 = vpack.c.bf16 %v647_v19, %v647_v19  ;;  %v1031_v29 = vpack.c.bf16 %v775_v22, %v775_v22  ;;  %v906_v19 = vpack.c.bf16 %v650_v9, %v650_v9  ;;  %v1035_v23 = vpack.c.bf16 %v779_v18, %v779_v18 }
  0x92   : > { %v1431_v32 = vunpack.c.l.b16 %v903_v27  ;;  %v1434_v26 = vunpack.c.l.b16 %v906_v19  ;;  %v7630_v19 = vld [vmem:[#allocation6 + $0x50] sm:$0xff]  }
  0x94   : > { %v1680_v40 = vpack.c.b16 %v1431_v32, %v1430_v31  ;;  %v8515_v31 = vperm.slane %v2627_v25, 0  ;;  %v8517_v32 = vunpack.c.l.bf16 %v7629_v30 }
  0x96   : > { %v652_v46 = vmul.f32 %v8517_v32, %v8406_v20  ;;  %v780_v49 = vmul.f32 %v8517_v32, %v8412_v24 }
  0x98   : > { %v1036_v60 = vpack.c.bf16 %v780_v49, %v780_v49 }
  0x9c   : > { %2001 = vmatmul.bf16.gmra.mxu0 %v1677_v34  ;;  %2321 = vmatmul.bf16.gmra.mxu2 %v1741_v35  ;;  %v1558_v34 = vunpack.c.l.b16 %v1030_v28  ;;  %v1559_v35 = vunpack.c.l.b16 %v1031_v29  ;;  %v1563_v29 = vunpack.c.l.b16 %v1035_v23 }
  0x9e   : > { %v1744_v41 = vpack.c.b16 %v1559_v35, %v1558_v34  ;;  %v8519_v34 = vunpack.c.h.bf16 %v7629_v30 }
  0xa0   : > { %v781_v50 = vmul.f32 %v8519_v34, %v8412_v24 }
  0xac   : > { %2006 = vmatmul.bf16.gmra.mxu0 %v1678_v53  ;;  %2326 = vmatmul.bf16.gmra.mxu2 %v1742_v54  ;;  %v1032_v53 = vpack.c.bf16 %v776_v47, %v776_v47  ;;  %v1033_v54 = vpack.c.bf16 %v777_v48, %v777_v48  ;;  %v653_v47 = vmul.f32 %v8519_v34, %v8406_v20 }
  0xae   : > { %v1560_v61 = vunpack.c.l.b16 %v1032_v53  ;;  %v1561_v62 = vunpack.c.l.b16 %v1033_v54  ;;  %v908_v54 = vpack.c.bf16 %v652_v46, %v652_v46  ;;  %v909_v57 = vpack.c.bf16 %v653_v47, %v653_v47  ;;  %v2910_v46 = vld [vmem:[#allocation9 + $0x10] sm:$0xff] }
  0xb0   : > { %v1745_v4 = vpack.c.b16 %v1561_v62, %v1560_v61  ;;  %v1037_v61 = vpack.c.bf16 %v781_v50, %v781_v50  ;;  %v1437_v7 = vunpack.c.l.b16 %v909_v57 }
  0xb2   : > { %v1565_v18 = vunpack.c.l.b16 %v1037_v61 }
  0xbc   : > { %2011 = vmatmul.bf16.gmra.mxu0 %v1679_v11  ;;  %2331 = vmatmul.bf16.gmra.mxu2 %v1743_v13  ;;  %v651_v11 = vmul.f32 %v8504_v6, %v8406_v20  ;;  %v778_v13 = vmul.f32 %v8502_v1, %v8412_v24 }
  0xbe   : > { %v907_v21 = vpack.c.bf16 %v651_v11, %v651_v11  ;;  %v1034_v22 = vpack.c.bf16 %v778_v13, %v778_v13  ;;  %v1564_v13 = vunpack.c.l.b16 %v1036_v60 }
  0xc0   : > { %v1435_v27 = vunpack.c.l.b16 %v907_v21  ;;  %v1562_v28 = vunpack.c.l.b16 %v1034_v22  ;;  %v1747_v30 = vpack.c.b16 %v1565_v18, %v1564_v13  ;;  %v2911_v13 = vld [vmem:[#allocation9 + $0x18] sm:$0xff] }
  0xc2   : > { %v1682_v35 = vpack.c.b16 %v1435_v27, %v1434_v26  ;;  %v1746_v37 = vpack.c.b16 %v1563_v29, %v1562_v28  ;;  %v8534_v26 = vunpack.c.l.bf16 %v7630_v19  ;;  %v8536_v27 = vunpack.c.h.bf16 %v7630_v19 }
  0xc4   : > { %v654_v47 = vmul.f32 %v8534_v26, %v8406_v20  ;;  %v655_v49 = vmul.f32 %v8536_v27, %v8406_v20  ;;  %v782_v50 = vmul.f32 %v8534_v26, %v8412_v24  ;;  %v783_v57 = vmul.f32 %v8536_v27, %v8412_v24 }
  0xcc   : > { %2016 = vmatmul.bf16.gmra.mxu0 %v1680_v40  ;;  %2336 = vmatmul.bf16.gmra.mxu2 %v1744_v41  ;;  %v2632_v40 = vrot.slane %v2627_v25, 4 }
  0xce   : > { %v8526_v48 = vperm.slane %v2632_v40, 0 }
  0xdc   : > { %2021 = vmatmul.bf16.gmra.mxu0 %v1681_v2  ;;  %2341 = vmatmul.bf16.gmra.mxu2 %v1745_v4  ;;  %v1436_v4 = vunpack.c.l.b16 %v908_v54 }
  0xde   : > { %v1683_v25 = vpack.c.b16 %v1437_v7, %v1436_v4 }
  0xe9   : > { %v1987_v41 = vpop.f32.mrf.mxu0 }
  0xea   : > { %v2652_v44 = vadd.f32 %v8515_v31, %v1987_v41 }
  0xec   : > { %2026 = vmatmul.bf16.gmra.mxu0 %v1682_v35  ;;  %2346 = vmatmul.bf16.gmra.mxu2 %v1746_v37  ;;  %v2940_v51 = vadd.f32 %v2908_v45, %v2652_v44 }
  0xee   : > { %v3196_v0 = vmax.f32 %v2940_v51, 0.0 }
  0xef   : > { %v2307_v53 = vpop.f32.mrf.mxu2 }
  0xf0   : > { %v2780_v58 = vadd.f32 %v8526_v48, %v2307_v53  ;;  %v3452_v21 = vpack.c.bf16 %v3196_v0, %v3196_v0  ;;  %v1038_v0 = vpack.c.bf16 %v782_v50, %v782_v50 }
  0xf1   : > { %v1989_v62 = vpop.f32.mrf.mxu0 }
  0xf2   : > { %v2653_v2 = vadd.f32 %v8515_v31, %v1989_v62  ;;  %v3068_v9 = vadd.f32 %v2908_v45, %v2780_v58  ;;  %v3984_v44 = vunpack.c.l.b16 %v3452_v21  ;;  %v910_v62 = vpack.c.bf16 %v654_v47, %v654_v47 }
  0xf4   : > { %v2941_v11 = vadd.f32 %v2909_v63, %v2653_v2  ;;  %v3324_v28 = vmax.f32 %v3068_v9, 0.0  ;;  %v1039_v9 = vpack.c.bf16 %v783_v57, %v783_v57 }
  0xf6   : > { %v3197_v22 = vmax.f32 %v2941_v11, 0.0  ;;  %v3580_v51 = vpack.c.bf16 %v3324_v28, %v3324_v28 }
  0xf7   : > { %v2309_v23 = vpop.f32.mrf.mxu2 }
  0xf8   : > { %v2781_v29 = vadd.f32 %v8526_v48, %v2309_v23  ;;  %v3453_v35 = vpack.c.bf16 %v3197_v22, %v3197_v22  ;;  %v4112_v4 = vunpack.c.l.b16 %v3580_v51  ;;  %v1438_v22 = vunpack.c.l.b16 %v910_v62 }
  0xf9   : > { %v1992_v37 = vpop.f32.mrf.mxu0 }
  0xfa   : > { %v3069_v40 = vadd.f32 %v2909_v63, %v2781_v29  ;;  %v2654_v41 = vadd.f32 %v8515_v31, %v1992_v37  ;;  %v3985_v45 = vunpack.c.l.b16 %v3453_v35  ;;  %v911_v63 = vpack.c.bf16 %v655_v49, %v655_v49  ;;  %v7631_v35 = vld [vmem:[#allocation6 + $0x58] sm:$0xff]  }
  0xfb   : > { %v1566_v29 = vunpack.c.l.b16 %v1038_v0  ;;  %v8552_v47 = vunpack.c.h.bf16 %v7631_v35 }
  0xfc   : > { %v3325_v53 = vmax.f32 %v3069_v40, 0.0  ;;  %2031 = vmatmul.bf16.gmra.mxu0 %v1683_v25  ;;  %2351 = vmatmul.bf16.gmra.mxu2 %v1747_v30  ;;  %v4240_v54 = vpack.c.b16 %v3985_v45, %v3984_v44  ;;  %v2942_v58 = vadd.f32 %v2910_v46, %v2654_v41  ;;  %v1439_v23 = vunpack.c.l.b16 %v911_v63 }
  0xfd   : > { %v1567_v30 = vunpack.c.l.b16 %v1039_v9  ;;  %v8550_v45 = vunpack.c.l.bf16 %v7631_v35  ;;  %v657_v63 = vmul.f32 %v8552_v47, %v8406_v20  ;;  %v785_v9 = vmul.f32 %v8552_v47, %v8412_v24  ;;  %v2913_v35 = vld [vmem:[#allocation9 + $0x28] sm:$0xff] }
  0xfe   : > { %4552 = vmatmul.bf16.vlgmr.msra.gmra.mxu1 %v4240_v54  ;;  %v3581_v60 = vpack.c.bf16 %v3325_v53, %v3325_v53  ;;  %v3198_v18 = vmax.f32 %v2942_v58, 0.0  ;;  %v1684_v44 = vpack.c.b16 %v1439_v23, %v1438_v22 }
  0xff   : > { %v2312_v61 = vpop.f32.mrf.mxu2  ;;  %v1748_v51 = vpack.c.b16 %v1567_v30, %v1566_v29  ;;  %v656_v62 = vmul.f32 %v8550_v45, %v8406_v20  ;;  %v784_v0 = vmul.f32 %v8550_v45, %v8412_v24  ;;  %v1041_v29 = vpack.c.bf16 %v785_v9, %v785_v9 }
 0x100   : > { %v2782_v2 = vadd.f32 %v8526_v48, %v2312_v61  ;;  %v4113_v7 = vunpack.c.l.b16 %v3581_v60  ;;  %v3454_v37 = vpack.c.bf16 %v3198_v18, %v3198_v18  ;;  %v2912_v61 = vld [vmem:[#allocation9 + $0x20] sm:$0xff] }
 0x101   : > { %v1994_v11 = vpop.f32.mrf.mxu0  ;;  %v1040_v22 = vpack.c.bf16 %v784_v0, %v784_v0 }
 0x102   : > { %v2655_v19 = vadd.f32 %v8515_v31, %v1994_v11  ;;  %v4304_v21 = vpack.c.b16 %v4113_v7, %v4112_v4  ;;  %v3070_v25 = vadd.f32 %v2910_v46, %v2782_v2  ;;  %v3986_v58 = vunpack.c.l.b16 %v3454_v37 }
 0x104   : > { %v2943_v28 = vadd.f32 %v2911_v13, %v2655_v19  ;;  %4872 = vmatmul.bf16.vlgmr.msra.gmra.mxu3 %v4304_v21  ;;  %v3326_v49 = vmax.f32 %v3070_v25, 0.0  ;;  %v912_v19 = vpack.c.bf16 %v656_v62, %v656_v62  ;;  %v913_v21 = vpack.c.bf16 %v657_v63, %v657_v63 }
 0x106   : > { %v3199_v40 = vmax.f32 %v2943_v28, 0.0  ;;  %v3582_v2 = vpack.c.bf16 %v3326_v49, %v3326_v49  ;;  %v1441_v49 = vunpack.c.l.b16 %v913_v21  ;;  %v2914_v21 = vld [vmem:[#allocation9 + $0x30] sm:$0xff] }
 0x107   : > { %v2314_v41 = vpop.f32.mrf.mxu2 }
 0x108   : > { %v2783_v50 = vadd.f32 %v8526_v48, %v2314_v41  ;;  %v3455_v53 = vpack.c.bf16 %v3199_v40, %v3199_v40  ;;  %v4114_v25 = vunpack.c.l.b16 %v3582_v2 }
 0x109   : > { %v1997_v54 = vpop.f32.mrf.mxu0 }
 0x10a   : > { %v3071_v46 = vadd.f32 %v2911_v13, %v2783_v50  ;;  %v2656_v57 = vadd.f32 %v8515_v31, %v1997_v54  ;;  %v3987_v60 = vunpack.c.l.b16 %v3455_v53  ;;  %v1568_v53 = vunpack.c.l.b16 %v1040_v22 }
 0x10b   : > { %v1569_v54 = vunpack.c.l.b16 %v1041_v29 }
 0x10c   : > { %v3327_v4 = vmax.f32 %v3071_v46, 0.0  ;;  %2036 = vmatmul.bf16.gmra.mxu0 %v1684_v44  ;;  %2356 = vmatmul.bf16.gmra.mxu2 %v1748_v51  ;;  %v4241_v7 = vpack.c.b16 %v3987_v60, %v3986_v58  ;;  %v2944_v11 = vadd.f32 %v2912_v61, %v2656_v57  ;;  %v1440_v44 = vunpack.c.l.b16 %v912_v19  ;;  %v7632_v46 = vld [vmem:[#allocation6 + $0x60] sm:$0xff]  }
 0x10d   : > { %v8566_v63 = vunpack.c.l.bf16 %v7632_v46  ;;  %v8568_v0 = vunpack.c.h.bf16 %v7632_v46 }
 0x10e   : > { %4557 = vmatmul.bf16.gmra.mxu1 %v4241_v7  ;;  %v3583_v13 = vpack.c.bf16 %v3327_v4, %v3327_v4  ;;  %v3200_v37 = vmax.f32 %v2944_v11, 0.0  ;;  %v1685_v62 = vpack.c.b16 %v1441_v49, %v1440_v44  ;;  %v1749_v7 = vpack.c.b16 %v1569_v54, %v1568_v53 }
 0x10f   : > { %v2317_v18 = vpop.f32.mrf.mxu2  ;;  %v658_v22 = vmul.f32 %v8566_v63, %v8406_v20 }
 0x110   : > { %v2784_v23 = vadd.f32 %v8526_v48, %v2317_v18  ;;  %v4115_v28 = vunpack.c.l.b16 %v3583_v13  ;;  %v3456_v57 = vpack.c.bf16 %v3200_v37, %v3200_v37 }
 0x111   : > { %v1999_v30 = vpop.f32.mrf.mxu0  ;;  %v914_v44 = vpack.c.bf16 %v658_v22, %v658_v22 }
 0x112   : > { %v2657_v40 = vadd.f32 %v8515_v31, %v1999_v30  ;;  %v4305_v41 = vpack.c.b16 %v4115_v28, %v4114_v25  ;;  %v3072_v50 = vadd.f32 %v2912_v61, %v2784_v23  ;;  %v3988_v18 = vunpack.c.l.b16 %v3456_v57 }
 0x113   : > { %v659_v23 = vmul.f32 %v8568_v0, %v8406_v20  ;;  %v786_v25 = vmul.f32 %v8566_v63, %v8412_v24 }
 0x114   : > { %v2945_v51 = vadd.f32 %v2913_v35, %v2657_v40  ;;  %4877 = vmatmul.bf16.gmra.mxu3 %v4305_v41  ;;  %v3328_v2 = vmax.f32 %v3072_v50, 0.0 }
 0x115   : > { %v915_v49 = vpack.c.bf16 %v659_v23, %v659_v23  ;;  %v1042_v50 = vpack.c.bf16 %v786_v25, %v786_v25 }
 0x116   : > { %v3201_v58 = vmax.f32 %v2945_v51, 0.0  ;;  %v3584_v28 = vpack.c.bf16 %v3328_v2, %v3328_v2 }
 0x117   : > { %v2319_v60 = vpop.f32.mrf.mxu2 }
 0x118   : > { %v2785_v4 = vadd.f32 %v8526_v48, %v2319_v60  ;;  %v3457_v9 = vpack.c.bf16 %v3201_v58, %v3201_v58  ;;  %v4116_v53 = vunpack.c.l.b16 %v3584_v28  ;;  %v2915_v58 = vld [vmem:[#allocation9 + $0x38] sm:$0xff] }
 0x119   : > { %v2002_v11 = vpop.f32.mrf.mxu0 }
 0x11a   : > { %v3073_v61 = vadd.f32 %v2913_v35, %v2785_v4  ;;  %v2658_v13 = vadd.f32 %v8515_v31, %v2002_v11  ;;  %v3989_v19 = vunpack.c.l.b16 %v3457_v9  ;;  %v787_v35 = vmul.f32 %v8568_v0, %v8412_v24 }
 0x11b   : > { %v1442_v4 = vunpack.c.l.b16 %v914_v44 }
 0x11c   : > { %v3329_v29 = vmax.f32 %v3073_v61, 0.0  ;;  %2041 = vmatmul.bf16.gmra.mxu0 %v1685_v62  ;;  %2361 = vmatmul.bf16.gmra.mxu2 %v1749_v7  ;;  %v4242_v30 = vpack.c.b16 %v3989_v19, %v3988_v18  ;;  %v2946_v37 = vadd.f32 %v2914_v21, %v2658_v13  ;;  %v1043_v46 = vpack.c.bf16 %v787_v35, %v787_v35  ;;  %v7633_v18 = vld [vmem:[#allocation6 + $0x68] sm:$0xff]  }
 0x11d   : > { %v1443_v7 = vunpack.c.l.b16 %v915_v49  ;;  %v1570_v61 = vunpack.c.l.b16 %v1042_v50  ;;  %v8582_v28 = vunpack.c.l.bf16 %v7633_v18 }
 0x11e   : > { %4562 = vmatmul.bf16.gmra.mxu1 %v4242_v30  ;;  %v3585_v40 = vpack.c.bf16 %v3329_v29, %v3329_v29  ;;  %v3202_v60 = vmax.f32 %v2946_v37, 0.0  ;;  %v1571_v13 = vunpack.c.l.b16 %v1043_v46  ;;  %v8584_v29 = vunpack.c.h.bf16 %v7633_v18 }
 0x11f   : > { %v2322_v41 = vpop.f32.mrf.mxu2  ;;  %v1686_v25 = vpack.c.b16 %v1443_v7, %v1442_v4  ;;  %11385 = vst [vmem:[#allocation33_spill] sm:$0xff] %v8582_v28  ;;  %v788_v46 = vmul.f32 %v8582_v28, %v8412_v24 }
 0x120   : > { %v2786_v51 = vadd.f32 %v8526_v48, %v2322_v41  ;;  %v4117_v54 = vunpack.c.l.b16 %v3585_v40  ;;  %v3458_v19 = vpack.c.bf16 %v3202_v60, %v3202_v60  ;;  %11386 = vst [vmem:[#allocation34_spill] sm:$0xff] %v8584_v29  ;;  %v1750_v37 = vpack.c.b16 %v1571_v13, %v1570_v61 }
 0x121   : > { %v2004_v57 = vpop.f32.mrf.mxu0  ;;  %v1044_v61 = vpack.c.bf16 %v788_v46, %v788_v46 }
 0x122   : > { %v2659_v62 = vadd.f32 %v8515_v31, %v2004_v57  ;;  %v4306_v2 = vpack.c.b16 %v4117_v54, %v4116_v53  ;;  %v3074_v9 = vadd.f32 %v2914_v21, %v2786_v51  ;;  %v3990_v49 = vunpack.c.l.b16 %v3458_v19  ;;  %v2916_v51 = vld [vmem:[#allocation9 + $0x40] sm:$0xff] }
 0x123   : > { %v660_v53 = vmul.f32 %v8582_v28, %v8406_v20  ;;  %v661_v54 = vmul.f32 %v8584_v29, %v8406_v20 }
 0x124   : > { %v2947_v11 = vadd.f32 %v2915_v58, %v2659_v62  ;;  %4882 = vmatmul.bf16.gmra.mxu3 %v4306_v2  ;;  %v3330_v30 = vmax.f32 %v3074_v9, 0.0 }
 0x125   : > { %v916_v9 = vpack.c.bf16 %v660_v53, %v660_v53  ;;  %v7634_v53 = vld [vmem:[#allocation6 + $0x70] sm:$0xff]  }
 0x126   : > { %v3203_v22 = vmax.f32 %v2947_v11, 0.0  ;;  %v3586_v57 = vpack.c.bf16 %v3330_v30, %v3330_v30  ;;  %v917_v11 = vpack.c.bf16 %v661_v54, %v661_v54  ;;  %v2917_v30 = vld [vmem:[#allocation9 + $0x48] sm:$0xff] }
 0x127   : > { %v2324_v23 = vpop.f32.mrf.mxu2 }
 0x128   : > { %v2787_v35 = vadd.f32 %v8526_v48, %v2324_v23  ;;  %v3459_v40 = vpack.c.bf16 %v3203_v22, %v3203_v22  ;;  %v4118_v18 = vunpack.c.l.b16 %v3586_v57 }
 0x129   : > { %v2007_v41 = vpop.f32.mrf.mxu0 }
 0x12a   : > { %v3075_v21 = vadd.f32 %v2915_v58, %v2787_v35  ;;  %v2660_v44 = vadd.f32 %v8515_v31, %v2007_v41  ;;  %v3991_v50 = vunpack.c.l.b16 %v3459_v40  ;;  %v789_v58 = vmul.f32 %v8584_v29, %v8412_v24 }
 0x12b   : > { %v1444_v40 = vunpack.c.l.b16 %v916_v9  ;;  %v1445_v41 = vunpack.c.l.b16 %v917_v11 }
 0x12c   : > { %v3331_v60 = vmax.f32 %v3075_v21, 0.0  ;;  %2046 = vmatmul.bf16.gmra.mxu0 %v1686_v25  ;;  %2366 = vmatmul.bf16.gmra.mxu2 %v1750_v37  ;;  %v4243_v62 = vpack.c.b16 %v3991_v50, %v3990_v49  ;;  %v2948_v2 = vadd.f32 %v2916_v51, %v2660_v44  ;;  %v1045_v22 = vpack.c.bf16 %v789_v58, %v789_v58 }
 0x12d   : > { %v1572_v49 = vunpack.c.l.b16 %v1044_v61  ;;  %v1687_v57 = vpack.c.b16 %v1445_v41, %v1444_v40  ;;  %v8600_v58 = vunpack.c.h.bf16 %v7634_v53 }
 0x12e   : > { %4567 = vmatmul.bf16.gmra.mxu1 %v4243_v62  ;;  %v3587_v4 = vpack.c.bf16 %v3331_v60, %v3331_v60  ;;  %v3204_v25 = vmax.f32 %v2948_v2, 0.0  ;;  %v1573_v50 = vunpack.c.l.b16 %v1045_v22  ;;  %v8598_v62 = vunpack.c.l.bf16 %v7634_v53 }
 0x12f   : > { %v2327_v7 = vpop.f32.mrf.mxu2  ;;  %11388 = vst [vmem:[#allocation36_spill] sm:$0xff] %v8600_v58 }
 0x130   : > { %v2788_v13 = vadd.f32 %v8526_v48, %v2327_v7  ;;  %v4119_v19 = vunpack.c.l.b16 %v3587_v4  ;;  %v3460_v54 = vpack.c.bf16 %v3204_v25, %v3204_v25  ;;  %11387 = vst [vmem:[#allocation35_spill] sm:$0xff] %v8598_v62  ;;  %v1751_v7 = vpack.c.b16 %v1573_v50, %v1572_v49 }
 0x131   : > { %v2009_v23 = vpop.f32.mrf.mxu0  ;;  %v662_v22 = vmul.f32 %v8598_v62, %v8406_v20  ;;  %v790_v25 = vmul.f32 %v8598_v62, %v8412_v24 }
 0x132   : > { %v2661_v35 = vadd.f32 %v8515_v31, %v2009_v23  ;;  %v4307_v37 = vpack.c.b16 %v4119_v19, %v4118_v18  ;;  %v3076_v21 = vadd.f32 %v2916_v51, %v2788_v13  ;;  %v3992_v61 = vunpack.c.l.b16 %v3460_v54  ;;  %v2918_v19 = vld [vmem:[#allocation9 + $0x50] sm:$0xff] }
 0x133   : > { %v663_v23 = vmul.f32 %v8600_v58, %v8406_v20  ;;  %v918_v49 = vpack.c.bf16 %v662_v22, %v662_v22  ;;  %v1046_v53 = vpack.c.bf16 %v790_v25, %v790_v25  ;;  %v543_v22 = vunpack.i.h.s16 %v8398_v8 }
 0x134   : > { %v2949_v44 = vadd.f32 %v2917_v30, %v2661_v35  ;;  %4887 = vmatmul.bf16.gmra.mxu3 %v4307_v37  ;;  %v3332_v2 = vmax.f32 %v3076_v21, 0.0 }
 0x135   : > { %v919_v50 = vpack.c.bf16 %v663_v23, %v663_v23 }
 0x136   : > { %v3205_v46 = vmax.f32 %v2949_v44, 0.0  ;;  %v3588_v35 = vpack.c.bf16 %v3332_v2, %v3332_v2 }
 0x137   : > { %v2329_v60 = vpop.f32.mrf.mxu2 }
 0x138   : > { %v2789_v4 = vadd.f32 %v8526_v48, %v2329_v60  ;;  %v3461_v9 = vpack.c.bf16 %v3205_v46, %v3205_v46  ;;  %v4120_v46 = vunpack.c.l.b16 %v3588_v35 }
 0x139   : > { %v2012_v11 = vpop.f32.mrf.mxu0 }
 0x13a   : > { %v3077_v51 = vadd.f32 %v2917_v30, %v2789_v4  ;;  %v2662_v13 = vadd.f32 %v8515_v31, %v2012_v11  ;;  %v3993_v18 = vunpack.c.l.b16 %v3461_v9  ;;  %v791_v30 = vmul.f32 %v8600_v58, %v8412_v24  ;;  %v2919_v9 = vld [vmem:[#allocation9 + $0x58] sm:$0xff] }
 0x13c   : > { %v3333_v37 = vmax.f32 %v3077_v51, 0.0  ;;  %2051 = vmatmul.bf16.gmra.mxu0 %v1687_v57  ;;  %2371 = vmatmul.bf16.gmra.mxu2 %v1751_v7  ;;  %v4244_v40 = vpack.c.b16 %v3993_v18, %v3992_v61  ;;  %v2950_v41 = vadd.f32 %v2918_v19, %v2662_v13  ;;  %v1047_v4 = vpack.c.bf16 %v791_v30, %v791_v30  ;;  %v7635_v51 = vld [vmem:[#allocation6 + $0x78] sm:$0xff]  }
 0x13d   : > { %v539_v13 = vunpack.i.h.s16 %v8392_v5  ;;  %v1446_v61 = vunpack.c.l.b16 %v918_v49  ;;  %v1447_v18 = vunpack.c.l.b16 %v919_v50 }
 0x13e   : > { %4572 = vmatmul.bf16.gmra.mxu1 %v4244_v40  ;;  %v3589_v21 = vpack.c.bf16 %v3333_v37, %v3333_v37  ;;  %v3206_v57 = vmax.f32 %v2950_v41, 0.0  ;;  %v1574_v37 = vunpack.c.l.b16 %v1046_v53  ;;  %v1575_v35 = vunpack.c.l.b16 %v1047_v4 }
 0x13f   : > { %v2332_v44 = vpop.f32.mrf.mxu2  ;;  %v8616_v40 = vunpack.c.l.bf16 %v7635_v51 }
 0x140   : > { %v2790_v54 = vadd.f32 %v8526_v48, %v2332_v44  ;;  %v4121_v60 = vunpack.c.l.b16 %v3589_v21  ;;  %v3462_v30 = vpack.c.bf16 %v3206_v57, %v3206_v57  ;;  %v1688_v44 = vpack.c.b16 %v1447_v18, %v1446_v61 }
 0x141   : > { %v2014_v2 = vpop.f32.mrf.mxu0  ;;  %11389 = vst [vmem:[#allocation37_spill] sm:$0xff] %v8616_v40  ;;  %v1752_v50 = vpack.c.b16 %v1575_v35, %v1574_v37  ;;  %v664_v53 = vmul.f32 %v8616_v40, %v8406_v20 }
 0x142   : > { %v2663_v7 = vadd.f32 %v8515_v31, %v2014_v2  ;;  %v4308_v11 = vpack.c.b16 %v4121_v60, %v4120_v46  ;;  %v3078_v23 = vadd.f32 %v2918_v19, %v2790_v54  ;;  %v8618_v2 = vunpack.c.h.bf16 %v7635_v51 }
 0x143   : > { %v547_v46 = vpack.i.b16 %v539_v13, %v539_v13  ;;  %v551_v60 = vpack.i.b16 %v543_v22, %v543_v22  ;;  %v3994_v57 = vunpack.c.l.b16 %v3462_v30  ;;  %v792_v13 = vmul.f32 %v8616_v40, %v8412_v24 }
 0x144   : > { %v2951_v25 = vadd.f32 %v2919_v9, %v2663_v7  ;;  %4892 = vmatmul.bf16.gmra.mxu3 %v4308_v11  ;;  %11390 = vst [vmem:[#allocation38_spill] sm:$0xff] %v8618_v2  ;;  %v3334_v5 = vmax.f32 %v3078_v23, 0.0  ;;  %v2920_v11 = vld [vmem:[#allocation9 + $0x60] sm:$0xff]  ;;  %v665_v51 = vmul.f32 %v8618_v2, %v8406_v20  ;;  %v920_v30 = vpack.c.bf16 %v664_v53, %v664_v53 }
 0x145   : > { %v555_v61 = vperm.slane %v547_v46, 0  ;;  %v559_v18 = vperm.slane %v551_v60, 0  ;;  %v1048_v20 = vpack.c.bf16 %v792_v13, %v792_v13 }
 0x146   : > { %v3207_v21 = vmax.f32 %v2951_v25, 0.0  ;;  %v3590_v22 = vpack.c.bf16 %v3334_v5, %v3334_v5 }
 0x147   : > { %v2334_v41 = vpop.f32.mrf.mxu2  ;;  %v1576_v13 = vunpack.c.l.b16 %v1048_v20 }
 0x148   : > { %v2791_v49 = vadd.f32 %v8526_v48, %v2334_v41  ;;  %v3463_v8 = vpack.c.bf16 %v3207_v21, %v3207_v21  ;;  %v921_v41 = vpack.c.bf16 %v665_v51, %v665_v51  ;;  %v4122_v60 = vunpack.c.l.b16 %v3590_v22 }
 0x149   : > { %v2017_v19 = vpop.f32.mrf.mxu0 }
 0x14a   : > { %v3079_v54 = vadd.f32 %v2919_v9, %v2791_v49  ;;  %v2664_v4 = vadd.f32 %v8515_v31, %v2017_v19  ;;  %v3995_v7 = vunpack.c.l.b16 %v3463_v8  ;;  %v793_v9 = vmul.f32 %v8618_v2, %v8412_v24 }
 0x14b   : > { %v567_v49 = vpack.i.b16 %v555_v61, %v555_v61  ;;  %v583_v8 = vpack.i.b16 %v559_v18, %v559_v18 }
 0x14c   : > { %v3335_v23 = vmax.f32 %v3079_v54, 0.0  ;;  %2056 = vmatmul.bf16.gmra.mxu0 %v1688_v44  ;;  %2376 = vmatmul.bf16.gmra.mxu2 %v1752_v50  ;;  %v4245_v25 = vpack.c.b16 %v3995_v7, %v3994_v57  ;;  %v2952_v37 = vadd.f32 %v2920_v11, %v2664_v4  ;;  %v1049_v19 = vpack.c.bf16 %v793_v9, %v793_v9  ;;  %v2921_v50 = vld [vmem:[#allocation9 + $0x68] sm:$0xff] }
 0x14d   : > { %v1448_v4 = vunpack.c.l.b16 %v920_v30  ;;  %v1449_v7 = vunpack.c.l.b16 %v921_v41  ;;  %v585_v53 = vperm.slane %v583_v8, 0 }
 0x14e   : > { %4577 = vmatmul.bf16.gmra.mxu1 %v4245_v25  ;;  %v3591_v35 = vpack.c.bf16 %v3335_v23, %v3335_v23  ;;  %v3208_v54 = vmax.f32 %v2952_v37, 0.0  ;;  %v569_v23 = vperm.slane %v567_v49, 0  ;;  %v1577_v61 = vunpack.c.l.b16 %v1049_v19 }
 0x14f   : > { %v2337_v21 = vpop.f32.mrf.mxu2  ;;  %v8634_v3 = vunpack.c.l.bf16 %v585_v53 }
 0x150   : > { %v2792_v46 = vadd.f32 %v8526_v48, %v2337_v21  ;;  %v4123_v5 = vunpack.c.l.b16 %v3591_v35  ;;  %v3464_v18 = vpack.c.bf16 %v3208_v54, %v3208_v54  ;;  %v1689_v35 = vpack.c.b16 %v1449_v7, %v1448_v4 }
 0x151   : > { %v2019_v44 = vpop.f32.mrf.mxu0  ;;  %v8632_v9 = vunpack.c.l.bf16 %v569_v23  ;;  %v1753_v30 = vpack.c.b16 %v1577_v61, %v1576_v13  ;;  %v794_v54 = vmul.f32 %v8402_v15, %v8634_v3 }
 0x152   : > { %v2665_v57 = vadd.f32 %v8515_v31, %v2019_v44  ;;  %v4309_v24 = vpack.c.b16 %v4123_v5, %v4122_v60  ;;  %v3080_v25 = vadd.f32 %v2920_v11, %v2792_v46  ;;  %v3996_v46 = vunpack.c.l.b16 %v3464_v18  ;;  %v2922_v5 = vld [vmem:[#allocation9 + $0x70] sm:$0xff] }
 0x153   : > { %v666_v19 = vmul.f32 %v8402_v15, %v8632_v9  ;;  %v667_v44 = vmul.f32 %v8404_v16, %v8632_v9  ;;  %v1050_v13 = vpack.c.bf16 %v794_v54, %v794_v54 }
 0x154   : > { %v2953_v51 = vadd.f32 %v2921_v50, %v2665_v57  ;;  %4897 = vmatmul.bf16.gmra.mxu3 %v4309_v24  ;;  %v3336_v37 = vmax.f32 %v3080_v25, 0.0 }
 0x155   : > { %v922_v25 = vpack.c.bf16 %v666_v19, %v666_v19 }
 0x156   : > { %v3209_v21 = vmax.f32 %v2953_v51, 0.0  ;;  %v3592_v57 = vpack.c.bf16 %v3336_v37, %v3336_v37  ;;  %v923_v51 = vpack.c.bf16 %v667_v44, %v667_v44 }
 0x157   : > { %v2339_v22 = vpop.f32.mrf.mxu2 }
 0x158   : > { %v2793_v60 = vadd.f32 %v8526_v48, %v2339_v22  ;;  %v3465_v41 = vpack.c.bf16 %v3209_v21, %v3209_v21  ;;  %v4124_v18 = vunpack.c.l.b16 %v3592_v57 }
 0x159   : > { %v2022_v49 = vpop.f32.mrf.mxu0 }
 0x15a   : > { %v3081_v8 = vadd.f32 %v2921_v50, %v2793_v60  ;;  %v2666_v11 = vadd.f32 %v8515_v31, %v2022_v49  ;;  %v3997_v20 = vunpack.c.l.b16 %v3465_v41  ;;  %v795_v50 = vmul.f32 %v8404_v16, %v8634_v3  ;;  %v2923_v60 = vld [vmem:[#allocation9 + $0x78] sm:$0xff] }
 0x15b   : > { %v1450_v49 = vunpack.c.l.b16 %v922_v25 }
 0x15c   : > { %v3337_v24 = vmax.f32 %v3081_v8, 0.0  ;;  %2061 = vmatmul.bf16.gmra.mxu0 %v1689_v35  ;;  %2381 = vmatmul.bf16.gmra.mxu2 %v1753_v30  ;;  %v4246_v4 = vpack.c.b16 %v3997_v20, %v3996_v46  ;;  %v2954_v7 = vadd.f32 %v2922_v5, %v2666_v11  ;;  %v1051_v22 = vpack.c.bf16 %v795_v50, %v795_v50 }
 0x15d   : > { %v1451_v8 = vunpack.c.l.b16 %v923_v51  ;;  %v1578_v20 = vunpack.c.l.b16 %v1050_v13  ;;  %v668_v13 = vmul.f32 %v8418_v39, %v8632_v9 }
 0x15e   : > { %4582 = vmatmul.bf16.gmra.mxu1 %v4246_v4  ;;  %v3593_v23 = vpack.c.bf16 %v3337_v24, %v3337_v24  ;;  %v3210_v35 = vmax.f32 %v2954_v7, 0.0  ;;  %v1579_v19 = vunpack.c.l.b16 %v1051_v22 }
 0x15f   : > { %v2342_v53 = vpop.f32.mrf.mxu2  ;;  %v1690_v4 = vpack.c.b16 %v1451_v8, %v1450_v49  ;;  %v924_v8 = vpack.c.bf16 %v668_v13, %v668_v13 }
 0x160   : > { %v2794_v61 = vadd.f32 %v8526_v48, %v2342_v53  ;;  %v4125_v21 = vunpack.c.l.b16 %v3593_v23  ;;  %v3466_v44 = vpack.c.bf16 %v3210_v35, %v3210_v35  ;;  %v1754_v23 = vpack.c.b16 %v1579_v19, %v1578_v20 }
 0x161   : > { %v2024_v37 = vpop.f32.mrf.mxu0 }
 0x162   : > { %v2667_v30 = vadd.f32 %v8515_v31, %v2024_v37  ;;  %v4310_v41 = vpack.c.b16 %v4125_v21, %v4124_v18  ;;  %v3082_v11 = vadd.f32 %v2922_v5, %v2794_v61  ;;  %v3998_v25 = vunpack.c.l.b16 %v3466_v44  ;;  %v2924_v5 = vld [vmem:[#allocation9 + $0x80] sm:$0xff] }
 0x163   : > { %v669_v61 = vmul.f32 %v8420_v42, %v8632_v9  ;;  %v796_v21 = vmul.f32 %v8418_v39, %v8634_v3 }
 0x164   : > { %v2955_v46 = vadd.f32 %v2923_v60, %v2667_v30  ;;  %4902 = vmatmul.bf16.gmra.mxu3 %v4310_v41  ;;  %v3338_v57 = vmax.f32 %v3082_v11, 0.0 }
 0x165   : > { %v925_v11 = vpack.c.bf16 %v669_v61, %v669_v61 }
 0x166   : > { %v3211_v54 = vmax.f32 %v2955_v46, 0.0  ;;  %v3594_v22 = vpack.c.bf16 %v3338_v57, %v3338_v57  ;;  %v1052_v46 = vpack.c.bf16 %v796_v21, %v796_v21 }
 0x167   : > { %v2344_v24 = vpop.f32.mrf.mxu2 }
 0x168   : > { %v2795_v50 = vadd.f32 %v8526_v48, %v2344_v24  ;;  %v3467_v53 = vpack.c.bf16 %v3211_v54, %v3211_v54  ;;  %v4126_v19 = vunpack.c.l.b16 %v3594_v22  ;;  %v8663_v22 = vld [vmem:[%s11305_s6] ss:$0 sm:$0xff] }
 0x169   : > { %v2027_v7 = vpop.f32.mrf.mxu0 }
 0x16a   : > { %v3083_v16 = vadd.f32 %v2923_v60, %v2795_v50  ;;  %v2668_v18 = vadd.f32 %v8515_v31, %v2027_v7  ;;  %v3999_v51 = vunpack.c.l.b16 %v3467_v53  ;;  %v797_v60 = vmul.f32 %v8420_v42, %v8634_v3 }
 0x16b   : > { %v1453_v53 = vunpack.c.l.b16 %v925_v11 }
 0x16c   : > { %v3339_v37 = vmax.f32 %v3083_v16, 0.0  ;;  %2066 = vmatmul.bf16.gmra.mxu0 %v1690_v4  ;;  %2386 = vmatmul.bf16.gmra.mxu2 %v1754_v23  ;;  %v4247_v35 = vpack.c.b16 %v3999_v51, %v3998_v25  ;;  %v2956_v30 = vadd.f32 %v2924_v5, %v2668_v18  ;;  %v1053_v54 = vpack.c.bf16 %v797_v60, %v797_v60  ;;  %v2925_v16 = vld [vmem:[#allocation9 + $0x88] sm:$0xff] }
 0x16d   : > { %v1452_v23 = vunpack.c.l.b16 %v924_v8  ;;  %v1580_v25 = vunpack.c.l.b16 %v1052_v46  ;;  %v670_v46 = vmul.f32 %v8430_v56, %v8632_v9 }
 0x16e   : > { %4587 = vmatmul.bf16.gmra.mxu1 %v4247_v35  ;;  %v3595_v41 = vpack.c.bf16 %v3339_v37, %v3339_v37  ;;  %v3212_v4 = vmax.f32 %v2956_v30, 0.0  ;;  %v1581_v51 = vunpack.c.l.b16 %v1053_v54  ;;  %v798_v54 = vmul.f32 %v8430_v56, %v8634_v3 }
 0x16f   : > { %v2347_v49 = vpop.f32.mrf.mxu2  ;;  %v1691_v37 = vpack.c.b16 %v1453_v53, %v1452_v23 }
 0x170   : > { %v2796_v20 = vadd.f32 %v8526_v48, %v2347_v49  ;;  %v4127_v44 = vunpack.c.l.b16 %v3595_v41  ;;  %v3468_v13 = vpack.c.bf16 %v3212_v4, %v3212_v4  ;;  %v1755_v30 = vpack.c.b16 %v1581_v51, %v1580_v25 }
 0x171   : > { %v2029_v24 = vpop.f32.mrf.mxu0  ;;  %v926_v25 = vpack.c.bf16 %v670_v46, %v670_v46 }
 0x172   : > { %v2669_v57 = vadd.f32 %v8515_v31, %v2029_v24  ;;  %v4311_v50 = vpack.c.b16 %v4127_v44, %v4126_v19  ;;  %v3084_v7 = vadd.f32 %v2924_v5, %v2796_v20  ;;  %v4000_v8 = vunpack.c.l.b16 %v3468_v13 }
 0x173   : > { %v671_v44 = vmul.f32 %v8432_v59, %v8632_v9  ;;  %v799_v24 = vmul.f32 %v8432_v59, %v8634_v3 }
 0x174   : > { %v2957_v18 = vadd.f32 %v2925_v16, %v2669_v57  ;;  %4907 = vmatmul.bf16.gmra.mxu3 %v4311_v50  ;;  %v3340_v35 = vmax.f32 %v3084_v7, 0.0  ;;  %v2926_v50 = vld [vmem:[#allocation9 + $0x90] sm:$0xff] }
 0x176   : > { %v3213_v61 = vmax.f32 %v2957_v18, 0.0  ;;  %v3596_v4 = vpack.c.bf16 %v3340_v35, %v3340_v35 }
 0x177   : > { %v2349_v21 = vpop.f32.mrf.mxu2 }
 0x178   : > { %v2797_v60 = vadd.f32 %v8526_v48, %v2349_v21  ;;  %v3469_v41 = vpack.c.bf16 %v3213_v61, %v3213_v61  ;;  %v927_v61 = vpack.c.bf16 %v671_v44, %v671_v44  ;;  %v1054_v21 = vpack.c.bf16 %v798_v54, %v798_v54 }
 0x179   : > { %v2032_v49 = vpop.f32.mrf.mxu0 }
 0x17a   : > { %v3085_v5 = vadd.f32 %v2925_v16, %v2797_v60  ;;  %v4001_v11 = vunpack.c.l.b16 %v3469_v41  ;;  %v2670_v20 = vadd.f32 %v8515_v31, %v2032_v49  ;;  %v8678_v16 = vld [vmem:[%s11306_s7] ss:$0 sm:$0xff]  ;;  %v1055_v60 = vpack.c.bf16 %v799_v24, %v799_v24 }
 0x17b   : > { %v4553_v19 = vpop.f32.mrf.mxu1  ;;  %v4128_v49 = vunpack.c.l.b16 %v3596_v4 }
 0x17c   : > { %v3341_v57 = vmax.f32 %v3085_v5, 0.0  ;;  %v4554_v23 = vadd.f32 %v8663_v22, %v4553_v19  ;;  %2071 = vmatmul.bf16.gmra.mxu0 %v1691_v37  ;;  %2391 = vmatmul.bf16.gmra.mxu2 %v1755_v30  ;;  %v4248_v53 = vpack.c.b16 %v4001_v11, %v4000_v8  ;;  %v2958_v51 = vadd.f32 %v2926_v50, %v2670_v20  ;;  %v2927_v19 = vld [vmem:[#allocation9 + $0x98] sm:$0xff] }
 0x17d   : > { %v1454_v8 = vunpack.c.l.b16 %v926_v25  ;;  %v1455_v20 = vunpack.c.l.b16 %v927_v61  ;;  %v1583_v44 = vunpack.c.l.b16 %v1055_v60 }
 0x17e   : > { %v5193_v7 = vmax.f32 %v4554_v23, 0.0  ;;  %4592 = vmatmul.bf16.gmra.mxu1 %v4248_v53  ;;  %v3597_v18 = vpack.c.bf16 %v3341_v57, %v3341_v57  ;;  %v3214_v11 = vmax.f32 %v2958_v51, 0.0  ;;  %v1582_v57 = vunpack.c.l.b16 %v1054_v21 }
 0x17f   : > { %v2352_v13 = vpop.f32.mrf.mxu2  ;;  %v1692_v56 = vpack.c.b16 %v1455_v20, %v1454_v8  ;;  %v800_v20 = vmul.f32 %v8442_v12, %v8634_v3 }
 0x180   : > { %v5453_v41 = vmul.f32 %v8678_v16, %v5193_v7  ;;  %v4129_v35 = vunpack.c.l.b16 %v3597_v18  ;;  %v2798_v5 = vadd.f32 %v8526_v48, %v2352_v13  ;;  %v3470_v7 = vpack.c.bf16 %v3214_v11, %v3214_v11 }
 0x181   : > { %v2034_v59 = vpop.f32.mrf.mxu0 }
 0x182   : > { %v2671_v37 = vadd.f32 %v8515_v31, %v2034_v59  ;;  %5709 = vadd.xlane.f32.xlu0 %v5453_v41  ;;  %v4312_v30 = vpack.c.b16 %v4129_v35, %v4128_v49  ;;  %v3086_v4 = vadd.f32 %v2926_v50, %v2798_v5  ;;  %v1756_v59 = vpack.c.b16 %v1583_v44, %v1582_v57 }
 0x183   : > { %v4555_v46 = vpop.f32.mrf.mxu1  ;;  %v672_v49 = vmul.f32 %v8442_v12, %v8632_v9  ;;  %v4002_v11 = vunpack.c.l.b16 %v3470_v7  ;;  %v801_v57 = vmul.f32 %v8444_v17, %v8634_v3 }
 0x184   : > { %v2959_v54 = vadd.f32 %v2927_v19, %v2671_v37  ;;  %v4556_v24 = vadd.f32 %v8663_v22, %v4555_v46  ;;  %4912 = vmatmul.bf16.gmra.mxu3 %v4312_v30  ;;  %v3342_v21 = vmax.f32 %v3086_v4, 0.0  ;;  %v2928_v30 = vld [vmem:[#allocation9 + $0xa0] sm:$0xff]  ;;  %v673_v46 = vmul.f32 %v8444_v17, %v8632_v9 }
 0x186   : > { %v3215_v23 = vmax.f32 %v2959_v54, 0.0  ;;  %v5194_v53 = vmax.f32 %v4556_v24, 0.0  ;;  %v3598_v24 = vpack.c.bf16 %v3342_v21, %v3342_v21  ;;  %v2929_v21 = vld [vmem:[#allocation9 + $0xa8] sm:$0xff] }
 0x187   : > { %v2354_v18 = vpop.f32.mrf.mxu2  ;;  %v4873_v13 = vpop.f32.mrf.mxu3 }
 0x188   : > { %v2799_v41 = vadd.f32 %v8526_v48, %v2354_v18  ;;  %v4874_v25 = vadd.f32 %v8663_v22, %v4873_v13  ;;  %v5454_v51 = vmul.f32 %v8678_v16, %v5194_v53  ;;  %v3471_v61 = vpack.c.bf16 %v3215_v23, %v3215_v23 }
 0x189   : > { %v2037_v60 = vpop.f32.mrf.mxu0  ;;  %v928_v18 = vpack.c.bf16 %v672_v49, %v672_v49 }
 0x18a   : > { %v3087_v50 = vadd.f32 %v2927_v19, %v2799_v41  ;;  %v5321_v35 = vmax.f32 %v4874_v25, 0.0  ;;  %v2672_v5 = vadd.f32 %v8515_v31, %v2037_v60  ;;  %5711 = vadd.xlane.f32.xlu0 %v5454_v51  ;;  %v4003_v37 = vunpack.c.l.b16 %v3471_v61 }
 0x18b   : > { %v4558_v8 = vpop.f32.mrf.mxu1  ;;  %v929_v25 = vpack.c.bf16 %v673_v46, %v673_v46  ;;  %v1056_v51 = vpack.c.bf16 %v800_v20, %v800_v20  ;;  %v1057_v61 = vpack.c.bf16 %v801_v57, %v801_v57 }
 0x18c   : > { %v3343_v44 = vmax.f32 %v3087_v50, 0.0  ;;  %v4559_v19 = vadd.f32 %v8663_v22, %v4558_v8  ;;  %2076 = vmatmul.bf16.gmra.mxu0 %v1692_v56  ;;  %2396 = vmatmul.bf16.gmra.mxu2 %v1756_v59  ;;  %v5581_v54 = vmul.f32 %v8678_v16, %v5321_v35  ;;  %v4249_v4 = vpack.c.b16 %v4003_v37, %v4002_v11 }
 0x18d   : > { %v2960_v23 = vadd.f32 %v2928_v30, %v2672_v5  ;;  %v4130_v35 = vunpack.c.l.b16 %v3598_v24  ;;  %v1456_v11 = vunpack.c.l.b16 %v928_v18  ;;  %v1457_v20 = vunpack.c.l.b16 %v929_v25 }
 0x18e   : > { %v5195_v53 = vmax.f32 %v4559_v19, 0.0  ;;  %5965 = vadd.xlane.f32.xlu2 %v5581_v54  ;;  %v3599_v7 = vpack.c.bf16 %v3343_v44, %v3343_v44  ;;  %4597 = vmatmul.bf16.gmra.mxu1 %v4249_v4  ;;  %v1584_v57 = vunpack.c.l.b16 %v1056_v51  ;;  %v1585_v19 = vunpack.c.l.b16 %v1057_v61 }
 0x18f   : > { %v2357_v13 = vpop.f32.mrf.mxu2  ;;  %v4875_v41 = vpop.f32.mrf.mxu3  ;;  %v3216_v37 = vmax.f32 %v2960_v23, 0.0 }
 0x190   : > { %v4876_v60 = vadd.f32 %v8663_v22, %v4875_v41  ;;  %v5455_v56 = vmul.f32 %v8678_v16, %v5195_v53  ;;  %v2800_v59 = vadd.f32 %v8526_v48, %v2357_v13  ;;  %v4131_v5 = vunpack.c.l.b16 %v3599_v7 }
 0x191   : > { %v2039_v50 = vpop.f32.mrf.mxu0  ;;  %v3472_v24 = vpack.c.bf16 %v3216_v37, %v3216_v37  ;;  %v1757_v18 = vpack.c.b16 %v1585_v19, %v1584_v57 }
 0x192   : > { %v5322_v8 = vmax.f32 %v4876_v60, 0.0  ;;  %v2673_v49 = vadd.f32 %v8515_v31, %v2039_v50  ;;  %5713 = vadd.xlane.f32.xlu1 %v5455_v56  ;;  %v4313_v46 = vpack.c.b16 %v4131_v5, %v4130_v35  ;;  %v3088_v13 = vadd.f32 %v2928_v30, %v2800_v59 }
 0x193   : > { %v4560_v44 = vpop.f32.mrf.mxu1  ;;  %v1693_v56 = vpack.c.b16 %v1457_v20, %v1456_v11  ;;  %v674_v30 = vmul.f32 %v8454_v33, %v8632_v9  ;;  %v4004_v37 = vunpack.c.l.b16 %v3472_v24  ;;  %v803_v20 = vmul.f32 %v8456_v36, %v8634_v3 }
 0x194   : > { %v2961_v54 = vadd.f32 %v2929_v21, %v2673_v49  ;;  %v4561_v4 = vadd.f32 %v8663_v22, %v4560_v44  ;;  %v5582_v53 = vmul.f32 %v8678_v16, %v5322_v8  ;;  %4917 = vmatmul.bf16.gmra.mxu3 %v4313_v46  ;;  %v3344_v35 = vmax.f32 %v3088_v13, 0.0 }
 0x195   : > { %v675_v49 = vmul.f32 %v8456_v36, %v8632_v9  ;;  %v802_v46 = vmul.f32 %v8454_v33, %v8634_v3 }
 0x196   : > { %v3217_v7 = vmax.f32 %v2961_v54, 0.0  ;;  %v5196_v23 = vmax.f32 %v4561_v4, 0.0  ;;  %5967 = vadd.xlane.f32.xlu0 %v5582_v53  ;;  %v2930_v54 = vld [vmem:[#allocation9 + $0xb0] sm:$0xff]  ;;  %v3600_v53 = vpack.c.bf16 %v3344_v35, %v3344_v35  ;;  %v2931_v35 = vld [vmem:[#allocation9 + $0xb8] sm:$0xff] }
 0x197   : > { %v2359_v41 = vpop.f32.mrf.mxu2  ;;  %v4878_v60 = vpop.f32.mrf.mxu3 }
 0x198   : > { %v2801_v50 = vadd.f32 %v8526_v48, %v2359_v41  ;;  %v4879_v25 = vadd.f32 %v8663_v22, %v4878_v60  ;;  %v5456_v51 = vmul.f32 %v8678_v16, %v5196_v23  ;;  %v3473_v61 = vpack.c.bf16 %v3217_v7, %v3217_v7 }
 0x199   : > { %v2042_v5 = vpop.f32.mrf.mxu0  ;;  %v930_v7 = vpack.c.bf16 %v674_v30, %v674_v30  ;;  %v931_v23 = vpack.c.bf16 %v675_v49, %v675_v49 }
 0x19a   : > { %v3089_v59 = vadd.f32 %v2929_v21, %v2801_v50  ;;  %5715 = vadd.xlane.f32.xlu1 %v5456_v51  ;;  %v4005_v8 = vunpack.c.l.b16 %v3473_v61  ;;  %v2674_v11 = vadd.f32 %v8515_v31, %v2042_v5  ;;  %v5323_v19 = vmax.f32 %v4879_v25, 0.0 }
 0x19b   : > { %v4563_v44 = vpop.f32.mrf.mxu1  ;;  %v1058_v51 = vpack.c.bf16 %v802_v46, %v802_v46  ;;  %v1059_v61 = vpack.c.bf16 %v803_v20, %v803_v20  ;;  %v1458_v49 = vunpack.c.l.b16 %v930_v7 }
 0x19c   : > { %v3345_v57 = vmax.f32 %v3089_v59, 0.0  ;;  %v4564_v21 = vadd.f32 %v8663_v22, %v4563_v44  ;;  %2081 = vmatmul.bf16.gmra.mxu0 %v1693_v56  ;;  %2401 = vmatmul.bf16.gmra.mxu2 %v1757_v18  ;;  %v4250_v4 = vpack.c.b16 %v4005_v8, %v4004_v37  ;;  %v2962_v41 = vadd.f32 %v2930_v54, %v2674_v11 }
 0x19d   : > { %v5583_v25 = vmul.f32 %v8678_v16, %v5323_v19  ;;  %v4132_v37 = vunpack.c.l.b16 %v3600_v53  ;;  %v1459_v11 = vunpack.c.l.b16 %v931_v23 }
 0x19e   : > { %v5197_v13 = vmax.f32 %v4564_v21, 0.0  ;;  %v3601_v24 = vpack.c.bf16 %v3345_v57, %v3345_v57  ;;  %4602 = vmatmul.bf16.gmra.mxu1 %v4250_v4  ;;  %v3218_v44 = vmax.f32 %v2962_v41, 0.0  ;;  %v1586_v57 = vunpack.c.l.b16 %v1058_v51 }
 0x19f   : > { %v2362_v60 = vpop.f32.mrf.mxu2  ;;  %v4880_v50 = vpop.f32.mrf.mxu3  ;;  %v1587_v21 = vunpack.c.l.b16 %v1059_v61 }
 0x1a0   : > { %v4881_v5 = vadd.f32 %v8663_v22, %v4880_v50  ;;  %v5457_v59 = vmul.f32 %v8678_v16, %v5197_v13  ;;  %v2802_v56 = vadd.f32 %v8526_v48, %v2362_v60  ;;  %v4133_v8 = vunpack.c.l.b16 %v3601_v24 }
 0x1a1   : > { %v2044_v18 = vpop.f32.mrf.mxu0  ;;  %v3474_v50 = vpack.c.bf16 %v3218_v44, %v3218_v44  ;;  %v805_v44 = vmul.f32 %v8468_v55, %v8634_v3 }
 0x1a2   : > { %v2675_v30 = vadd.f32 %v8515_v31, %v2044_v18  ;;  %5969 = vadd.xlane.f32.xlu1 %v5583_v25  ;;  %5717 = vadd.xlane.f32.xlu2 %v5457_v59  ;;  %v4314_v20 = vpack.c.b16 %v4133_v8, %v4132_v37  ;;  %v5324_v19 = vmax.f32 %v4881_v5, 0.0  ;;  %v3090_v13 = vadd.f32 %v2930_v54, %v2802_v56 }
 0x1a3   : > { %v4565_v46 = vpop.f32.mrf.mxu1  ;;  %v1694_v18 = vpack.c.b16 %v1459_v11, %v1458_v49  ;;  %v1758_v25 = vpack.c.b16 %v1587_v21, %v1586_v57  ;;  %v676_v54 = vmul.f32 %v8466_v52, %v8632_v9  ;;  %v677_v8 = vmul.f32 %v8468_v55, %v8632_v9  ;;  %v2932_v57 = vld [vmem:[#allocation9 + $0xc0] sm:$0xff] }
 0x1a4   : > { %v2963_v4 = vadd.f32 %v2931_v35, %v2675_v30  ;;  %4922 = vmatmul.bf16.gmra.mxu3 %v4314_v20  ;;  %v4566_v53 = vadd.f32 %v8663_v22, %v4565_v46  ;;  %v5584_v41 = vmul.f32 %v8678_v16, %v5324_v19  ;;  %v3346_v61 = vmax.f32 %v3090_v13, 0.0 }
 0x1a5   : > { %v4006_v11 = vunpack.c.l.b16 %v3474_v50  ;;  %v933_v50 = vpack.c.bf16 %v677_v8, %v677_v8 }
 0x1a6   : > { %v3219_v60 = vmax.f32 %v2963_v4, 0.0  ;;  %v5198_v46 = vmax.f32 %v4566_v53, 0.0  ;;  %v3602_v19 = vpack.c.bf16 %v3346_v61, %v3346_v61  ;;  %v1061_v53 = vpack.c.bf16 %v805_v44, %v805_v44 }
 0x1a7   : > { %v2364_v24 = vpop.f32.mrf.mxu2  ;;  %v4883_v36 = vpop.f32.mrf.mxu3 }
 0x1a8   : > { %v2803_v7 = vadd.f32 %v8526_v48, %v2364_v24  ;;  %v4884_v23 = vadd.f32 %v8663_v22, %v4883_v36  ;;  %v3475_v51 = vpack.c.bf16 %v3219_v60, %v3219_v60  ;;  %v804_v36 = vmul.f32 %v8466_v52, %v8634_v3 }
 0x1a9   : > { %v2047_v5 = vpop.f32.mrf.mxu0  ;;  %v932_v60 = vpack.c.bf16 %v676_v54, %v676_v54 }
 0x1aa   : > { %v3091_v59 = vadd.f32 %v2931_v35, %v2803_v7  ;;  %v5325_v56 = vmax.f32 %v4884_v23, 0.0  ;;  %5971 = vadd.xlane.f32.xlu2 %v5584_v41  ;;  %v4007_v37 = vunpack.c.l.b16 %v3475_v51  ;;  %v2676_v30 = vadd.f32 %v8515_v31, %v2047_v5 }
 0x1ab   : > { %v4568_v49 = vpop.f32.mrf.mxu1  ;;  %v1060_v41 = vpack.c.bf16 %v804_v36, %v804_v36  ;;  %v1460_v8 = vunpack.c.l.b16 %v932_v60 }
 0x1ac   : > { %v3347_v20 = vmax.f32 %v3091_v59, 0.0  ;;  %v4569_v35 = vadd.f32 %v8663_v22, %v4568_v49  ;;  %2086 = vmatmul.bf16.gmra.mxu0 %v1694_v18  ;;  %2406 = vmatmul.bf16.gmra.mxu2 %v1758_v25  ;;  %v5585_v21 = vmul.f32 %v8678_v16, %v5325_v56  ;;  %v4251_v4 = vpack.c.b16 %v4007_v37, %v4006_v11  ;;  %v2933_v56 = vld [vmem:[#allocation9 + $0xc8] sm:$0xff] }
 0x1ad   : > { %v2964_v24 = vadd.f32 %v2932_v57, %v2676_v30  ;;  %v5458_v18 = vmul.f32 %v8678_v16, %v5198_v46  ;;  %v4134_v37 = vunpack.c.l.b16 %v3602_v19  ;;  %v1461_v30 = vunpack.c.l.b16 %v933_v50 }
 0x1ae   : > { %5973 = vadd.xlane.f32.xlu0 %v5585_v21  ;;  %v3603_v13 = vpack.c.bf16 %v3347_v20, %v3347_v20  ;;  %4607 = vmatmul.bf16.gmra.mxu1 %v4251_v4  ;;  %v5199_v51 = vmax.f32 %v4569_v35, 0.0  ;;  %v1588_v20 = vunpack.c.l.b16 %v1060_v41  ;;  %v1589_v35 = vunpack.c.l.b16 %v1061_v53 }
 0x1af   : > { %v2367_v7 = vpop.f32.mrf.mxu2  ;;  %v4885_v23 = vpop.f32.mrf.mxu3  ;;  %v3220_v11 = vmax.f32 %v2964_v24, 0.0  ;;  %v1695_v24 = vpack.c.b16 %v1461_v30, %v1460_v8 }
 0x1b0   : > { %v4886_v5 = vadd.f32 %v8663_v22, %v4885_v23  ;;  %v4135_v25 = vunpack.c.l.b16 %v3603_v13  ;;  %v2804_v59 = vadd.f32 %v8526_v48, %v2367_v7  ;;  %v5459_v13 = vmul.f32 %v8678_v16, %v5199_v51 }
 0x1b1   : > { %v2049_v61 = vpop.f32.mrf.mxu0  ;;  %v3476_v23 = vpack.c.bf16 %v3220_v11, %v3220_v11 }
 0x1b2   : > { %v5326_v49 = vmax.f32 %v4886_v5, 0.0  ;;  %v2677_v54 = vadd.f32 %v8515_v31, %v2049_v61  ;;  %5719 = vadd.xlane.f32.xlu2 %v5458_v18  ;;  %v4315_v44 = vpack.c.b16 %v4135_v25, %v4134_v37  ;;  %v3092_v7 = vadd.f32 %v2932_v57, %v2804_v59 }
 0x1b3   : > { %v4570_v36 = vpop.f32.mrf.mxu1  ;;  %v1759_v5 = vpack.c.b16 %v1589_v35, %v1588_v20  ;;  %v678_v57 = vmul.f32 %v8478_v10, %v8632_v9  ;;  %v4008_v11 = vunpack.c.l.b16 %v3476_v23  ;;  %v2934_v35 = vld [vmem:[#allocation9 + $0xd0] sm:$0xff] }
 0x1b4   : > { %v2965_v21 = vadd.f32 %v2933_v56, %v2677_v54  ;;  %v4571_v46 = vadd.f32 %v8663_v22, %v4570_v36  ;;  %v5586_v4 = vmul.f32 %v8678_v16, %v5326_v49  ;;  %4927 = vmatmul.bf16.gmra.mxu3 %v4315_v44  ;;  %v3348_v61 = vmax.f32 %v3092_v7, 0.0 }
 0x1b5   : > { %v679_v54 = vmul.f32 %v8480_v14, %v8632_v9  ;;  %v806_v36 = vmul.f32 %v8478_v10, %v8634_v3  ;;  %v807_v44 = vmul.f32 %v8480_v14, %v8634_v3 }
 0x1b6   : > { %v3221_v19 = vmax.f32 %v2965_v21, 0.0  ;;  %5975 = vadd.xlane.f32.xlu1 %v5586_v4  ;;  %5721 = vadd.xlane.f32.xlu0 %v5459_v13  ;;  %v5200_v41 = vmax.f32 %v4571_v46, 0.0  ;;  %v3604_v4 = vpack.c.bf16 %v3348_v61, %v3348_v61 }
 0x1b7   : > { %v2369_v60 = vpop.f32.mrf.mxu2  ;;  %v4888_v50 = vpop.f32.mrf.mxu3  ;;  %v935_v23 = vpack.c.bf16 %v679_v54, %v679_v54 }
 0x1b8   : > { %v3477_v18 = vpack.c.bf16 %v3221_v19, %v3221_v19  ;;  %v2805_v53 = vadd.f32 %v8526_v48, %v2369_v60  ;;  %v4889_v25 = vadd.f32 %v8663_v22, %v4888_v50  ;;  %v5460_v46 = vmul.f32 %v8678_v16, %v5200_v41 }
 0x1b9   : > { %v2052_v37 = vpop.f32.mrf.mxu0  ;;  %v934_v19 = vpack.c.bf16 %v678_v57, %v678_v57  ;;  %v1463_v54 = vunpack.c.l.b16 %v935_v23 }
 0x1ba   : > { %v4009_v51 = vunpack.c.l.b16 %v3477_v18  ;;  %v3093_v59 = vadd.f32 %v2933_v56, %v2805_v53  ;;  %v5327_v49 = vmax.f32 %v4889_v25, 0.0  ;;  %v2678_v8 = vadd.f32 %v8515_v31, %v2052_v37 }
 0x1bb   : > { %v4573_v30 = vpop.f32.mrf.mxu1  ;;  %v1062_v53 = vpack.c.bf16 %v806_v36, %v806_v36  ;;  %v1063_v25 = vpack.c.bf16 %v807_v44, %v807_v44  ;;  %v1462_v57 = vunpack.c.l.b16 %v934_v19 }
 0x1bc   : > { %v3349_v20 = vmax.f32 %v3093_v59, 0.0  ;;  %v4574_v21 = vadd.f32 %v8663_v22, %v4573_v30  ;;  %2091 = vmatmul.bf16.gmra.mxu0 %v1695_v24  ;;  %2411 = vmatmul.bf16.gmra.mxu2 %v1759_v5  ;;  %v5587_v56 = vmul.f32 %v8678_v16, %v5327_v49  ;;  %v4252_v13 = vpack.c.b16 %v4009_v51, %v4008_v11  ;;  %v2935_v51 = vld [vmem:[#allocation9 + $0xd8] sm:$0xff] }
 0x1bd   : > { %v2966_v60 = vadd.f32 %v2934_v35, %v2678_v8  ;;  %v4136_v59 = vunpack.c.l.b16 %v3604_v4  ;;  %v1591_v36 = vunpack.c.l.b16 %v1063_v25 }
 0x1be   : > { %v3605_v7 = vpack.c.bf16 %v3349_v20, %v3349_v20  ;;  %5977 = vadd.xlane.f32.xlu2 %v5587_v56  ;;  %5723 = vadd.xlane.f32.xlu1 %v5460_v46  ;;  %v5201_v24 = vmax.f32 %v4574_v21, 0.0  ;;  %v1590_v56 = vunpack.c.l.b16 %v1062_v53 }
 0x1bf   : > { %4612 = vmatmul.bf16.gmra.mxu1 %v4252_v13  ;;  %v2372_v50 = vpop.f32.mrf.mxu2  ;;  %v4890_v18 = vpop.f32.mrf.mxu3  ;;  %v3222_v8 = vmax.f32 %v2966_v60, 0.0  ;;  %v1696_v60 = vpack.c.b16 %v1463_v54, %v1462_v57 }
 0x1c0   : > { %v4137_v37 = vunpack.c.l.b16 %v3605_v7  ;;  %v4891_v5 = vadd.f32 %v8663_v22, %v4890_v18  ;;  %v2806_v41 = vadd.f32 %v8526_v48, %v2372_v50  ;;  %v5461_v4 = vmul.f32 %v8678_v16, %v5201_v24 }
 0x1c1   : > { %v2054_v61 = vpop.f32.mrf.mxu0  ;;  %v3478_v50 = vpack.c.bf16 %v3222_v8, %v3222_v8  ;;  %v1760_v18 = vpack.c.b16 %v1591_v36, %v1590_v56  ;;  %v2936_v36 = vld [vmem:[#allocation9 + $0xe0] sm:$0xff] }
 0x1c2   : > { %v5328_v49 = vmax.f32 %v4891_v5, 0.0  ;;  %v2679_v11 = vadd.f32 %v8515_v31, %v2054_v61  ;;  %v4316_v20 = vpack.c.b16 %v4137_v37, %v4136_v59  ;;  %v3094_v13 = vadd.f32 %v2934_v35, %v2806_v41 }
 0x1c3   : > { %v4575_v30 = vpop.f32.mrf.mxu1  ;;  %v680_v35 = vmul.f32 %v8490_v38, %v8632_v9  ;;  %v4010_v8 = vunpack.c.l.b16 %v3478_v50 }
 0x1c4   : > { %v2967_v44 = vadd.f32 %v2935_v51, %v2679_v11  ;;  %v4576_v21 = vadd.f32 %v8663_v22, %v4575_v30  ;;  %v5588_v46 = vmul.f32 %v8678_v16, %v5328_v49  ;;  %4932 = vmatmul.bf16.gmra.mxu3 %v4316_v20  ;;  %v3350_v59 = vmax.f32 %v3094_v13, 0.0 }
 0x1c5   : > { %v681_v11 = vmul.f32 %v8492_v43, %v8632_v9  ;;  %v808_v30 = vmul.f32 %v8490_v38, %v8634_v3  ;;  %v809_v20 = vmul.f32 %v8492_v43, %v8634_v3 }
 0x1c6   : > { %v3223_v7 = vmax.f32 %v2967_v44, 0.0  ;;  %5979 = vadd.xlane.f32.xlu0 %v5588_v46  ;;  %5725 = vadd.xlane.f32.xlu2 %v5461_v4  ;;  %v5202_v53 = vmax.f32 %v4576_v21, 0.0  ;;  %v3606_v46 = vpack.c.bf16 %v3350_v59, %v3350_v59 }
 0x1c7   : > { %v2374_v19 = vpop.f32.mrf.mxu2  ;;  %v4893_v23 = vpop.f32.mrf.mxu3  ;;  %v937_v50 = vpack.c.bf16 %v681_v11, %v681_v11 }
 0x1c8   : > { %v3479_v37 = vpack.c.bf16 %v3223_v7, %v3223_v7  ;;  %v2807_v25 = vadd.f32 %v8526_v48, %v2374_v19  ;;  %v4894_v5 = vadd.f32 %v8663_v22, %v4893_v23  ;;  %v5462_v21 = vmul.f32 %v8678_v16, %v5202_v53 }
 0x1c9   : > { %v2057_v61 = vpop.f32.mrf.mxu0  ;;  %v936_v7 = vpack.c.bf16 %v680_v35, %v680_v35  ;;  %v1465_v11 = vunpack.c.l.b16 %v937_v50 }
 0x1ca   : > { %v4011_v24 = vunpack.c.l.b16 %v3479_v37  ;;  %v3095_v41 = vadd.f32 %v2935_v51, %v2807_v25  ;;  %v5329_v49 = vmax.f32 %v4894_v5, 0.0  ;;  %v2680_v57 = vadd.f32 %v8515_v31, %v2057_v61 }
 0x1cb   : > { %v4578_v54 = vpop.f32.mrf.mxu1  ;;  %v1064_v25 = vpack.c.bf16 %v808_v30, %v808_v30  ;;  %v1065_v5 = vpack.c.bf16 %v809_v20, %v809_v20  ;;  %v1464_v35 = vunpack.c.l.b16 %v936_v7 }
 0x1cc   : > { %v3351_v56 = vmax.f32 %v3095_v41, 0.0  ;;  %v4579_v44 = vadd.f32 %v8663_v22, %v4578_v54  ;;  %2096 = vmatmul.bf16.gmra.mxu0 %v1696_v60  ;;  %2416 = vmatmul.bf16.gmra.mxu2 %v1760_v18  ;;  %v5589_v51 = vmul.f32 %v8678_v16, %v5329_v49  ;;  %v4253_v4 = vpack.c.b16 %v4011_v24, %v4010_v8  ;;  %v2937_v24 = vld [vmem:[#allocation9 + $0xe8] sm:$0xff] }
 0x1cd   : > { %v2968_v19 = vadd.f32 %v2936_v36, %v2680_v57  ;;  %v4138_v41 = vunpack.c.l.b16 %v3606_v46  ;;  %v1593_v30 = vunpack.c.l.b16 %v1065_v5 }
 0x1ce   : > { %v3607_v13 = vpack.c.bf16 %v3351_v56, %v3351_v56  ;;  %5981 = vadd.xlane.f32.xlu1 %v5589_v51  ;;  %5727 = vadd.xlane.f32.xlu0 %v5462_v21  ;;  %v5203_v60 = vmax.f32 %v4579_v44, 0.0  ;;  %v1592_v51 = vunpack.c.l.b16 %v1064_v25 }
 0x1cf   : > { %4617 = vmatmul.bf16.gmra.mxu1 %v4253_v4  ;;  %v2377_v23 = vpop.f32.mrf.mxu2  ;;  %v4895_v37 = vpop.f32.mrf.mxu3  ;;  %v3224_v57 = vmax.f32 %v2968_v19, 0.0  ;;  %v1697_v19 = vpack.c.b16 %v1465_v11, %v1464_v35 }
 0x1d0   : > { %v4139_v61 = vunpack.c.l.b16 %v3607_v13  ;;  %v4896_v18 = vadd.f32 %v8663_v22, %v4895_v37  ;;  %v2808_v53 = vadd.f32 %v8526_v48, %v2377_v23  ;;  %v5463_v46 = vmul.f32 %v8678_v16, %v5203_v60 }
 0x1d1   : > { %v2059_v59 = vpop.f32.mrf.mxu0  ;;  %v3480_v23 = vpack.c.bf16 %v3224_v57, %v3224_v57  ;;  %v1761_v37 = vpack.c.b16 %v1593_v30, %v1592_v51  ;;  %v2938_v30 = vld [vmem:[#allocation9 + $0xf0] sm:$0xff] }
 0x1d2   : > { %v5330_v49 = vmax.f32 %v4896_v18, 0.0  ;;  %v2681_v8 = vadd.f32 %v8515_v31, %v2059_v59  ;;  %v4317_v56 = vpack.c.b16 %v4139_v61, %v4138_v41  ;;  %v3096_v4 = vadd.f32 %v2936_v36, %v2808_v53 }
 0x1d3   : > { %v4580_v54 = vpop.f32.mrf.mxu1  ;;  %v682_v36 = vmul.f32 %v8502_v1, %v8632_v9  ;;  %v4012_v57 = vunpack.c.l.b16 %v3480_v23 }
 0x1d4   : > { %v2969_v20 = vadd.f32 %v2937_v24, %v2681_v8  ;;  %v4581_v44 = vadd.f32 %v8663_v22, %v4580_v54  ;;  %v5590_v21 = vmul.f32 %v8678_v16, %v5330_v49  ;;  %4937 = vmatmul.bf16.gmra.mxu3 %v4317_v56  ;;  %v3352_v41 = vmax.f32 %v3096_v4, 0.0 }
 0x1d5   : > { %v683_v8 = vmul.f32 %v8504_v6, %v8632_v9  ;;  %v810_v54 = vmul.f32 %v8502_v1, %v8634_v3  ;;  %v811_v56 = vmul.f32 %v8504_v6, %v8634_v3  ;;  %v938_v4 = vpack.c.bf16 %v682_v36, %v682_v36  ;;  %v2939_v36 = vld [vmem:[#allocation9 + $0xf8] sm:$0xff] }
 0x1d6   : > { %v3225_v13 = vmax.f32 %v2969_v20, 0.0  ;;  %5983 = vadd.xlane.f32.xlu2 %v5590_v21  ;;  %5729 = vadd.xlane.f32.xlu1 %v5463_v46  ;;  %v5204_v25 = vmax.f32 %v4581_v44, 0.0  ;;  %v3608_v21 = vpack.c.bf16 %v3352_v41, %v3352_v41 }
 0x1d7   : > { %v2379_v7 = vpop.f32.mrf.mxu2  ;;  %v4898_v50 = vpop.f32.mrf.mxu3  ;;  %v939_v23 = vpack.c.bf16 %v683_v8, %v683_v8 }
 0x1d8   : > { %v3481_v61 = vpack.c.bf16 %v3225_v13, %v3225_v13  ;;  %v2809_v5 = vadd.f32 %v8526_v48, %v2379_v7  ;;  %v4899_v18 = vadd.f32 %v8663_v22, %v4898_v50  ;;  %v5464_v44 = vmul.f32 %v8678_v16, %v5204_v25 }
 0x1d9   : > { %v2062_v59 = vpop.f32.mrf.mxu0 }
 0x1da   : > { %v4013_v60 = vunpack.c.l.b16 %v3481_v61  ;;  %v3097_v53 = vadd.f32 %v2937_v24, %v2809_v5  ;;  %v5331_v49 = vmax.f32 %v4899_v18, 0.0  ;;  %v2682_v35 = vadd.f32 %v8515_v31, %v2062_v59 }
 0x1db   : > { %v4583_v11 = vpop.f32.mrf.mxu1  ;;  %v1066_v5 = vpack.c.bf16 %v810_v54, %v810_v54  ;;  %v1067_v18 = vpack.c.bf16 %v811_v56, %v811_v56 }
 0x1dc   : > { %v3353_v51 = vmax.f32 %v3097_v53, 0.0  ;;  %v4584_v20 = vadd.f32 %v8663_v22, %v4583_v11  ;;  %2101 = vmatmul.bf16.gmra.mxu0 %v1697_v19  ;;  %2421 = vmatmul.bf16.gmra.mxu2 %v1761_v37  ;;  %v5591_v24 = vmul.f32 %v8678_v16, %v5331_v49  ;;  %v4254_v46 = vpack.c.b16 %v4013_v60, %v4012_v57  ;;  %v7766_v57 = vld [vmem:[%s8374_s5] sm:$0xff] }
 0x1dd   : > { %v2970_v7 = vadd.f32 %v2938_v30, %v2682_v35  ;;  %v4140_v53 = vunpack.c.l.b16 %v3608_v21  ;;  %v1466_v60 = vunpack.c.l.b16 %v938_v4  ;;  %v2629_v35 = vrot.slane %v7766_v57, 1 }
 0x1de   : > { %v3609_v13 = vpack.c.bf16 %v3353_v51, %v3353_v51  ;;  %5985 = vadd.xlane.f32.xlu0 %v5591_v24  ;;  %5731 = vadd.xlane.f32.xlu2 %v5464_v44  ;;  %v5205_v37 = vmax.f32 %v4584_v20, 0.0  ;;  %v1467_v11 = vunpack.c.l.b16 %v939_v23  ;;  %v1594_v56 = vunpack.c.l.b16 %v1066_v5 }
 0x1df   : > { %4622 = vmatmul.bf16.gmra.mxu1 %v4254_v46  ;;  %v2382_v50 = vpop.f32.mrf.mxu2  ;;  %v4900_v61 = vpop.f32.mrf.mxu3  ;;  %v3226_v51 = vmax.f32 %v2970_v7, 0.0  ;;  %v1595_v44 = vunpack.c.l.b16 %v1067_v18 }
 0x1e0   : > { %v4141_v19 = vunpack.c.l.b16 %v3609_v13  ;;  %v4901_v59 = vadd.f32 %v8663_v22, %v4900_v61  ;;  %v2810_v25 = vadd.f32 %v8526_v48, %v2382_v50  ;;  %v5465_v13 = vmul.f32 %v8678_v16, %v5205_v37 }
 0x1e1   : > { %v2064_v41 = vpop.f32.mrf.mxu0  ;;  %v3482_v23 = vpack.c.bf16 %v3226_v51, %v3226_v51  ;;  %v1762_v5 = vpack.c.b16 %v1595_v44, %v1594_v56  ;;  %v813_v56 = vmul.f32 %v8519_v34, %v8634_v3 }
 0x1e2   : > { %v5332_v49 = vmax.f32 %v4901_v59, 0.0  ;;  %v2683_v8 = vadd.f32 %v8515_v31, %v2064_v41  ;;  %v4318_v54 = vpack.c.b16 %v4141_v19, %v4140_v53  ;;  %v3098_v50 = vadd.f32 %v2938_v30, %v2810_v25 }
 0x1e3   : > { %v4585_v24 = vpop.f32.mrf.mxu1  ;;  %v8806_v31 = vperm.slane %v2629_v35, 0  ;;  %v1698_v19 = vpack.c.b16 %v1467_v11, %v1466_v60  ;;  %v2633_v30 = vrot.slane %v7766_v57, 5  ;;  %v684_v25 = vmul.f32 %v8517_v32, %v8632_v9 }
 0x1e4   : > { %v2971_v20 = vadd.f32 %v2939_v36, %v2683_v8  ;;  %v4586_v46 = vadd.f32 %v8663_v22, %v4585_v24  ;;  %v5592_v21 = vmul.f32 %v8678_v16, %v5332_v49  ;;  %4942 = vmatmul.bf16.gmra.mxu3 %v4318_v54  ;;  %v3354_v49 = vmax.f32 %v3098_v50, 0.0 }
 0x1e5   : > { %v4014_v54 = vunpack.c.l.b16 %v3482_v23  ;;  %v685_v11 = vmul.f32 %v8519_v34, %v8632_v9 }
 0x1e6   : > { %v3227_v4 = vmax.f32 %v2971_v20, 0.0  ;;  %5987 = vadd.xlane.f32.xlu1 %v5592_v21  ;;  %5733 = vadd.xlane.f32.xlu0 %v5465_v13  ;;  %v5206_v59 = vmax.f32 %v4586_v46, 0.0  ;;  %v3610_v46 = vpack.c.bf16 %v3354_v49, %v3354_v49  ;;  %v8822_v13 = vperm.slane %v2633_v30, 0 }
 0x1e7   : > { %v2384_v7 = vpop.f32.mrf.mxu2  ;;  %v4903_v61 = vpop.f32.mrf.mxu3 }
 0x1e8   : > { %v3483_v18 = vpack.c.bf16 %v3227_v4, %v3227_v4  ;;  %v2811_v53 = vadd.f32 %v8526_v48, %v2384_v7  ;;  %v4904_v41 = vadd.f32 %v8663_v22, %v4903_v61  ;;  %v812_v48 = vmul.f32 %v8517_v32, %v8634_v3  ;;  %v7767_v4 = vld [vmem:[#allocation9] sm:$0xff] }
 0x1e9   : > { %v2067_v37 = vpop.f32.mrf.mxu0  ;;  %v5466_v20 = vmul.f32 %v8678_v16, %v5206_v59  ;;  %v940_v7 = vpack.c.bf16 %v684_v25, %v684_v25  ;;  %v4142_v49 = vunpack.c.l.b16 %v3610_v46 }
 0x1ea   : > { %v4015_v8 = vunpack.c.l.b16 %v3483_v18  ;;  %v3099_v35 = vadd.f32 %v2939_v36, %v2811_v53  ;;  %v5333_v24 = vmax.f32 %v4904_v41, 0.0  ;;  %v2684_v51 = vadd.f32 %v8806_v31, %v2067_v37 }
 0x1eb   : > { %v4588_v60 = vpop.f32.mrf.mxu1  ;;  %v941_v53 = vpack.c.bf16 %v685_v11, %v685_v11 }
 0x1ec   : > { %v3355_v57 = vmax.f32 %v3099_v35, 0.0  ;;  %v4589_v44 = vadd.f32 %v8663_v22, %v4588_v60  ;;  %2106 = vmatmul.bf16.gmra.mxu0 %v1698_v19  ;;  %2426 = vmatmul.bf16.gmra.mxu2 %v1762_v5  ;;  %v5593_v36 = vmul.f32 %v8678_v16, %v5333_v24  ;;  %v4255_v21 = vpack.c.b16 %v4015_v8, %v4014_v54 }
 0x1ed   : > { %v2972_v23 = vadd.f32 %v7767_v4, %v2684_v51  ;;  %v1068_v19 = vpack.c.bf16 %v812_v48, %v812_v48  ;;  %v1069_v5 = vpack.c.bf16 %v813_v56, %v813_v56  ;;  %v1468_v54 = vunpack.c.l.b16 %v940_v7  ;;  %v7768_v48 = vld [vmem:[#allocation9 + $0x8] sm:$0xff] }
 0x1ee   : > { %v3611_v50 = vpack.c.bf16 %v3355_v57, %v3355_v57  ;;  %5989 = vadd.xlane.f32.xlu2 %v5593_v36  ;;  %5735 = vadd.xlane.f32.xlu1 %v5466_v20  ;;  %v5207_v37 = vmax.f32 %v4589_v44, 0.0  ;;  %v1469_v57 = vunpack.c.l.b16 %v941_v53 }
 0x1ef   : > { %4627 = vmatmul.bf16.gmra.mxu1 %v4255_v21  ;;  %v2387_v61 = vpop.f32.mrf.mxu2  ;;  %v4905_v18 = vpop.f32.mrf.mxu3  ;;  %v3228_v35 = vmax.f32 %v2972_v23, 0.0  ;;  %v1596_v36 = vunpack.c.l.b16 %v1068_v19  ;;  %v1597_v11 = vunpack.c.l.b16 %v1069_v5 }
 0x1f0   : > { %v4143_v41 = vunpack.c.l.b16 %v3611_v50  ;;  %v4906_v59 = vadd.f32 %v8663_v22, %v4905_v18  ;;  %v2812_v30 = vadd.f32 %v8822_v13, %v2387_v61  ;;  %v5467_v46 = vmul.f32 %v8678_v16, %v5207_v37 }
 0x1f1   : > { %v2069_v8 = vpop.f32.mrf.mxu0  ;;  %v3484_v50 = vpack.c.bf16 %v3228_v35, %v3228_v35  ;;  %v1699_v18 = vpack.c.b16 %v1469_v57, %v1468_v54  ;;  %v686_v37 = vmul.f32 %v8534_v26, %v8632_v9  ;;  %v687_v35 = vmul.f32 %v8536_v27, %v8632_v9 }
 0x1f2   : > { %v5334_v24 = vmax.f32 %v4906_v59, 0.0  ;;  %v2685_v51 = vadd.f32 %v8806_v31, %v2069_v8  ;;  %v4319_v60 = vpack.c.b16 %v4143_v41, %v4142_v49  ;;  %v3100_v21 = vadd.f32 %v7767_v4, %v2812_v30 }
 0x1f3   : > { %v4590_v25 = vpop.f32.mrf.mxu1  ;;  %v1763_v41 = vpack.c.b16 %v1597_v11, %v1596_v36  ;;  %v4016_v49 = vunpack.c.l.b16 %v3484_v50  ;;  %v8850_v11 = vld [vmem:[%s11306_s7] ss:$0 sm:$0xff]  ;;  %v7771_v50 = vld [vmem:[#allocation9 + $0x10] sm:$0xff] }
 0x1f4   : > { %v2973_v56 = vadd.f32 %v7768_v48, %v2685_v51  ;;  %v4591_v44 = vadd.f32 %v8663_v22, %v4590_v25  ;;  %v5594_v20 = vmul.f32 %v8678_v16, %v5334_v24  ;;  %4947 = vmatmul.bf16.gmra.mxu3 %v4319_v60  ;;  %v3356_v59 = vmax.f32 %v3100_v21, 0.0  ;;  %v8834_v22 = vld [vmem:[%s11305_s6] ss:$0 sm:$0xff] }
 0x1f5   : > { %v814_v25 = vmul.f32 %v8534_v26, %v8634_v3  ;;  %v815_v60 = vmul.f32 %v8536_v27, %v8634_v3  ;;  %v942_v21 = vpack.c.bf16 %v686_v37, %v686_v37 }
 0x1f6   : > { %v3229_v23 = vmax.f32 %v2973_v56, 0.0  ;;  %5991 = vadd.xlane.f32.xlu0 %v5594_v20  ;;  %5737 = vadd.xlane.f32.xlu2 %v5467_v46  ;;  %v5208_v19 = vmax.f32 %v4591_v44, 0.0  ;;  %v3612_v44 = vpack.c.bf16 %v3356_v59, %v3356_v59 }
 0x1f7   : > { %v2389_v7 = vpop.f32.mrf.mxu2  ;;  %v4908_v61 = vpop.f32.mrf.mxu3 }
 0x1f8   : > { %v3485_v53 = vpack.c.bf16 %v3229_v23, %v3229_v23  ;;  %v2813_v5 = vadd.f32 %v8822_v13, %v2389_v7  ;;  %v4909_v16 = vadd.f32 %v8834_v22, %v4908_v61 }
 0x1f9   : > { %v2072_v4 = vpop.f32.mrf.mxu0 }
 0x1fa   : > { %v4017_v30 = vunpack.c.l.b16 %v3485_v53  ;;  %v3101_v8 = vadd.f32 %v7768_v48, %v2813_v5  ;;  %v5335_v24 = vmax.f32 %v4909_v16, 0.0  ;;  %v2686_v51 = vadd.f32 %v8806_v31, %v2072_v4 }
 0x1fb   : > { %v4593_v54 = vpop.f32.mrf.mxu1  ;;  %v5468_v48 = vmul.f32 %v8850_v11, %v5208_v19  ;;  %v1071_v16 = vpack.c.bf16 %v815_v60, %v815_v60  ;;  %v4144_v4 = vunpack.c.l.b16 %v3612_v44  ;;  %v7772_v60 = vld [vmem:[#allocation9 + $0x18] sm:$0xff] }
 0x1fc   : > { %v3357_v57 = vmax.f32 %v3101_v8, 0.0  ;;  %v4594_v36 = vadd.f32 %v8834_v22, %v4593_v54  ;;  %2111 = vmatmul.bf16.gmra.mxu0 %v1699_v18  ;;  %2431 = vmatmul.bf16.gmra.mxu2 %v1763_v41  ;;  %v4256_v56 = vpack.c.b16 %v4017_v30, %v4016_v49  ;;  %v5595_v20 = vmul.f32 %v8850_v11, %v5335_v24 }
 0x1fd   : > { %v2974_v23 = vadd.f32 %v7771_v50, %v2686_v51  ;;  %v943_v18 = vpack.c.bf16 %v687_v35, %v687_v35  ;;  %v1070_v41 = vpack.c.bf16 %v814_v25, %v814_v25  ;;  %v1470_v30 = vunpack.c.l.b16 %v942_v21 }
 0x1fe   : > { %v3613_v46 = vpack.c.bf16 %v3357_v57, %v3357_v57  ;;  %5739 = vadd.xlane.f32.xlu0 %v5468_v48  ;;  %5993 = vadd.xlane.f32.xlu1 %v5595_v20  ;;  %v5209_v5 = vmax.f32 %v4594_v36, 0.0  ;;  %v1599_v36 = vunpack.c.l.b16 %v1071_v16 }
 0x1ff   : > { %4632 = vmatmul.bf16.gmra.mxu1 %v4256_v56  ;;  %v2392_v7 = vpop.f32.mrf.mxu2  ;;  %v4910_v61 = vpop.f32.mrf.mxu3  ;;  %v3230_v8 = vmax.f32 %v2974_v23, 0.0  ;;  %v1471_v35 = vunpack.c.l.b16 %v943_v18  ;;  %v1598_v48 = vunpack.c.l.b16 %v1070_v41 }
 0x200   : > { %v4145_v53 = vunpack.c.l.b16 %v3613_v46  ;;  %v2814_v19 = vadd.f32 %v8822_v13, %v2392_v7  ;;  %v4911_v59 = vadd.f32 %v8834_v22, %v4910_v61  ;;  %v5469_v57 = vmul.f32 %v8850_v11, %v5209_v5 }
 0x201   : > { %v2074_v49 = vpop.f32.mrf.mxu0  ;;  %v3486_v46 = vpack.c.bf16 %v3230_v8, %v3230_v8  ;;  %v1764_v5 = vpack.c.b16 %v1599_v36, %v1598_v48  ;;  %v689_v8 = vmul.f32 %v8552_v47, %v8632_v9  ;;  %v817_v48 = vmul.f32 %v8552_v47, %v8634_v3 }
 0x202   : > { %v5336_v37 = vmax.f32 %v4911_v59, 0.0  ;;  %v2687_v24 = vadd.f32 %v8806_v31, %v2074_v49  ;;  %v4320_v54 = vpack.c.b16 %v4145_v53, %v4144_v4  ;;  %v3102_v25 = vadd.f32 %v7771_v50, %v2814_v19 }
 0x203   : > { %v4595_v51 = vpop.f32.mrf.mxu1  ;;  %v1700_v53 = vpack.c.b16 %v1471_v35, %v1470_v30  ;;  %v688_v49 = vmul.f32 %v8550_v45, %v8632_v9  ;;  %v816_v30 = vmul.f32 %v8550_v45, %v8634_v3 }
 0x204   : > { %v2975_v56 = vadd.f32 %v7772_v60, %v2687_v24  ;;  %v4596_v44 = vadd.f32 %v8834_v22, %v4595_v51  ;;  %4952 = vmatmul.bf16.gmra.mxu3 %v4320_v54  ;;  %v5596_v20 = vmul.f32 %v8850_v11, %v5336_v37  ;;  %v3358_v50 = vmax.f32 %v3102_v25, 0.0 }
 0x205   : > { %v4018_v37 = vunpack.c.l.b16 %v3486_v46 }
 0x206   : > { %v3231_v21 = vmax.f32 %v2975_v56, 0.0  ;;  %5995 = vadd.xlane.f32.xlu2 %v5596_v20  ;;  %5741 = vadd.xlane.f32.xlu1 %v5469_v57  ;;  %v5210_v16 = vmax.f32 %v4596_v44, 0.0  ;;  %v3614_v36 = vpack.c.bf16 %v3358_v50, %v3358_v50  ;;  %v7773_v20 = vld [vmem:[#allocation9 + $0x20] sm:$0xff] }
 0x207   : > { %v2394_v23 = vpop.f32.mrf.mxu2  ;;  %v4913_v7 = vpop.f32.mrf.mxu3 }
 0x208   : > { %v2815_v61 = vadd.f32 %v8822_v13, %v2394_v23  ;;  %v4914_v18 = vadd.f32 %v8834_v22, %v4913_v7  ;;  %v3487_v41 = vpack.c.bf16 %v3231_v21, %v3231_v21  ;;  %v944_v7 = vpack.c.bf16 %v688_v49, %v688_v49  ;;  %v7774_v49 = vld [vmem:[#allocation9 + $0x28] sm:$0xff] }
 0x209   : > { %v2077_v4 = vpop.f32.mrf.mxu0 }
 0x20a   : > { %v3103_v19 = vadd.f32 %v7772_v60, %v2815_v61  ;;  %v5337_v59 = vmax.f32 %v4914_v18, 0.0  ;;  %v4019_v24 = vunpack.c.l.b16 %v3487_v41  ;;  %v2688_v51 = vadd.f32 %v8806_v31, %v2077_v4 }
 0x20b   : > { %v4598_v57 = vpop.f32.mrf.mxu1  ;;  %v5470_v60 = vmul.f32 %v8850_v11, %v5210_v16  ;;  %v945_v61 = vpack.c.bf16 %v689_v8, %v689_v8  ;;  %v1072_v18 = vpack.c.bf16 %v816_v30, %v816_v30  ;;  %v1073_v41 = vpack.c.bf16 %v817_v48, %v817_v48 }
 0x20c   : > { %v3359_v54 = vmax.f32 %v3103_v19, 0.0  ;;  %2116 = vmatmul.bf16.gmra.mxu0 %v1700_v53  ;;  %2436 = vmatmul.bf16.gmra.mxu2 %v1764_v5  ;;  %v5597_v35 = vmul.f32 %v8850_v11, %v5337_v59  ;;  %v4599_v25 = vadd.f32 %v8834_v22, %v4598_v57  ;;  %v4257_v56 = vpack.c.b16 %v4019_v24, %v4018_v37 }
 0x20d   : > { %v2976_v46 = vadd.f32 %v7773_v20, %v2688_v51  ;;  %v4146_v4 = vunpack.c.l.b16 %v3614_v36  ;;  %v1473_v57 = vunpack.c.l.b16 %v945_v61  ;;  %v1601_v48 = vunpack.c.l.b16 %v1073_v41 }
 0x20e   : > { %v3615_v44 = vpack.c.bf16 %v3359_v54, %v3359_v54  ;;  %5997 = vadd.xlane.f32.xlu0 %v5597_v35  ;;  %5743 = vadd.xlane.f32.xlu2 %v5470_v60  ;;  %v5211_v5 = vmax.f32 %v4599_v25, 0.0  ;;  %v1472_v54 = vunpack.c.l.b16 %v944_v7  ;;  %v1600_v35 = vunpack.c.l.b16 %v1072_v18 }
 0x20f   : > { %4637 = vmatmul.bf16.gmra.mxu1 %v4257_v56  ;;  %v2397_v21 = vpop.f32.mrf.mxu2  ;;  %v4915_v23 = vpop.f32.mrf.mxu3  ;;  %v3232_v59 = vmax.f32 %v2976_v46, 0.0 }
 0x210   : > { %v4147_v53 = vunpack.c.l.b16 %v3615_v44  ;;  %v4916_v50 = vadd.f32 %v8834_v22, %v4915_v23  ;;  %v2816_v16 = vadd.f32 %v8822_v13, %v2397_v21  ;;  %v5471_v60 = vmul.f32 %v8850_v11, %v5211_v5 }
 0x211   : > { %v2079_v19 = vpop.f32.mrf.mxu0  ;;  %v3488_v44 = vpack.c.bf16 %v3232_v59, %v3232_v59  ;;  %v1701_v18 = vpack.c.b16 %v1473_v57, %v1472_v54  ;;  %v691_v59 = vmul.f32 %v8568_v0, %v8632_v9  ;;  %v818_v54 = vmul.f32 %v8566_v63, %v8634_v3 }
 0x212   : > { %v5338_v37 = vmax.f32 %v4916_v50, 0.0  ;;  %v2689_v24 = vadd.f32 %v8806_v31, %v2079_v19  ;;  %v4321_v51 = vpack.c.b16 %v4147_v53, %v4146_v4  ;;  %v3104_v36 = vadd.f32 %v7773_v20, %v2816_v16 }
 0x213   : > { %v4600_v30 = vpop.f32.mrf.mxu1  ;;  %v1765_v53 = vpack.c.b16 %v1601_v48, %v1600_v35  ;;  %v4020_v20 = vunpack.c.l.b16 %v3488_v44  ;;  %v690_v19 = vmul.f32 %v8566_v63, %v8632_v9  ;;  %v7775_v44 = vld [vmem:[#allocation9 + $0x30] sm:$0xff] }
 0x214   : > { %v2977_v8 = vadd.f32 %v7774_v49, %v2689_v24  ;;  %v5598_v25 = vmul.f32 %v8850_v11, %v5338_v37  ;;  %v4601_v56 = vadd.f32 %v8834_v22, %v4600_v30  ;;  %4957 = vmatmul.bf16.gmra.mxu3 %v4321_v51  ;;  %v3360_v50 = vmax.f32 %v3104_v36, 0.0 }
 0x215   : > { %v819_v30 = vmul.f32 %v8568_v0, %v8634_v3  ;;  %v946_v36 = vpack.c.bf16 %v690_v19, %v690_v19 }
 0x216   : > { %v3233_v46 = vmax.f32 %v2977_v8, 0.0  ;;  %5999 = vadd.xlane.f32.xlu1 %v5598_v25  ;;  %5745 = vadd.xlane.f32.xlu0 %v5471_v60  ;;  %v5212_v7 = vmax.f32 %v4601_v56, 0.0  ;;  %v3616_v25 = vpack.c.bf16 %v3360_v50, %v3360_v50 }
 0x217   : > { %v2399_v21 = vpop.f32.mrf.mxu2  ;;  %v4918_v61 = vpop.f32.mrf.mxu3 }
 0x218   : > { %v3489_v23 = vpack.c.bf16 %v3233_v46, %v3233_v46  ;;  %v2817_v4 = vadd.f32 %v8822_v13, %v2399_v21  ;;  %v4919_v5 = vadd.f32 %v8834_v22, %v4918_v61  ;;  %v5472_v35 = vmul.f32 %v8850_v11, %v5212_v7 }
 0x219   : > { %v2082_v41 = vpop.f32.mrf.mxu0  ;;  %v947_v61 = vpack.c.bf16 %v691_v59, %v691_v59  ;;  %v4148_v50 = vunpack.c.l.b16 %v3616_v25  ;;  %v7776_v59 = vld [vmem:[#allocation9 + $0x38] sm:$0xff] }
 0x21a   : > { %v4021_v16 = vunpack.c.l.b16 %v3489_v23  ;;  %v3105_v37 = vadd.f32 %v7774_v49, %v2817_v4  ;;  %v5339_v24 = vmax.f32 %v4919_v5, 0.0  ;;  %v2690_v51 = vadd.f32 %v8806_v31, %v2082_v41 }
 0x21b   : > { %v4603_v57 = vpop.f32.mrf.mxu1 }
 0x21c   : > { %2121 = vmatmul.bf16.gmra.mxu0 %v1701_v18  ;;  %2441 = vmatmul.bf16.gmra.mxu2 %v1765_v53  ;;  %v4258_v8 = vpack.c.b16 %v4021_v16, %v4020_v20  ;;  %v3361_v60 = vmax.f32 %v3105_v37, 0.0  ;;  %v4604_v48 = vadd.f32 %v8834_v22, %v4603_v57  ;;  %v5599_v49 = vmul.f32 %v8850_v11, %v5339_v24 }
 0x21d   : > { %v2978_v46 = vadd.f32 %v7775_v44, %v2690_v51  ;;  %v1074_v18 = vpack.c.bf16 %v818_v54, %v818_v54  ;;  %v1075_v53 = vpack.c.bf16 %v819_v30, %v819_v30  ;;  %v1474_v16 = vunpack.c.l.b16 %v946_v36 }
 0x21e   : > { %5747 = vadd.xlane.f32.xlu1 %v5472_v35  ;;  %v3617_v56 = vpack.c.bf16 %v3361_v60, %v3361_v60  ;;  %6001 = vadd.xlane.f32.xlu2 %v5599_v49  ;;  %v5213_v5 = vmax.f32 %v4604_v48, 0.0 }
 0x21f   : > { %4642 = vmatmul.bf16.gmra.mxu1 %v4258_v8  ;;  %v2402_v21 = vpop.f32.mrf.mxu2  ;;  %v4920_v7 = vpop.f32.mrf.mxu3  ;;  %v3234_v19 = vmax.f32 %v2978_v46, 0.0  ;;  %v1475_v8 = vunpack.c.l.b16 %v947_v61  ;;  %v1602_v60 = vunpack.c.l.b16 %v1074_v18  ;;  %v1603_v49 = vunpack.c.l.b16 %v1075_v53 }
 0x220   : > { %v2818_v23 = vadd.f32 %v8822_v13, %v2402_v21  ;;  %v4149_v4 = vunpack.c.l.b16 %v3617_v56  ;;  %v4921_v41 = vadd.f32 %v8834_v22, %v4920_v7  ;;  %v5473_v48 = vmul.f32 %v8850_v11, %v5213_v5 }
 0x221   : > { %v2084_v20 = vpop.f32.mrf.mxu0  ;;  %v3490_v36 = vpack.c.bf16 %v3234_v19, %v3234_v19  ;;  %v1702_v7 = vpack.c.b16 %v1475_v8, %v1474_v16  ;;  %v1766_v61 = vpack.c.b16 %v1603_v49, %v1602_v60  ;;  %v820_v19 = vmul.f32 %v8582_v28, %v8634_v3 }
 0x222   : > { %v5340_v37 = vmax.f32 %v4921_v41, 0.0  ;;  %v2691_v24 = vadd.f32 %v8806_v31, %v2084_v20  ;;  %v4322_v51 = vpack.c.b16 %v4149_v4, %v4148_v50  ;;  %v3106_v57 = vadd.f32 %v7775_v44, %v2818_v23 }
 0x223   : > { %v4605_v35 = vpop.f32.mrf.mxu1  ;;  %v692_v4 = vmul.f32 %v8582_v28, %v8632_v9  ;;  %v693_v20 = vmul.f32 %v8584_v29, %v8632_v9  ;;  %v4022_v16 = vunpack.c.l.b16 %v3490_v36  ;;  %v1076_v36 = vpack.c.bf16 %v820_v19, %v820_v19 }
 0x224   : > { %v2979_v54 = vadd.f32 %v7776_v59, %v2691_v24  ;;  %v4606_v30 = vadd.f32 %v8834_v22, %v4605_v35  ;;  %4962 = vmatmul.bf16.gmra.mxu3 %v4322_v51  ;;  %v5600_v25 = vmul.f32 %v8850_v11, %v5340_v37  ;;  %v3362_v21 = vmax.f32 %v3106_v57, 0.0 }
 0x225   : > { %v821_v37 = vmul.f32 %v8584_v29, %v8634_v3  ;;  %v1604_v19 = vunpack.c.l.b16 %v1076_v36 }
 0x226   : > { %v3235_v56 = vmax.f32 %v2979_v54, 0.0  ;;  %6003 = vadd.xlane.f32.xlu0 %v5600_v25  ;;  %5749 = vadd.xlane.f32.xlu2 %v5473_v48  ;;  %v5214_v53 = vmax.f32 %v4606_v30, 0.0  ;;  %v3618_v35 = vpack.c.bf16 %v3362_v21, %v3362_v21  ;;  %v948_v48 = vpack.c.bf16 %v692_v4, %v692_v4 }
 0x227   : > { %v2404_v46 = vpop.f32.mrf.mxu2  ;;  %v4923_v23 = vpop.f32.mrf.mxu3 }
 0x228   : > { %v2819_v44 = vadd.f32 %v8822_v13, %v2404_v46  ;;  %v3491_v18 = vpack.c.bf16 %v3235_v56, %v3235_v56  ;;  %v4924_v50 = vadd.f32 %v8834_v22, %v4923_v23  ;;  %v5474_v54 = vmul.f32 %v8850_v11, %v5214_v53  ;;  %v7777_v46 = vld [vmem:[#allocation9 + $0x40] sm:$0xff] }
 0x229   : > { %v2087_v5 = vpop.f32.mrf.mxu0  ;;  %v949_v56 = vpack.c.bf16 %v693_v20, %v693_v20  ;;  %v1077_v23 = vpack.c.bf16 %v821_v37, %v821_v37  ;;  %v1476_v4 = vunpack.c.l.b16 %v948_v48 }
 0x22a   : > { %v3107_v41 = vadd.f32 %v7776_v59, %v2819_v44  ;;  %v4023_v24 = vunpack.c.l.b16 %v3491_v18  ;;  %v5341_v51 = vmax.f32 %v4924_v50, 0.0  ;;  %v2692_v57 = vadd.f32 %v8806_v31, %v2087_v5 }
 0x22b   : > { %v4608_v60 = vpop.f32.mrf.mxu1  ;;  %v4150_v18 = vunpack.c.l.b16 %v3618_v35  ;;  %v1477_v20 = vunpack.c.l.b16 %v949_v56 }
 0x22c   : > { %v3363_v8 = vmax.f32 %v3107_v41, 0.0  ;;  %2126 = vmatmul.bf16.gmra.mxu0 %v1702_v7  ;;  %2446 = vmatmul.bf16.gmra.mxu2 %v1766_v61  ;;  %v4609_v49 = vadd.f32 %v8834_v22, %v4608_v60  ;;  %v5601_v59 = vmul.f32 %v8850_v11, %v5341_v51  ;;  %v4259_v30 = vpack.c.b16 %v4023_v24, %v4022_v16  ;;  %v7778_v60 = vld [vmem:[#allocation9 + $0x48] sm:$0xff] }
 0x22d   : > { %v2980_v44 = vadd.f32 %v7777_v46, %v2692_v57  ;;  %v1703_v36 = vpack.c.b16 %v1477_v20, %v1476_v4  ;;  %v823_v4 = vmul.f32 %v8600_v58, %v8634_v3 }
 0x22e   : > { %v3619_v25 = vpack.c.bf16 %v3363_v8, %v3363_v8  ;;  %6005 = vadd.xlane.f32.xlu1 %v5601_v59  ;;  %5751 = vadd.xlane.f32.xlu0 %v5474_v54  ;;  %v5215_v41 = vmax.f32 %v4609_v49, 0.0  ;;  %v1605_v8 = vunpack.c.l.b16 %v1077_v23 }
 0x22f   : > { %v2407_v21 = vpop.f32.mrf.mxu2  ;;  %4647 = vmatmul.bf16.gmra.mxu1 %v4259_v30  ;;  %v4925_v50 = vpop.f32.mrf.mxu3  ;;  %v3236_v24 = vmax.f32 %v2980_v44, 0.0 }
 0x230   : > { %v4151_v7 = vunpack.c.l.b16 %v3619_v25  ;;  %v2820_v61 = vadd.f32 %v8822_v13, %v2407_v21  ;;  %v4926_v53 = vadd.f32 %v8834_v22, %v4925_v50  ;;  %v5475_v30 = vmul.f32 %v8850_v11, %v5215_v41 }
 0x231   : > { %v2089_v5 = vpop.f32.mrf.mxu0  ;;  %v3492_v25 = vpack.c.bf16 %v3236_v24, %v3236_v24  ;;  %v1767_v44 = vpack.c.b16 %v1605_v8, %v1604_v19 }
 0x232   : > { %v4323_v16 = vpack.c.b16 %v4151_v7, %v4150_v18  ;;  %v5342_v51 = vmax.f32 %v4926_v53, 0.0  ;;  %v2693_v57 = vadd.f32 %v8806_v31, %v2089_v5  ;;  %v3108_v37 = vadd.f32 %v7777_v46, %v2820_v61 }
 0x233   : > { %v4610_v35 = vpop.f32.mrf.mxu1  ;;  %v694_v18 = vmul.f32 %v8598_v62, %v8632_v9  ;;  %v695_v7 = vmul.f32 %v8600_v58, %v8632_v9  ;;  %v4024_v20 = vunpack.c.l.b16 %v3492_v25  ;;  %v7779_v25 = vld [vmem:[#allocation9 + $0x50] sm:$0xff] }
 0x234   : > { %v2981_v59 = vadd.f32 %v7778_v60, %v2693_v57  ;;  %v4611_v54 = vadd.f32 %v8834_v22, %v4610_v35  ;;  %4967 = vmatmul.bf16.gmra.mxu3 %v4323_v16  ;;  %v5602_v49 = vmul.f32 %v8850_v11, %v5342_v51  ;;  %v3364_v21 = vmax.f32 %v3108_v37, 0.0 }
 0x235   : > { %v822_v16 = vmul.f32 %v8598_v62, %v8634_v3  ;;  %v950_v35 = vpack.c.bf16 %v694_v18, %v694_v18 }
 0x236   : > { %v3237_v48 = vmax.f32 %v2981_v59, 0.0  ;;  %6007 = vadd.xlane.f32.xlu2 %v5602_v49  ;;  %5753 = vadd.xlane.f32.xlu1 %v5475_v30  ;;  %v5216_v50 = vmax.f32 %v4611_v54, 0.0  ;;  %v3620_v57 = vpack.c.bf16 %v3364_v21, %v3364_v21  ;;  %v951_v59 = vpack.c.bf16 %v695_v7, %v695_v7 }
 0x237   : > { %v2409_v56 = vpop.f32.mrf.mxu2  ;;  %v4928_v23 = vpop.f32.mrf.mxu3 }
 0x238   : > { %v2821_v46 = vadd.f32 %v8822_v13, %v2409_v56  ;;  %v3493_v61 = vpack.c.bf16 %v3237_v48, %v3237_v48  ;;  %v4929_v41 = vadd.f32 %v8834_v22, %v4928_v23  ;;  %v5476_v49 = vmul.f32 %v8850_v11, %v5216_v50 }
 0x239   : > { %v2092_v5 = vpop.f32.mrf.mxu0  ;;  %v1079_v23 = vpack.c.bf16 %v823_v4, %v823_v4  ;;  %v1479_v50 = vunpack.c.l.b16 %v951_v59 }
 0x23a   : > { %v3109_v53 = vadd.f32 %v7778_v60, %v2821_v46  ;;  %v4025_v19 = vunpack.c.l.b16 %v3493_v61  ;;  %v5343_v24 = vmax.f32 %v4929_v41, 0.0  ;;  %v2694_v51 = vadd.f32 %v8806_v31, %v2092_v5 }
 0x23b   : > { %v1078_v46 = vpack.c.bf16 %v822_v16, %v822_v16  ;;  %v4152_v61 = vunpack.c.l.b16 %v3620_v57  ;;  %v1607_v16 = vunpack.c.l.b16 %v1079_v23  ;;  %v696_v23 = vmul.f32 %v8616_v40, %v8632_v9 }
 0x23c   : > { %v3365_v8 = vmax.f32 %v3109_v53, 0.0  ;;  %v4613_v37 = vpop.f32.mrf.mxu1  ;;  %2131 = vmatmul.bf16.gmra.mxu0 %v1703_v36  ;;  %2451 = vmatmul.bf16.gmra.mxu2 %v1767_v44  ;;  %v5603_v54 = vmul.f32 %v8850_v11, %v5343_v24  ;;  %v4260_v30 = vpack.c.b16 %v4025_v19, %v4024_v20  ;;  %v2982_v56 = vadd.f32 %v7779_v25, %v2694_v51 }
 0x23d   : > { %v4614_v60 = vadd.f32 %v8834_v22, %v4613_v37  ;;  %v1478_v53 = vunpack.c.l.b16 %v950_v35  ;;  %v1606_v24 = vunpack.c.l.b16 %v1078_v46  ;;  %v7780_v37 = vld [vmem:[#allocation9 + $0x58] sm:$0xff] }
 0x23e   : > { %v3621_v48 = vpack.c.bf16 %v3365_v8, %v3365_v8  ;;  %6009 = vadd.xlane.f32.xlu0 %v5603_v54  ;;  %5755 = vadd.xlane.f32.xlu2 %v5476_v49  ;;  %v3238_v5 = vmax.f32 %v2982_v56, 0.0 }
 0x23f   : > { %v2412_v21 = vpop.f32.mrf.mxu2  ;;  %4652 = vmatmul.bf16.gmra.mxu1 %v4260_v30  ;;  %v4930_v18 = vpop.f32.mrf.mxu3  ;;  %v5217_v7 = vmax.f32 %v4614_v60, 0.0  ;;  %v1704_v30 = vpack.c.b16 %v1479_v50, %v1478_v53  ;;  %v7781_v53 = vld [vmem:[%s8363_s0] sm:$0xf]  ;;  %v11391_v50 = vld [vmem:[#allocation26_spill] sm:$0xff]  ;;  %s7299_s0 = scalar_lea.hbm %s11308_s9, %s7556_s16 }
 0x240   : > { %v4153_v36 = vunpack.c.l.b16 %v3621_v48  ;;  %v2822_v44 = vadd.f32 %v8822_v13, %v2412_v21  ;;  %v4931_v41 = vadd.f32 %v8834_v22, %v4930_v18  ;;  %v3494_v59 = vpack.c.bf16 %v3238_v5, %v3238_v5  ;;  %s7303_s20 = sshll.u32 %s7299_s0, 4  ;;  %s7304_s20 = int_to_ptr.hbm [resolvable:$true] %s7303_s20 }
 0x241   : > { %v2094_v20 = vpop.f32.mrf.mxu0  ;;  %v5477_v35 = vmul.f32 %v8850_v11, %v5217_v7  ;;  %v1768_v48 = vpack.c.b16 %v1607_v16, %v1606_v24  ;;  %v697_v21 = vmul.f32 %v8618_v2, %v8632_v9  ;;  %v824_v18 = vmul.f32 %v8616_v40, %v8634_v3  ;;  %s8076_s10 = sshra.s32 %s7304_s20, 4  ;;  %s8077_s10 = int_to_ptr.hbm [resolvable:$true] %s8076_s10 }
 0x242   : > { %v4324_v19 = vpack.c.b16 %v4153_v36, %v4152_v61  ;;  %v3110_v4 = vadd.f32 %v7779_v25, %v2822_v44  ;;  %v5344_v51 = vmax.f32 %v4931_v41, 0.0  ;;  %v2695_v8 = vadd.f32 %v8806_v31, %v2094_v20  ;;  %p8083_p10 = scmp.lt.s32.totalorder %s8077_s10, %s11308_s9 }
 0x243   : > { %v527_v5 = vsel %vm11348_vm2, %v7781_v53, %v11391_v50  ;;  %v4026_v20 = vunpack.c.l.b16 %v3494_v59  ;;  %v825_v9 = vmul.f32 %v8618_v2, %v8634_v3 }
 0x244   : > { %v4615_v57 = vpop.f32.mrf.mxu1  ;;  %v2983_v54 = vadd.f32 %v7780_v37, %v2695_v8  ;;  %4972 = vmatmul.bf16.gmra.mxu3 %v4324_v19  ;;  %v5604_v60 = vmul.f32 %v8850_v11, %v5344_v51  ;;  %v3366_v56 = vmax.f32 %v3110_v4, 0.0  ;;  %v8953_v16 = vrot.slane %v527_v5, 1 }
 0x245   : > { %v4616_v49 = vadd.f32 %v8834_v22, %v4615_v57 }
 0x246   : > { %v3239_v46 = vmax.f32 %v2983_v54, 0.0  ;;  %6011 = vadd.xlane.f32.xlu1 %v5604_v60  ;;  %5757 = vadd.xlane.f32.xlu0 %v5477_v35  ;;  %v3622_v4 = vpack.c.bf16 %v3366_v56, %v3366_v56  ;;  %v952_v60 = vpack.c.bf16 %v696_v23, %v696_v23  ;;  %v535_v35 = vsel %vm11345_vm3, %v7781_v53, %v11391_v50 }
 0x247   : > { %v2414_v25 = vpop.f32.mrf.mxu2  ;;  %v5218_v61 = vmax.f32 %v4616_v49, 0.0  ;;  %v4933_v44 = vpop.f32.mrf.mxu3  ;;  %v1080_v23 = vpack.c.bf16 %v824_v18, %v824_v18  ;;  %v8963_v53 = vrot.slane %v535_v35, 3  ;;  %vm6792_vm3 = vcmask 982912  }
 0x248   : > { %v2823_v36 = vadd.f32 %v8822_v13, %v2414_v25  ;;  %v3495_v7 = vpack.c.bf16 %v3239_v46, %v3239_v46  ;;  %v4934_v41 = vadd.f32 %v8834_v22, %v4933_v44  ;;  %v7782_v25 = vld [vmem:[#allocation9 + $0x60] sm:$0xff]  ;;  %v953_v44 = vpack.c.bf16 %v697_v21, %v697_v21 }
 0x249   : > { %v2097_v24 = vpop.f32.mrf.mxu0  ;;  %v5478_v3 = vmul.f32 %v8850_v11, %v5218_v61  ;;  %v1480_v18 = vunpack.c.l.b16 %v952_v60 }
 0x24a   : > { %v3111_v19 = vadd.f32 %v7780_v37, %v2823_v36  ;;  %v4027_v51 = vunpack.c.l.b16 %v3495_v7  ;;  %v5345_v8 = vmax.f32 %v4934_v41, 0.0  ;;  %v2696_v57 = vadd.f32 %v8806_v31, %v2097_v24 }
 0x24b   : > { %v7468_v7 = vpack.i.b16 %v8953_v16, %v8953_v16  ;;  %v1081_v41 = vpack.c.bf16 %v825_v9, %v825_v9  ;;  %v7470_v24 = vpack.i.b16 %v8963_v53, %v8963_v53 }
 0x24c   : > { %v3367_v54 = vmax.f32 %v3111_v19, 0.0  ;;  %v4618_v49 = vpop.f32.mrf.mxu1  ;;  %2136 = vmatmul.bf16.gmra.mxu0 %v1704_v30  ;;  %2456 = vmatmul.bf16.gmra.mxu2 %v1768_v48  ;;  %v5605_v59 = vmul.f32 %v8850_v11, %v5345_v8  ;;  %v4261_v46 = vpack.c.b16 %v4027_v51, %v4026_v20  ;;  %v2984_v36 = vadd.f32 %v7782_v25, %v2696_v57 }
 0x24d   : > { %v4619_v37 = vadd.f32 %v8834_v22, %v4618_v49  ;;  %v4154_v30 = vunpack.c.l.b16 %v3622_v4  ;;  %v556_v19 = vperm.slane %v7468_v7, 0  ;;  %v1481_v49 = vunpack.c.l.b16 %v953_v44  ;;  %v7783_v7 = vld [vmem:[#allocation9 + $0x68] sm:$0xff] }
 0x24e   : > { %v3623_v56 = vpack.c.bf16 %v3367_v54, %v3367_v54  ;;  %6013 = vadd.xlane.f32.xlu2 %v5605_v59  ;;  %5759 = vadd.xlane.f32.xlu1 %v5478_v3  ;;  %v3240_v4 = vmax.f32 %v2984_v36, 0.0  ;;  %v1608_v3 = vunpack.c.l.b16 %v1080_v23 }
 0x24f   : > { %v2417_v48 = vpop.f32.mrf.mxu2  ;;  %v5219_v5 = vmax.f32 %v4619_v37, 0.0  ;;  %4657 = vmatmul.bf16.gmra.mxu1 %v4261_v46  ;;  %v4935_v20 = vpop.f32.mrf.mxu3  ;;  %v571_v35 = vpack.i.b16 %v556_v19, %v556_v19  ;;  %v1609_v46 = vunpack.c.l.b16 %v1081_v41 }
 0x250   : > { %v4155_v50 = vunpack.c.l.b16 %v3623_v56  ;;  %v2824_v61 = vadd.f32 %v8822_v13, %v2417_v48  ;;  %v4936_v21 = vadd.f32 %v8834_v22, %v4935_v20  ;;  %v560_v56 = vperm.slane %v7470_v24, 0 }
 0x251   : > { %v2099_v8 = vpop.f32.mrf.mxu0  ;;  %v5479_v59 = vmul.f32 %v8850_v11, %v5219_v5  ;;  %v573_v36 = vperm.slane %v571_v35, 0  ;;  %v3496_v60 = vpack.c.bf16 %v3240_v4, %v3240_v4  ;;  %v1705_v5 = vpack.c.b16 %v1481_v49, %v1480_v18  ;;  %v11392_v18 = vld [vmem:[#allocation27_spill] sm:$0xff] }
 0x252   : > { %v3112_v51 = vadd.f32 %v7782_v25, %v2824_v61  ;;  %v4325_v57 = vpack.c.b16 %v4155_v50, %v4154_v30  ;;  %v5346_v9 = vmax.f32 %v4936_v21, 0.0  ;;  %v2697_v54 = vadd.f32 %v8806_v31, %v2099_v8 }
 0x253   : > { %v587_v50 = vpack.i.b16 %v560_v56, %v560_v56  ;;  %v8973_v19 = vunpack.c.l.bf16 %v573_v36  ;;  %v1769_v21 = vpack.c.b16 %v1609_v46, %v1608_v3 }
 0x254   : > { %v4620_v37 = vpop.f32.mrf.mxu1  ;;  %v2985_v48 = vadd.f32 %v7783_v7, %v2697_v54  ;;  %4977 = vmatmul.bf16.gmra.mxu3 %v4325_v57  ;;  %v5606_v25 = vmul.f32 %v8850_v11, %v5346_v9  ;;  %v3368_v30 = vmax.f32 %v3112_v51, 0.0  ;;  %v4028_v9 = vunpack.c.l.b16 %v3496_v60 }
 0x255   : > { %v4621_v20 = vadd.f32 %v8834_v22, %v4620_v37  ;;  %v589_v35 = vperm.slane %v587_v50, 0  ;;  %v699_v49 = vmul.f32 %v11392_v18, %v8973_v19 }
 0x256   : > { %v3241_v61 = vmax.f32 %v2985_v48, 0.0  ;;  %6015 = vadd.xlane.f32.xlu0 %v5606_v25  ;;  %5761 = vadd.xlane.f32.xlu2 %v5479_v59  ;;  %v3624_v54 = vpack.c.bf16 %v3368_v30, %v3368_v30  ;;  %v698_v48 = vmul.f32 %v8402_v15, %v8973_v19  ;;  %v7784_v30 = vld [vmem:[#allocation9 + $0x70] sm:$0xff] }
 0x257   : > { %v2419_v44 = vpop.f32.mrf.mxu2  ;;  %v4938_v41 = vpop.f32.mrf.mxu3  ;;  %v5220_v8 = vmax.f32 %v4621_v20, 0.0 }
 0x258   : > { %v2825_v23 = vadd.f32 %v8822_v13, %v2419_v44  ;;  %v3497_v24 = vpack.c.bf16 %v3241_v61, %v3241_v61  ;;  %v4939_v57 = vadd.f32 %v8834_v22, %v4938_v41  ;;  %v4156_v61 = vunpack.c.l.b16 %v3624_v54 }
 0x259   : > { %v2102_v51 = vpop.f32.mrf.mxu0  ;;  %v8985_v41 = vunpack.c.l.bf16 %v589_v35 }
 0x25a   : > { %v3113_v4 = vadd.f32 %v7783_v7, %v2825_v23  ;;  %v4029_v37 = vunpack.c.l.b16 %v3497_v24  ;;  %v5347_v56 = vmax.f32 %v4939_v57, 0.0  ;;  %v2698_v59 = vadd.f32 %v8806_v31, %v2102_v51 }
 0x25b   : > { %v5480_v7 = vmul.f32 %v8850_v11, %v5220_v8  ;;  %v954_v23 = vpack.c.bf16 %v698_v48, %v698_v48  ;;  %v826_v35 = vmul.f32 %v8402_v15, %v8985_v41  ;;  %v8992_v48 = vpop.xlane.xlu0 %5709 }
 0x25c   : > { %v3369_v25 = vmax.f32 %v3113_v4, 0.0  ;;  %v4623_v36 = vpop.f32.mrf.mxu1  ;;  %2141 = vmatmul.bf16.gmra.mxu0 %v1705_v5  ;;  %2461 = vmatmul.bf16.gmra.mxu2 %v1769_v21  ;;  %v5607_v46 = vmul.f32 %v8850_v11, %v5347_v56  ;;  %v4262_v20 = vpack.c.b16 %v4029_v37, %v4028_v9  ;;  %v2986_v50 = vadd.f32 %v7784_v30, %v2698_v59 }
 0x25d   : > { %v4624_v3 = vadd.f32 %v8834_v22, %v4623_v36  ;;  %v955_v4 = vpack.c.bf16 %v699_v49, %v699_v49  ;;  %11393 = vst [vmem:[#allocation26_spill] sm:$0xff] %v8992_v48  ;;  %v827_v49 = vmul.f32 %v11392_v18, %v8985_v41 }
 0x25e   : > { %v3625_v60 = vpack.c.bf16 %v3369_v25, %v3369_v25  ;;  %6017 = vadd.xlane.f32.xlu1 %v5607_v46  ;;  %5763 = vadd.xlane.f32.xlu0 %v5480_v7  ;;  %v3242_v9 = vmax.f32 %v2986_v50, 0.0  ;;  %v8997_v7 = vpop.xlane.xlu2 %5965 }
 0x25f   : > { %v2422_v44 = vpop.f32.mrf.mxu2  ;;  %v5221_v21 = vmax.f32 %v4624_v3, 0.0  ;;  %4662 = vmatmul.bf16.gmra.mxu1 %v4262_v20  ;;  %v4940_v57 = vpop.f32.mrf.mxu3  ;;  %v1482_v3 = vunpack.c.l.b16 %v954_v23  ;;  %v1483_v46 = vunpack.c.l.b16 %v955_v4  ;;  %11394 = vst [vmem:[#allocation27_spill] sm:$0xff] %v8997_v7  ;;  %v7785_v20 = vld [vmem:[#allocation9 + $0x78] sm:$0xff] }
 0x260   : > { %v4157_v5 = vunpack.c.l.b16 %v3625_v60  ;;  %v2826_v24 = vadd.f32 %v8822_v13, %v2422_v44  ;;  %v4941_v8 = vadd.f32 %v8834_v22, %v4940_v57  ;;  %v9001_v44 = vpop.xlane.xlu1 %5713 }
 0x261   : > { %v2104_v51 = vpop.f32.mrf.mxu0  ;;  %v5481_v36 = vmul.f32 %v8850_v11, %v5221_v21  ;;  %11395 = vst [vmem:[#allocation39_spill] sm:$0xff] %v9001_v44 }
 0x262   : > { %v4326_v37 = vpack.c.b16 %v4157_v5, %v4156_v61  ;;  %v3114_v56 = vadd.f32 %v7784_v30, %v2826_v24  ;;  %v5348_v54 = vmax.f32 %v4941_v8, 0.0  ;;  %v2699_v59 = vadd.f32 %v8806_v31, %v2104_v51 }
 0x263   : > { %v1082_v61 = vpack.c.bf16 %v826_v35, %v826_v35  ;;  %v3498_v5 = vpack.c.bf16 %v3242_v9, %v3242_v9  ;;  %v1083_v24 = vpack.c.bf16 %v827_v49, %v827_v49 }
 0x264   : > { %v4625_v25 = vpop.f32.mrf.mxu1  ;;  %v2987_v60 = vadd.f32 %v7785_v20, %v2699_v59  ;;  %4982 = vmatmul.bf16.gmra.mxu3 %v4326_v37  ;;  %v5608_v50 = vmul.f32 %v8850_v11, %v5348_v54  ;;  %v3370_v21 = vmax.f32 %v3114_v56, 0.0  ;;  %v1706_v59 = vpack.c.b16 %v1483_v46, %v1482_v3 }
 0x265   : > { %v4626_v30 = vadd.f32 %v8834_v22, %v4625_v25  ;;  %v1610_v4 = vunpack.c.l.b16 %v1082_v61  ;;  %v1611_v7 = vunpack.c.l.b16 %v1083_v24  ;;  %v4030_v35 = vunpack.c.l.b16 %v3498_v5 }
 0x266   : > { %v3243_v23 = vmax.f32 %v2987_v60, 0.0  ;;  %6019 = vadd.xlane.f32.xlu2 %v5608_v50  ;;  %5765 = vadd.xlane.f32.xlu1 %v5481_v36  ;;  %v700_v56 = vmul.f32 %v8418_v39, %v8973_v19  ;;  %v3626_v49 = vpack.c.bf16 %v3370_v21, %v3370_v21  ;;  %v701_v3 = vmul.f32 %v8420_v42, %v8973_v19 }
 0x267   : > { %v2424_v57 = vpop.f32.mrf.mxu2  ;;  %v4943_v51 = vpop.f32.mrf.mxu3  ;;  %v5222_v37 = vmax.f32 %v4626_v30, 0.0  ;;  %v1770_v9 = vpack.c.b16 %v1611_v7, %v1610_v4  ;;  %v828_v46 = vmul.f32 %v8418_v39, %v8985_v41 }
 0x268   : > { %v2827_v8 = vadd.f32 %v8822_v13, %v2424_v57  ;;  %v3499_v25 = vpack.c.bf16 %v3243_v23, %v3243_v23  ;;  %v4944_v54 = vadd.f32 %v8834_v22, %v4943_v51  ;;  %v4158_v21 = vunpack.c.l.b16 %v3626_v49  ;;  %v7786_v23 = vld [vmem:[#allocation9 + $0x80] sm:$0xff] }
 0x269   : > { %v2107_v44 = vpop.f32.mrf.mxu0  ;;  %v5482_v5 = vmul.f32 %v8850_v11, %v5222_v37  ;;  %v956_v51 = vpack.c.bf16 %v700_v56, %v700_v56 }
 0x26a   : > { %v3115_v48 = vadd.f32 %v7785_v20, %v2827_v8  ;;  %v4031_v36 = vunpack.c.l.b16 %v3499_v25  ;;  %v5349_v60 = vmax.f32 %v4944_v54, 0.0  ;;  %v2700_v50 = vadd.f32 %v8806_v31, %v2107_v44  ;;  %v9012_v20 = vpop.xlane.xlu2 %5717  ;;  %v9017_v44 = vpop.xlane.xlu0 %5711 }
 0x26b   : > { %11396 = vst [vmem:[#allocation40_spill] sm:$0xff] %v9012_v20  ;;  %v9021_v25 = vpop.xlane.xlu1 %5715 }
 0x26c   : > { %v3371_v61 = vmax.f32 %v3115_v48, 0.0  ;;  %v4628_v57 = vpop.f32.mrf.mxu1  ;;  %2146 = vmatmul.bf16.gmra.mxu0 %v1706_v59  ;;  %2466 = vmatmul.bf16.gmra.mxu2 %v1770_v9  ;;  %v5609_v30 = vmul.f32 %v8850_v11, %v5349_v60  ;;  %v4263_v24 = vpack.c.b16 %v4031_v36, %v4030_v35  ;;  %11397 = vst [vmem:[#allocation41_spill] sm:$0xff] %v9017_v44 }
 0x26d   : > { %v4629_v7 = vadd.f32 %v8834_v22, %v4628_v57  ;;  %v2988_v4 = vadd.f32 %v7786_v23, %v2700_v50  ;;  %v829_v59 = vmul.f32 %v8420_v42, %v8985_v41  ;;  %11398 = vst [vmem:[#allocation42_spill] sm:$0xff] %v9021_v25  ;;  %v957_v9 = vpack.c.bf16 %v701_v3, %v701_v3  ;;  %v9029_v3 = vld [vmem:[%s11305_s6] ss:$0 sm:$0xff] }
 0x26e   : > { %v3627_v48 = vpack.c.bf16 %v3371_v61, %v3371_v61  ;;  %6021 = vadd.xlane.f32.xlu0 %v5609_v30  ;;  %5767 = vadd.xlane.f32.xlu2 %v5482_v5  ;;  %v1084_v36 = vpack.c.bf16 %v828_v46, %v828_v46  ;;  %v1484_v25 = vunpack.c.l.b16 %v956_v51 }
 0x26f   : > { %v2427_v8 = vpop.f32.mrf.mxu2  ;;  %4667 = vmatmul.bf16.gmra.mxu1 %v4263_v24  ;;  %v4945_v35 = vpop.f32.mrf.mxu3  ;;  %v5223_v60 = vmax.f32 %v4629_v7, 0.0  ;;  %v1085_v50 = vpack.c.bf16 %v829_v59, %v829_v59  ;;  %v3244_v30 = vmax.f32 %v2988_v4, 0.0 }
 0x270   : > { %v4159_v54 = vunpack.c.l.b16 %v3627_v48  ;;  %v2828_v37 = vadd.f32 %v8822_v13, %v2427_v8  ;;  %v4946_v49 = vadd.f32 %v8834_v22, %v4945_v35  ;;  %v1485_v48 = vunpack.c.l.b16 %v957_v9  ;;  %v7787_v8 = vld [vmem:[#allocation9 + $0x88] sm:$0xff] }
 0x271   : > { %v2109_v61 = vpop.f32.mrf.mxu0  ;;  %v1612_v24 = vunpack.c.l.b16 %v1084_v36  ;;  %v1613_v42 = vunpack.c.l.b16 %v1085_v50  ;;  %v5483_v7 = vmul.f32 %v8850_v11, %v5223_v60  ;;  %v3500_v4 = vpack.c.bf16 %v3244_v30, %v3244_v30  ;;  %v11402_v50 = vld [vmem:[#allocation30_spill] sm:$0xff] }
 0x272   : > { %v4327_v57 = vpack.c.b16 %v4159_v54, %v4158_v21  ;;  %v3116_v56 = vadd.f32 %v7786_v23, %v2828_v37  ;;  %v5350_v5 = vmax.f32 %v4946_v49, 0.0  ;;  %v2701_v20 = vadd.f32 %v8806_v31, %v2109_v61  ;;  %v9034_v21 = vpop.xlane.xlu0 %5967  ;;  %v9036_v23 = vpop.xlane.xlu2 %5971 }
 0x273   : > { %11399 = vst [vmem:[#allocation43_spill] sm:$0xff] %v9034_v21  ;;  %v1707_v35 = vpack.c.b16 %v1485_v48, %v1484_v25  ;;  %v702_v61 = vmul.f32 %v11402_v50, %v8973_v19  ;;  %v4032_v30 = vunpack.c.l.b16 %v3500_v4  ;;  %v9055_v4 = vld [vmem:[%s11306_s7] ss:$0 sm:$0xff] }
 0x274   : > { %v4630_v44 = vpop.f32.mrf.mxu1  ;;  %v2989_v39 = vadd.f32 %v7787_v8, %v2701_v20  ;;  %4987 = vmatmul.bf16.gmra.mxu3 %v4327_v57  ;;  %v5610_v46 = vmul.f32 %v8850_v11, %v5350_v5  ;;  %11400 = vst [vmem:[#allocation44_spill] sm:$0xff] %v9036_v23  ;;  %v3372_v51 = vmax.f32 %v3116_v56, 0.0  ;;  %v9040_v11 = vpop.xlane.xlu1 %5969 }
 0x275   : > { %v4631_v22 = vadd.f32 %v9029_v3, %v4630_v44  ;;  %v1771_v44 = vpack.c.b16 %v1613_v42, %v1612_v24  ;;  %11401 = vst [vmem:[#allocation45_spill] sm:$0xff] %v9040_v11  ;;  %v830_v24 = vmul.f32 %v11402_v50, %v8985_v41 }
 0x276   : > { %v3245_v59 = vmax.f32 %v2989_v39, 0.0  ;;  %6023 = vadd.xlane.f32.xlu1 %v5610_v46  ;;  %5769 = vadd.xlane.f32.xlu0 %v5483_v7  ;;  %v11403_v39 = vld [vmem:[#allocation31_spill] sm:$0xff]  ;;  %v3628_v56 = vpack.c.bf16 %v3372_v51, %v3372_v51 }
 0x277   : > { %v2429_v20 = vpop.f32.mrf.mxu2  ;;  %v4948_v37 = vpop.f32.mrf.mxu3  ;;  %v5224_v36 = vmax.f32 %v4631_v22, 0.0  ;;  %v703_v57 = vmul.f32 %v11403_v39, %v8973_v19 }
 0x278   : > { %v2829_v54 = vadd.f32 %v8822_v13, %v2429_v20  ;;  %v3501_v9 = vpack.c.bf16 %v3245_v59, %v3245_v59  ;;  %v4949_v49 = vadd.f32 %v9029_v3, %v4948_v37 }
 0x279   : > { %v2112_v7 = vpop.f32.mrf.mxu0  ;;  %v5484_v59 = vmul.f32 %v9055_v4, %v5224_v36 }
 0x27a   : > { %v3117_v60 = vadd.f32 %v7787_v8, %v2829_v54  ;;  %v4033_v5 = vunpack.c.l.b16 %v3501_v9  ;;  %v5351_v46 = vmax.f32 %v4949_v49, 0.0  ;;  %v2702_v42 = vadd.f32 %v8806_v31, %v2112_v7  ;;  %v9059_v20 = vpop.xlane.xlu0 %5973  ;;  %v9062_v36 = vpop.xlane.xlu2 %5719 }
 0x27b   : > { %v831_v8 = vmul.f32 %v11403_v39, %v8985_v41  ;;  %11404 = vst [vmem:[#allocation30_spill] sm:$0xff] %v9059_v20  ;;  %v959_v7 = vpack.c.bf16 %v703_v57, %v703_v57 }
 0x27c   : > { %v3373_v25 = vmax.f32 %v3117_v60, 0.0  ;;  %v4633_v48 = vpop.f32.mrf.mxu1  ;;  %2151 = vmatmul.bf16.gmra.mxu0 %v1707_v35  ;;  %2471 = vmatmul.bf16.gmra.mxu2 %v1771_v44  ;;  %v5611_v51 = vmul.f32 %v9055_v4, %v5351_v46  ;;  %v4264_v37 = vpack.c.b16 %v4033_v5, %v4032_v30  ;;  %v4160_v35 = vunpack.c.l.b16 %v3628_v56  ;;  %v7790_v44 = vld [vmem:[#allocation9 + $0x90] sm:$0xff]  ;;  %11405 = vst [vmem:[#allocation31_spill] sm:$0xff] %v9062_v36  ;;  %v9065_v56 = vpop.xlane.xlu1 %5975 }
 0x27d   : > { %v4634_v22 = vadd.f32 %v9029_v3, %v4633_v48  ;;  %v2990_v9 = vadd.f32 %v7790_v44, %v2702_v42  ;;  %v958_v60 = vpack.c.bf16 %v702_v61, %v702_v61  ;;  %v1086_v46 = vpack.c.bf16 %v830_v24, %v830_v24  ;;  %11406 = vst [vmem:[#allocation46_spill] sm:$0xff] %v9065_v56  ;;  %v7791_v56 = vld [vmem:[#allocation9 + $0x98] sm:$0xff] }
 0x27e   : > { %v3629_v54 = vpack.c.bf16 %v3373_v25, %v3373_v25  ;;  %6025 = vadd.xlane.f32.xlu2 %v5611_v51  ;;  %5771 = vadd.xlane.f32.xlu1 %v5484_v59  ;;  %v1087_v21 = vpack.c.bf16 %v831_v8, %v831_v8  ;;  %v1487_v57 = vunpack.c.l.b16 %v959_v7 }
 0x27f   : > { %v2432_v49 = vpop.f32.mrf.mxu2  ;;  %4672 = vmatmul.bf16.gmra.mxu1 %v4264_v37  ;;  %v4950_v11 = vpop.f32.mrf.mxu3  ;;  %v5225_v20 = vmax.f32 %v4634_v22, 0.0  ;;  %v3246_v25 = vmax.f32 %v2990_v9, 0.0  ;;  %v1486_v61 = vunpack.c.l.b16 %v958_v60 }
 0x280   : > { %v4161_v48 = vunpack.c.l.b16 %v3629_v54  ;;  %v2830_v23 = vadd.f32 %v8822_v13, %v2432_v49  ;;  %v4951_v30 = vadd.f32 %v9029_v3, %v4950_v11  ;;  %v1614_v49 = vunpack.c.l.b16 %v1086_v46 }
 0x281   : > { %v2114_v51 = vpop.f32.mrf.mxu0  ;;  %v1615_v24 = vunpack.c.l.b16 %v1087_v21  ;;  %v5485_v11 = vmul.f32 %v9055_v4, %v5225_v20  ;;  %v3502_v9 = vpack.c.bf16 %v3246_v25, %v3246_v25  ;;  %v1708_v7 = vpack.c.b16 %v1487_v57, %v1486_v61 }
 0x282   : > { %v4328_v5 = vpack.c.b16 %v4161_v48, %v4160_v35  ;;  %v5352_v42 = vmax.f32 %v4951_v30, 0.0  ;;  %v3118_v59 = vadd.f32 %v7790_v44, %v2830_v23  ;;  %v2703_v54 = vadd.f32 %v8806_v31, %v2114_v51  ;;  %v9071_v23 = vpop.xlane.xlu0 %5721 }
 0x283   : > { %11407 = vst [vmem:[#allocation47_spill] sm:$0xff] %v9071_v23  ;;  %v1772_v30 = vpack.c.b16 %v1615_v24, %v1614_v49  ;;  %v704_v25 = vmul.f32 %v8442_v12, %v8973_v19 }
 0x284   : > { %v4635_v37 = vpop.f32.mrf.mxu1  ;;  %4992 = vmatmul.bf16.gmra.mxu3 %v4328_v5  ;;  %v5612_v22 = vmul.f32 %v9055_v4, %v5352_v42  ;;  %v2991_v35 = vadd.f32 %v7791_v56, %v2703_v54  ;;  %v3374_v44 = vmax.f32 %v3118_v59, 0.0  ;;  %v9074_v5 = vpop.xlane.xlu2 %5977  ;;  %v705_v59 = vmul.f32 %v8444_v17, %v8973_v19 }
 0x285   : > { %v4636_v8 = vadd.f32 %v9029_v3, %v4635_v37  ;;  %11408 = vst [vmem:[#allocation48_spill] sm:$0xff] %v9074_v5  ;;  %v4034_v37 = vunpack.c.l.b16 %v3502_v9  ;;  %v9083_v49 = vpop.xlane.xlu1 %5723 }
 0x286   : > { %6027 = vadd.xlane.f32.xlu0 %v5612_v22  ;;  %5773 = vadd.xlane.f32.xlu2 %v5485_v11  ;;  %v3247_v48 = vmax.f32 %v2991_v35, 0.0  ;;  %v832_v22 = vmul.f32 %v8442_v12, %v8985_v41  ;;  %11409 = vst [vmem:[#allocation49_spill] sm:$0xff] %v9083_v49  ;;  %v3630_v24 = vpack.c.bf16 %v3374_v44, %v3374_v44  ;;  %v7792_v44 = vld [vmem:[#allocation9 + $0xa0] sm:$0xff] }
 0x287   : > { %v2434_v60 = vpop.f32.mrf.mxu2  ;;  %v4953_v46 = vpop.f32.mrf.mxu3  ;;  %v5226_v42 = vmax.f32 %v4636_v8, 0.0  ;;  %v960_v49 = vpack.c.bf16 %v704_v25, %v704_v25 }
 0x288   : > { %v2831_v21 = vadd.f32 %v8822_v13, %v2434_v60  ;;  %v4954_v20 = vadd.f32 %v9029_v3, %v4953_v46  ;;  %v3503_v51 = vpack.c.bf16 %v3247_v48, %v3247_v48  ;;  %v4162_v23 = vunpack.c.l.b16 %v3630_v24 }
 0x289   : > { %v2117_v57 = vpop.f32.mrf.mxu0 }
 0x28a   : > { %v3119_v54 = vadd.f32 %v7791_v56, %v2831_v21  ;;  %v5353_v61 = vmax.f32 %v4954_v20, 0.0  ;;  %v4035_v8 = vunpack.c.l.b16 %v3503_v51  ;;  %v833_v56 = vmul.f32 %v8444_v17, %v8985_v41  ;;  %v9091_v5 = vpop.xlane.xlu0 %5979 }
 0x28b   : > { %v2704_v9 = vadd.f32 %v8806_v31, %v2117_v57  ;;  %v5486_v21 = vmul.f32 %v9055_v4, %v5226_v42  ;;  %11410 = vst [vmem:[#allocation50_spill] sm:$0xff] %v9091_v5 }
 0x28c   : > { %v3375_v11 = vmax.f32 %v3119_v54, 0.0  ;;  %v4638_v35 = vpop.f32.mrf.mxu1  ;;  %2156 = vmatmul.bf16.gmra.mxu0 %v1708_v7  ;;  %2476 = vmatmul.bf16.gmra.mxu2 %v1772_v30  ;;  %v5613_v48 = vmul.f32 %v9055_v4, %v5353_v61  ;;  %v4265_v20 = vpack.c.b16 %v4035_v8, %v4034_v37  ;;  %v961_v30 = vpack.c.bf16 %v705_v59, %v705_v59  ;;  %v9095_v8 = vpop.xlane.xlu2 %5725 }
 0x28d   : > { %v4639_v60 = vadd.f32 %v9029_v3, %v4638_v35  ;;  %v2992_v51 = vadd.f32 %v7792_v44, %v2704_v9  ;;  %v1088_v54 = vpack.c.bf16 %v832_v22, %v832_v22  ;;  %v1089_v36 = vpack.c.bf16 %v833_v56, %v833_v56  ;;  %11411 = vst [vmem:[#allocation51_spill] sm:$0xff] %v9095_v8  ;;  %v7794_v8 = vld [vmem:[#allocation9 + $0xb0] sm:$0xff] }
 0x28e   : > { %v3631_v46 = vpack.c.bf16 %v3375_v11, %v3375_v11  ;;  %6029 = vadd.xlane.f32.xlu1 %v5613_v48  ;;  %5775 = vadd.xlane.f32.xlu0 %v5486_v21  ;;  %v1488_v59 = vunpack.c.l.b16 %v960_v49  ;;  %v1489_v22 = vunpack.c.l.b16 %v961_v30  ;;  %v9097_v21 = vpop.xlane.xlu1 %5981 }
 0x28f   : > { %v2437_v7 = vpop.f32.mrf.mxu2  ;;  %4677 = vmatmul.bf16.gmra.mxu1 %v4265_v20  ;;  %v4955_v61 = vpop.f32.mrf.mxu3  ;;  %v5227_v42 = vmax.f32 %v4639_v60, 0.0  ;;  %v3248_v11 = vmax.f32 %v2992_v51, 0.0  ;;  %11412 = vst [vmem:[#allocation52_spill] sm:$0xff] %v9097_v21  ;;  %v1617_v5 = vunpack.c.l.b16 %v1089_v36  ;;  %v7793_v51 = vld [vmem:[#allocation9 + $0xa8] sm:$0xff] }
 0x290   : > { %v4163_v57 = vunpack.c.l.b16 %v3631_v46  ;;  %v2832_v35 = vadd.f32 %v8822_v13, %v2437_v7  ;;  %v4956_v37 = vadd.f32 %v9029_v3, %v4955_v61  ;;  %v1616_v7 = vunpack.c.l.b16 %v1088_v54 }
 0x291   : > { %v2119_v48 = vpop.f32.mrf.mxu0  ;;  %v5487_v60 = vmul.f32 %v9055_v4, %v5227_v42  ;;  %v3504_v61 = vpack.c.bf16 %v3248_v11, %v3248_v11  ;;  %v1709_v30 = vpack.c.b16 %v1489_v22, %v1488_v59  ;;  %v706_v11 = vmul.f32 %v8454_v33, %v8973_v19 }
 0x292   : > { %v4329_v25 = vpack.c.b16 %v4163_v57, %v4162_v23  ;;  %v5354_v9 = vmax.f32 %v4956_v37, 0.0  ;;  %v3120_v24 = vadd.f32 %v7792_v44, %v2832_v35  ;;  %v2705_v46 = vadd.f32 %v8806_v31, %v2119_v48 }
 0x293   : > { %v1773_v36 = vpack.c.b16 %v1617_v5, %v1616_v7  ;;  %v4036_v22 = vunpack.c.l.b16 %v3504_v61  ;;  %v834_v5 = vmul.f32 %v8454_v33, %v8985_v41  ;;  %v962_v21 = vpack.c.bf16 %v706_v11, %v706_v11 }
 0x294   : > { %v4640_v20 = vpop.f32.mrf.mxu1  ;;  %4997 = vmatmul.bf16.gmra.mxu3 %v4329_v25  ;;  %v5614_v23 = vmul.f32 %v9055_v4, %v5354_v9  ;;  %v2993_v57 = vadd.f32 %v7793_v51, %v2705_v46  ;;  %v3376_v44 = vmax.f32 %v3120_v24, 0.0  ;;  %v11414_v46 = vld [vmem:[#allocation32_spill] sm:$0xff]  ;;  %v9111_v59 = vpop.xlane.xlu2 %5983 }
 0x295   : > { %v4641_v56 = vadd.f32 %v9029_v3, %v4640_v20  ;;  %v9105_v20 = vpop.xlane.xlu0 %5727  ;;  %11415 = vst [vmem:[#allocation54_spill] sm:$0xff] %v9111_v59  ;;  %v835_v7 = vmul.f32 %v11414_v46, %v8985_v41 }
 0x296   : > { %6031 = vadd.xlane.f32.xlu2 %v5614_v23  ;;  %5777 = vadd.xlane.f32.xlu1 %v5487_v60  ;;  %v3249_v35 = vmax.f32 %v2993_v57, 0.0  ;;  %11413 = vst [vmem:[#allocation53_spill] sm:$0xff] %v9105_v20  ;;  %v707_v23 = vmul.f32 %v11414_v46, %v8973_v19 }
 0x297   : > { %v2439_v49 = vpop.f32.mrf.mxu2  ;;  %v4958_v54 = vpop.f32.mrf.mxu3  ;;  %v5228_v48 = vmax.f32 %v4641_v56, 0.0  ;;  %v3632_v56 = vpack.c.bf16 %v3376_v44, %v3376_v44  ;;  %v1091_v46 = vpack.c.bf16 %v835_v7, %v835_v7 }
 0x298   : > { %v2833_v37 = vadd.f32 %v8822_v13, %v2439_v49  ;;  %v4959_v25 = vadd.f32 %v9029_v3, %v4958_v54  ;;  %v3505_v9 = vpack.c.bf16 %v3249_v35, %v3249_v35 }
 0x299   : > { %v2122_v60 = vpop.f32.mrf.mxu0  ;;  %v5488_v54 = vmul.f32 %v9055_v4, %v5228_v48 }
 0x29a   : > { %v3121_v42 = vadd.f32 %v7793_v51, %v2833_v37  ;;  %v5355_v24 = vmax.f32 %v4959_v25, 0.0  ;;  %v4037_v57 = vunpack.c.l.b16 %v3505_v9  ;;  %v2706_v49 = vadd.f32 %v8806_v31, %v2122_v60  ;;  %v9121_v25 = vpop.xlane.xlu1 %5729 }
 0x29b   : > { %11416 = vst [vmem:[#allocation55_spill] sm:$0xff] %v9121_v25  ;;  %v1090_v60 = vpack.c.bf16 %v834_v5, %v834_v5 }
 0x29c   : > { %v3377_v51 = vmax.f32 %v3121_v42, 0.0  ;;  %v4643_v35 = vpop.f32.mrf.mxu1  ;;  %2161 = vmatmul.bf16.gmra.mxu0 %v1709_v30  ;;  %2481 = vmatmul.bf16.gmra.mxu2 %v1773_v36  ;;  %v5615_v61 = vmul.f32 %v9055_v4, %v5355_v24  ;;  %v4266_v20 = vpack.c.b16 %v4037_v57, %v4036_v22  ;;  %v2994_v44 = vadd.f32 %v7794_v8, %v2706_v49 }
 0x29d   : > { %v4644_v37 = vadd.f32 %v9029_v3, %v4643_v35  ;;  %v963_v42 = vpack.c.bf16 %v707_v23, %v707_v23  ;;  %v4164_v30 = vunpack.c.l.b16 %v3632_v56  ;;  %v1619_v56 = vunpack.c.l.b16 %v1091_v46 }
 0x29e   : > { %v3633_v59 = vpack.c.bf16 %v3377_v51, %v3377_v51  ;;  %6033 = vadd.xlane.f32.xlu0 %v5615_v61  ;;  %5779 = vadd.xlane.f32.xlu2 %v5488_v54  ;;  %v9125_v51 = vpop.xlane.xlu0 %5985  ;;  %v3250_v22 = vmax.f32 %v2994_v44, 0.0  ;;  %v1490_v61 = vunpack.c.l.b16 %v962_v21 }
 0x29f   : > { %v2442_v9 = vpop.f32.mrf.mxu2  ;;  %4682 = vmatmul.bf16.gmra.mxu1 %v4266_v20  ;;  %v4960_v24 = vpop.f32.mrf.mxu3  ;;  %v5229_v48 = vmax.f32 %v4644_v37, 0.0  ;;  %11417 = vst [vmem:[#allocation56_spill] sm:$0xff] %v9125_v51  ;;  %v1491_v54 = vunpack.c.l.b16 %v963_v42  ;;  %v1618_v20 = vunpack.c.l.b16 %v1090_v60 }
 0x2a0   : > { %v4165_v36 = vunpack.c.l.b16 %v3633_v59  ;;  %v2834_v35 = vadd.f32 %v8822_v13, %v2442_v9  ;;  %v4961_v25 = vadd.f32 %v9029_v3, %v4960_v24  ;;  %v9128_v9 = vpop.xlane.xlu2 %5731  ;;  %v3506_v42 = vpack.c.bf16 %v3250_v22, %v3250_v22 }
 0x2a1   : > { %v2124_v49 = vpop.f32.mrf.mxu0  ;;  %11418 = vst [vmem:[#allocation57_spill] sm:$0xff] %v9128_v9  ;;  %v709_v22 = vmul.f32 %v8468_v55, %v8973_v19 }
 0x2a2   : > { %v4330_v11 = vpack.c.b16 %v4165_v36, %v4164_v30  ;;  %v5356_v57 = vmax.f32 %v4961_v25, 0.0  ;;  %v3122_v23 = vadd.f32 %v7794_v8, %v2834_v35  ;;  %v2707_v5 = vadd.f32 %v8806_v31, %v2124_v49  ;;  %v9133_v44 = vpop.xlane.xlu1 %5987  ;;  %v7795_v25 = vld [vmem:[#allocation9 + $0xb8] sm:$0xff] }
 0x2a3   : > { %v5489_v30 = vmul.f32 %v9055_v4, %v5229_v48  ;;  %11419 = vst [vmem:[#allocation58_spill] sm:$0xff] %v9133_v44  ;;  %v1710_v36 = vpack.c.b16 %v1491_v54, %v1490_v61  ;;  %v1774_v49 = vpack.c.b16 %v1619_v56, %v1618_v20  ;;  %v708_v44 = vmul.f32 %v8466_v52, %v8973_v19 }
 0x2a4   : > { %v4645_v59 = vpop.f32.mrf.mxu1  ;;  %5002 = vmatmul.bf16.gmra.mxu3 %v4330_v11  ;;  %v5616_v37 = vmul.f32 %v9055_v4, %v5356_v57  ;;  %v2995_v21 = vadd.f32 %v7795_v25, %v2707_v5  ;;  %v3378_v60 = vmax.f32 %v3122_v23, 0.0  ;;  %v4038_v5 = vunpack.c.l.b16 %v3506_v42 }
 0x2a5   : > { %v4646_v7 = vadd.f32 %v9029_v3, %v4645_v59  ;;  %v836_v54 = vmul.f32 %v8466_v52, %v8985_v41  ;;  %v837_v23 = vmul.f32 %v8468_v55, %v8985_v41  ;;  %v964_v9 = vpack.c.bf16 %v708_v44, %v708_v44 }
 0x2a6   : > { %6035 = vadd.xlane.f32.xlu1 %v5616_v37  ;;  %5781 = vadd.xlane.f32.xlu0 %v5489_v30  ;;  %v3251_v46 = vmax.f32 %v2995_v21, 0.0  ;;  %v9145_v20 = vpop.xlane.xlu0 %5733  ;;  %v3634_v56 = vpack.c.bf16 %v3378_v60, %v3378_v60 }
 0x2a7   : > { %v2444_v8 = vpop.f32.mrf.mxu2  ;;  %v4963_v24 = vpop.f32.mrf.mxu3  ;;  %v5230_v11 = vmax.f32 %v4646_v7, 0.0  ;;  %11420 = vst [vmem:[#allocation59_spill] sm:$0xff] %v9145_v20  ;;  %v7796_v20 = vld [vmem:[#allocation9 + $0xc0] sm:$0xff] }
 0x2a8   : > { %v2835_v35 = vadd.f32 %v8822_v13, %v2444_v8  ;;  %v4964_v57 = vadd.f32 %v9029_v3, %v4963_v24  ;;  %v3507_v59 = vpack.c.bf16 %v3251_v46, %v3251_v46  ;;  %v9148_v21 = vpop.xlane.xlu2 %5989 }
 0x2a9   : > { %v2127_v61 = vpop.f32.mrf.mxu0  ;;  %11421 = vst [vmem:[#allocation60_spill] sm:$0xff] %v9148_v21  ;;  %v5490_v46 = vmul.f32 %v9055_v4, %v5230_v11 }
 0x2aa   : > { %v3123_v48 = vadd.f32 %v7795_v25, %v2835_v35  ;;  %v5357_v37 = vmax.f32 %v4964_v57, 0.0  ;;  %v4039_v7 = vunpack.c.l.b16 %v3507_v59  ;;  %v2708_v25 = vadd.f32 %v8806_v31, %v2127_v61 }
 0x2ab   : > { %v4166_v61 = vunpack.c.l.b16 %v3634_v56 }
 0x2ac   : > { %v3379_v30 = vmax.f32 %v3123_v48, 0.0  ;;  %2166 = vmatmul.bf16.gmra.mxu0 %v1710_v36  ;;  %2486 = vmatmul.bf16.gmra.mxu2 %v1774_v49  ;;  %v4648_v42 = vpop.f32.mrf.mxu1  ;;  %v5617_v8 = vmul.f32 %v9055_v4, %v5357_v37  ;;  %v4267_v57 = vpack.c.b16 %v4039_v7, %v4038_v5  ;;  %v2996_v60 = vadd.f32 %v7796_v20, %v2708_v25  ;;  %v9153_v49 = vpop.xlane.xlu1 %5735 }
 0x2ad   : > { %v4649_v24 = vadd.f32 %v9029_v3, %v4648_v42  ;;  %v965_v48 = vpack.c.bf16 %v709_v22, %v709_v22  ;;  %v1092_v36 = vpack.c.bf16 %v836_v54, %v836_v54  ;;  %11422 = vst [vmem:[#allocation61_spill] sm:$0xff] %v9153_v49 }
 0x2ae   : > { %v3635_v35 = vpack.c.bf16 %v3379_v30, %v3379_v30  ;;  %6037 = vadd.xlane.f32.xlu2 %v5617_v8  ;;  %5783 = vadd.xlane.f32.xlu1 %v5490_v46  ;;  %v1093_v30 = vpack.c.bf16 %v837_v23, %v837_v23  ;;  %v3252_v7 = vmax.f32 %v2996_v60, 0.0  ;;  %v1492_v8 = vunpack.c.l.b16 %v964_v9  ;;  %v9157_v22 = vpop.xlane.xlu0 %5991 }
 0x2af   : > { %v2447_v59 = vpop.f32.mrf.mxu2  ;;  %4687 = vmatmul.bf16.gmra.mxu1 %v4267_v57  ;;  %v4965_v11 = vpop.f32.mrf.mxu3  ;;  %v5231_v51 = vmax.f32 %v4649_v24, 0.0  ;;  %v1493_v46 = vunpack.c.l.b16 %v965_v48  ;;  %11423 = vst [vmem:[#allocation62_spill] sm:$0xff] %v9157_v22 }
 0x2b0   : > { %v4167_v21 = vunpack.c.l.b16 %v3635_v35  ;;  %v2836_v37 = vadd.f32 %v8822_v13, %v2447_v59  ;;  %v4966_v5 = vadd.f32 %v9029_v3, %v4965_v11  ;;  %v1620_v35 = vunpack.c.l.b16 %v1092_v36  ;;  %v7797_v59 = vld [vmem:[#allocation9 + $0xc8] sm:$0xff] }
 0x2b1   : > { %v2129_v42 = vpop.f32.mrf.mxu0  ;;  %v1621_v57 = vunpack.c.l.b16 %v1093_v30  ;;  %v5491_v24 = vmul.f32 %v9055_v4, %v5231_v51  ;;  %v3508_v9 = vpack.c.bf16 %v3252_v7, %v3252_v7  ;;  %v1711_v48 = vpack.c.b16 %v1493_v46, %v1492_v8 }
 0x2b2   : > { %v4331_v44 = vpack.c.b16 %v4167_v21, %v4166_v61  ;;  %v5358_v25 = vmax.f32 %v4966_v5, 0.0  ;;  %v3124_v54 = vadd.f32 %v7796_v20, %v2836_v37  ;;  %v2709_v56 = vadd.f32 %v8806_v31, %v2129_v42  ;;  %v9163_v61 = vpop.xlane.xlu2 %5737 }
 0x2b3   : > { %11424 = vst [vmem:[#allocation63_spill] sm:$0xff] %v9163_v61  ;;  %v710_v7 = vmul.f32 %v8478_v10, %v8973_v19  ;;  %v4040_v8 = vunpack.c.l.b16 %v3508_v9 }
 0x2b4   : > { %v4650_v49 = vpop.f32.mrf.mxu1  ;;  %5007 = vmatmul.bf16.gmra.mxu3 %v4331_v44  ;;  %v5618_v23 = vmul.f32 %v9055_v4, %v5358_v25  ;;  %v2997_v21 = vadd.f32 %v7797_v59, %v2709_v56  ;;  %v9165_v37 = vpop.xlane.xlu1 %5993  ;;  %v3380_v36 = vmax.f32 %v3124_v54, 0.0  ;;  %v1775_v44 = vpack.c.b16 %v1621_v57, %v1620_v35 }
 0x2b5   : > { %v4651_v60 = vadd.f32 %v9029_v3, %v4650_v49  ;;  %11425 = vst [vmem:[#allocation64_spill] sm:$0xff] %v9165_v37  ;;  %v711_v56 = vmul.f32 %v8480_v14, %v8973_v19  ;;  %v838_v54 = vmul.f32 %v8478_v10, %v8985_v41  ;;  %v839_v35 = vmul.f32 %v8480_v14, %v8985_v41 }
 0x2b6   : > { %6039 = vadd.xlane.f32.xlu0 %v5618_v23  ;;  %5785 = vadd.xlane.f32.xlu2 %v5491_v24  ;;  %v3253_v11 = vmax.f32 %v2997_v21, 0.0  ;;  %v3636_v57 = vpack.c.bf16 %v3380_v36, %v3380_v36  ;;  %v966_v37 = vpack.c.bf16 %v710_v7, %v710_v7  ;;  %v7798_v36 = vld [vmem:[#allocation9 + $0xd0] sm:$0xff] }
 0x2b7   : > { %v2449_v20 = vpop.f32.mrf.mxu2  ;;  %v4968_v5 = vpop.f32.mrf.mxu3  ;;  %v5232_v51 = vmax.f32 %v4651_v60, 0.0 }
 0x2b8   : > { %v2837_v30 = vadd.f32 %v8822_v13, %v2449_v20  ;;  %v4969_v25 = vadd.f32 %v9029_v3, %v4968_v5  ;;  %v3509_v42 = vpack.c.bf16 %v3253_v11, %v3253_v11  ;;  %v9180_v11 = vpop.xlane.xlu0 %5739 }
 0x2b9   : > { %v2132_v23 = vpop.f32.mrf.mxu0  ;;  %v5492_v9 = vmul.f32 %v9055_v4, %v5232_v51  ;;  %11426 = vst [vmem:[#allocation65_spill] sm:$0xff] %v9180_v11 }
 0x2ba   : > { %v3125_v49 = vadd.f32 %v7797_v59, %v2837_v30  ;;  %v5359_v46 = vmax.f32 %v4969_v25, 0.0  ;;  %v4041_v24 = vunpack.c.l.b16 %v3509_v42  ;;  %v2710_v59 = vadd.f32 %v8806_v31, %v2132_v23  ;;  %v9183_v61 = vpop.xlane.xlu2 %5995 }
 0x2bb   : > { %11427 = vst [vmem:[#allocation66_spill] sm:$0xff] %v9183_v61  ;;  %v4168_v23 = vunpack.c.l.b16 %v3636_v57 }
 0x2bc   : > { %v3381_v21 = vmax.f32 %v3125_v49, 0.0  ;;  %2171 = vmatmul.bf16.gmra.mxu0 %v1711_v48  ;;  %2491 = vmatmul.bf16.gmra.mxu2 %v1775_v44  ;;  %v4653_v60 = vpop.f32.mrf.mxu1  ;;  %v5619_v20 = vmul.f32 %v9055_v4, %v5359_v46  ;;  %v4268_v25 = vpack.c.b16 %v4041_v24, %v4040_v8  ;;  %v2998_v42 = vadd.f32 %v7798_v36, %v2710_v59  ;;  %v9187_v7 = vpop.xlane.xlu1 %5741 }
 0x2bd   : > { %v4654_v5 = vadd.f32 %v9029_v3, %v4653_v60  ;;  %v967_v44 = vpack.c.bf16 %v711_v56, %v711_v56  ;;  %v1094_v49 = vpack.c.bf16 %v838_v54, %v838_v54  ;;  %11428 = vst [vmem:[#allocation67_spill] sm:$0xff] %v9187_v7 }
 0x2be   : > { %v3637_v30 = vpack.c.bf16 %v3381_v21, %v3381_v21  ;;  %6041 = vadd.xlane.f32.xlu1 %v5619_v20  ;;  %5787 = vadd.xlane.f32.xlu0 %v5492_v9  ;;  %v1095_v21 = vpack.c.bf16 %v839_v35, %v839_v35  ;;  %v3254_v60 = vmax.f32 %v2998_v42, 0.0  ;;  %v1494_v9 = vunpack.c.l.b16 %v966_v37 }
 0x2bf   : > { %v2452_v48 = vpop.f32.mrf.mxu2  ;;  %4692 = vmatmul.bf16.gmra.mxu1 %v4268_v25  ;;  %v4970_v11 = vpop.f32.mrf.mxu3  ;;  %v5233_v22 = vmax.f32 %v4654_v5, 0.0  ;;  %v1495_v61 = vunpack.c.l.b16 %v967_v44  ;;  %v1622_v57 = vunpack.c.l.b16 %v1094_v49 }
 0x2c0   : > { %v4169_v46 = vunpack.c.l.b16 %v3637_v30  ;;  %v2838_v51 = vadd.f32 %v8822_v13, %v2452_v48  ;;  %v4971_v8 = vadd.f32 %v9029_v3, %v4970_v11  ;;  %v1623_v30 = vunpack.c.l.b16 %v1095_v21  ;;  %v9192_v11 = vpop.xlane.xlu0 %5997  ;;  %v7799_v48 = vld [vmem:[#allocation9 + $0xd8] sm:$0xff] }
 0x2c1   : > { %v2134_v20 = vpop.f32.mrf.mxu0  ;;  %v5493_v5 = vmul.f32 %v9055_v4, %v5233_v22  ;;  %11429 = vst [vmem:[#allocation68_spill] sm:$0xff] %v9192_v11 }
 0x2c2   : > { %v4332_v24 = vpack.c.b16 %v4169_v46, %v4168_v23  ;;  %v5360_v59 = vmax.f32 %v4971_v8, 0.0  ;;  %v3126_v56 = vadd.f32 %v7798_v36, %v2838_v51  ;;  %v2711_v54 = vadd.f32 %v8806_v31, %v2134_v20 }
 0x2c3   : > { %v3510_v46 = vpack.c.bf16 %v3254_v60, %v3254_v60  ;;  %v1712_v36 = vpack.c.b16 %v1495_v61, %v1494_v9  ;;  %v1776_v8 = vpack.c.b16 %v1623_v30, %v1622_v57  ;;  %v712_v60 = vmul.f32 %v8490_v38, %v8973_v19 }
 0x2c4   : > { %v4655_v25 = vpop.f32.mrf.mxu1  ;;  %5012 = vmatmul.bf16.gmra.mxu3 %v4332_v24  ;;  %v5620_v35 = vmul.f32 %v9055_v4, %v5360_v59  ;;  %v2999_v23 = vadd.f32 %v7799_v48, %v2711_v54  ;;  %v3382_v44 = vmax.f32 %v3126_v56, 0.0  ;;  %v9196_v24 = vpop.xlane.xlu2 %5743  ;;  %v713_v61 = vmul.f32 %v8492_v43, %v8973_v19 }
 0x2c5   : > { %v4656_v42 = vadd.f32 %v9029_v3, %v4655_v25  ;;  %11430 = vst [vmem:[#allocation69_spill] sm:$0xff] %v9196_v24  ;;  %v9199_v20 = vpop.xlane.xlu1 %5999  ;;  %v4042_v9 = vunpack.c.l.b16 %v3510_v46  ;;  %v840_v57 = vmul.f32 %v8490_v38, %v8985_v41  ;;  %v841_v30 = vmul.f32 %v8492_v43, %v8985_v41 }
 0x2c6   : > { %6043 = vadd.xlane.f32.xlu2 %v5620_v35  ;;  %5789 = vadd.xlane.f32.xlu1 %v5493_v5  ;;  %v3255_v49 = vmax.f32 %v2999_v23, 0.0  ;;  %11431 = vst [vmem:[#allocation70_spill] sm:$0xff] %v9199_v20  ;;  %v3638_v5 = vpack.c.bf16 %v3382_v44, %v3382_v44  ;;  %v968_v11 = vpack.c.bf16 %v712_v60, %v712_v60  ;;  %v7800_v20 = vld [vmem:[#allocation9 + $0xe0] sm:$0xff] }
 0x2c7   : > { %v2454_v37 = vpop.f32.mrf.mxu2  ;;  %v4973_v21 = vpop.f32.mrf.mxu3  ;;  %v5234_v22 = vmax.f32 %v4656_v42, 0.0 }
 0x2c8   : > { %v2839_v51 = vadd.f32 %v8822_v13, %v2454_v37  ;;  %v4974_v59 = vadd.f32 %v9029_v3, %v4973_v21  ;;  %v3511_v54 = vpack.c.bf16 %v3255_v49, %v3255_v49 }
 0x2c9   : > { %v2137_v35 = vpop.f32.mrf.mxu0  ;;  %v5494_v46 = vmul.f32 %v9055_v4, %v5234_v22 }
 0x2ca   : > { %v3127_v25 = vadd.f32 %v7799_v48, %v2839_v51  ;;  %v5361_v56 = vmax.f32 %v4974_v59, 0.0  ;;  %v4043_v23 = vunpack.c.l.b16 %v3511_v54  ;;  %v2712_v48 = vadd.f32 %v8806_v31, %v2137_v35  ;;  %v9213_v35 = vpop.xlane.xlu0 %5745 }
 0x2cb   : > { %v969_v54 = vpack.c.bf16 %v713_v61, %v713_v61  ;;  %11432 = vst [vmem:[#allocation71_spill] sm:$0xff] %v9213_v35  ;;  %v1496_v61 = vunpack.c.l.b16 %v968_v11 }
 0x2cc   : > { %v3383_v42 = vmax.f32 %v3127_v25, 0.0  ;;  %2176 = vmatmul.bf16.gmra.mxu0 %v1712_v36  ;;  %2496 = vmatmul.bf16.gmra.mxu2 %v1776_v8  ;;  %v4658_v37 = vpop.f32.mrf.mxu1  ;;  %v5621_v49 = vmul.f32 %v9055_v4, %v5361_v56  ;;  %v4269_v59 = vpack.c.b16 %v4043_v23, %v4042_v9  ;;  %v3000_v24 = vadd.f32 %v7800_v20, %v2712_v48  ;;  %v9216_v7 = vpop.xlane.xlu2 %6001 }
 0x2cd   : > { %v4659_v21 = vadd.f32 %v9029_v3, %v4658_v37  ;;  %v1096_v25 = vpack.c.bf16 %v840_v57, %v840_v57  ;;  %v4170_v36 = vunpack.c.l.b16 %v3638_v5  ;;  %11433 = vst [vmem:[#allocation72_spill] sm:$0xff] %v9216_v7  ;;  %v1497_v57 = vunpack.c.l.b16 %v969_v54 }
 0x2ce   : > { %v3639_v51 = vpack.c.bf16 %v3383_v42, %v3383_v42  ;;  %6045 = vadd.xlane.f32.xlu0 %v5621_v49  ;;  %5791 = vadd.xlane.f32.xlu2 %v5494_v46  ;;  %v1097_v42 = vpack.c.bf16 %v841_v30, %v841_v30  ;;  %v3256_v48 = vmax.f32 %v3000_v24, 0.0  ;;  %v9219_v46 = vpop.xlane.xlu1 %5747 }
 0x2cf   : > { %v2457_v44 = vpop.f32.mrf.mxu2  ;;  %4697 = vmatmul.bf16.gmra.mxu1 %v4269_v59  ;;  %v4975_v22 = vpop.f32.mrf.mxu3  ;;  %v5235_v9 = vmax.f32 %v4659_v21, 0.0  ;;  %11434 = vst [vmem:[#allocation73_spill] sm:$0xff] %v9219_v46  ;;  %v1624_v59 = vunpack.c.l.b16 %v1096_v25  ;;  %v1713_v54 = vpack.c.b16 %v1497_v57, %v1496_v61 }
 0x2d0   : > { %v4171_v8 = vunpack.c.l.b16 %v3639_v51  ;;  %v2840_v56 = vadd.f32 %v8822_v13, %v2457_v44  ;;  %v4976_v60 = vadd.f32 %v9029_v3, %v4975_v22  ;;  %v1625_v44 = vunpack.c.l.b16 %v1097_v42  ;;  %v7801_v22 = vld [vmem:[#allocation9 + $0xe8] sm:$0xff] }
 0x2d1   : > { %v2139_v49 = vpop.f32.mrf.mxu0  ;;  %v5495_v21 = vmul.f32 %v9055_v4, %v5235_v9 }
 0x2d2   : > { %v4333_v23 = vpack.c.b16 %v4171_v8, %v4170_v36  ;;  %v5362_v37 = vmax.f32 %v4976_v60, 0.0  ;;  %v3128_v5 = vadd.f32 %v7800_v20, %v2840_v56  ;;  %v2713_v51 = vadd.f32 %v8806_v31, %v2139_v49  ;;  %v9225_v20 = vpop.xlane.xlu0 %6003 }
 0x2d3   : > { %v3512_v8 = vpack.c.bf16 %v3256_v48, %v3256_v48  ;;  %11435 = vst [vmem:[#allocation74_spill] sm:$0xff] %v9225_v20  ;;  %v715_v48 = vmul.f32 %v8504_v6, %v8973_v19 }
 0x2d4   : > { %v4660_v35 = vpop.f32.mrf.mxu1  ;;  %5017 = vmatmul.bf16.gmra.mxu3 %v4333_v23  ;;  %v5622_v30 = vmul.f32 %v9055_v4, %v5362_v37  ;;  %v3001_v36 = vadd.f32 %v7801_v22, %v2713_v51  ;;  %v3384_v56 = vmax.f32 %v3128_v5, 0.0  ;;  %v1777_v23 = vpack.c.b16 %v1625_v44, %v1624_v59  ;;  %v9233_v61 = vpop.xlane.xlu2 %5749 }
 0x2d5   : > { %v4661_v24 = vadd.f32 %v9029_v3, %v4660_v35  ;;  %v714_v35 = vmul.f32 %v8502_v1, %v8973_v19  ;;  %11436 = vst [vmem:[#allocation75_spill] sm:$0xff] %v9233_v61  ;;  %v4044_v57 = vunpack.c.l.b16 %v3512_v8  ;;  %v843_v59 = vmul.f32 %v8504_v6, %v8985_v41  ;;  %v7802_v61 = vld [vmem:[#allocation9 + $0xf0] sm:$0xff] }
 0x2d6   : > { %6047 = vadd.xlane.f32.xlu1 %v5622_v30  ;;  %5793 = vadd.xlane.f32.xlu0 %v5495_v21  ;;  %v3257_v25 = vmax.f32 %v3001_v36, 0.0  ;;  %v842_v21 = vmul.f32 %v8502_v1, %v8985_v41  ;;  %v9239_v44 = vpop.xlane.xlu1 %6005 }
 0x2d7   : > { %v2459_v11 = vpop.f32.mrf.mxu2  ;;  %v4978_v60 = vpop.f32.mrf.mxu3  ;;  %v5236_v37 = vmax.f32 %v4661_v24, 0.0  ;;  %11437 = vst [vmem:[#allocation76_spill] sm:$0xff] %v9239_v44  ;;  %v970_v7 = vpack.c.bf16 %v714_v35, %v714_v35 }
 0x2d8   : > { %v2841_v42 = vadd.f32 %v8822_v13, %v2459_v11  ;;  %v4979_v9 = vadd.f32 %v9029_v3, %v4978_v60  ;;  %v3513_v49 = vpack.c.bf16 %v3257_v25, %v3257_v25 }
 0x2d9   : > { %v2142_v30 = vpop.f32.mrf.mxu0 }
 0x2da   : > { %v3129_v51 = vadd.f32 %v7801_v22, %v2841_v42  ;;  %v5363_v5 = vmax.f32 %v4979_v9, 0.0  ;;  %v3640_v22 = vpack.c.bf16 %v3384_v56, %v3384_v56  ;;  %v4045_v36 = vunpack.c.l.b16 %v3513_v49 }
 0x2db   : > { %v2714_v11 = vadd.f32 %v8806_v31, %v2142_v30  ;;  %v5496_v42 = vmul.f32 %v9055_v4, %v5236_v37  ;;  %v971_v49 = vpack.c.bf16 %v715_v48, %v715_v48  ;;  %v1099_v37 = vpack.c.bf16 %v843_v59, %v843_v59 }
 0x2dc   : > { %v3385_v24 = vmax.f32 %v3129_v51, 0.0  ;;  %2181 = vmatmul.bf16.gmra.mxu0 %v1713_v54  ;;  %2501 = vmatmul.bf16.gmra.mxu2 %v1777_v23  ;;  %v4663_v25 = vpop.f32.mrf.mxu1  ;;  %v5623_v8 = vmul.f32 %v9055_v4, %v5363_v5  ;;  %v4270_v20 = vpack.c.b16 %v4045_v36, %v4044_v57  ;;  %v1098_v51 = vpack.c.bf16 %v842_v21, %v842_v21  ;;  %v9247_v57 = vpop.xlane.xlu0 %5751  ;;  %v7803_v36 = vld [vmem:[%s8374_s5] sm:$0xff] }
 0x2dd   : > { %v4664_v9 = vadd.f32 %v9029_v3, %v4663_v25  ;;  %v3002_v46 = vadd.f32 %v7802_v61, %v2714_v11  ;;  %v4172_v54 = vunpack.c.l.b16 %v3640_v22  ;;  %11438 = vst [vmem:[#allocation77_spill] sm:$0xff] %v9247_v57  ;;  %v2630_v11 = vrot.slane %v7803_v36, 2 }
 0x2de   : > { %v3641_v60 = vpack.c.bf16 %v3385_v24, %v3385_v24  ;;  %6049 = vadd.xlane.f32.xlu2 %v5623_v8  ;;  %5795 = vadd.xlane.f32.xlu1 %v5496_v42  ;;  %v9250_v8 = vpop.xlane.xlu2 %6007  ;;  %v1498_v22 = vunpack.c.l.b16 %v970_v7  ;;  %v1626_v44 = vunpack.c.l.b16 %v1098_v51  ;;  %v1627_v59 = vunpack.c.l.b16 %v1099_v37  ;;  %v9255_v57 = vpop.xlane.xlu1 %5753 }
 0x2df   : > { %v2462_v56 = vpop.f32.mrf.mxu2  ;;  %4702 = vmatmul.bf16.gmra.mxu1 %v4270_v20  ;;  %v4980_v30 = vpop.f32.mrf.mxu3  ;;  %v5237_v24 = vmax.f32 %v4664_v9, 0.0  ;;  %11439 = vst [vmem:[#allocation78_spill] sm:$0xff] %v9250_v8  ;;  %v3258_v42 = vmax.f32 %v3002_v46, 0.0  ;;  %v7804_v8 = vld [vmem:[#allocation9 + $0xf8] sm:$0xff] }
 0x2e0   : > { %v4173_v23 = vunpack.c.l.b16 %v3641_v60  ;;  %v2842_v5 = vadd.f32 %v8822_v13, %v2462_v56  ;;  %v4981_v25 = vadd.f32 %v9029_v3, %v4980_v30  ;;  %v1499_v60 = vunpack.c.l.b16 %v971_v49  ;;  %11440 = vst [vmem:[#allocation79_spill] sm:$0xff] %v9255_v57 }
 0x2e1   : > { %v2144_v21 = vpop.f32.mrf.mxu0  ;;  %v3514_v7 = vpack.c.bf16 %v3258_v42, %v3258_v42 }
 0x2e2   : > { %v4334_v35 = vpack.c.b16 %v4173_v23, %v4172_v54  ;;  %v5364_v48 = vmax.f32 %v4981_v25, 0.0  ;;  %v3130_v20 = vadd.f32 %v7802_v61, %v2842_v5  ;;  %v2715_v56 = vadd.f32 %v8806_v31, %v2144_v21 }
 0x2e3   : > { %v5497_v54 = vmul.f32 %v9055_v4, %v5237_v24  ;;  %v2634_v23 = vrot.slane %v7803_v36, 6  ;;  %v9258_v31 = vperm.slane %v2630_v11, 0  ;;  %v1714_v49 = vpack.c.b16 %v1499_v60, %v1498_v22 }
 0x2e4   : > { %v4665_v9 = vpop.f32.mrf.mxu1  ;;  %5022 = vmatmul.bf16.gmra.mxu3 %v4334_v35  ;;  %v5624_v30 = vmul.f32 %v9055_v4, %v5364_v48  ;;  %v3003_v46 = vadd.f32 %v7804_v8, %v2715_v56  ;;  %v3386_v51 = vmax.f32 %v3130_v20, 0.0  ;;  %v1778_v24 = vpack.c.b16 %v1627_v59, %v1626_v44  ;;  %v9264_v56 = vpop.xlane.xlu0 %6009 }
 0x2e5   : > { %v4666_v25 = vadd.f32 %v9029_v3, %v4665_v9  ;;  %v9262_v21 = vperm.slane %v2634_v23, 0  ;;  %11441 = vst [vmem:[#allocation80_spill] sm:$0xff] %v9264_v56  ;;  %v716_v11 = vmul.f32 %v8517_v32, %v8973_v19  ;;  %v717_v22 = vmul.f32 %v8519_v34, %v8973_v19 }
 0x2e6   : > { %6051 = vadd.xlane.f32.xlu0 %v5624_v30  ;;  %5797 = vadd.xlane.f32.xlu2 %v5497_v54  ;;  %v3259_v5 = vmax.f32 %v3003_v46, 0.0  ;;  %v4046_v60 = vunpack.c.l.b16 %v3514_v7  ;;  %v844_v44 = vmul.f32 %v8517_v32, %v8985_v41  ;;  %v3642_v59 = vpack.c.bf16 %v3386_v51, %v3386_v51  ;;  %v9275_v23 = vpop.xlane.xlu2 %5755  ;;  %v9284_v51 = vld [vmem:[%s11305_s6] ss:$0 sm:$0xff] }
 0x2e7   : > { %v2464_v61 = vpop.f32.mrf.mxu2  ;;  %v4983_v35 = vpop.f32.mrf.mxu3  ;;  %v5238_v36 = vmax.f32 %v4666_v25, 0.0  ;;  %11442 = vst [vmem:[#allocation81_spill] sm:$0xff] %v9275_v23 }
 0x2e8   : > { %v2843_v37 = vadd.f32 %v8822_v13, %v2464_v61  ;;  %v4984_v48 = vadd.f32 %v9029_v3, %v4983_v35  ;;  %v3515_v42 = vpack.c.bf16 %v3259_v5, %v3259_v5  ;;  %v845_v3 = vmul.f32 %v8519_v34, %v8985_v41  ;;  %v9279_v61 = vpop.xlane.xlu1 %6011 }
 0x2e9   : > { %v2147_v13 = vpop.f32.mrf.mxu0  ;;  %v5498_v7 = vmul.f32 %v9055_v4, %v5238_v36  ;;  %11443 = vst [vmem:[#allocation82_spill] sm:$0xff] %v9279_v61 }
 0x2ea   : > { %v3131_v9 = vadd.f32 %v7804_v8, %v2843_v37  ;;  %v5365_v20 = vmax.f32 %v4984_v48, 0.0  ;;  %v4047_v30 = vunpack.c.l.b16 %v3515_v42  ;;  %v2716_v8 = vadd.f32 %v9258_v31, %v2147_v13 }
 0x2eb   : > { %v1101_v61 = vpack.c.bf16 %v845_v3, %v845_v3  ;;  %v9297_v3 = vld [vmem:[%s11306_s7] ss:$0 sm:$0xff] }
 0x2ec   : > { %v3387_v54 = vmax.f32 %v3131_v9, 0.0  ;;  %2186 = vmatmul.bf16.gmra.mxu0 %v1714_v49  ;;  %2506 = vmatmul.bf16.gmra.mxu2 %v1778_v24  ;;  %v4668_v46 = vpop.f32.mrf.mxu1  ;;  %v5625_v25 = vmul.f32 %v9055_v4, %v5365_v20  ;;  %v4271_v35 = vpack.c.b16 %v4047_v30, %v4046_v60  ;;  %v972_v49 = vpack.c.bf16 %v716_v11, %v716_v11  ;;  %v7806_v24 = vld [vmem:[#allocation9] sm:$0xff] }
 0x2ed   : > { %v4669_v37 = vadd.f32 %v9284_v51, %v4668_v46  ;;  %v3004_v48 = vadd.f32 %v7806_v24, %v2716_v8  ;;  %v973_v9 = vpack.c.bf16 %v717_v22, %v717_v22  ;;  %v1100_v20 = vpack.c.bf16 %v844_v44, %v844_v44 }
 0x2ee   : > { %v3643_v5 = vpack.c.bf16 %v3387_v54, %v3387_v54  ;;  %6053 = vadd.xlane.f32.xlu1 %v5625_v25  ;;  %5799 = vadd.xlane.f32.xlu0 %v5498_v7  ;;  %v4174_v4 = vunpack.c.l.b16 %v3642_v59  ;;  %v1500_v8 = vunpack.c.l.b16 %v972_v49  ;;  %v9289_v7 = vpop.xlane.xlu0 %5757  ;;  %v7808_v49 = vld [vmem:[#allocation9 + $0x8] sm:$0xff] }
 0x2ef   : > { %v2467_v42 = vpop.f32.mrf.mxu2  ;;  %4707 = vmatmul.bf16.gmra.mxu1 %v4271_v35  ;;  %v4985_v54 = vpop.f32.mrf.mxu3  ;;  %v5239_v56 = vmax.f32 %v4669_v37, 0.0  ;;  %v3260_v60 = vmax.f32 %v3004_v48, 0.0  ;;  %v1501_v25 = vunpack.c.l.b16 %v973_v9  ;;  %11444 = vst [vmem:[#allocation83_spill] sm:$0xff] %v9289_v7  ;;  %v1628_v59 = vunpack.c.l.b16 %v1100_v20 }
 0x2f0   : > { %v4175_v36 = vunpack.c.l.b16 %v3643_v5  ;;  %v2844_v13 = vadd.f32 %v9262_v21, %v2467_v42  ;;  %v4986_v23 = vadd.f32 %v9284_v51, %v4985_v54  ;;  %v1629_v5 = vunpack.c.l.b16 %v1101_v61  ;;  %v9292_v35 = vpop.xlane.xlu2 %6013 }
 0x2f1   : > { %v2149_v30 = vpop.f32.mrf.mxu0  ;;  %11445 = vst [vmem:[#allocation84_spill] sm:$0xff] %v9292_v35  ;;  %v5499_v37 = vmul.f32 %v9297_v3, %v5239_v56  ;;  %v3516_v9 = vpack.c.bf16 %v3260_v60, %v3260_v60  ;;  %v1715_v20 = vpack.c.b16 %v1501_v25, %v1500_v8  ;;  %v718_v60 = vmul.f32 %v8534_v26, %v8973_v19 }
 0x2f2   : > { %v4335_v46 = vpack.c.b16 %v4175_v36, %v4174_v4  ;;  %v5366_v11 = vmax.f32 %v4986_v23, 0.0  ;;  %v3132_v22 = vadd.f32 %v7806_v24, %v2844_v13  ;;  %v2717_v44 = vadd.f32 %v9258_v31, %v2149_v30  ;;  %v9302_v4 = vpop.xlane.xlu1 %5759 }
 0x2f3   : > { %11446 = vst [vmem:[#allocation85_spill] sm:$0xff] %v9302_v4  ;;  %v1779_v30 = vpack.c.b16 %v1629_v5, %v1628_v59  ;;  %v4048_v8 = vunpack.c.l.b16 %v3516_v9  ;;  %v847_v59 = vmul.f32 %v8536_v27, %v8985_v41  ;;  %v974_v4 = vpack.c.bf16 %v718_v60, %v718_v60 }
 0x2f4   : > { %v4670_v42 = vpop.f32.mrf.mxu1  ;;  %5027 = vmatmul.bf16.gmra.mxu3 %v4335_v46  ;;  %v5626_v23 = vmul.f32 %v9297_v3, %v5366_v11  ;;  %v3005_v48 = vadd.f32 %v7808_v49, %v2717_v44  ;;  %v3388_v36 = vmax.f32 %v3132_v22, 0.0  ;;  %v846_v22 = vmul.f32 %v8534_v26, %v8985_v41 }
 0x2f5   : > { %v4671_v24 = vadd.f32 %v9284_v51, %v4670_v42  ;;  %v719_v42 = vmul.f32 %v8536_v27, %v8973_v19 }
 0x2f6   : > { %6055 = vadd.xlane.f32.xlu2 %v5626_v23  ;;  %5801 = vadd.xlane.f32.xlu1 %v5499_v37  ;;  %v3261_v13 = vmax.f32 %v3005_v48, 0.0  ;;  %v9314_v5 = vpop.xlane.xlu0 %6015  ;;  %v3644_v37 = vpack.c.bf16 %v3388_v36, %v3388_v36 }
 0x2f7   : > { %v2469_v61 = vpop.f32.mrf.mxu2  ;;  %v4988_v46 = vpop.f32.mrf.mxu3  ;;  %v5240_v11 = vmax.f32 %v4671_v24, 0.0  ;;  %11447 = vst [vmem:[#allocation86_spill] sm:$0xff] %v9314_v5  ;;  %v7809_v5 = vld [vmem:[#allocation9 + $0x10] sm:$0xff] }
 0x2f8   : > { %v2845_v54 = vadd.f32 %v9262_v21, %v2469_v61  ;;  %v4989_v56 = vadd.f32 %v9284_v51, %v4988_v46  ;;  %v3517_v35 = vpack.c.bf16 %v3261_v13, %v3261_v13  ;;  %v9320_v7 = vpop.xlane.xlu2 %5761 }
 0x2f9   : > { %v2152_v23 = vpop.f32.mrf.mxu0  ;;  %v5500_v13 = vmul.f32 %v9297_v3, %v5240_v11  ;;  %11448 = vst [vmem:[#allocation87_spill] sm:$0xff] %v9320_v7 }
 0x2fa   : > { %v3133_v44 = vadd.f32 %v7808_v49, %v2845_v54  ;;  %v5367_v25 = vmax.f32 %v4989_v56, 0.0  ;;  %v4049_v48 = vunpack.c.l.b16 %v3517_v35  ;;  %v2718_v24 = vadd.f32 %v9258_v31, %v2152_v23 }
 0x2fb   : > { %v4176_v23 = vunpack.c.l.b16 %v3644_v37 }
 0x2fc   : > { %v3389_v49 = vmax.f32 %v3133_v44, 0.0  ;;  %2191 = vmatmul.bf16.gmra.mxu0 %v1715_v20  ;;  %2511 = vmatmul.bf16.gmra.mxu2 %v1779_v30  ;;  %v4673_v61 = vpop.f32.mrf.mxu1  ;;  %v5627_v9 = vmul.f32 %v9297_v3, %v5367_v25  ;;  %v4272_v56 = vpack.c.b16 %v4049_v48, %v4048_v8  ;;  %v3006_v36 = vadd.f32 %v7809_v5, %v2718_v24  ;;  %v9322_v30 = vpop.xlane.xlu1 %6017 }
 0x2fd   : > { %v4674_v46 = vadd.f32 %v9284_v51, %v4673_v61  ;;  %v975_v44 = vpack.c.bf16 %v719_v42, %v719_v42  ;;  %v1102_v20 = vpack.c.bf16 %v846_v22, %v846_v22  ;;  %11449 = vst [vmem:[#allocation88_spill] sm:$0xff] %v9322_v30  ;;  %v1103_v61 = vpack.c.bf16 %v847_v59, %v847_v59 }
 0x2fe   : > { %v3645_v54 = vpack.c.bf16 %v3389_v49, %v3389_v49  ;;  %6057 = vadd.xlane.f32.xlu0 %v5627_v9  ;;  %5803 = vadd.xlane.f32.xlu2 %v5500_v13  ;;  %v3262_v7 = vmax.f32 %v3006_v36, 0.0  ;;  %v1502_v13 = vunpack.c.l.b16 %v974_v4 }
 0x2ff   : > { %v2472_v35 = vpop.f32.mrf.mxu2  ;;  %4712 = vmatmul.bf16.gmra.mxu1 %v4272_v56  ;;  %v4990_v49 = vpop.f32.mrf.mxu3  ;;  %v5241_v8 = vmax.f32 %v4674_v46, 0.0  ;;  %v1503_v57 = vunpack.c.l.b16 %v975_v44  ;;  %v1630_v30 = vunpack.c.l.b16 %v1102_v20  ;;  %v1631_v37 = vunpack.c.l.b16 %v1103_v61 }
 0x300   : > { %v4177_v25 = vunpack.c.l.b16 %v3645_v54  ;;  %v2846_v11 = vadd.f32 %v9262_v21, %v2472_v35  ;;  %v4991_v60 = vadd.f32 %v9284_v51, %v4990_v49  ;;  %v9329_v46 = vpop.xlane.xlu0 %5763  ;;  %v7810_v35 = vld [vmem:[#allocation9 + $0x18] sm:$0xff]  ;;  %v3518_v4 = vpack.c.bf16 %v3262_v7, %v3262_v7 }
 0x301   : > { %v2154_v9 = vpop.f32.mrf.mxu0  ;;  %v5501_v59 = vmul.f32 %v9297_v3, %v5241_v8  ;;  %11450 = vst [vmem:[#allocation89_spill] sm:$0xff] %v9329_v46  ;;  %v1716_v44 = vpack.c.b16 %v1503_v57, %v1502_v13  ;;  %v720_v7 = vmul.f32 %v8550_v45, %v8973_v19 }
 0x302   : > { %v4336_v48 = vpack.c.b16 %v4177_v25, %v4176_v23  ;;  %v5368_v24 = vmax.f32 %v4991_v60, 0.0  ;;  %v3134_v42 = vadd.f32 %v7809_v5, %v2846_v11  ;;  %v2719_v22 = vadd.f32 %v9258_v31, %v2154_v9  ;;  %v9332_v25 = vpop.xlane.xlu2 %6019 }
 0x303   : > { %11451 = vst [vmem:[#allocation90_spill] sm:$0xff] %v9332_v25  ;;  %v1780_v60 = vpack.c.b16 %v1631_v37, %v1630_v30  ;;  %v4050_v57 = vunpack.c.l.b16 %v3518_v4  ;;  %v849_v30 = vmul.f32 %v8552_v47, %v8985_v41  ;;  %v976_v25 = vpack.c.bf16 %v720_v7, %v720_v7 }
 0x304   : > { %v4675_v54 = vpop.f32.mrf.mxu1  ;;  %5032 = vmatmul.bf16.gmra.mxu3 %v4336_v48  ;;  %v5628_v56 = vmul.f32 %v9297_v3, %v5368_v24  ;;  %v3007_v23 = vadd.f32 %v7810_v35, %v2719_v22  ;;  %v3390_v20 = vmax.f32 %v3134_v42, 0.0  ;;  %v9336_v24 = vpop.xlane.xlu1 %5765 }
 0x305   : > { %v4676_v36 = vadd.f32 %v9284_v51, %v4675_v54  ;;  %11452 = vst [vmem:[#allocation91_spill] sm:$0xff] %v9336_v24  ;;  %v721_v54 = vmul.f32 %v8552_v47, %v8973_v19  ;;  %v7811_v24 = vld [vmem:[#allocation9 + $0x20] sm:$0xff]  ;;  %v1105_v46 = vpack.c.bf16 %v849_v30, %v849_v30 }
 0x306   : > { %6059 = vadd.xlane.f32.xlu1 %v5628_v56  ;;  %5805 = vadd.xlane.f32.xlu0 %v5501_v59  ;;  %v3263_v11 = vmax.f32 %v3007_v23, 0.0  ;;  %v848_v56 = vmul.f32 %v8550_v45, %v8985_v41  ;;  %v3646_v37 = vpack.c.bf16 %v3390_v20, %v3390_v20 }
 0x307   : > { %v2474_v5 = vpop.f32.mrf.mxu2  ;;  %v4993_v61 = vpop.f32.mrf.mxu3  ;;  %v5242_v8 = vmax.f32 %v4676_v36, 0.0 }
 0x308   : > { %v2847_v49 = vadd.f32 %v9262_v21, %v2474_v5  ;;  %v4994_v48 = vadd.f32 %v9284_v51, %v4993_v61  ;;  %v3519_v9 = vpack.c.bf16 %v3263_v11, %v3263_v11  ;;  %v9349_v11 = vpop.xlane.xlu0 %6021 }
 0x309   : > { %v2157_v42 = vpop.f32.mrf.mxu0  ;;  %v5502_v4 = vmul.f32 %v9297_v3, %v5242_v8  ;;  %11453 = vst [vmem:[#allocation92_spill] sm:$0xff] %v9349_v11 }
 0x30a   : > { %v3135_v22 = vadd.f32 %v7810_v35, %v2847_v49  ;;  %v5369_v13 = vmax.f32 %v4994_v48, 0.0  ;;  %v4051_v59 = vunpack.c.l.b16 %v3519_v9  ;;  %v2720_v35 = vadd.f32 %v9258_v31, %v2157_v42  ;;  %v9353_v11 = vpop.xlane.xlu2 %5767 }
 0x30b   : > { %11454 = vst [vmem:[#allocation93_spill] sm:$0xff] %v9353_v11 }
 0x30c   : > { %v3391_v23 = vmax.f32 %v3135_v22, 0.0  ;;  %2196 = vmatmul.bf16.gmra.mxu0 %v1716_v44  ;;  %2516 = vmatmul.bf16.gmra.mxu2 %v1780_v60  ;;  %v4678_v36 = vpop.f32.mrf.mxu1  ;;  %v5629_v5 = vmul.f32 %v9297_v3, %v5369_v13  ;;  %v4273_v48 = vpack.c.b16 %v4051_v59, %v4050_v57  ;;  %v3008_v20 = vadd.f32 %v7811_v24, %v2720_v35  ;;  %v9356_v7 = vpop.xlane.xlu1 %6023 }
 0x30d   : > { %v4679_v61 = vadd.f32 %v9284_v51, %v4678_v36  ;;  %v977_v22 = vpack.c.bf16 %v721_v54, %v721_v54  ;;  %v1104_v44 = vpack.c.bf16 %v848_v56, %v848_v56  ;;  %v4178_v60 = vunpack.c.l.b16 %v3646_v37  ;;  %11455 = vst [vmem:[#allocation94_spill] sm:$0xff] %v9356_v7  ;;  %v7813_v7 = vld [vmem:[#allocation9 + $0x30] sm:$0xff] }
 0x30e   : > { %v3647_v49 = vpack.c.bf16 %v3391_v23, %v3391_v23  ;;  %6061 = vadd.xlane.f32.xlu2 %v5629_v5  ;;  %5807 = vadd.xlane.f32.xlu1 %v5502_v4  ;;  %v3264_v35 = vmax.f32 %v3008_v20, 0.0  ;;  %v1504_v54 = vunpack.c.l.b16 %v976_v25 }
 0x30f   : > { %v2477_v9 = vpop.f32.mrf.mxu2  ;;  %4717 = vmatmul.bf16.gmra.mxu1 %v4273_v48  ;;  %v4995_v8 = vpop.f32.mrf.mxu3  ;;  %v5243_v23 = vmax.f32 %v4679_v61, 0.0  ;;  %v1505_v56 = vunpack.c.l.b16 %v977_v22  ;;  %v1633_v48 = vunpack.c.l.b16 %v1105_v46 }
 0x310   : > { %v4179_v42 = vunpack.c.l.b16 %v3647_v49  ;;  %v2848_v13 = vadd.f32 %v9262_v21, %v2477_v9  ;;  %v4996_v57 = vadd.f32 %v9284_v51, %v4995_v8  ;;  %v1632_v49 = vunpack.c.l.b16 %v1104_v44  ;;  %v7812_v8 = vld [vmem:[#allocation9 + $0x28] sm:$0xff] }
 0x311   : > { %v2159_v5 = vpop.f32.mrf.mxu0  ;;  %v5503_v61 = vmul.f32 %v9297_v3, %v5243_v23  ;;  %v3520_v20 = vpack.c.bf16 %v3264_v35, %v3264_v35  ;;  %v1717_v22 = vpack.c.b16 %v1505_v56, %v1504_v54  ;;  %v722_v35 = vmul.f32 %v8566_v63, %v8973_v19 }
 0x312   : > { %v4337_v59 = vpack.c.b16 %v4179_v42, %v4178_v60  ;;  %v5370_v36 = vmax.f32 %v4996_v57, 0.0  ;;  %v3136_v37 = vadd.f32 %v7811_v24, %v2848_v13  ;;  %v2721_v4 = vadd.f32 %v9258_v31, %v2159_v5  ;;  %v9362_v24 = vpop.xlane.xlu0 %5769 }
 0x313   : > { %11456 = vst [vmem:[#allocation95_spill] sm:$0xff] %v9362_v24  ;;  %v1781_v57 = vpack.c.b16 %v1633_v48, %v1632_v49  ;;  %v723_v54 = vmul.f32 %v8568_v0, %v8973_v19  ;;  %v4052_v56 = vunpack.c.l.b16 %v3520_v20  ;;  %v851_v49 = vmul.f32 %v8568_v0, %v8985_v41 }
 0x314   : > { %v4680_v9 = vpop.f32.mrf.mxu1  ;;  %5037 = vmatmul.bf16.gmra.mxu3 %v4337_v59  ;;  %v5630_v30 = vmul.f32 %v9297_v3, %v5370_v36  ;;  %v3009_v11 = vadd.f32 %v7812_v8, %v2721_v4  ;;  %v3392_v42 = vmax.f32 %v3136_v37, 0.0  ;;  %v9365_v59 = vpop.xlane.xlu2 %6025 }
 0x315   : > { %v4681_v60 = vadd.f32 %v9284_v51, %v4680_v9  ;;  %11457 = vst [vmem:[#allocation96_spill] sm:$0xff] %v9365_v59  ;;  %v850_v9 = vmul.f32 %v8566_v63, %v8985_v41  ;;  %v9376_v48 = vpop.xlane.xlu1 %5771  ;;  %v978_v59 = vpack.c.bf16 %v722_v35, %v722_v35 }
 0x316   : > { %6063 = vadd.xlane.f32.xlu0 %v5630_v30  ;;  %5809 = vadd.xlane.f32.xlu2 %v5503_v61  ;;  %v3265_v44 = vmax.f32 %v3009_v11, 0.0  ;;  %11458 = vst [vmem:[#allocation97_spill] sm:$0xff] %v9376_v48  ;;  %v3648_v30 = vpack.c.bf16 %v3392_v42, %v3392_v42 }
 0x317   : > { %v2479_v25 = vpop.f32.mrf.mxu2  ;;  %v4998_v13 = vpop.f32.mrf.mxu3  ;;  %v5244_v23 = vmax.f32 %v4681_v60, 0.0 }
 0x318   : > { %v2849_v46 = vadd.f32 %v9262_v21, %v2479_v25  ;;  %v4999_v36 = vadd.f32 %v9284_v51, %v4998_v13  ;;  %v3521_v5 = vpack.c.bf16 %v3265_v44, %v3265_v44 }
 0x319   : > { %v2162_v11 = vpop.f32.mrf.mxu0  ;;  %v5504_v44 = vmul.f32 %v9297_v3, %v5244_v23 }
 0x31a   : > { %v3137_v4 = vadd.f32 %v7812_v8, %v2849_v46  ;;  %v5371_v37 = vmax.f32 %v4999_v36, 0.0  ;;  %v4053_v61 = vunpack.c.l.b16 %v3521_v5  ;;  %v2722_v60 = vadd.f32 %v9258_v31, %v2162_v11  ;;  %v9382_v11 = vpop.xlane.xlu0 %6027 }
 0x31b   : > { %v979_v5 = vpack.c.bf16 %v723_v54, %v723_v54  ;;  %11459 = vst [vmem:[#allocation98_spill] sm:$0xff] %v9382_v11  ;;  %v1506_v54 = vunpack.c.l.b16 %v978_v59 }
 0x31c   : > { %v3393_v8 = vmax.f32 %v3137_v4, 0.0  ;;  %2201 = vmatmul.bf16.gmra.mxu0 %v1717_v22  ;;  %2521 = vmatmul.bf16.gmra.mxu2 %v1781_v57  ;;  %v4683_v25 = vpop.f32.mrf.mxu1  ;;  %v5631_v20 = vmul.f32 %v9297_v3, %v5371_v37  ;;  %v4274_v36 = vpack.c.b16 %v4053_v61, %v4052_v56  ;;  %v3010_v24 = vadd.f32 %v7813_v7, %v2722_v60  ;;  %v9386_v61 = vpop.xlane.xlu2 %5773 }
 0x31d   : > { %v4684_v13 = vadd.f32 %v9284_v51, %v4683_v25  ;;  %v1106_v4 = vpack.c.bf16 %v850_v9, %v850_v9  ;;  %v4180_v22 = vunpack.c.l.b16 %v3648_v30  ;;  %11460 = vst [vmem:[#allocation99_spill] sm:$0xff] %v9386_v61  ;;  %v1507_v9 = vunpack.c.l.b16 %v979_v5  ;;  %v7815_v61 = vld [vmem:[#allocation9 + $0x40] sm:$0xff] }
 0x31e   : > { %v3649_v46 = vpack.c.bf16 %v3393_v8, %v3393_v8  ;;  %6065 = vadd.xlane.f32.xlu1 %v5631_v20  ;;  %5811 = vadd.xlane.f32.xlu0 %v5504_v44  ;;  %v1107_v8 = vpack.c.bf16 %v851_v49, %v851_v49  ;;  %v3266_v60 = vmax.f32 %v3010_v24, 0.0  ;;  %v9388_v44 = vpop.xlane.xlu1 %6029 }
 0x31f   : > { %v2482_v42 = vpop.f32.mrf.mxu2  ;;  %4722 = vmatmul.bf16.gmra.mxu1 %v4274_v36  ;;  %v5000_v23 = vpop.f32.mrf.mxu3  ;;  %v5245_v48 = vmax.f32 %v4684_v13, 0.0  ;;  %11461 = vst [vmem:[#allocation100_spill] sm:$0xff] %v9388_v44  ;;  %v1634_v36 = vunpack.c.l.b16 %v1106_v4  ;;  %v1718_v5 = vpack.c.b16 %v1507_v9, %v1506_v54 }
 0x320   : > { %v4181_v57 = vunpack.c.l.b16 %v3649_v46  ;;  %v2850_v37 = vadd.f32 %v9262_v21, %v2482_v42  ;;  %v5001_v56 = vadd.f32 %v9284_v51, %v5000_v23  ;;  %v1635_v42 = vunpack.c.l.b16 %v1107_v8 }
 0x321   : > { %v2164_v20 = vpop.f32.mrf.mxu0  ;;  %v5505_v13 = vmul.f32 %v9297_v3, %v5245_v48  ;;  %v3522_v23 = vpack.c.bf16 %v3266_v60, %v3266_v60  ;;  %v725_v60 = vmul.f32 %v8584_v29, %v8973_v19 }
 0x322   : > { %v4338_v35 = vpack.c.b16 %v4181_v57, %v4180_v22  ;;  %v5372_v25 = vmax.f32 %v5001_v56, 0.0  ;;  %v3138_v30 = vadd.f32 %v7813_v7, %v2850_v37  ;;  %v2723_v46 = vadd.f32 %v9258_v31, %v2164_v20  ;;  %v7814_v22 = vld [vmem:[#allocation9 + $0x38] sm:$0xff]  ;;  %v9396_v20 = vpop.xlane.xlu0 %5775 }
 0x323   : > { %v1782_v56 = vpack.c.b16 %v1635_v42, %v1634_v36  ;;  %11462 = vst [vmem:[#allocation101_spill] sm:$0xff] %v9396_v20  ;;  %v4054_v9 = vunpack.c.l.b16 %v3522_v23  ;;  %v852_v36 = vmul.f32 %v8582_v28, %v8985_v41  ;;  %v853_v42 = vmul.f32 %v8584_v29, %v8985_v41 }
 0x324   : > { %v4685_v11 = vpop.f32.mrf.mxu1  ;;  %5042 = vmatmul.bf16.gmra.mxu3 %v4338_v35  ;;  %v5632_v49 = vmul.f32 %v9297_v3, %v5372_v25  ;;  %v3011_v57 = vadd.f32 %v7814_v22, %v2723_v46  ;;  %v3394_v7 = vmax.f32 %v3138_v30, 0.0  ;;  %v9402_v54 = vpop.xlane.xlu2 %6031 }
 0x325   : > { %v4686_v24 = vadd.f32 %v9284_v51, %v4685_v11  ;;  %v724_v11 = vmul.f32 %v8582_v28, %v8973_v19  ;;  %11463 = vst [vmem:[#allocation102_spill] sm:$0xff] %v9402_v54  ;;  %v1109_v20 = vpack.c.bf16 %v853_v42, %v853_v42 }
 0x326   : > { %6067 = vadd.xlane.f32.xlu2 %v5632_v49  ;;  %5813 = vadd.xlane.f32.xlu1 %v5505_v13  ;;  %v3267_v37 = vmax.f32 %v3011_v57, 0.0  ;;  %v3650_v13 = vpack.c.bf16 %v3394_v7, %v3394_v7 }
 0x327   : > { %v2484_v59 = vpop.f32.mrf.mxu2  ;;  %v5003_v8 = vpop.f32.mrf.mxu3  ;;  %v5246_v35 = vmax.f32 %v4686_v24, 0.0  ;;  %v980_v54 = vpack.c.bf16 %v724_v11, %v724_v11 }
 0x328   : > { %v2851_v4 = vadd.f32 %v9262_v21, %v2484_v59  ;;  %v5004_v25 = vadd.f32 %v9284_v51, %v5003_v8  ;;  %v3523_v48 = vpack.c.bf16 %v3267_v37, %v3267_v37 }
 0x329   : > { %v2167_v49 = vpop.f32.mrf.mxu0  ;;  %v5506_v23 = vmul.f32 %v9297_v3, %v5246_v35 }
 0x32a   : > { %v3139_v46 = vadd.f32 %v7814_v22, %v2851_v4  ;;  %v5373_v30 = vmax.f32 %v5004_v25, 0.0  ;;  %v4055_v57 = vunpack.c.l.b16 %v3523_v48  ;;  %v2724_v24 = vadd.f32 %v9258_v31, %v2167_v49  ;;  %v9411_v4 = vpop.xlane.xlu1 %5777 }
 0x32b   : > { %11464 = vst [vmem:[#allocation103_spill] sm:$0xff] %v9411_v4 }
 0x32c   : > { %v3395_v22 = vmax.f32 %v3139_v46, 0.0  ;;  %2206 = vmatmul.bf16.gmra.mxu0 %v1718_v5  ;;  %2526 = vmatmul.bf16.gmra.mxu2 %v1782_v56  ;;  %v4688_v59 = vpop.f32.mrf.mxu1  ;;  %v5633_v37 = vmul.f32 %v9297_v3, %v5373_v30  ;;  %v4275_v44 = vpack.c.b16 %v4055_v57, %v4054_v9  ;;  %v3012_v7 = vadd.f32 %v7815_v61, %v2724_v24 }
 0x32d   : > { %v4689_v25 = vadd.f32 %v9284_v51, %v4688_v59  ;;  %v981_v46 = vpack.c.bf16 %v725_v60, %v725_v60  ;;  %v1108_v5 = vpack.c.bf16 %v852_v36, %v852_v36  ;;  %v4182_v56 = vunpack.c.l.b16 %v3650_v13  ;;  %v9416_v59 = vpop.xlane.xlu0 %6033 }
 0x32e   : > { %v3651_v8 = vpack.c.bf16 %v3395_v22, %v3395_v22  ;;  %6069 = vadd.xlane.f32.xlu0 %v5633_v37  ;;  %5815 = vadd.xlane.f32.xlu2 %v5506_v23  ;;  %11465 = vst [vmem:[#allocation104_spill] sm:$0xff] %v9416_v59  ;;  %v3268_v9 = vmax.f32 %v3012_v7, 0.0  ;;  %v1508_v37 = vunpack.c.l.b16 %v980_v54  ;;  %v7816_v7 = vld [vmem:[#allocation9 + $0x48] sm:$0xff] }
 0x32f   : > { %v2487_v48 = vpop.f32.mrf.mxu2  ;;  %4727 = vmatmul.bf16.gmra.mxu1 %v4275_v44  ;;  %v5005_v35 = vpop.f32.mrf.mxu3  ;;  %v5247_v4 = vmax.f32 %v4689_v25, 0.0  ;;  %v1509_v23 = vunpack.c.l.b16 %v981_v46  ;;  %v1636_v13 = vunpack.c.l.b16 %v1108_v5  ;;  %v1637_v44 = vunpack.c.l.b16 %v1109_v20 }
 0x330   : > { %v4183_v49 = vunpack.c.l.b16 %v3651_v8  ;;  %v2852_v30 = vadd.f32 %v9262_v21, %v2487_v48  ;;  %v5006_v22 = vadd.f32 %v9284_v51, %v5005_v35  ;;  %v9419_v8 = vpop.xlane.xlu2 %5779  ;;  %v3524_v46 = vpack.c.bf16 %v3268_v9, %v3268_v9 }
 0x331   : > { %v2169_v24 = vpop.f32.mrf.mxu0  ;;  %11466 = vst [vmem:[#allocation105_spill] sm:$0xff] %v9419_v8  ;;  %v5507_v25 = vmul.f32 %v9297_v3, %v5247_v4  ;;  %v1719_v5 = vpack.c.b16 %v1509_v23, %v1508_v37  ;;  %v727_v9 = vmul.f32 %v8600_v58, %v8973_v19  ;;  %v854_v23 = vmul.f32 %v8598_v62, %v8985_v41 }
 0x332   : > { %v4339_v11 = vpack.c.b16 %v4183_v49, %v4182_v56  ;;  %v5374_v57 = vmax.f32 %v5006_v22, 0.0  ;;  %v3140_v60 = vadd.f32 %v7815_v61, %v2852_v30  ;;  %v2725_v36 = vadd.f32 %v9258_v31, %v2169_v24  ;;  %v9423_v35 = vpop.xlane.xlu1 %6035 }
 0x333   : > { %11467 = vst [vmem:[#allocation106_spill] sm:$0xff] %v9423_v35 }
 0x334   : > { %v4690_v48 = vpop.f32.mrf.mxu1  ;;  %5047 = vmatmul.bf16.gmra.mxu3 %v4339_v11  ;;  %v5634_v42 = vmul.f32 %v9297_v3, %v5374_v57  ;;  %v3013_v56 = vadd.f32 %v7816_v7, %v2725_v36  ;;  %v3396_v20 = vmax.f32 %v3140_v60, 0.0  ;;  %v1783_v11 = vpack.c.b16 %v1637_v44, %v1636_v13 }
 0x335   : > { %v4691_v54 = vadd.f32 %v9284_v51, %v4690_v48  ;;  %v726_v36 = vmul.f32 %v8598_v62, %v8973_v19  ;;  %v4056_v48 = vunpack.c.l.b16 %v3524_v46  ;;  %v855_v60 = vmul.f32 %v8600_v58, %v8985_v41  ;;  %v9436_v13 = vpop.xlane.xlu0 %5781 }
 0x336   : > { %6071 = vadd.xlane.f32.xlu1 %v5634_v42  ;;  %5817 = vadd.xlane.f32.xlu0 %v5507_v25  ;;  %v3269_v49 = vmax.f32 %v3013_v56, 0.0  ;;  %11468 = vst [vmem:[#allocation107_spill] sm:$0xff] %v9436_v13  ;;  %v3652_v44 = vpack.c.bf16 %v3396_v20, %v3396_v20  ;;  %v7817_v13 = vld [vmem:[#allocation9 + $0x50] sm:$0xff] }
 0x337   : > { %v2489_v61 = vpop.f32.mrf.mxu2  ;;  %v5008_v22 = vpop.f32.mrf.mxu3  ;;  %v5248_v57 = vmax.f32 %v4691_v54, 0.0  ;;  %v982_v8 = vpack.c.bf16 %v726_v36, %v726_v36 }
 0x338   : > { %v2853_v30 = vadd.f32 %v9262_v21, %v2489_v61  ;;  %v5009_v4 = vadd.f32 %v9284_v51, %v5008_v22  ;;  %v3525_v24 = vpack.c.bf16 %v3269_v49, %v3269_v49  ;;  %v9439_v54 = vpop.xlane.xlu2 %6037 }
 0x339   : > { %v2172_v37 = vpop.f32.mrf.mxu0  ;;  %11469 = vst [vmem:[#allocation108_spill] sm:$0xff] %v9439_v54  ;;  %v5508_v49 = vmul.f32 %v9297_v3, %v5248_v57 }
 0x33a   : > { %v3141_v35 = vadd.f32 %v7816_v7, %v2853_v30  ;;  %v5375_v42 = vmax.f32 %v5009_v4, 0.0  ;;  %v4057_v25 = vunpack.c.l.b16 %v3525_v24  ;;  %v2726_v56 = vadd.f32 %v9258_v31, %v2172_v37 }
 0x33b   : > { %v983_v24 = vpack.c.bf16 %v727_v9, %v727_v9  ;;  %v4184_v37 = vunpack.c.l.b16 %v3652_v44 }
 0x33c   : > { %v3397_v7 = vmax.f32 %v3141_v35, 0.0  ;;  %2211 = vmatmul.bf16.gmra.mxu0 %v1719_v5  ;;  %2531 = vmatmul.bf16.gmra.mxu2 %v1783_v11  ;;  %v4693_v46 = vpop.f32.mrf.mxu1  ;;  %v5635_v61 = vmul.f32 %v9297_v3, %v5375_v42  ;;  %v4276_v4 = vpack.c.b16 %v4057_v25, %v4056_v48  ;;  %v3014_v20 = vadd.f32 %v7817_v13, %v2726_v56  ;;  %v9444_v11 = vpop.xlane.xlu1 %5783 }
 0x33d   : > { %v4694_v22 = vadd.f32 %v9284_v51, %v4693_v46  ;;  %v1110_v5 = vpack.c.bf16 %v854_v23, %v854_v23  ;;  %11470 = vst [vmem:[#allocation109_spill] sm:$0xff] %v9444_v11  ;;  %v1510_v25 = vunpack.c.l.b16 %v982_v8  ;;  %v541_v56 = vunpack.i.h.s16 %v8953_v16  ;;  %v9451_v11 = vpop.xlane.xlu0 %6039  ;;  %v7818_v16 = vld [vmem:[#allocation9 + $0x58] sm:$0xff] }
 0x33e   : > { %v3653_v30 = vpack.c.bf16 %v3397_v7, %v3397_v7  ;;  %6073 = vadd.xlane.f32.xlu2 %v5635_v61  ;;  %5819 = vadd.xlane.f32.xlu1 %v5508_v49  ;;  %v1111_v7 = vpack.c.bf16 %v855_v60, %v855_v60  ;;  %v3270_v46 = vmax.f32 %v3014_v20, 0.0  ;;  %v1511_v23 = vunpack.c.l.b16 %v983_v24  ;;  %11471 = vst [vmem:[#allocation110_spill] sm:$0xff] %v9451_v11 }
 0x33f   : > { %v2492_v35 = vpop.f32.mrf.mxu2  ;;  %4732 = vmatmul.bf16.gmra.mxu1 %v4276_v4  ;;  %v5010_v57 = vpop.f32.mrf.mxu3  ;;  %v5249_v59 = vmax.f32 %v4694_v22, 0.0  ;;  %v545_v49 = vunpack.i.h.s16 %v8963_v53  ;;  %v1638_v4 = vunpack.c.l.b16 %v1110_v5  ;;  %v549_v24 = vpack.i.b16 %v541_v56, %v541_v56 }
 0x340   : > { %v4185_v54 = vunpack.c.l.b16 %v3653_v30  ;;  %v2854_v42 = vadd.f32 %v9262_v21, %v2492_v35  ;;  %v5011_v48 = vadd.f32 %v9284_v51, %v5010_v57  ;;  %v1639_v35 = vunpack.c.l.b16 %v1111_v7 }
 0x341   : > { %v2174_v9 = vpop.f32.mrf.mxu0  ;;  %v5509_v8 = vmul.f32 %v9297_v3, %v5249_v59  ;;  %v3526_v53 = vpack.c.bf16 %v3270_v46, %v3270_v46  ;;  %v1720_v5 = vpack.c.b16 %v1511_v23, %v1510_v25  ;;  %v728_v56 = vmul.f32 %v8616_v40, %v8973_v19 }
 0x342   : > { %v4340_v36 = vpack.c.b16 %v4185_v54, %v4184_v37  ;;  %v5376_v61 = vmax.f32 %v5011_v48, 0.0  ;;  %v3142_v44 = vadd.f32 %v7817_v13, %v2854_v42  ;;  %v2727_v30 = vadd.f32 %v9258_v31, %v2174_v9  ;;  %v9456_v37 = vpop.xlane.xlu2 %5785 }
 0x343   : > { %11472 = vst [vmem:[#allocation111_spill] sm:$0xff] %v9456_v37  ;;  %v553_v42 = vpack.i.b16 %v545_v49, %v545_v49  ;;  %v729_v46 = vmul.f32 %v8618_v2, %v8973_v19  ;;  %v856_v23 = vmul.f32 %v8616_v40, %v8985_v41  ;;  %v557_v49 = vperm.slane %v549_v24, 0 }
 0x344   : > { %v4695_v60 = vpop.f32.mrf.mxu1  ;;  %5052 = vmatmul.bf16.gmra.mxu3 %v4340_v36  ;;  %v5636_v54 = vmul.f32 %v9297_v3, %v5376_v61  ;;  %v3015_v22 = vadd.f32 %v7818_v16, %v2727_v30  ;;  %v9458_v57 = vpop.xlane.xlu1 %6041  ;;  %v3398_v7 = vmax.f32 %v3142_v44, 0.0  ;;  %v1784_v61 = vpack.c.b16 %v1639_v35, %v1638_v4 }
 0x345   : > { %v4696_v20 = vadd.f32 %v9284_v51, %v4695_v60  ;;  %11473 = vst [vmem:[#allocation112_spill] sm:$0xff] %v9458_v57  ;;  %v4058_v44 = vunpack.c.l.b16 %v3526_v53  ;;  %v857_v4 = vmul.f32 %v8618_v2, %v8985_v41  ;;  %v561_v35 = vperm.slane %v553_v42, 0  ;;  %v9474_v42 = vpop.xlane.xlu0 %5787 }
 0x346   : > { %6075 = vadd.xlane.f32.xlu0 %v5636_v54  ;;  %5821 = vadd.xlane.f32.xlu2 %v5509_v8  ;;  %v3271_v48 = vmax.f32 %v3015_v22, 0.0  ;;  %v3654_v22 = vpack.c.bf16 %v3398_v7, %v3398_v7  ;;  %v984_v24 = vpack.c.bf16 %v728_v56, %v728_v56  ;;  %v985_v53 = vpack.c.bf16 %v729_v46, %v729_v46  ;;  %v7819_v7 = vld [vmem:[#allocation9 + $0x60] sm:$0xff] }
 0x347   : > { %v2494_v13 = vpop.f32.mrf.mxu2  ;;  %v5013_v59 = vpop.f32.mrf.mxu3  ;;  %v5250_v9 = vmax.f32 %v4696_v20, 0.0  ;;  %v575_v41 = vpack.i.b16 %v557_v49, %v557_v49  ;;  %11474 = vst [vmem:[#allocation113_spill] sm:$0xff] %v9474_v42 }
 0x348   : > { %v2855_v36 = vadd.f32 %v9262_v21, %v2494_v13  ;;  %v5014_v30 = vadd.f32 %v9284_v51, %v5013_v59  ;;  %v3527_v60 = vpack.c.bf16 %v3271_v48, %v3271_v48 }
 0x349   : > { %v2177_v8 = vpop.f32.mrf.mxu0  ;;  %v5510_v48 = vmul.f32 %v9297_v3, %v5250_v9 }
 0x34a   : > { %v3143_v25 = vadd.f32 %v7818_v16, %v2855_v36  ;;  %v5377_v54 = vmax.f32 %v5014_v30, 0.0  ;;  %v4059_v20 = vunpack.c.l.b16 %v3527_v60  ;;  %v2728_v59 = vadd.f32 %v9258_v31, %v2177_v8  ;;  %v9476_v8 = vpop.xlane.xlu2 %6043 }
 0x34b   : > { %11475 = vst [vmem:[#allocation114_spill] sm:$0xff] %v9476_v8 }
 0x34c   : > { %v3399_v13 = vmax.f32 %v3143_v25, 0.0  ;;  %2216 = vmatmul.bf16.gmra.mxu0 %v1720_v5  ;;  %2536 = vmatmul.bf16.gmra.mxu2 %v1784_v61  ;;  %v4698_v19 = vpop.f32.mrf.mxu1  ;;  %v5637_v16 = vmul.f32 %v9297_v3, %v5377_v54  ;;  %v4277_v57 = vpack.c.b16 %v4059_v20, %v4058_v44  ;;  %v3016_v60 = vadd.f32 %v7819_v7, %v2728_v59  ;;  %v9480_v20 = vpop.xlane.xlu1 %5789 }
 0x34d   : > { %v4699_v30 = vadd.f32 %v9284_v51, %v4698_v19  ;;  %v1112_v61 = vpack.c.bf16 %v856_v23, %v856_v23  ;;  %v591_v25 = vpack.i.b16 %v561_v35, %v561_v35  ;;  %v4186_v54 = vunpack.c.l.b16 %v3654_v22  ;;  %11476 = vst [vmem:[#allocation115_spill] sm:$0xff] %v9480_v20 }
 0x34e   : > { %v3655_v36 = vpack.c.bf16 %v3399_v13, %v3399_v13  ;;  %6077 = vadd.xlane.f32.xlu1 %v5637_v16  ;;  %5823 = vadd.xlane.f32.xlu0 %v5510_v48  ;;  %v1113_v13 = vpack.c.bf16 %v857_v4, %v857_v4  ;;  %v1512_v19 = vunpack.c.l.b16 %v984_v24  ;;  %v577_v16 = vperm.slane %v575_v41, 0 }
 0x34f   : > { %v2497_v5 = vpop.f32.mrf.mxu2  ;;  %4737 = vmatmul.bf16.gmra.mxu1 %v4277_v57  ;;  %v5015_v46 = vpop.f32.mrf.mxu3  ;;  %v5251_v44 = vmax.f32 %v4699_v30, 0.0  ;;  %v3272_v48 = vmax.f32 %v3016_v60, 0.0  ;;  %v593_v8 = vperm.slane %v591_v25, 0  ;;  %v1513_v57 = vunpack.c.l.b16 %v985_v53 }
 0x350   : > { %v4187_v9 = vunpack.c.l.b16 %v3655_v36  ;;  %v2856_v56 = vadd.f32 %v9262_v21, %v2497_v5  ;;  %v5016_v49 = vadd.f32 %v9284_v51, %v5015_v46  ;;  %v1640_v36 = vunpack.c.l.b16 %v1112_v61  ;;  %v7820_v46 = vld [vmem:[#allocation9 + $0x68] sm:$0xff]  ;;  %v9490_v61 = vpop.xlane.xlu0 %6045 }
 0x351   : > { %v2179_v42 = vpop.f32.mrf.mxu0  ;;  %v1641_v5 = vunpack.c.l.b16 %v1113_v13  ;;  %v5511_v30 = vmul.f32 %v9297_v3, %v5251_v44  ;;  %v9486_v41 = vunpack.c.l.bf16 %v577_v16  ;;  %v9488_v53 = vunpack.c.l.bf16 %v593_v8  ;;  %11477 = vst [vmem:[#allocation116_spill] sm:$0xff] %v9490_v61 }
 0x352   : > { %v4341_v59 = vpack.c.b16 %v4187_v9, %v4186_v54  ;;  %v3144_v23 = vadd.f32 %v7819_v7, %v2856_v56  ;;  %v5378_v35 = vmax.f32 %v5016_v49, 0.0  ;;  %v2729_v22 = vadd.f32 %v9258_v31, %v2179_v42 }
 0x353   : > { %v3528_v7 = vpack.c.bf16 %v3272_v48, %v3272_v48  ;;  %v1721_v13 = vpack.c.b16 %v1513_v57, %v1512_v19  ;;  %v1785_v44 = vpack.c.b16 %v1641_v5, %v1640_v36  ;;  %v730_v8 = vmul.f32 %v8402_v15, %v9486_v41 }
 0x354   : > { %v4700_v37 = vpop.f32.mrf.mxu1  ;;  %5057 = vmatmul.bf16.gmra.mxu3 %v4341_v59  ;;  %v5638_v4 = vmul.f32 %v9297_v3, %v5378_v35  ;;  %v3017_v54 = vadd.f32 %v7820_v46, %v2729_v22  ;;  %v3400_v60 = vmax.f32 %v3144_v23, 0.0  ;;  %v9494_v59 = vpop.xlane.xlu2 %5791  ;;  %v731_v35 = vmul.f32 %v11392_v18, %v9486_v41 }
 0x355   : > { %v4701_v24 = vadd.f32 %v9284_v51, %v4700_v37  ;;  %11478 = vst [vmem:[#allocation117_spill] sm:$0xff] %v9494_v59  ;;  %v9496_v16 = vpop.xlane.xlu1 %6047  ;;  %v4060_v22 = vunpack.c.l.b16 %v3528_v7  ;;  %v858_v57 = vmul.f32 %v8402_v15, %v9488_v53  ;;  %v7821_v15 = vld [vmem:[#allocation9 + $0x70] sm:$0xff] }
 0x356   : > { %6079 = vadd.xlane.f32.xlu2 %v5638_v4  ;;  %5825 = vadd.xlane.f32.xlu1 %v5511_v30  ;;  %v3273_v25 = vmax.f32 %v3017_v54, 0.0  ;;  %11479 = vst [vmem:[#allocation118_spill] sm:$0xff] %v9496_v16  ;;  %v3656_v4 = vpack.c.bf16 %v3400_v60, %v3400_v60 }
 0x357   : > { %v2499_v42 = vpop.f32.mrf.mxu2  ;;  %v5018_v56 = vpop.f32.mrf.mxu3  ;;  %v5252_v49 = vmax.f32 %v4701_v24, 0.0 }
 0x358   : > { %v2857_v9 = vadd.f32 %v9262_v21, %v2499_v42  ;;  %v5019_v37 = vadd.f32 %v9284_v51, %v5018_v56  ;;  %v3529_v48 = vpack.c.bf16 %v3273_v25, %v3273_v25  ;;  %v4188_v56 = vunpack.c.l.b16 %v3656_v4  ;;  %v9517_v4 = vpop.xlane.xlu0 %5793 }
 0x359   : > { %v2182_v19 = vpop.f32.mrf.mxu0  ;;  %v5512_v7 = vmul.f32 %v9297_v3, %v5252_v49  ;;  %11480 = vst [vmem:[#allocation119_spill] sm:$0xff] %v9517_v4 }
 0x35a   : > { %v3145_v23 = vadd.f32 %v7820_v46, %v2857_v9  ;;  %v5379_v30 = vmax.f32 %v5019_v37, 0.0  ;;  %v4061_v36 = vunpack.c.l.b16 %v3529_v48  ;;  %v2730_v54 = vadd.f32 %v9258_v31, %v2182_v19 }
 0x35b   : > { %v859_v46 = vmul.f32 %v11392_v18, %v9488_v53 }
 0x35c   : > { %v3401_v5 = vmax.f32 %v3145_v23, 0.0  ;;  %2221 = vmatmul.bf16.gmra.mxu0 %v1721_v13  ;;  %2541 = vmatmul.bf16.gmra.mxu2 %v1785_v44  ;;  %v4703_v24 = vpop.f32.mrf.mxu1  ;;  %v5639_v42 = vmul.f32 %v9297_v3, %v5379_v30  ;;  %v4278_v9 = vpack.c.b16 %v4061_v36, %v4060_v22  ;;  %v3018_v37 = vadd.f32 %v7821_v15, %v2730_v54  ;;  %v9519_v36 = vpop.xlane.xlu2 %6049 }
 0x35d   : > { %v4704_v25 = vadd.f32 %v9284_v51, %v4703_v24  ;;  %v986_v13 = vpack.c.bf16 %v730_v8, %v730_v8  ;;  %v987_v44 = vpack.c.bf16 %v731_v35, %v731_v35  ;;  %v1114_v30 = vpack.c.bf16 %v858_v57, %v858_v57  ;;  %v9514_v51 = vld [vmem:[%s11305_s6] ss:$0 sm:$0xff]  ;;  %11481 = vst [vmem:[#allocation120_spill] sm:$0xff] %v9519_v36  ;;  %v9521_v57 = vpop.xlane.xlu1 %5795  ;;  %v7823_v36 = vld [vmem:[#allocation9 + $0x78] sm:$0xff] }
 0x35e   : > { %v3657_v60 = vpack.c.bf16 %v3401_v5, %v3401_v5  ;;  %6081 = vadd.xlane.f32.xlu0 %v5639_v42  ;;  %5827 = vadd.xlane.f32.xlu2 %v5512_v7  ;;  %v1115_v16 = vpack.c.bf16 %v859_v46, %v859_v46  ;;  %v3274_v35 = vmax.f32 %v3018_v37, 0.0  ;;  %11482 = vst [vmem:[#allocation121_spill] sm:$0xff] %v9521_v57 }
 0x35f   : > { %v2502_v48 = vpop.f32.mrf.mxu2  ;;  %4742 = vmatmul.bf16.gmra.mxu1 %v4278_v9  ;;  %v5020_v19 = vpop.f32.mrf.mxu3  ;;  %v5253_v49 = vmax.f32 %v4704_v25, 0.0  ;;  %v1514_v24 = vunpack.c.l.b16 %v986_v13  ;;  %v1515_v42 = vunpack.c.l.b16 %v987_v44 }
 0x360   : > { %v4189_v23 = vunpack.c.l.b16 %v3657_v60  ;;  %v2858_v18 = vadd.f32 %v9262_v21, %v2502_v48  ;;  %v5021_v22 = vadd.f32 %v9514_v51, %v5020_v19  ;;  %v1642_v60 = vunpack.c.l.b16 %v1114_v30 }
 0x361   : > { %v2184_v54 = vpop.f32.mrf.mxu0  ;;  %v1643_v25 = vunpack.c.l.b16 %v1115_v16  ;;  %v5513_v19 = vmul.f32 %v9297_v3, %v5253_v49  ;;  %v1722_v44 = vpack.c.b16 %v1515_v42, %v1514_v24 }
 0x362   : > { %v4342_v8 = vpack.c.b16 %v4189_v23, %v4188_v56  ;;  %v5380_v5 = vmax.f32 %v5021_v22, 0.0  ;;  %v3146_v46 = vadd.f32 %v7821_v15, %v2858_v18  ;;  %v2731_v7 = vadd.f32 %v9258_v31, %v2184_v54  ;;  %v9529_v54 = vpop.xlane.xlu0 %6051 }
 0x363   : > { %v3530_v23 = vpack.c.bf16 %v3274_v35, %v3274_v35  ;;  %v1786_v22 = vpack.c.b16 %v1643_v25, %v1642_v60  ;;  %11483 = vst [vmem:[#allocation122_spill] sm:$0xff] %v9529_v54  ;;  %v7825_v54 = vld [vmem:[#allocation9 + $0x80] sm:$0xff] }
 0x364   : > { %v4705_v9 = vpop.f32.mrf.mxu1  ;;  %5062 = vmatmul.bf16.gmra.mxu3 %v4342_v8  ;;  %v5640_v48 = vmul.f32 %v9297_v3, %v5380_v5  ;;  %v3019_v56 = vadd.f32 %v7823_v36, %v2731_v7  ;;  %v3402_v15 = vmax.f32 %v3146_v46, 0.0  ;;  %v11484_v7 = vld [vmem:[#allocation28_spill] sm:$0xff]  ;;  %v9539_v25 = vpop.xlane.xlu2 %5797 }
 0x365   : > { %v4706_v37 = vadd.f32 %v9514_v51, %v4705_v9  ;;  %v732_v35 = vmul.f32 %v11484_v7, %v9486_v41  ;;  %v11485_v9 = vld [vmem:[#allocation29_spill] sm:$0xff]  ;;  %v4062_v24 = vunpack.c.l.b16 %v3530_v23  ;;  %11486 = vst [vmem:[#allocation28_spill] sm:$0xff] %v9539_v25 }
 0x366   : > { %6083 = vadd.xlane.f32.xlu1 %v5640_v48  ;;  %5829 = vadd.xlane.f32.xlu0 %v5513_v19  ;;  %v3275_v18 = vmax.f32 %v3019_v56, 0.0  ;;  %v733_v48 = vmul.f32 %v11485_v9, %v9486_v41  ;;  %v860_v19 = vmul.f32 %v11484_v7, %v9488_v53  ;;  %v861_v60 = vmul.f32 %v11485_v9, %v9488_v53 }
 0x367   : > { %v2504_v13 = vpop.f32.mrf.mxu2  ;;  %v5023_v16 = vpop.f32.mrf.mxu3  ;;  %v5254_v8 = vmax.f32 %v4706_v37, 0.0  ;;  %v3658_v56 = vpack.c.bf16 %v3402_v15, %v3402_v15 }
 0x368   : > { %v2859_v30 = vadd.f32 %v9262_v21, %v2504_v13  ;;  %v5024_v5 = vadd.f32 %v9514_v51, %v5023_v16  ;;  %v3531_v3 = vpack.c.bf16 %v3275_v18, %v3275_v18  ;;  %v9541_v37 = vpop.xlane.xlu1 %6053  ;;  %v1117_v4 = vpack.c.bf16 %v861_v60, %v861_v60 }
 0x369   : > { %v2187_v46 = vpop.f32.mrf.mxu0  ;;  %11487 = vst [vmem:[#allocation29_spill] sm:$0xff] %v9541_v37 }
 0x36a   : > { %v3147_v49 = vadd.f32 %v7823_v36, %v2859_v30  ;;  %v5381_v42 = vmax.f32 %v5024_v5, 0.0  ;;  %v4063_v36 = vunpack.c.l.b16 %v3531_v3  ;;  %v2732_v18 = vadd.f32 %v9258_v31, %v2187_v46  ;;  %v9547_v30 = vld [vmem:[%s11306_s7] ss:$0 sm:$0xff] }
 0x36b   : > { %v5514_v5 = vmul.f32 %v9547_v30, %v5254_v8  ;;  %v4190_v46 = vunpack.c.l.b16 %v3658_v56 }
 0x36c   : > { %v3403_v13 = vmax.f32 %v3147_v49, 0.0  ;;  %2226 = vmatmul.bf16.gmra.mxu0 %v1722_v44  ;;  %2546 = vmatmul.bf16.gmra.mxu2 %v1786_v22  ;;  %v4708_v23 = vpop.f32.mrf.mxu1  ;;  %v5641_v16 = vmul.f32 %v9547_v30, %v5381_v42  ;;  %v4279_v9 = vpack.c.b16 %v4063_v36, %v4062_v24  ;;  %v988_v49 = vpack.c.bf16 %v732_v35, %v732_v35  ;;  %v9554_v35 = vpop.xlane.xlu0 %5799 }
 0x36d   : > { %v4709_v15 = vadd.f32 %v9514_v51, %v4708_v23  ;;  %v989_v44 = vpack.c.bf16 %v733_v48, %v733_v48  ;;  %v1116_v22 = vpack.c.bf16 %v860_v19, %v860_v19  ;;  %v3020_v25 = vadd.f32 %v7825_v54, %v2732_v18  ;;  %11488 = vst [vmem:[#allocation123_spill] sm:$0xff] %v9554_v35  ;;  %v9556_v48 = vpop.xlane.xlu2 %6055 }
 0x36e   : > { %v3659_v7 = vpack.c.bf16 %v3403_v13, %v3403_v13  ;;  %6085 = vadd.xlane.f32.xlu2 %v5641_v16  ;;  %5831 = vadd.xlane.f32.xlu1 %v5514_v5  ;;  %v1516_v16 = vunpack.c.l.b16 %v988_v49  ;;  %11489 = vst [vmem:[#allocation124_spill] sm:$0xff] %v9556_v48 }
 0x36f   : > { %v2507_v3 = vpop.f32.mrf.mxu2  ;;  %4747 = vmatmul.bf16.gmra.mxu1 %v4279_v9  ;;  %v5025_v57 = vpop.f32.mrf.mxu3  ;;  %v5255_v42 = vmax.f32 %v4709_v15, 0.0  ;;  %v1517_v5 = vunpack.c.l.b16 %v989_v44  ;;  %v3276_v19 = vmax.f32 %v3020_v25, 0.0  ;;  %v1644_v18 = vunpack.c.l.b16 %v1116_v22 }
 0x370   : > { %v4191_v37 = vunpack.c.l.b16 %v3659_v7  ;;  %v2860_v8 = vadd.f32 %v9262_v21, %v2507_v3  ;;  %v5026_v13 = vadd.f32 %v9514_v51, %v5025_v57  ;;  %v1645_v7 = vunpack.c.l.b16 %v1117_v4  ;;  %v7826_v3 = vld [vmem:[#allocation9 + $0x88] sm:$0xff] }
 0x371   : > { %v2189_v36 = vpop.f32.mrf.mxu0  ;;  %v5515_v57 = vmul.f32 %v9547_v30, %v5255_v42  ;;  %v1723_v4 = vpack.c.b16 %v1517_v5, %v1516_v16  ;;  %v735_v16 = vmul.f32 %v11403_v39, %v9486_v41  ;;  %v862_v5 = vmul.f32 %v11402_v50, %v9488_v53 }
 0x372   : > { %v4343_v23 = vpack.c.b16 %v4191_v37, %v4190_v46  ;;  %v5382_v24 = vmax.f32 %v5026_v13, 0.0  ;;  %v2733_v56 = vadd.f32 %v9258_v31, %v2189_v36  ;;  %v3148_v60 = vadd.f32 %v7825_v54, %v2860_v8  ;;  %v9561_v37 = vpop.xlane.xlu1 %5801 }
 0x373   : > { %11490 = vst [vmem:[#allocation125_spill] sm:$0xff] %v9561_v37  ;;  %v3532_v46 = vpack.c.bf16 %v3276_v19, %v3276_v19  ;;  %v1787_v54 = vpack.c.b16 %v1645_v7, %v1644_v18  ;;  %v6735_v36 = vlaneseq  ;;  %v1118_v48 = vpack.c.bf16 %v862_v5, %v862_v5 }
 0x374   : > { %v4710_v15 = vpop.f32.mrf.mxu1  ;;  %5067 = vmatmul.bf16.gmra.mxu3 %v4343_v23  ;;  %v5642_v9 = vmul.f32 %v9547_v30, %v5382_v24  ;;  %v3021_v49 = vadd.f32 %v7826_v3, %v2733_v56  ;;  %v3404_v8 = vmax.f32 %v3148_v60, 0.0  ;;  %v9574_v7 = vpop.xlane.xlu0 %6057 }
 0x375   : > { %v4711_v44 = vadd.f32 %v9514_v51, %v4710_v15  ;;  %v734_v15 = vmul.f32 %v11402_v50, %v9486_v41  ;;  %v4064_v18 = vunpack.c.l.b16 %v3532_v46  ;;  %11491 = vst [vmem:[#allocation126_spill] sm:$0xff] %v9574_v7 }
 0x376   : > { %6087 = vadd.xlane.f32.xlu0 %v5642_v9  ;;  %5833 = vadd.xlane.f32.xlu2 %v5515_v57  ;;  %v3277_v13 = vmax.f32 %v3021_v49, 0.0 }
 0x377   : > { %v2509_v25 = vpop.f32.mrf.mxu2  ;;  %v5028_v22 = vpop.f32.mrf.mxu3  ;;  %v5256_v23 = vmax.f32 %v4711_v44, 0.0  ;;  %v863_v44 = vmul.f32 %v11403_v39, %v9488_v53 }
 0x378   : > { %v2861_v24 = vadd.f32 %v9262_v21, %v2509_v25  ;;  %v5029_v42 = vadd.f32 %v9514_v51, %v5028_v22  ;;  %v3533_v56 = vpack.c.bf16 %v3277_v13, %v3277_v13 }
 0x379   : > { %v2192_v19 = vpop.f32.mrf.mxu0 }
 0x37a   : > { %v3149_v9 = vadd.f32 %v7826_v3, %v2861_v24  ;;  %v5383_v57 = vmax.f32 %v5029_v42, 0.0  ;;  %v4065_v60 = vunpack.c.l.b16 %v3533_v56  ;;  %v2734_v49 = vadd.f32 %v9258_v31, %v2192_v19  ;;  %v9581_v42 = vpop.xlane.xlu2 %5803  ;;  %v9583_v50 = vpop.xlane.xlu1 %6059 }
 0x37b   : > { %v3660_v3 = vpack.c.bf16 %v3404_v8, %v3404_v8  ;;  %v5516_v24 = vmul.f32 %v9547_v30, %v5256_v23  ;;  %11492 = vst [vmem:[#allocation127_spill] sm:$0xff] %v9581_v42  ;;  %v990_v19 = vpack.c.bf16 %v734_v15, %v734_v15  ;;  %v991_v8 = vpack.c.bf16 %v735_v16, %v735_v16 }
 0x37c   : > { %2231 = vmatmul.bf16.gmra.mxu0 %v1723_v4  ;;  %2551 = vmatmul.bf16.gmra.mxu2 %v1787_v54  ;;  %v3405_v25 = vmax.f32 %v3149_v9, 0.0  ;;  %v4713_v13 = vpop.f32.mrf.mxu1  ;;  %v5643_v22 = vmul.f32 %v9547_v30, %v5383_v57  ;;  %11493 = vst [vmem:[#allocation128_spill] sm:$0xff] %v9583_v50  ;;  %v4280_v56 = vpack.c.b16 %v4065_v60, %v4064_v18  ;;  %v7827_v54 = vld [vmem:[#allocation9 + $0x90] sm:$0xff]  ;;  %v9586_v9 = vand.u32 127, %v6735_v36 }
 0x37d   : > { %v4714_v46 = vadd.f32 %v9514_v51, %v4713_v13  ;;  %v3022_v7 = vadd.f32 %v7827_v54, %v2734_v49  ;;  %v1119_v50 = vpack.c.bf16 %v863_v44, %v863_v44  ;;  %v4192_v42 = vunpack.c.l.b16 %v3660_v3 }
 0x37e   : > { %v3661_v4 = vpack.c.bf16 %v3405_v25, %v3405_v25  ;;  %6089 = vadd.xlane.f32.xlu1 %v5643_v22  ;;  %5835 = vadd.xlane.f32.xlu0 %v5516_v24  ;;  %v9591_v60 = vstv %s9566_s3  ;;  %v9594_v49 = vadd.s32 4294967288, %v9586_v9  ;;  %v1518_v25 = vunpack.c.l.b16 %v990_v19 }
 0x37f   : > { %v2512_v39 = vpop.f32.mrf.mxu2  ;;  %4752 = vmatmul.bf16.gmra.mxu1 %v4280_v56  ;;  %v5030_v57 = vpop.f32.mrf.mxu3  ;;  %v5257_v18 = vmax.f32 %v4714_v46, 0.0  ;;  %v736_v36 = vmul.f32 %v8442_v12, %v9486_v41  ;;  %v3278_v16 = vmax.f32 %v3022_v7, 0.0  ;;  %v1519_v5 = vunpack.c.l.b16 %v991_v8 }
 0x380   : > { %v2862_v23 = vadd.f32 %v9262_v21, %v2512_v39  ;;  %v4193_v13 = vunpack.c.l.b16 %v3661_v4  ;;  %v5031_v15 = vadd.f32 %v9514_v51, %v5030_v57  ;;  %v1646_v46 = vunpack.c.l.b16 %v1118_v48 }
 0x381   : > { %v2194_v24 = vpop.f32.mrf.mxu0  ;;  %v1647_v4 = vunpack.c.l.b16 %v1119_v50  ;;  %v9600_v39 = vadd.s32 4294967280, %v9586_v9  ;;  %v5517_v37 = vmul.f32 %v9547_v30, %v5257_v18  ;;  %v737_v7 = vmul.f32 %v8444_v17, %v9486_v41 }
 0x382   : > { %v5384_v22 = vmax.f32 %v5031_v15, 0.0  ;;  %v4344_v56 = vpack.c.b16 %v4193_v13, %v4192_v42  ;;  %v3150_v44 = vadd.f32 %v7827_v54, %v2862_v23  ;;  %v2735_v3 = vadd.f32 %v9258_v31, %v2194_v24  ;;  %v5806_v54 = vpop.xlane.xlu0 %5805  ;;  %v6062_v8 = vpop.xlane.xlu2 %6061  ;;  %v7828_v23 = vld [vmem:[#allocation9 + $0x98] sm:$0xff] }
 0x383   : > { %v9607_v42 = vadd.s32 4294967272, %v9586_v9  ;;  %v992_v13 = vpack.c.bf16 %v736_v36, %v736_v36  ;;  %v9611_v15 = vadd.s32 4294967264, %v9586_v9  ;;  %v3534_v18 = vpack.c.bf16 %v3278_v16, %v3278_v16  ;;  %v5808_v59 = vpop.xlane.xlu1 %5807 }
 0x384   : > { %v4715_v57 = vpop.f32.mrf.mxu1  ;;  %5072 = vmatmul.bf16.gmra.mxu3 %v4344_v56  ;;  %v5644_v19 = vmul.f32 %v9547_v30, %v5384_v22  ;;  %v3023_v48 = vadd.f32 %v7828_v23, %v2735_v3  ;;  %v9614_v22 = vadd.s32 4294967256, %v9586_v9  ;;  %v1724_v56 = vpack.c.b16 %v1519_v5, %v1518_v25 }
 0x385   : > { %v4716_v50 = vadd.f32 %v9514_v51, %v4715_v57  ;;  %v3406_v35 = vmax.f32 %v3150_v44, 0.0  ;;  %v1788_v11 = vpack.c.b16 %v1647_v4, %v1646_v46  ;;  %v6271_v36 = vadd.f32 %v9591_v60, %v5806_v54 }
 0x386   : > { %6091 = vadd.xlane.f32.xlu2 %v5644_v19  ;;  %5837 = vadd.xlane.f32.xlu1 %v5517_v37  ;;  %v3279_v61 = vmax.f32 %v3023_v48, 0.0  ;;  %v993_v40 = vpack.c.bf16 %v737_v7, %v737_v7  ;;  %v9619_v16 = vunpack.c.l.b16 %v992_v13  ;;  %v864_v37 = vmul.f32 %v8442_v12, %v9488_v53  ;;  %v7829_v13 = vld [vmem:[#allocation9 + $0xa0] sm:$0xff] }
 0x387   : > { %v2514_v24 = vpop.f32.mrf.mxu2  ;;  %v5033_v3 = vpop.f32.mrf.mxu3  ;;  %v5258_v57 = vmax.f32 %v4716_v50, 0.0  ;;  %v4066_v25 = vunpack.c.l.b16 %v3534_v18  ;;  %v6272_v5 = vadd.f32 %v9591_v60, %v5808_v59  ;;  %v865_v46 = vmul.f32 %v8444_v17, %v9488_v53 }
 0x388   : > { %v2863_v20 = vadd.f32 %v9262_v21, %v2514_v24  ;;  %v5034_v2 = vadd.f32 %v9514_v51, %v5033_v3  ;;  %v3535_v58 = vpack.c.bf16 %v3279_v61, %v3279_v61  ;;  %v3662_v4 = vpack.c.bf16 %v3406_v35, %v3406_v35 }
 0x389   : > { %v2197_v19 = vpop.f32.mrf.mxu0  ;;  %v9630_v59 = vunpack.c.l.b16 %v993_v40  ;;  %v1120_v35 = vpack.c.bf16 %v864_v37, %v864_v37  ;;  %v6861_v3 = vperm.slane %v6272_v5, %v9594_v49 }
 0x38a   : > { %v3151_v62 = vadd.f32 %v7828_v23, %v2863_v20  ;;  %v5385_v44 = vmax.f32 %v5034_v2, 0.0  ;;  %v4067_v54 = vunpack.c.l.b16 %v3535_v58  ;;  %v2736_v61 = vadd.f32 %v9258_v31, %v2197_v19 }
 0x38b   : > { %v6860_v20 = vperm.slane %v6271_v36, %v9586_v9  ;;  %v5518_v23 = vmul.f32 %v9547_v30, %v5258_v57  ;;  %v9637_v58 = vadd.f32 %v9591_v60, %v6062_v8  ;;  %v4194_v40 = vunpack.c.l.b16 %v3662_v4  ;;  %v5810_v57 = vpop.xlane.xlu2 %5809 }
 0x38c   : > { %v3407_v48 = vmax.f32 %v3151_v62, 0.0  ;;  %2236 = vmatmul.bf16.gmra.mxu0 %v1724_v56  ;;  %2556 = vmatmul.bf16.gmra.mxu2 %v1788_v11  ;;  %v4718_v7 = vpop.f32.mrf.mxu1  ;;  %v5645_v12 = vmul.f32 %v9547_v30, %v5385_v44  ;;  %v4281_v17 = vpack.c.b16 %v4067_v54, %v4066_v25  ;;  %v9634_v62 = vadd.s32 4294967248, %v9586_v9  ;;  %v6064_v11 = vpop.xlane.xlu0 %6063  ;;  %v11494_v54 = vld [vmem:[#allocation32_spill] sm:$0xff] }
 0x38d   : > { %v4719_v50 = vadd.f32 %v9514_v51, %v4718_v7  ;;  %v3024_v18 = vadd.f32 %v7829_v13, %v2736_v61  ;;  %v1121_v56 = vpack.c.bf16 %v865_v46, %v865_v46  ;;  %v738_v19 = vmul.f32 %v8454_v33, %v9486_v41 }
 0x38e   : > { %v3663_v2 = vpack.c.bf16 %v3407_v48, %v3407_v48  ;;  %6093 = vadd.xlane.f32.xlu0 %v5645_v12  ;;  %5839 = vadd.xlane.f32.xlu2 %v5518_v23  ;;  %v739_v48 = vmul.f32 %v11494_v54, %v9486_v41  ;;  %v6400_v46 = vadd.f32 %v9591_v60, %v6064_v11  ;;  %v1648_v61 = vunpack.c.l.b16 %v1120_v35 }
 0x38f   : > { %v2517_v24 = vpop.f32.mrf.mxu2  ;;  %4757 = vmatmul.bf16.gmra.mxu1 %v4281_v17  ;;  %v5035_v25 = vpop.f32.mrf.mxu3  ;;  %v5259_v44 = vmax.f32 %v4719_v50, 0.0  ;;  %v1725_v5 = vpack.c.b16 %v9630_v59, %v9619_v16  ;;  %v7108_v7 = vperm.slane %v9637_v58, %v9586_v9  ;;  %v6273_v12 = vadd.f32 %v9591_v60, %v5810_v57 }
 0x390   : > { %v4195_v36 = vunpack.c.l.b16 %v3663_v2  ;;  %v2864_v37 = vadd.f32 %v9262_v21, %v2517_v24  ;;  %v5036_v8 = vadd.f32 %v9514_v51, %v5035_v25  ;;  %v3280_v23 = vmax.f32 %v3024_v18, 0.0  ;;  %v7830_v18 = vld [vmem:[#allocation9 + $0xa8] sm:$0xff] }
 0x391   : > { %v2199_v50 = vpop.f32.mrf.mxu0  ;;  %v6862_v17 = vsel %vm6740_vm4, %v6861_v3, %v6860_v20  ;;  %v1649_v29 = vunpack.c.l.b16 %v1121_v56  ;;  %v6066_v11 = vpop.xlane.xlu1 %6065  ;;  %v5519_v59 = vmul.f32 %v9547_v30, %v5259_v44  ;;  %v994_v35 = vpack.c.bf16 %v738_v19, %v738_v19 }
 0x392   : > { %v4345_v4 = vpack.c.b16 %v4195_v36, %v4194_v40  ;;  %v5386_v2 = vmax.f32 %v5036_v8, 0.0  ;;  %v3152_v24 = vadd.f32 %v7829_v13, %v2864_v37  ;;  %v2737_v25 = vadd.f32 %v9258_v31, %v2199_v50 }
 0x393   : > { %v995_v58 = vpack.c.bf16 %v739_v48, %v739_v48  ;;  %v7109_v36 = vperm.slane %v6400_v46, %v9594_v49  ;;  %v866_v20 = vmul.f32 %v8454_v33, %v9488_v53  ;;  %v9661_v13 = vadd.s32 4294967240, %v9586_v9 }
 0x394   : > { %v4720_v40 = vpop.f32.mrf.mxu1  ;;  %5077 = vmatmul.bf16.gmra.mxu3 %v4345_v4  ;;  %v5646_v16 = vmul.f32 %v9547_v30, %v5386_v2  ;;  %v3025_v57 = vadd.f32 %v7830_v18, %v2737_v25  ;;  %v6863_v56 = vperm.slane %v6273_v12, %v9600_v39  ;;  %v3536_v3 = vpack.c.bf16 %v3280_v23, %v3280_v23 }
 0x395   : > { %v4721_v8 = vadd.f32 %v9514_v51, %v4720_v40  ;;  %v867_v44 = vmul.f32 %v11494_v54, %v9488_v53  ;;  %v3408_v19 = vmax.f32 %v3152_v24, 0.0  ;;  %v1789_v2 = vpack.c.b16 %v1649_v29, %v1648_v61 }
 0x396   : > { %6095 = vadd.xlane.f32.xlu1 %v5646_v16  ;;  %5841 = vadd.xlane.f32.xlu0 %v5519_v59  ;;  %v3281_v48 = vmax.f32 %v3025_v57, 0.0  ;;  %v9668_v25 = vunpack.c.l.b16 %v994_v35  ;;  %v9670_v40 = vunpack.c.l.b16 %v995_v58  ;;  %v7110_v12 = vsel %vm6740_vm4, %v7109_v36, %v7108_v7  ;;  %v5812_v57 = vpop.xlane.xlu0 %5811 }
 0x397   : > { %v2519_v37 = vpop.f32.mrf.mxu2  ;;  %v5038_v4 = vpop.f32.mrf.mxu3  ;;  %v5260_v50 = vmax.f32 %v4721_v8, 0.0  ;;  %v1122_v59 = vpack.c.bf16 %v866_v20, %v866_v20  ;;  %v9674_v54 = vsel %vm6744_vm5, %v6863_v56, %v6862_v17  ;;  %v4068_v24 = vunpack.c.l.b16 %v3536_v3 }
 0x398   : > { %v2865_v46 = vadd.f32 %v9262_v21, %v2519_v37  ;;  %v5039_v33 = vadd.f32 %v9514_v51, %v5038_v4  ;;  %v3537_v23 = vpack.c.bf16 %v3281_v48, %v3281_v48  ;;  %v1123_v29 = vpack.c.bf16 %v867_v44, %v867_v44 }
 0x399   : > { %v2202_v28 = vpop.f32.mrf.mxu0  ;;  %v3664_v61 = vpack.c.bf16 %v3408_v19, %v3408_v19  ;;  %v6401_v7 = vadd.f32 %v9591_v60, %v6066_v11  ;;  %v5520_v17 = vmul.f32 %v9547_v30, %v5260_v50  ;;  %v6274_v20 = vadd.f32 %v9591_v60, %v5812_v57  ;;  %v6068_v3 = vpop.xlane.xlu2 %6067  ;;  %v7831_v19 = vld [vmem:[#allocation9 + $0xb0] sm:$0xff] }
 0x39a   : > { %v3153_v16 = vadd.f32 %v7830_v18, %v2865_v46  ;;  %v5387_v37 = vmax.f32 %v5039_v33, 0.0  ;;  %v4069_v8 = vunpack.c.l.b16 %v3537_v23  ;;  %v2738_v35 = vadd.f32 %v9258_v31, %v2202_v28 }
 0x39b   : > { %v1726_v18 = vpack.c.b16 %v9670_v40, %v9668_v25  ;;  %v9684_v46 = vunpack.c.l.b16 %v1122_v59  ;;  %v740_v50 = vmul.f32 %v8466_v52, %v9486_v41  ;;  %v4196_v33 = vunpack.c.l.b16 %v3664_v61 }
 0x39c   : > { %v3409_v4 = vmax.f32 %v3153_v16, 0.0  ;;  %2241 = vmatmul.bf16.gmra.mxu0 %v1725_v5  ;;  %2561 = vmatmul.bf16.gmra.mxu2 %v1789_v2  ;;  %v4723_v58 = vpop.f32.mrf.mxu1  ;;  %v5647_v36 = vmul.f32 %v9547_v30, %v5387_v37  ;;  %v4282_v28 = vpack.c.b16 %v4069_v8, %v4068_v24  ;;  %v5814_v5 = vpop.xlane.xlu1 %5813  ;;  %v3026_v48 = vadd.f32 %v7831_v19, %v2738_v35 }
 0x39d   : > { %v4724_v44 = vadd.f32 %v9514_v51, %v4723_v58  ;;  %v9686_v2 = vunpack.c.l.b16 %v1123_v29  ;;  %v741_v24 = vmul.f32 %v8468_v55, %v9486_v41  ;;  %v7111_v37 = vperm.slane %v6401_v7, %v9600_v39 }
 0x39e   : > { %v3665_v56 = vpack.c.bf16 %v3409_v4, %v3409_v4  ;;  %6097 = vadd.xlane.f32.xlu2 %v5647_v36  ;;  %5843 = vadd.xlane.f32.xlu1 %v5520_v17  ;;  %v6402_v59 = vadd.f32 %v9591_v60, %v6068_v3  ;;  %v6865_v4 = vperm.slane %v6274_v20, %v9607_v42  ;;  %v3282_v36 = vmax.f32 %v3026_v48, 0.0 }
 0x39f   : > { %v2522_v11 = vpop.f32.mrf.mxu2  ;;  %4762 = vmatmul.bf16.gmra.mxu1 %v4282_v28  ;;  %v5040_v57 = vpop.f32.mrf.mxu3  ;;  %v5261_v8 = vmax.f32 %v4724_v44, 0.0  ;;  %v6275_v61 = vadd.f32 %v9591_v60, %v5814_v5  ;;  %v868_v58 = vmul.f32 %v8466_v52, %v9488_v53  ;;  %v996_v28 = vpack.c.bf16 %v740_v50, %v740_v50 }
 0x3a0   : > { %v4197_v23 = vunpack.c.l.b16 %v3665_v56  ;;  %v2866_v16 = vadd.f32 %v9262_v21, %v2522_v11  ;;  %v5041_v29 = vadd.f32 %v9514_v51, %v5040_v57  ;;  %v869_v7 = vmul.f32 %v8468_v55, %v9488_v53 }
 0x3a1   : > { %v2204_v56 = vpop.f32.mrf.mxu0  ;;  %v6070_v3 = vpop.xlane.xlu0 %6069  ;;  %v1790_v20 = vpack.c.b16 %v9686_v2, %v9684_v46  ;;  %v997_v57 = vpack.c.bf16 %v741_v24, %v741_v24  ;;  %v7112_v5 = vsel %vm6744_vm5, %v7111_v37, %v7110_v12  ;;  %v5521_v50 = vmul.f32 %v9547_v30, %v5261_v8 }
 0x3a2   : > { %v4346_v35 = vpack.c.b16 %v4197_v23, %v4196_v33  ;;  %v5388_v17 = vmax.f32 %v5041_v29, 0.0  ;;  %v3154_v11 = vadd.f32 %v7831_v19, %v2866_v16  ;;  %v2739_v44 = vadd.f32 %v9258_v31, %v2204_v56  ;;  %v7832_v19 = vld [vmem:[#allocation9 + $0xb8] sm:$0xff] }
 0x3a3   : > { %v7113_v33 = vperm.slane %v6402_v59, %v9607_v42  ;;  %v6867_v55 = vperm.slane %v6275_v61, %v9611_v15  ;;  %v1124_v29 = vpack.c.bf16 %v868_v58, %v868_v58  ;;  %v6866_v46 = vsel %vm6748_vm6, %v6865_v4, %v9674_v54 }
 0x3a4   : > { %v4725_v52 = vpop.f32.mrf.mxu1  ;;  %5082 = vmatmul.bf16.gmra.mxu3 %v4346_v35  ;;  %v5648_v48 = vmul.f32 %v9547_v30, %v5388_v17  ;;  %v3027_v23 = vadd.f32 %v7832_v19, %v2739_v44  ;;  %v3538_v2 = vpack.c.bf16 %v3282_v36, %v3282_v36  ;;  %v9713_v24 = vunpack.c.l.b16 %v996_v28  ;;  %v5816_v35 = vpop.xlane.xlu2 %5815 }
 0x3a5   : > { %v4726_v16 = vadd.f32 %v9514_v51, %v4725_v52  ;;  %v1125_v37 = vpack.c.bf16 %v869_v7, %v869_v7  ;;  %v3410_v59 = vmax.f32 %v3154_v11, 0.0  ;;  %v9716_v56 = vunpack.c.l.b16 %v997_v57 }
 0x3a6   : > { %6099 = vadd.xlane.f32.xlu0 %v5648_v48  ;;  %5845 = vadd.xlane.f32.xlu2 %v5521_v50  ;;  %v3283_v8 = vmax.f32 %v3027_v23, 0.0  ;;  %v7114_v58 = vsel %vm6748_vm6, %v7113_v33, %v7112_v5  ;;  %v6403_v44 = vadd.f32 %v9591_v60, %v6070_v3  ;;  %v6868_v36 = vsel %vm6752_vm7, %v6867_v55, %v6866_v46 }
 0x3a7   : > { %v2524_v12 = vpop.f32.mrf.mxu2  ;;  %v5043_v17 = vpop.f32.mrf.mxu3  ;;  %v5262_v54 = vmax.f32 %v4726_v16, 0.0  ;;  %v9722_v11 = vunpack.c.l.b16 %v1124_v29  ;;  %v4070_v48 = vunpack.c.l.b16 %v3538_v2  ;;  %v6276_v50 = vadd.f32 %v9591_v60, %v5816_v35  ;;  %v7833_v35 = vld [vmem:[#allocation9 + $0xc0] sm:$0xff] }
 0x3a8   : > { %v2867_v61 = vadd.f32 %v9262_v21, %v2524_v12  ;;  %v5044_v4 = vadd.f32 %v9514_v51, %v5043_v17  ;;  %v3539_v28 = vpack.c.bf16 %v3283_v8, %v3283_v8  ;;  %v9725_v12 = vunpack.c.l.b16 %v1125_v37 }
 0x3a9   : > { %v6072_v7 = vpop.xlane.xlu1 %6071  ;;  %v2207_v23 = vpop.f32.mrf.mxu0  ;;  %v3666_v5 = vpack.c.bf16 %v3410_v59, %v3410_v59  ;;  %v7115_v55 = vperm.slane %v6403_v44, %v9611_v15  ;;  %v5522_v46 = vmul.f32 %v9547_v30, %v5262_v54  ;;  %v742_v2 = vmul.f32 %v8478_v10, %v9486_v41 }
 0x3aa   : > { %v3155_v52 = vadd.f32 %v7832_v19, %v2867_v61  ;;  %v5389_v57 = vmax.f32 %v5044_v4, 0.0  ;;  %v4071_v3 = vunpack.c.l.b16 %v3539_v28  ;;  %v2740_v16 = vadd.f32 %v9258_v31, %v2207_v23  ;;  %v5818_v59 = vpop.xlane.xlu0 %5817 }
 0x3ab   : > { %v9738_v25 = vadd.s32 4294967232, %v9586_v9  ;;  %v6869_v40 = vperm.slane %v6276_v50, %v9614_v22  ;;  %v743_v44 = vmul.f32 %v8480_v14, %v9486_v41  ;;  %v4198_v54 = vunpack.c.l.b16 %v3666_v5 }
 0x3ac   : > { %v3411_v33 = vmax.f32 %v3155_v52, 0.0  ;;  %2246 = vmatmul.bf16.gmra.mxu0 %v1726_v18  ;;  %2566 = vmatmul.bf16.gmra.mxu2 %v1790_v20  ;;  %v4728_v19 = vpop.f32.mrf.mxu1  ;;  %v5649_v29 = vmul.f32 %v9547_v30, %v5389_v57  ;;  %v3028_v8 = vadd.f32 %v7833_v35, %v2740_v16  ;;  %v4283_v17 = vpack.c.b16 %v4071_v3, %v4070_v48 }
 0x3ad   : > { %v4729_v61 = vadd.f32 %v9514_v51, %v4728_v19  ;;  %v1727_v20 = vpack.c.b16 %v9716_v56, %v9713_v24  ;;  %v6404_v28 = vadd.f32 %v9591_v60, %v6072_v7  ;;  %v6277_v50 = vadd.f32 %v9591_v60, %v5818_v59 }
 0x3ae   : > { %v3667_v37 = vpack.c.bf16 %v3411_v33, %v3411_v33  ;;  %6101 = vadd.xlane.f32.xlu1 %v5649_v29  ;;  %5847 = vadd.xlane.f32.xlu0 %v5522_v46  ;;  %v1791_v3 = vpack.c.b16 %v9725_v12, %v9722_v11  ;;  %v7116_v33 = vsel %vm6752_vm7, %v7115_v55, %v7114_v58  ;;  %v3284_v16 = vmax.f32 %v3028_v8, 0.0 }
 0x3af   : > { %v2527_v18 = vpop.f32.mrf.mxu2  ;;  %4767 = vmatmul.bf16.gmra.mxu1 %v4283_v17  ;;  %v5045_v48 = vpop.f32.mrf.mxu3  ;;  %v5263_v57 = vmax.f32 %v4729_v61, 0.0  ;;  %v998_v29 = vpack.c.bf16 %v742_v2, %v742_v2  ;;  %v9754_v59 = vmul.f32 %v8478_v10, %v9488_v53  ;;  %v6870_v61 = vsel %vm6756_vm8, %v6869_v40, %v6868_v36  ;;  %v7834_v40 = vld [vmem:[#allocation9 + $0xc8] sm:$0xff] }
 0x3b0   : > { %v4199_v4 = vunpack.c.l.b16 %v3667_v37  ;;  %v2868_v52 = vadd.f32 %v9262_v21, %v2527_v18  ;;  %v5046_v23 = vadd.f32 %v9514_v51, %v5045_v48  ;;  %v999_v18 = vpack.c.bf16 %v743_v44, %v743_v44 }
 0x3b1   : > { %v6074_v19 = vpop.xlane.xlu2 %6073  ;;  %v5820_v37 = vpop.xlane.xlu1 %5819  ;;  %v7117_v48 = vperm.slane %v6404_v28, %v9614_v22  ;;  %v6871_v12 = vperm.slane %v6277_v50, %v9634_v62  ;;  %v9765_v10 = vmul.f32 %v8480_v14, %v9488_v53  ;;  %v3540_v36 = vpack.c.bf16 %v3284_v16, %v3284_v16 }
 0x3b2   : > { %v4347_v5 = vpack.c.b16 %v4199_v4, %v4198_v54  ;;  %v3156_v46 = vadd.f32 %v7833_v35, %v2868_v52  ;;  %v5390_v7 = vmax.f32 %v5046_v23, 0.0  ;;  %v2209_v17 = vpop.f32.mrf.mxu0  ;;  %v6405_v11 = vadd.f32 %v9591_v60, %v6074_v19 }
 0x3b3   : > { %v2741_v58 = vadd.f32 %v9258_v31, %v2209_v17  ;;  %v5523_v35 = vmul.f32 %v9547_v30, %v5263_v57  ;;  %v6278_v8 = vadd.f32 %v9591_v60, %v5820_v37  ;;  %v9769_v52 = vunpack.c.l.b16 %v998_v29 }
 0x3b4   : > { %v4730_v55 = vpop.f32.mrf.mxu1  ;;  %5087 = vmatmul.bf16.gmra.mxu3 %v4347_v5  ;;  %v5650_v2 = vmul.f32 %v9547_v30, %v5390_v7  ;;  %v3412_v4 = vmax.f32 %v3156_v46, 0.0  ;;  %v9771_v50 = vunpack.c.l.b16 %v999_v18  ;;  %v1126_v14 = vpack.c.bf16 %v9754_v59, %v9754_v59 }
 0x3b5   : > { %v3029_v44 = vadd.f32 %v7834_v40, %v2741_v58  ;;  %v4731_v54 = vadd.f32 %v9514_v51, %v4730_v55  ;;  %v7118_v57 = vsel %vm6756_vm8, %v7117_v48, %v7116_v33  ;;  %v7119_v23 = vperm.slane %v6405_v11, %v9634_v62 }
 0x3b6   : > { %6103 = vadd.xlane.f32.xlu2 %v5650_v2  ;;  %5849 = vadd.xlane.f32.xlu1 %v5523_v35  ;;  %v6872_v46 = vsel %vm6760_vm9, %v6871_v12, %v6870_v61  ;;  %v1127_v29 = vpack.c.bf16 %v9765_v10, %v9765_v10  ;;  %v4072_v17 = vunpack.c.l.b16 %v3540_v36  ;;  %v6873_v18 = vperm.slane %v6278_v8, %v9661_v13 }
 0x3b7   : > { %v2529_v28 = vpop.f32.mrf.mxu2  ;;  %v3285_v16 = vmax.f32 %v3029_v44, 0.0  ;;  %v5048_v5 = vpop.f32.mrf.mxu3  ;;  %v5264_v7 = vmax.f32 %v4731_v54, 0.0  ;;  %v3668_v11 = vpack.c.bf16 %v3412_v4, %v3412_v4  ;;  %v7120_v12 = vsel %vm6760_vm9, %v7119_v23, %v7118_v57 }
 0x3b8   : > { %v2869_v19 = vadd.f32 %v9262_v21, %v2529_v28  ;;  %v5049_v37 = vadd.f32 %v9514_v51, %v5048_v5  ;;  %v6874_v57 = vsel %vm6764_vm10, %v6873_v18, %v6872_v46  ;;  %v9797_v5 = vadd.s32 4294967224, %v9586_v9 }
 0x3b9   : > { %v3541_v59 = vpack.c.bf16 %v3285_v16, %v3285_v16  ;;  %v6076_v33 = vpop.xlane.xlu0 %6075  ;;  %v5822_v48 = vpop.xlane.xlu2 %5821  ;;  %v5524_v28 = vmul.f32 %v9547_v30, %v5264_v7 }
 0x3ba   : > { %v3157_v58 = vadd.f32 %v7834_v40, %v2869_v19  ;;  %v5391_v55 = vmax.f32 %v5049_v37, 0.0  ;;  %v6406_v2 = vadd.f32 %v9591_v60, %v6076_v33  ;;  %v6279_v35 = vadd.f32 %v9591_v60, %v5822_v48  ;;  %v2212_v61 = vpop.f32.mrf.mxu0 }
 0x3bb   : > { %v4073_v44 = vunpack.c.l.b16 %v3541_v59  ;;  %v2742_v10 = vadd.f32 %v9258_v31, %v2212_v61  ;;  %v4200_v59 = vunpack.c.l.b16 %v3668_v11  ;;  %v1728_v11 = vpack.c.b16 %v9771_v50, %v9769_v52 }
 0x3bc   : > { %v3413_v54 = vmax.f32 %v3157_v58, 0.0  ;;  %2251 = vmatmul.bf16.gmra.mxu0 %v1727_v20  ;;  %2571 = vmatmul.bf16.gmra.mxu2 %v1791_v3  ;;  %v7121_v36 = vperm.slane %v6406_v2, %v9661_v13  ;;  %v6875_v8 = vperm.slane %v6279_v35, %v9738_v25  ;;  %v4733_v40 = vpop.f32.mrf.mxu1  ;;  %v5651_v4 = vmul.f32 %v9547_v30, %v5391_v55  ;;  %v7835_v20 = vld [vmem:[#allocation9 + $0xd0] sm:$0xff] }
 0x3bd   : > { %v4734_v16 = vadd.f32 %v9514_v51, %v4733_v40  ;;  %v4284_v19 = vpack.c.b16 %v4073_v44, %v4072_v17  ;;  %v3030_v3 = vadd.f32 %v7835_v20, %v2742_v10  ;;  %v744_v17 = vmul.f32 %v8490_v38, %v9486_v41 }
 0x3be   : > { %v3669_v23 = vpack.c.bf16 %v3413_v54, %v3413_v54  ;;  %v7122_v24 = vsel %vm6764_vm10, %v7121_v36, %v7120_v12  ;;  %v6876_v56 = vsel %vm6768_vm11, %v6875_v8, %v6874_v57  ;;  %6105 = vadd.xlane.f32.xlu0 %v5651_v4  ;;  %5851 = vadd.xlane.f32.xlu2 %v5524_v28  ;;  %v9805_v58 = vadd.s32 4294967216, %v9586_v9 }
 0x3bf   : > { %v2532_v37 = vpop.f32.mrf.mxu2  ;;  %4772 = vmatmul.bf16.gmra.mxu1 %v4284_v19  ;;  %v5050_v18 = vpop.f32.mrf.mxu3  ;;  %v5265_v33 = vmax.f32 %v4734_v16, 0.0  ;;  %v1654_v61 = vunpack.c.l.b16 %v1126_v14  ;;  %v745_v12 = vmul.f32 %v8492_v43, %v9486_v41  ;;  %v3286_v44 = vmax.f32 %v3030_v3, 0.0  ;;  %v7836_v19 = vld [vmem:[#allocation9 + $0xd8] sm:$0xff] }
 0x3c0   : > { %v4201_v7 = vunpack.c.l.b16 %v3669_v23  ;;  %v2870_v46 = vadd.f32 %v9262_v21, %v2532_v37  ;;  %v5051_v48 = vadd.f32 %v9514_v51, %v5050_v18  ;;  %v1655_v28 = vunpack.c.l.b16 %v1127_v29 }
 0x3c1   : > { %v6078_v55 = vpop.xlane.xlu1 %6077  ;;  %v5824_v2 = vpop.xlane.xlu0 %5823  ;;  %v1000_v57 = vpack.c.bf16 %v744_v17, %v744_v17  ;;  %v5525_v16 = vmul.f32 %v9547_v30, %v5265_v33  ;;  %v3542_v29 = vpack.c.bf16 %v3286_v44, %v3286_v44 }
 0x3c2   : > { %v4348_v35 = vpack.c.b16 %v4201_v7, %v4200_v59  ;;  %v5392_v54 = vmax.f32 %v5051_v48, 0.0  ;;  %v6407_v10 = vadd.f32 %v9591_v60, %v6078_v55  ;;  %v6280_v36 = vadd.f32 %v9591_v60, %v5824_v2  ;;  %v2214_v8 = vpop.f32.mrf.mxu0 }
 0x3c3   : > { %v3158_v40 = vadd.f32 %v7835_v20, %v2870_v46  ;;  %v2743_v4 = vadd.f32 %v9258_v31, %v2214_v8  ;;  %v1001_v59 = vpack.c.bf16 %v745_v12, %v745_v12  ;;  %v9822_v20 = vmul.f32 %v8490_v38, %v9488_v53  ;;  %v9830_v38 = vld [vmem:[%s11305_s6] ss:$0 sm:$0xff] }
 0x3c4   : > { %v7123_v23 = vperm.slane %v6407_v10, %v9738_v25  ;;  %v6877_v52 = vperm.slane %v6280_v36, %v9797_v5  ;;  %v4735_v50 = vpop.f32.mrf.mxu1  ;;  %5092 = vmatmul.bf16.gmra.mxu3 %v4348_v35  ;;  %v5652_v14 = vmul.f32 %v9547_v30, %v5392_v54  ;;  %v4074_v8 = vunpack.c.l.b16 %v3542_v29 }
 0x3c5   : > { %v3031_v3 = vadd.f32 %v7836_v19, %v2743_v4  ;;  %v4736_v37 = vadd.f32 %v9514_v51, %v4735_v50  ;;  %v3414_v17 = vmax.f32 %v3158_v40, 0.0  ;;  %v1792_v51 = vpack.c.b16 %v1655_v28, %v1654_v61 }
 0x3c6   : > { %v7124_v7 = vsel %vm6768_vm11, %v7123_v23, %v7122_v24  ;;  %v6878_v46 = vsel %vm11352_vm12, %v6877_v52, %v6876_v56  ;;  %6107 = vadd.xlane.f32.xlu1 %v5652_v14  ;;  %5853 = vadd.xlane.f32.xlu0 %v5525_v16  ;;  %v9833_v24 = vunpack.c.l.b16 %v1000_v57  ;;  %v873_v56 = vmul.f32 %v8492_v43, %v9488_v53 }
 0x3c7   : > { %v2534_v18 = vpop.f32.mrf.mxu2  ;;  %v3287_v33 = vmax.f32 %v3031_v3, 0.0  ;;  %v5053_v55 = vpop.f32.mrf.mxu3  ;;  %v5266_v2 = vmax.f32 %v4736_v37, 0.0  ;;  %v9837_v36 = vunpack.c.l.b16 %v1001_v59  ;;  %v1128_v61 = vpack.c.bf16 %v9822_v20, %v9822_v20 }
 0x3c8   : > { %v2871_v48 = vadd.f32 %v9262_v21, %v2534_v18  ;;  %v5054_v35 = vadd.f32 %v9830_v38, %v5053_v55  ;;  %v3670_v23 = vpack.c.bf16 %v3414_v17, %v3414_v17  ;;  %v1129_v18 = vpack.c.bf16 %v873_v56, %v873_v56 }
 0x3c9   : > { %v3543_v12 = vpack.c.bf16 %v3287_v33, %v3287_v33  ;;  %v6080_v54 = vpop.xlane.xlu2 %6079  ;;  %v5826_v10 = vpop.xlane.xlu1 %5825  ;;  %v5526_v37 = vmul.f32 %v9547_v30, %v5266_v2  ;;  %v9850_v17 = vadd.s32 4294967208, %v9586_v9  ;;  %v746_v56 = vmul.f32 %v8502_v1, %v9486_v41 }
 0x3ca   : > { %v3159_v44 = vadd.f32 %v7836_v19, %v2871_v48  ;;  %v5393_v40 = vmax.f32 %v5054_v35, 0.0  ;;  %v6408_v4 = vadd.f32 %v9591_v60, %v6080_v54  ;;  %v6281_v28 = vadd.f32 %v9591_v60, %v5826_v10  ;;  %v2217_v57 = vpop.f32.mrf.mxu0  ;;  %v7838_v48 = vld [vmem:[#allocation9 + $0xe0] sm:$0xff] }
 0x3cb   : > { %v4075_v52 = vunpack.c.l.b16 %v3543_v12  ;;  %v2744_v43 = vadd.f32 %v9258_v31, %v2217_v57  ;;  %v4202_v35 = vunpack.c.l.b16 %v3670_v23 }
 0x3cc   : > { %v3415_v50 = vmax.f32 %v3159_v44, 0.0  ;;  %2256 = vmatmul.bf16.gmra.mxu0 %v1728_v11  ;;  %2576 = vmatmul.bf16.gmra.mxu2 %v1792_v51  ;;  %v7125_v14 = vperm.slane %v6408_v4, %v9797_v5  ;;  %v6879_v16 = vperm.slane %v6281_v28, %v9805_v58  ;;  %v4738_v19 = vpop.f32.mrf.mxu1  ;;  %v5653_v3 = vmul.f32 %v9547_v30, %v5393_v40 }
 0x3cd   : > { %v4739_v20 = vadd.f32 %v9830_v38, %v4738_v19  ;;  %v4285_v29 = vpack.c.b16 %v4075_v52, %v4074_v8  ;;  %v3032_v55 = vadd.f32 %v7838_v48, %v2744_v43  ;;  %v9858_v44 = vadd.s32 4294967200, %v9586_v9 }
 0x3ce   : > { %v3671_v59 = vpack.c.bf16 %v3415_v50, %v3415_v50  ;;  %v7126_v11 = vsel %vm11352_vm12, %v7125_v14, %v7124_v7  ;;  %v6880_v33 = vsel %vm11351_vm13, %v6879_v16, %v6878_v46  ;;  %6109 = vadd.xlane.f32.xlu2 %v5653_v3  ;;  %5855 = vadd.xlane.f32.xlu1 %v5526_v37  ;;  %v1656_v4 = vunpack.c.l.b16 %v1128_v61 }
 0x3cf   : > { %v2537_v51 = vpop.f32.mrf.mxu2  ;;  %4777 = vmatmul.bf16.gmra.mxu1 %v4285_v29  ;;  %v5055_v2 = vpop.f32.mrf.mxu3  ;;  %v5267_v7 = vmax.f32 %v4739_v20, 0.0  ;;  %v1729_v40 = vpack.c.b16 %v9837_v36, %v9833_v24  ;;  %v747_v28 = vmul.f32 %v8504_v6, %v9486_v41  ;;  %v3288_v57 = vmax.f32 %v3032_v55, 0.0  ;;  %v9871_v24 = vld [vmem:[%s11306_s7] ss:$0 sm:$0xff] }
 0x3d0   : > { %v4203_v12 = vunpack.c.l.b16 %v3671_v59  ;;  %v2872_v30 = vadd.f32 %v9262_v21, %v2537_v51  ;;  %v5056_v46 = vadd.f32 %v9830_v38, %v5055_v2  ;;  %v1657_v19 = vunpack.c.l.b16 %v1129_v18  ;;  %v7840_v29 = vld [vmem:[#allocation9 + $0xe8] sm:$0xff] }
 0x3d1   : > { %v6082_v54 = vpop.xlane.xlu0 %6081  ;;  %v5828_v10 = vpop.xlane.xlu2 %5827  ;;  %v1002_v3 = vpack.c.bf16 %v746_v56, %v746_v56  ;;  %v5527_v36 = vmul.f32 %v9871_v24, %v5267_v7  ;;  %v1003_v55 = vpack.c.bf16 %v747_v28, %v747_v28  ;;  %v9880_v51 = vmul.f32 %v8502_v1, %v9488_v53 }
 0x3d2   : > { %v4349_v8 = vpack.c.b16 %v4203_v12, %v4202_v35  ;;  %v5394_v23 = vmax.f32 %v5056_v46, 0.0  ;;  %v6409_v52 = vadd.f32 %v9591_v60, %v6082_v54  ;;  %v6282_v50 = vadd.f32 %v9591_v60, %v5828_v10  ;;  %v2219_v43 = vpop.f32.mrf.mxu0 }
 0x3d3   : > { %v3160_v14 = vadd.f32 %v7838_v48, %v2872_v30  ;;  %v2745_v16 = vadd.f32 %v9258_v31, %v2219_v43  ;;  %v3544_v35 = vpack.c.bf16 %v3288_v57, %v3288_v57  ;;  %v1793_v10 = vpack.c.b16 %v1657_v19, %v1656_v4 }
 0x3d4   : > { %v7127_v61 = vperm.slane %v6409_v52, %v9805_v58  ;;  %v6881_v37 = vperm.slane %v6282_v50, %v9850_v17  ;;  %v4740_v59 = vpop.f32.mrf.mxu1  ;;  %5097 = vmatmul.bf16.gmra.mxu3 %v4349_v8  ;;  %v5654_v20 = vmul.f32 %v9871_v24, %v5394_v23  ;;  %v9886_v1 = vunpack.c.l.b16 %v1002_v3 }
 0x3d5   : > { %v3033_v48 = vadd.f32 %v7840_v29, %v2745_v16  ;;  %v4741_v18 = vadd.f32 %v9830_v38, %v4740_v59  ;;  %v3416_v56 = vmax.f32 %v3160_v14, 0.0  ;;  %v875_v57 = vmul.f32 %v8504_v6, %v9488_v53 }
 0x3d6   : > { %v7128_v12 = vsel %vm11351_vm13, %v7127_v61, %v7126_v11  ;;  %v6882_v30 = vsel %vm11349_vm14, %v6881_v37, %v6880_v33  ;;  %6111 = vadd.xlane.f32.xlu0 %v5654_v20  ;;  %5857 = vadd.xlane.f32.xlu2 %v5527_v36  ;;  %v9890_v50 = vunpack.c.l.b16 %v1003_v55  ;;  %v1130_v43 = vpack.c.bf16 %v9880_v51, %v9880_v51 }
 0x3d7   : > { %v2539_v2 = vpop.f32.mrf.mxu2  ;;  %v3289_v7 = vmax.f32 %v3033_v48, 0.0  ;;  %v5058_v54 = vpop.f32.mrf.mxu3  ;;  %v5268_v8 = vmax.f32 %v4741_v18, 0.0  ;;  %v4076_v14 = vunpack.c.l.b16 %v3544_v35  ;;  %v3672_v36 = vpack.c.bf16 %v3416_v56, %v3416_v56 }
 0x3d8   : > { %v2873_v46 = vadd.f32 %v9262_v21, %v2539_v2  ;;  %v5059_v28 = vadd.f32 %v9830_v38, %v5058_v54  ;;  %v1131_v2 = vpack.c.bf16 %v875_v57, %v875_v57  ;;  %v9903_v56 = vadd.s32 4294967192, %v9586_v9 }
 0x3d9   : > { %v3545_v11 = vpack.c.bf16 %v3289_v7, %v3289_v7  ;;  %v6084_v33 = vpop.xlane.xlu1 %6083  ;;  %v5830_v52 = vpop.xlane.xlu0 %5829  ;;  %v5528_v18 = vmul.f32 %v9871_v24, %v5268_v8  ;;  %v4204_v8 = vunpack.c.l.b16 %v3672_v36 }
 0x3da   : > { %v3161_v23 = vadd.f32 %v7840_v29, %v2873_v46  ;;  %v5395_v16 = vmax.f32 %v5059_v28, 0.0  ;;  %v6410_v4 = vadd.f32 %v9591_v60, %v6084_v33  ;;  %v6283_v19 = vadd.f32 %v9591_v60, %v5830_v52  ;;  %v2222_v3 = vpop.f32.mrf.mxu0  ;;  %v7841_v46 = vld [vmem:[#allocation9 + $0xf0] sm:$0xff] }
 0x3db   : > { %v4077_v61 = vunpack.c.l.b16 %v3545_v11  ;;  %v2746_v6 = vadd.f32 %v9258_v31, %v2222_v3  ;;  %v7842_v52 = vld [vmem:[%s8374_s5] sm:$0xff]  ;;  %v1658_v3 = vunpack.c.l.b16 %v1130_v43  ;;  %v1659_v36 = vunpack.c.l.b16 %v1131_v2  ;;  %s8078_s5 = scalar_lea.hbm %s8077_s10, 16 }
 0x3dc   : > { %v3417_v37 = vmax.f32 %v3161_v23, 0.0  ;;  %2261 = vmatmul.bf16.gmra.mxu0 %v1729_v40  ;;  %2581 = vmatmul.bf16.gmra.mxu2 %v1793_v10  ;;  %v5655_v59 = vmul.f32 %v9871_v24, %v5395_v16  ;;  %v7129_v20 = vperm.slane %v6410_v4, %v9850_v17  ;;  %v6883_v29 = vperm.slane %v6283_v19, %v9858_v44  ;;  %v4743_v48 = vpop.f32.mrf.mxu1  ;;  %v7843_v2 = vld [vmem:[#allocation9 + $0xf8] sm:$0xff]  ;;  %p8079_p1 = scmp.ne.s32.totalorder %s8077_s10, %s8078_s5  ;;  %p8084_p11 = scmp.lt.s32.totalorder %s8082_s21, %s8078_s5 }
 0x3dd   : > { %v4744_v51 = vadd.f32 %v9830_v38, %v4743_v48  ;;  %v4286_v35 = vpack.c.b16 %v4077_v61, %v4076_v14  ;;  %v3034_v54 = vadd.f32 %v7841_v46, %v2746_v6  ;;  %v9909_v23 = vadd.s32 4294967184, %v9586_v9 }
 0x3de   : > { %v3673_v55 = vpack.c.bf16 %v3417_v37, %v3417_v37  ;;  %v7130_v40 = vsel %vm11349_vm14, %v7129_v20, %v7128_v12  ;;  %v6884_v7 = vsel %vm11350_vm15, %v6883_v29, %v6882_v30  ;;  %6113 = vadd.xlane.f32.xlu1 %v5655_v59  ;;  %5859 = vadd.xlane.f32.xlu0 %v5528_v18  ;;  %v2631_v30 = vrot.slane %v7842_v52, 3  ;;  %p8080_p3 = pnand %p8079_p1, %p8311_p2  ;;  %p8085_p12 = por %p8084_p11, %p8083_p10 }
 0x3df   : > { %v2542_v10 = vpop.f32.mrf.mxu2  ;;  %4782 = vmatmul.bf16.gmra.mxu1 %v4286_v35  ;;  %v5060_v57 = vpop.f32.mrf.mxu3  ;;  %v5269_v33 = vmax.f32 %v4744_v51, 0.0  ;;  %v1730_v19 = vpack.c.b16 %v9890_v50, %v9886_v1  ;;  %v3290_v61 = vmax.f32 %v3034_v54, 0.0  ;;  %v2635_v18 = vrot.slane %v7842_v52, 7 }
 0x3e0   : > { %v4205_v28 = vunpack.c.l.b16 %v3673_v55  ;;  %v2874_v11 = vadd.f32 %v9262_v21, %v2542_v10  ;;  %v5061_v12 = vadd.f32 %v9830_v38, %v5060_v57  ;;  %v9920_v55 = vmul.f32 %v8517_v32, %v9486_v41  ;;  %p8081_p5 = pneg %p8080_p3 }
 0x3e1   : > { %v6086_v14 = vpop.xlane.xlu2 %6085  ;;  %v5832_v16 = vpop.xlane.xlu1 %5831  ;;  %v5529_v51 = vmul.f32 %v9871_v24, %v5269_v33  ;;  %v1794_v54 = vpack.c.b16 %v1659_v36, %v1658_v3  ;;  %v9929_v10 = vmul.f32 %v8519_v34, %v9486_v41  ;;  %v9933_v33 = vperm.slane %v2631_v30, 0 }
 0x3e2   : > { %v4350_v4 = vpack.c.b16 %v4205_v28, %v4204_v8  ;;  %v5396_v37 = vmax.f32 %v5061_v12, 0.0  ;;  %v6411_v6 = vadd.f32 %v9591_v60, %v6086_v14  ;;  %v6284_v59 = vadd.f32 %v9591_v60, %v5832_v16  ;;  %v2224_v20 = vpop.f32.mrf.mxu0  ;;  %p8086_p13 = pnand %p8085_p12, %p8081_p5 }
 0x3e3   : > { %v3162_v29 = vadd.f32 %v7841_v46, %v2874_v11  ;;  %v2747_v48 = vadd.f32 %v9258_v31, %v2224_v20  ;;  %v3546_v8 = vpack.c.bf16 %v3290_v61, %v3290_v61 }
 0x3e4   : > { %v7131_v1 = vperm.slane %v6411_v6, %v9858_v44  ;;  %v6885_v50 = vperm.slane %v6284_v59, %v9903_v56  ;;  %v4745_v43 = vpop.f32.mrf.mxu1  ;;  %5102 = vmatmul.bf16.gmra.mxu3 %v4350_v4  ;;  %v5656_v35 = vmul.f32 %v9871_v24, %v5396_v37  ;;  %v9936_v4 = vperm.slane %v2635_v18, 0 }
 0x3e5   : > { %v3035_v46 = vadd.f32 %v7843_v2, %v2747_v48  ;;  %v4746_v31 = vadd.f32 %v9830_v38, %v4745_v43  ;;  %v3418_v12 = vmax.f32 %v3162_v29, 0.0  ;;  %v1005_v59 = vpack.c.bf16 %v9929_v10, %v9929_v10 }
 0x3e6   : > { %v7132_v28 = vsel %vm11350_vm15, %v7131_v1, %v7130_v40  ;;  %v6886_v11 = vsel %vm11347_vm0, %v6885_v50, %v6884_v7  ;;  %6115 = vadd.xlane.f32.xlu2 %v5656_v35  ;;  %5861 = vadd.xlane.f32.xlu1 %v5529_v51  ;;  %v1004_v40 = vpack.c.bf16 %v9920_v55, %v9920_v55  ;;  %v4078_v20 = vunpack.c.l.b16 %v3546_v8 }
 0x3e7   : > { %v2544_v57 = vpop.f32.mrf.mxu2  ;;  %v3291_v52 = vmax.f32 %v3035_v46, 0.0  ;;  %v5063_v16 = vpop.f32.mrf.mxu3  ;;  %v5270_v3 = vmax.f32 %v4746_v31, 0.0  ;;  %v876_v7 = vmul.f32 %v8517_v32, %v9488_v53  ;;  %v3674_v51 = vpack.c.bf16 %v3418_v12, %v3418_v12 }
 0x3e8   : > { %v2875_v14 = vadd.f32 %v9262_v21, %v2544_v57  ;;  %v5064_v36 = vadd.f32 %v9830_v38, %v5063_v16  ;;  %v877_v21 = vmul.f32 %v8519_v34, %v9488_v53  ;;  %v9956_v12 = vadd.s32 4294967176, %v9586_v9 }
 0x3e9   : > { %v3547_v61 = vpack.c.bf16 %v3291_v52, %v3291_v52  ;;  %v6088_v30 = vpop.xlane.xlu0 %6087  ;;  %v5834_v6 = vpop.xlane.xlu2 %5833  ;;  %v5530_v46 = vmul.f32 %v9871_v24, %v5270_v3  ;;  %v1132_v57 = vpack.c.bf16 %v876_v7, %v876_v7  ;;  %v4206_v16 = vunpack.c.l.b16 %v3674_v51 }
 0x3ea   : > { %v3163_v37 = vadd.f32 %v7843_v2, %v2875_v14  ;;  %v5397_v29 = vmax.f32 %v5064_v36, 0.0  ;;  %v6412_v48 = vadd.f32 %v9591_v60, %v6088_v30  ;;  %v6285_v18 = vadd.f32 %v9591_v60, %v5834_v6  ;;  %v2227_v55 = vpop.f32.mrf.mxu0 }
 0x3eb   : > { %v4079_v1 = vunpack.c.l.b16 %v3547_v61  ;;  %v2748_v50 = vadd.f32 %v9933_v33, %v2227_v55  ;;  %v1133_v14 = vpack.c.bf16 %v877_v21, %v877_v21  ;;  %v7844_v61 = vld [vmem:[#allocation9] sm:$0xff]  ;;  %v750_v21 = vmul.f32 %v8534_v26, %v9486_v41 }
 0x3ec   : > { %v3419_v32 = vmax.f32 %v3163_v37, 0.0  ;;  %2266 = vmatmul.bf16.gmra.mxu0 %v1730_v19  ;;  %2586 = vmatmul.bf16.gmra.mxu2 %v1794_v54  ;;  %v5657_v43 = vmul.f32 %v9871_v24, %v5397_v29  ;;  %v7133_v35 = vperm.slane %v6412_v48, %v9903_v56  ;;  %v6887_v34 = vperm.slane %v6285_v18, %v9909_v23  ;;  %v4748_v2 = vpop.f32.mrf.mxu1 }
 0x3ed   : > { %v4749_v10 = vadd.f32 %v9830_v38, %v4748_v2  ;;  %v4287_v8 = vpack.c.b16 %v4079_v1, %v4078_v20  ;;  %v3036_v3 = vadd.f32 %v7844_v61, %v2748_v50  ;;  %v1532_v20 = vunpack.c.l.b16 %v1004_v40 }
 0x3ee   : > { %v3675_v31 = vpack.c.bf16 %v3419_v32, %v3419_v32  ;;  %v7134_v19 = vsel %vm11347_vm0, %v7133_v35, %v7132_v28  ;;  %v6888_v54 = vsel %vm6792_vm3, %v6887_v34, %v6886_v11  ;;  %6117 = vadd.xlane.f32.xlu0 %v5657_v43  ;;  %5863 = vadd.xlane.f32.xlu2 %v5530_v46  ;;  %v1533_v48 = vunpack.c.l.b16 %v1005_v59 }
 0x3ef   : > { %v2547_v52 = vpop.f32.mrf.mxu2  ;;  %4787 = vmatmul.bf16.gmra.mxu1 %v4287_v8  ;;  %v5065_v30 = vpop.f32.mrf.mxu3  ;;  %v5271_v7 = vmax.f32 %v4749_v10, 0.0  ;;  %v1660_v18 = vunpack.c.l.b16 %v1132_v57  ;;  %v751_v50 = vmul.f32 %v8536_v27, %v9486_v41  ;;  %v3292_v43 = vmax.f32 %v3036_v3, 0.0  ;;  %v7845_v8 = vld [vmem:[#allocation9 + $0x8] sm:$0xff] }
 0x3f0   : > { %v4207_v36 = vunpack.c.l.b16 %v3675_v31  ;;  %v2876_v37 = vadd.f32 %v9936_v4, %v2547_v52  ;;  %v5066_v6 = vadd.f32 %v9830_v38, %v5065_v30  ;;  %v1661_v34 = vunpack.c.l.b16 %v1133_v14 }
 0x3f1   : > { %v6090_v28 = vpop.xlane.xlu1 %6089  ;;  %v5836_v29 = vpop.xlane.xlu0 %5835  ;;  %v5531_v59 = vmul.f32 %v9871_v24, %v5271_v7  ;;  %v3548_v30 = vpack.c.bf16 %v3292_v43, %v3292_v43 }
 0x3f2   : > { %v4351_v11 = vpack.c.b16 %v4207_v36, %v4206_v16  ;;  %v5398_v55 = vmax.f32 %v5066_v6, 0.0  ;;  %v6413_v51 = vadd.f32 %v9591_v60, %v6090_v28  ;;  %v6286_v1 = vadd.f32 %v9591_v60, %v5836_v29  ;;  %v2229_v32 = vpop.f32.mrf.mxu0 }
 0x3f3   : > { %v3164_v35 = vadd.f32 %v7844_v61, %v2876_v37  ;;  %v2749_v40 = vadd.f32 %v9933_v33, %v2229_v32  ;;  %v1731_v16 = vpack.c.b16 %v1533_v48, %v1532_v20  ;;  %v1006_v36 = vpack.c.bf16 %v750_v21, %v750_v21 }
 0x3f4   : > { %v7135_v2 = vperm.slane %v6413_v51, %v9909_v23  ;;  %v6889_v46 = vperm.slane %v6286_v1, %v9956_v12  ;;  %v4750_v31 = vpop.f32.mrf.mxu1  ;;  %5107 = vmatmul.bf16.gmra.mxu3 %v4351_v11  ;;  %v5658_v10 = vmul.f32 %v9871_v24, %v5398_v55  ;;  %v1007_v37 = vpack.c.bf16 %v751_v50, %v751_v50 }
 0x3f5   : > { %v3037_v57 = vadd.f32 %v7845_v8, %v2749_v40  ;;  %v4751_v52 = vadd.f32 %v9830_v38, %v4750_v31  ;;  %v3420_v7 = vmax.f32 %v3164_v35, 0.0  ;;  %v1795_v29 = vpack.c.b16 %v1661_v34, %v1660_v18 }
 0x3f6   : > { %v7136_v61 = vsel %vm6792_vm3, %v7135_v2, %v7134_v19  ;;  %v9976_v14 = vsel %vm6796_vm1, %v6889_v46, %v6888_v54  ;;  %6119 = vadd.xlane.f32.xlu1 %v5658_v10  ;;  %5865 = vadd.xlane.f32.xlu0 %v5531_v59  ;;  %v9980_v19 = vunpack.c.l.b16 %v1006_v36  ;;  %v878_v54 = vmul.f32 %v8534_v26, %v9488_v53 }
 0x3f7   : > { %v2549_v3 = vpop.f32.mrf.mxu2  ;;  %v3293_v6 = vmax.f32 %v3037_v57, 0.0  ;;  %v5068_v28 = vpop.f32.mrf.mxu3  ;;  %v5272_v11 = vmax.f32 %v4751_v52, 0.0  ;;  %v879_v51 = vmul.f32 %v8536_v27, %v9488_v53  ;;  %v9987_v43 = vunpack.c.l.b16 %v1007_v37 }
 0x3f8   : > { %v2877_v55 = vadd.f32 %v9936_v4, %v2549_v3  ;;  %v5069_v20 = vadd.f32 %v9830_v38, %v5068_v28  ;;  %v4080_v35 = vunpack.c.l.b16 %v3548_v30  ;;  %v3676_v40 = vpack.c.bf16 %v3420_v7, %v3420_v7 }
 0x3f9   : > { %v3549_v48 = vpack.c.bf16 %v3293_v6, %v3293_v6  ;;  %v6092_v21 = vpop.xlane.xlu2 %6091  ;;  %v5532_v31 = vmul.f32 %v9871_v24, %v5272_v11  ;;  %v5838_v10 = vpop.xlane.xlu1 %5837  ;;  %v1134_v3 = vpack.c.bf16 %v878_v54, %v878_v54  ;;  %v1135_v7 = vpack.c.bf16 %v879_v51, %v879_v51 }
 0x3fa   : > { %v3165_v1 = vadd.f32 %v7845_v8, %v2877_v55  ;;  %v5399_v32 = vmax.f32 %v5069_v20, 0.0  ;;  %v6414_v50 = vadd.f32 %v9591_v60, %v6092_v21  ;;  %v2232_v18 = vpop.f32.mrf.mxu0  ;;  %v7846_v8 = vld [vmem:[#allocation9 + $0x10] sm:$0xff]  ;;  %v4208_v6 = vunpack.c.l.b16 %v3676_v40 }
 0x3fb   : > { %v4081_v34 = vunpack.c.l.b16 %v3549_v48  ;;  %v2750_v59 = vadd.f32 %v9933_v33, %v2232_v18  ;;  %v6287_v55 = vadd.f32 %v9591_v60, %v5838_v10  ;;  %v1663_v40 = vunpack.c.l.b16 %v1135_v7 }
 0x3fc   : > { %2271 = vmatmul.bf16.gmra.mxu0 %v1731_v16  ;;  %2591 = vmatmul.bf16.gmra.mxu2 %v1795_v29  ;;  %v3421_v2 = vmax.f32 %v3165_v1, 0.0  ;;  %v5659_v26 = vmul.f32 %v9871_v24, %v5399_v32  ;;  %v7137_v46 = vperm.slane %v6414_v50, %v9956_v12  ;;  %v4753_v27 = vpop.f32.mrf.mxu1  ;;  %v1662_v32 = vunpack.c.l.b16 %v1134_v3 }
 0x3fd   : > { %v3038_v57 = vadd.f32 %v7846_v8, %v2750_v59  ;;  %v4754_v52 = vadd.f32 %v9830_v38, %v4753_v27  ;;  %v4288_v36 = vpack.c.b16 %v4081_v34, %v4080_v35 }
 0x3fe   : > { %v3677_v37 = vpack.c.bf16 %v3421_v2, %v3421_v2  ;;  %v9995_v30 = vsel %vm6796_vm1, %v7137_v46, %v7136_v61  ;;  %6121 = vadd.xlane.f32.xlu2 %v5659_v26  ;;  %5867 = vadd.xlane.f32.xlu1 %v5532_v31  ;;  %v1732_v61 = vpack.c.b16 %v9987_v43, %v9980_v19 }
 0x3ff   : > { %v2552_v16 = vpop.f32.mrf.mxu2  ;;  %4792 = vmatmul.bf16.gmra.mxu1 %v4288_v36  ;;  %v5070_v29 = vpop.f32.mrf.mxu3  ;;  %v5273_v20 = vmax.f32 %v4754_v52, 0.0  ;;  %v3294_v21 = vmax.f32 %v3038_v57, 0.0  ;;  %v10006_v2 = vmul.f32 %v8550_v45, %v9486_v41  ;;  %v10010_v26 = vmul.f32 %v8552_v47, %v9486_v41 }
 0x400   : > { %v2878_v28 = vadd.f32 %v9936_v4, %v2552_v16  ;;  %v4209_v11 = vunpack.c.l.b16 %v3677_v37  ;;  %v5071_v48 = vadd.f32 %v9830_v38, %v5070_v29  ;;  %v6891_v19 = vperm.slane %v6287_v55, %v9586_v9 }
 0x401   : > { %v6094_v54 = vpop.xlane.xlu0 %6093  ;;  %v5840_v1 = vpop.xlane.xlu2 %5839  ;;  %v5533_v43 = vmul.f32 %v9871_v24, %v5273_v20  ;;  %v3550_v10 = vpack.c.bf16 %v3294_v21, %v3294_v21  ;;  %v880_v36 = vmul.f32 %v8550_v45, %v9488_v53  ;;  %v1796_v7 = vpack.c.b16 %v1663_v40, %v1662_v32 }
 0x402   : > { %v5400_v50 = vmax.f32 %v5071_v48, 0.0  ;;  %v6288_v51 = vadd.f32 %v9591_v60, %v5840_v1  ;;  %v2234_v18 = vpop.f32.mrf.mxu0  ;;  %v4352_v35 = vpack.c.b16 %v4209_v11, %v4208_v6  ;;  %v3166_v34 = vadd.f32 %v7846_v8, %v2878_v28  ;;  %v7847_v8 = vld [vmem:[#allocation9 + $0x18] sm:$0xff] }
 0x403   : > { %v2751_v59 = vadd.f32 %v9933_v33, %v2234_v18  ;;  %v6415_v3 = vadd.f32 %v9591_v60, %v6094_v54  ;;  %v1008_v55 = vpack.c.bf16 %v10006_v2, %v10006_v2  ;;  %v1009_v45 = vpack.c.bf16 %v10010_v26, %v10010_v26 }
 0x404   : > { %v6892_v46 = vperm.slane %v6288_v51, %v9594_v49  ;;  %v4755_v27 = vpop.f32.mrf.mxu1  ;;  %5112 = vmatmul.bf16.gmra.mxu3 %v4352_v35  ;;  %v5660_v31 = vmul.f32 %v9871_v24, %v5400_v50  ;;  %v3422_v6 = vmax.f32 %v3166_v34, 0.0  ;;  %v881_v21 = vmul.f32 %v8552_v47, %v9488_v53 }
 0x405   : > { %v3039_v57 = vadd.f32 %v7847_v8, %v2751_v59  ;;  %v4756_v52 = vadd.f32 %v9830_v38, %v4755_v27  ;;  %v4082_v54 = vunpack.c.l.b16 %v3550_v10  ;;  %v1136_v18 = vpack.c.bf16 %v880_v36, %v880_v36 }
 0x406   : > { %v6893_v37 = vsel %vm6740_vm4, %v6892_v46, %v6891_v19  ;;  %6123 = vadd.xlane.f32.xlu0 %v5660_v31  ;;  %5869 = vadd.xlane.f32.xlu2 %v5533_v43  ;;  %v7139_v35 = vperm.slane %v6415_v3, %v9586_v9  ;;  %v3678_v19 = vpack.c.bf16 %v3422_v6, %v3422_v6 }
 0x407   : > { %v2554_v16 = vpop.f32.mrf.mxu2  ;;  %v3295_v28 = vmax.f32 %v3039_v57, 0.0  ;;  %v5073_v11 = vpop.f32.mrf.mxu3  ;;  %v5274_v20 = vmax.f32 %v4756_v52, 0.0  ;;  %v1137_v3 = vpack.c.bf16 %v881_v21, %v881_v21 }
 0x408   : > { %v2879_v29 = vadd.f32 %v9936_v4, %v2554_v16  ;;  %v5074_v48 = vadd.f32 %v9830_v38, %v5073_v11 }
 0x409   : > { %v3551_v1 = vpack.c.bf16 %v3295_v28, %v3295_v28  ;;  %v6096_v50 = vpop.xlane.xlu1 %6095  ;;  %v5842_v51 = vpop.xlane.xlu0 %5841 }
 0x40a   : > { %v3167_v32 = vadd.f32 %v7847_v8, %v2879_v29  ;;  %v5401_v40 = vmax.f32 %v5074_v48, 0.0  ;;  %v6416_v34 = vadd.f32 %v9591_v60, %v6096_v50  ;;  %v6289_v59 = vadd.f32 %v9591_v60, %v5842_v51  ;;  %v2237_v2 = vpop.f32.mrf.mxu0 }
 0x40b   : > { %v4083_v43 = vunpack.c.l.b16 %v3551_v1  ;;  %v2752_v46 = vadd.f32 %v9933_v33, %v2237_v2  ;;  %v5534_v8 = vmul.f32 %v9871_v24, %v5274_v20  ;;  %v4210_v29 = vunpack.c.l.b16 %v3678_v19 }
 0x40c   : > { %v3423_v26 = vmax.f32 %v3167_v32, 0.0  ;;  %2276 = vmatmul.bf16.gmra.mxu0 %v1732_v61  ;;  %2596 = vmatmul.bf16.gmra.mxu2 %v1796_v7  ;;  %v5661_v47 = vmul.f32 %v9871_v24, %v5401_v40  ;;  %v7140_v27 = vperm.slane %v6416_v34, %v9594_v49  ;;  %v6894_v31 = vperm.slane %v6289_v59, %v9600_v39  ;;  %v4758_v10 = vpop.f32.mrf.mxu1  ;;  %v7848_v61 = vld [vmem:[#allocation9 + $0x20] sm:$0xff] }
 0x40d   : > { %v4759_v52 = vadd.f32 %v9830_v38, %v4758_v10  ;;  %v4289_v36 = vpack.c.b16 %v4083_v43, %v4082_v54  ;;  %v3040_v7 = vadd.f32 %v7848_v61, %v2752_v46  ;;  %v1536_v54 = vunpack.c.l.b16 %v1008_v55 }
 0x40e   : > { %v3679_v57 = vpack.c.bf16 %v3423_v26, %v3423_v26  ;;  %v7141_v16 = vsel %vm6740_vm4, %v7140_v27, %v7139_v35  ;;  %v6895_v6 = vsel %vm6744_vm5, %v6894_v31, %v6893_v37  ;;  %6125 = vadd.xlane.f32.xlu1 %v5661_v47  ;;  %5871 = vadd.xlane.f32.xlu0 %v5534_v8  ;;  %v1537_v35 = vunpack.c.l.b16 %v1009_v45  ;;  %v7849_v8 = vld [vmem:[#allocation9 + $0x28] sm:$0xff] }
 0x40f   : > { %v2557_v28 = vpop.f32.mrf.mxu2  ;;  %4797 = vmatmul.bf16.gmra.mxu1 %v4289_v36  ;;  %v5075_v20 = vpop.f32.mrf.mxu3  ;;  %v5275_v1 = vmax.f32 %v4759_v52, 0.0  ;;  %v1664_v37 = vunpack.c.l.b16 %v1136_v18  ;;  %v1665_v40 = vunpack.c.l.b16 %v1137_v3  ;;  %v3296_v34 = vmax.f32 %v3040_v7, 0.0 }
 0x410   : > { %v4211_v11 = vunpack.c.l.b16 %v3679_v57  ;;  %v2880_v48 = vadd.f32 %v9936_v4, %v2557_v28  ;;  %v5076_v32 = vadd.f32 %v9830_v38, %v5075_v20  ;;  %v10047_v47 = vmul.f32 %v8566_v63, %v9486_v41 }
 0x411   : > { %v6098_v21 = vpop.xlane.xlu2 %6097  ;;  %v5844_v50 = vpop.xlane.xlu1 %5843  ;;  %v10051_v55 = vmul.f32 %v8568_v0, %v9486_v41  ;;  %v5535_v45 = vmul.f32 %v9871_v24, %v5275_v1  ;;  %v1733_v36 = vpack.c.b16 %v1537_v35, %v1536_v54  ;;  %v882_v3 = vmul.f32 %v8566_v63, %v9488_v53 }
 0x412   : > { %v4353_v51 = vpack.c.b16 %v4211_v11, %v4210_v29  ;;  %v5402_v59 = vmax.f32 %v5076_v32, 0.0  ;;  %v6417_v2 = vadd.f32 %v9591_v60, %v6098_v21  ;;  %v6290_v19 = vadd.f32 %v9591_v60, %v5844_v50  ;;  %v2239_v43 = vpop.f32.mrf.mxu0 }
 0x413   : > { %v3168_v26 = vadd.f32 %v7848_v61, %v2880_v48  ;;  %v2753_v46 = vadd.f32 %v9933_v33, %v2239_v43  ;;  %v3552_v61 = vpack.c.bf16 %v3296_v34, %v3296_v34  ;;  %v1797_v32 = vpack.c.b16 %v1665_v40, %v1664_v37 }
 0x414   : > { %v7142_v18 = vperm.slane %v6417_v2, %v9600_v39  ;;  %v6896_v27 = vperm.slane %v6290_v19, %v9607_v42  ;;  %v4760_v31 = vpop.f32.mrf.mxu1  ;;  %5117 = vmatmul.bf16.gmra.mxu3 %v4353_v51  ;;  %v5662_v10 = vmul.f32 %v9871_v24, %v5402_v59  ;;  %v1010_v63 = vpack.c.bf16 %v10047_v47, %v10047_v47 }
 0x415   : > { %v3041_v57 = vadd.f32 %v7849_v8, %v2753_v46  ;;  %v4761_v52 = vadd.f32 %v9830_v38, %v4760_v31  ;;  %v3424_v11 = vmax.f32 %v3168_v26, 0.0  ;;  %v883_v34 = vmul.f32 %v8568_v0, %v9488_v53 }
 0x416   : > { %v7143_v7 = vsel %vm6744_vm5, %v7142_v18, %v7141_v16  ;;  %v6897_v28 = vsel %vm6748_vm6, %v6896_v27, %v6895_v6  ;;  %6127 = vadd.xlane.f32.xlu2 %v5662_v10  ;;  %5873 = vadd.xlane.f32.xlu1 %v5535_v45  ;;  %v1011_v16 = vpack.c.bf16 %v10051_v55, %v10051_v55  ;;  %v4084_v2 = vunpack.c.l.b16 %v3552_v61 }
 0x417   : > { %v2559_v29 = vpop.f32.mrf.mxu2  ;;  %v3297_v48 = vmax.f32 %v3041_v57, 0.0  ;;  %v5078_v1 = vpop.f32.mrf.mxu3  ;;  %v5276_v21 = vmax.f32 %v4761_v52, 0.0  ;;  %v1138_v59 = vpack.c.bf16 %v882_v3, %v882_v3  ;;  %v3680_v26 = vpack.c.bf16 %v3424_v11, %v3424_v11 }
 0x418   : > { %v2881_v20 = vadd.f32 %v9936_v4, %v2559_v29  ;;  %v5079_v54 = vadd.f32 %v9830_v38, %v5078_v1  ;;  %v1139_v52 = vpack.c.bf16 %v883_v34, %v883_v34 }
 0x419   : > { %v3553_v50 = vpack.c.bf16 %v3297_v48, %v3297_v48  ;;  %v6100_v51 = vpop.xlane.xlu0 %6099  ;;  %v5846_v35 = vpop.xlane.xlu2 %5845  ;;  %v5536_v31 = vmul.f32 %v9871_v24, %v5276_v21  ;;  %v4212_v48 = vunpack.c.l.b16 %v3680_v26 }
 0x41a   : > { %v3169_v6 = vadd.f32 %v7849_v8, %v2881_v20  ;;  %v5403_v19 = vmax.f32 %v5079_v54, 0.0  ;;  %v6418_v37 = vadd.f32 %v9591_v60, %v6100_v51  ;;  %v6291_v40 = vadd.f32 %v9591_v60, %v5846_v35  ;;  %v2242_v43 = vpop.f32.mrf.mxu0 }
 0x41b   : > { %v4085_v46 = vunpack.c.l.b16 %v3553_v50  ;;  %v2754_v55 = vadd.f32 %v9933_v33, %v2242_v43  ;;  %v1538_v50 = vunpack.c.l.b16 %v1010_v63  ;;  %v1539_v35 = vunpack.c.l.b16 %v1011_v16  ;;  %v11496_v63 = vld [vmem:[#allocation34_spill] sm:$0xff] }
 0x41c   : > { %v3425_v47 = vmax.f32 %v3169_v6, 0.0  ;;  %2281 = vmatmul.bf16.gmra.mxu0 %v1733_v36  ;;  %2601 = vmatmul.bf16.gmra.mxu2 %v1797_v32  ;;  %v5663_v45 = vmul.f32 %v9871_v24, %v5403_v19  ;;  %v7144_v18 = vperm.slane %v6418_v37, %v9607_v42  ;;  %v6898_v0 = vperm.slane %v6291_v40, %v9611_v15  ;;  %v4763_v27 = vpop.f32.mrf.mxu1  ;;  %v7850_v36 = vld [vmem:[#allocation9 + $0x30] sm:$0xff] }
 0x41d   : > { %v4764_v8 = vadd.f32 %v9830_v38, %v4763_v27  ;;  %v4290_v57 = vpack.c.b16 %v4085_v46, %v4084_v2  ;;  %v3042_v29 = vadd.f32 %v7850_v36, %v2754_v55  ;;  %v1667_v34 = vunpack.c.l.b16 %v1139_v52 }
 0x41e   : > { %v3681_v10 = vpack.c.bf16 %v3425_v47, %v3425_v47  ;;  %v7145_v3 = vsel %vm6748_vm6, %v7144_v18, %v7143_v7  ;;  %v6899_v61 = vsel %vm6752_vm7, %v6898_v0, %v6897_v28  ;;  %6129 = vadd.xlane.f32.xlu0 %v5663_v45  ;;  %5875 = vadd.xlane.f32.xlu2 %v5536_v31  ;;  %v1666_v28 = vunpack.c.l.b16 %v1138_v59  ;;  %v11495_v47 = vld [vmem:[#allocation33_spill] sm:$0xff] }
 0x41f   : > { %v2562_v11 = vpop.f32.mrf.mxu2  ;;  %4802 = vmatmul.bf16.gmra.mxu1 %v4290_v57  ;;  %v5080_v32 = vpop.f32.mrf.mxu3  ;;  %v5277_v21 = vmax.f32 %v4764_v8, 0.0  ;;  %v3298_v2 = vmax.f32 %v3042_v29, 0.0  ;;  %v10087_v55 = vmul.f32 %v11495_v47, %v9486_v41  ;;  %v10091_v45 = vmul.f32 %v11496_v63, %v9486_v41  ;;  %v7851_v31 = vld [vmem:[#allocation9 + $0x38] sm:$0xff] }
 0x420   : > { %v4213_v20 = vunpack.c.l.b16 %v3681_v10  ;;  %v2882_v1 = vadd.f32 %v9936_v4, %v2562_v11  ;;  %v5081_v54 = vadd.f32 %v9830_v38, %v5080_v32  ;;  %v1734_v57 = vpack.c.b16 %v1539_v35, %v1538_v50 }
 0x421   : > { %v6102_v6 = vpop.xlane.xlu1 %6101  ;;  %v5848_v51 = vpop.xlane.xlu0 %5847  ;;  %v5537_v16 = vmul.f32 %v9871_v24, %v5277_v21  ;;  %v884_v52 = vmul.f32 %v11495_v47, %v9488_v53 }
 0x422   : > { %v4354_v7 = vpack.c.b16 %v4213_v20, %v4212_v48  ;;  %v5404_v19 = vmax.f32 %v5081_v54, 0.0  ;;  %v6419_v37 = vadd.f32 %v9591_v60, %v6102_v6  ;;  %v6292_v40 = vadd.f32 %v9591_v60, %v5848_v51  ;;  %v2244_v43 = vpop.f32.mrf.mxu0 }
 0x423   : > { %v3170_v26 = vadd.f32 %v7850_v36, %v2882_v1  ;;  %v2755_v46 = vadd.f32 %v9933_v33, %v2244_v43  ;;  %v3554_v36 = vpack.c.bf16 %v3298_v2, %v3298_v2  ;;  %v1798_v54 = vpack.c.b16 %v1667_v34, %v1666_v28 }
 0x424   : > { %v7146_v59 = vperm.slane %v6419_v37, %v9611_v15  ;;  %v6900_v18 = vperm.slane %v6292_v40, %v9614_v22  ;;  %v4765_v0 = vpop.f32.mrf.mxu1  ;;  %5122 = vmatmul.bf16.gmra.mxu3 %v4354_v7  ;;  %v5664_v27 = vmul.f32 %v9871_v24, %v5404_v19  ;;  %v1012_v51 = vpack.c.bf16 %v10087_v55, %v10087_v55 }
 0x425   : > { %v3043_v10 = vadd.f32 %v7851_v31, %v2755_v46  ;;  %v4766_v8 = vadd.f32 %v9830_v38, %v4765_v0  ;;  %v3426_v20 = vmax.f32 %v3170_v26, 0.0  ;;  %v885_v19 = vmul.f32 %v11496_v63, %v9488_v53 }
 0x426   : > { %v7147_v29 = vsel %vm6752_vm7, %v7146_v59, %v7145_v3  ;;  %v6901_v11 = vsel %vm6756_vm8, %v6900_v18, %v6899_v61  ;;  %6131 = vadd.xlane.f32.xlu1 %v5664_v27  ;;  %5877 = vadd.xlane.f32.xlu0 %v5537_v16  ;;  %v1013_v3 = vpack.c.bf16 %v10091_v45, %v10091_v45  ;;  %v4086_v40 = vunpack.c.l.b16 %v3554_v36  ;;  %v10120_v27 = vld [vmem:[%s11305_s6] ss:$0 sm:$0xff]  ;;  %v7853_v36 = vld [vmem:[#allocation9 + $0x40] sm:$0xff] }
 0x427   : > { %v2564_v48 = vpop.f32.mrf.mxu2  ;;  %v3299_v1 = vmax.f32 %v3043_v10, 0.0  ;;  %v5083_v21 = vpop.f32.mrf.mxu3  ;;  %v5278_v6 = vmax.f32 %v4766_v8, 0.0  ;;  %v1140_v37 = vpack.c.bf16 %v884_v52, %v884_v52  ;;  %v3682_v26 = vpack.c.bf16 %v3426_v20, %v3426_v20 }
 0x428   : > { %v2883_v32 = vadd.f32 %v9936_v4, %v2564_v48  ;;  %v5084_v50 = vadd.f32 %v9830_v38, %v5083_v21  ;;  %v1141_v8 = vpack.c.bf16 %v885_v19, %v885_v19 }
 0x429   : > { %v3555_v7 = vpack.c.bf16 %v3299_v1, %v3299_v1  ;;  %v6104_v35 = vpop.xlane.xlu2 %6103  ;;  %v5850_v2 = vpop.xlane.xlu1 %5849  ;;  %v5538_v18 = vmul.f32 %v9871_v24, %v5278_v6  ;;  %v4214_v1 = vunpack.c.l.b16 %v3682_v26 }
 0x42a   : > { %v3171_v61 = vadd.f32 %v7851_v31, %v2883_v32  ;;  %v5405_v43 = vmax.f32 %v5084_v50, 0.0  ;;  %v6420_v28 = vadd.f32 %v9591_v60, %v6104_v35  ;;  %v6293_v38 = vadd.f32 %v9591_v60, %v5850_v2  ;;  %v2247_v34 = vpop.f32.mrf.mxu0 }
 0x42b   : > { %v4087_v46 = vunpack.c.l.b16 %v3555_v7  ;;  %v2756_v55 = vadd.f32 %v9933_v33, %v2247_v34  ;;  %v1540_v7 = vunpack.c.l.b16 %v1012_v51  ;;  %v1541_v2 = vunpack.c.l.b16 %v1013_v3  ;;  %v11498_v51 = vld [vmem:[#allocation36_spill] sm:$0xff] }
 0x42c   : > { %v3427_v47 = vmax.f32 %v3171_v61, 0.0  ;;  %2286 = vmatmul.bf16.gmra.mxu0 %v1734_v57  ;;  %2606 = vmatmul.bf16.gmra.mxu2 %v1798_v54  ;;  %v5665_v45 = vmul.f32 %v9871_v24, %v5405_v43  ;;  %v7148_v16 = vperm.slane %v6420_v28, %v9614_v22  ;;  %v6902_v63 = vperm.slane %v6293_v38, %v9634_v62  ;;  %v4768_v59 = vpop.f32.mrf.mxu1 }
 0x42d   : > { %v4769_v31 = vadd.f32 %v10120_v27, %v4768_v59  ;;  %v4291_v10 = vpack.c.b16 %v4087_v46, %v4086_v40  ;;  %v3044_v48 = vadd.f32 %v7853_v36, %v2756_v55  ;;  %v1669_v19 = vunpack.c.l.b16 %v1141_v8 }
 0x42e   : > { %v3683_v0 = vpack.c.bf16 %v3427_v47, %v3427_v47  ;;  %v7149_v57 = vsel %vm6756_vm8, %v7148_v16, %v7147_v29  ;;  %v6903_v52 = vsel %vm6760_vm9, %v6902_v63, %v6901_v11  ;;  %6133 = vadd.xlane.f32.xlu2 %v5665_v45  ;;  %5879 = vadd.xlane.f32.xlu1 %v5538_v18  ;;  %v1668_v11 = vunpack.c.l.b16 %v1140_v37  ;;  %v11497_v47 = vld [vmem:[#allocation35_spill] sm:$0xff] }
 0x42f   : > { %v2567_v20 = vpop.f32.mrf.mxu2  ;;  %4807 = vmatmul.bf16.gmra.mxu1 %v4291_v10  ;;  %v5085_v54 = vpop.f32.mrf.mxu3  ;;  %v5279_v6 = vmax.f32 %v4769_v31, 0.0  ;;  %v3300_v40 = vmax.f32 %v3044_v48, 0.0  ;;  %v10132_v55 = vmul.f32 %v11497_v47, %v9486_v41  ;;  %v10136_v45 = vmul.f32 %v11498_v51, %v9486_v41  ;;  %v7854_v18 = vld [vmem:[#allocation9 + $0x48] sm:$0xff] }
 0x430   : > { %v4215_v32 = vunpack.c.l.b16 %v3683_v0  ;;  %v2884_v21 = vadd.f32 %v9936_v4, %v2567_v20  ;;  %v5086_v50 = vadd.f32 %v10120_v27, %v5085_v54  ;;  %v1735_v10 = vpack.c.b16 %v1541_v2, %v1540_v7 }
 0x431   : > { %v6106_v61 = vpop.xlane.xlu0 %6105  ;;  %v5852_v35 = vpop.xlane.xlu2 %5851  ;;  %v5539_v3 = vmul.f32 %v9871_v24, %v5279_v6  ;;  %v886_v8 = vmul.f32 %v11497_v47, %v9488_v53  ;;  %v1799_v6 = vpack.c.b16 %v1669_v19, %v1668_v11 }
 0x432   : > { %v4355_v29 = vpack.c.b16 %v4215_v32, %v4214_v1  ;;  %v5406_v43 = vmax.f32 %v5086_v50, 0.0  ;;  %v6421_v28 = vadd.f32 %v9591_v60, %v6106_v61  ;;  %v6294_v38 = vadd.f32 %v9591_v60, %v5852_v35  ;;  %v2249_v34 = vpop.f32.mrf.mxu0 }
 0x433   : > { %v3172_v26 = vadd.f32 %v7853_v36, %v2884_v21  ;;  %v2757_v46 = vadd.f32 %v9933_v33, %v2249_v34  ;;  %v3556_v36 = vpack.c.bf16 %v3300_v40, %v3300_v40  ;;  %v1014_v61 = vpack.c.bf16 %v10132_v55, %v10132_v55 }
 0x434   : > { %v7150_v37 = vperm.slane %v6421_v28, %v9634_v62  ;;  %v6904_v16 = vperm.slane %v6294_v38, %v9661_v13  ;;  %v4770_v63 = vpop.f32.mrf.mxu1  ;;  %5127 = vmatmul.bf16.gmra.mxu3 %v4355_v29  ;;  %v5666_v59 = vmul.f32 %v9871_v24, %v5406_v43  ;;  %v887_v40 = vmul.f32 %v11498_v51, %v9488_v53 }
 0x435   : > { %v3045_v0 = vadd.f32 %v7854_v18, %v2757_v46  ;;  %v4771_v31 = vadd.f32 %v10120_v27, %v4770_v63  ;;  %v3428_v32 = vmax.f32 %v3172_v26, 0.0  ;;  %v1142_v43 = vpack.c.bf16 %v886_v8, %v886_v8 }
 0x436   : > { %v7151_v48 = vsel %vm6760_vm9, %v7150_v37, %v7149_v57  ;;  %v6905_v20 = vsel %vm6764_vm10, %v6904_v16, %v6903_v52  ;;  %6135 = vadd.xlane.f32.xlu0 %v5666_v59  ;;  %5881 = vadd.xlane.f32.xlu2 %v5539_v3  ;;  %v1015_v57 = vpack.c.bf16 %v10136_v45, %v10136_v45  ;;  %v4088_v28 = vunpack.c.l.b16 %v3556_v36  ;;  %v10161_v45 = vld [vmem:[%s11306_s7] ss:$0 sm:$0xff]  ;;  %v7856_v36 = vld [vmem:[#allocation9 + $0x50] sm:$0xff] }
 0x437   : > { %v2569_v1 = vpop.f32.mrf.mxu2  ;;  %v3301_v21 = vmax.f32 %v3045_v0, 0.0  ;;  %v5088_v54 = vpop.f32.mrf.mxu3  ;;  %v5280_v50 = vmax.f32 %v4771_v31, 0.0  ;;  %v3684_v26 = vpack.c.bf16 %v3428_v32, %v3428_v32  ;;  %v1143_v31 = vpack.c.bf16 %v887_v40, %v887_v40 }
 0x438   : > { %v2885_v24 = vadd.f32 %v9936_v4, %v2569_v1  ;;  %v5089_v7 = vadd.f32 %v10120_v27, %v5088_v54 }
 0x439   : > { %v3557_v35 = vpack.c.bf16 %v3301_v21, %v3301_v21  ;;  %v6108_v29 = vpop.xlane.xlu1 %6107  ;;  %v5854_v2 = vpop.xlane.xlu0 %5853  ;;  %v5540_v63 = vmul.f32 %v10161_v45, %v5280_v50  ;;  %v4216_v21 = vunpack.c.l.b16 %v3684_v26  ;;  %v1671_v40 = vunpack.c.l.b16 %v1143_v31 }
 0x43a   : > { %v3173_v52 = vadd.f32 %v7854_v18, %v2885_v24  ;;  %v5407_v38 = vmax.f32 %v5089_v7, 0.0  ;;  %v6422_v11 = vadd.f32 %v9591_v60, %v6108_v29  ;;  %v6295_v19 = vadd.f32 %v9591_v60, %v5854_v2  ;;  %v2252_v34 = vpop.f32.mrf.mxu0 }
 0x43b   : > { %v4089_v46 = vunpack.c.l.b16 %v3557_v35  ;;  %v2758_v55 = vadd.f32 %v9933_v33, %v2252_v34  ;;  %v1542_v35 = vunpack.c.l.b16 %v1014_v61  ;;  %v1543_v2 = vunpack.c.l.b16 %v1015_v57  ;;  %v11500_v61 = vld [vmem:[#allocation38_spill] sm:$0xff] }
 0x43c   : > { %v3429_v47 = vmax.f32 %v3173_v52, 0.0  ;;  %2291 = vmatmul.bf16.gmra.mxu0 %v1735_v10  ;;  %2611 = vmatmul.bf16.gmra.mxu2 %v1799_v6  ;;  %v5667_v51 = vmul.f32 %v10161_v45, %v5407_v38  ;;  %v7152_v3 = vperm.slane %v6422_v11, %v9661_v13  ;;  %v6906_v37 = vperm.slane %v6295_v19, %v9738_v25  ;;  %v4773_v16 = vpop.f32.mrf.mxu1 }
 0x43d   : > { %v4774_v18 = vadd.f32 %v10120_v27, %v4773_v16  ;;  %v4292_v0 = vpack.c.b16 %v4089_v46, %v4088_v28  ;;  %v3046_v1 = vadd.f32 %v7856_v36, %v2758_v55 }
 0x43e   : > { %v3685_v59 = vpack.c.bf16 %v3429_v47, %v3429_v47  ;;  %v7153_v10 = vsel %vm6764_vm10, %v7152_v3, %v7151_v48  ;;  %v6907_v8 = vsel %vm6768_vm11, %v6906_v37, %v6905_v20  ;;  %6137 = vadd.xlane.f32.xlu1 %v5667_v51  ;;  %5883 = vadd.xlane.f32.xlu0 %v5540_v63  ;;  %v1670_v20 = vunpack.c.l.b16 %v1142_v43  ;;  %v11499_v47 = vld [vmem:[#allocation37_spill] sm:$0xff] }
 0x43f   : > { %v2572_v32 = vpop.f32.mrf.mxu2  ;;  %4812 = vmatmul.bf16.gmra.mxu1 %v4292_v0  ;;  %v5090_v6 = vpop.f32.mrf.mxu3  ;;  %v5281_v50 = vmax.f32 %v4774_v18, 0.0  ;;  %v3302_v28 = vmax.f32 %v3046_v1, 0.0  ;;  %v10177_v55 = vmul.f32 %v11499_v47, %v9486_v41  ;;  %v10181_v51 = vmul.f32 %v11500_v61, %v9486_v41  ;;  %v7857_v63 = vld [vmem:[#allocation9 + $0x58] sm:$0xff] }
 0x440   : > { %v4217_v24 = vunpack.c.l.b16 %v3685_v59  ;;  %v2886_v54 = vadd.f32 %v9936_v4, %v2572_v32  ;;  %v5091_v7 = vadd.f32 %v10120_v27, %v5090_v6  ;;  %v1736_v0 = vpack.c.b16 %v1543_v2, %v1542_v35 }
 0x441   : > { %v6110_v52 = vpop.xlane.xlu2 %6109  ;;  %v5856_v29 = vpop.xlane.xlu1 %5855  ;;  %v5541_v57 = vmul.f32 %v10161_v45, %v5281_v50  ;;  %v3558_v31 = vpack.c.bf16 %v3302_v28, %v3302_v28  ;;  %v1800_v6 = vpack.c.b16 %v1671_v40, %v1670_v20  ;;  %v1016_v35 = vpack.c.bf16 %v10177_v55, %v10177_v55 }
 0x442   : > { %v4356_v48 = vpack.c.b16 %v4217_v24, %v4216_v21  ;;  %v5408_v38 = vmax.f32 %v5091_v7, 0.0  ;;  %v6423_v11 = vadd.f32 %v9591_v60, %v6110_v52  ;;  %v6296_v19 = vadd.f32 %v9591_v60, %v5856_v29  ;;  %v2254_v34 = vpop.f32.mrf.mxu0 }
 0x443   : > { %v3174_v26 = vadd.f32 %v7856_v36, %v2886_v54  ;;  %v2759_v46 = vadd.f32 %v9933_v33, %v2254_v34  ;;  %v888_v2 = vmul.f32 %v11499_v47, %v9488_v53  ;;  %v889_v28 = vmul.f32 %v11500_v61, %v9488_v53 }
 0x444   : > { %v7154_v43 = vperm.slane %v6423_v11, %v9738_v25  ;;  %v6908_v3 = vperm.slane %v6296_v19, %v9797_v5  ;;  %v4775_v37 = vpop.f32.mrf.mxu1  ;;  %5132 = vmatmul.bf16.gmra.mxu3 %v4356_v48  ;;  %v5668_v16 = vmul.f32 %v10161_v45, %v5408_v38  ;;  %v4090_v20 = vunpack.c.l.b16 %v3558_v31 }
 0x445   : > { %v3047_v59 = vadd.f32 %v7857_v63, %v2759_v46  ;;  %v4776_v18 = vadd.f32 %v10120_v27, %v4775_v37  ;;  %v3430_v32 = vmax.f32 %v3174_v26, 0.0 }
 0x446   : > { %v7155_v36 = vsel %vm6768_vm11, %v7154_v43, %v7153_v10  ;;  %v6909_v41 = vsel %vm11352_vm12, %v6908_v3, %v6907_v8  ;;  %6139 = vadd.xlane.f32.xlu2 %v5668_v16  ;;  %5885 = vadd.xlane.f32.xlu1 %v5541_v57  ;;  %v1017_v10 = vpack.c.bf16 %v10181_v51, %v10181_v51 }
 0x447   : > { %v2574_v1 = vpop.f32.mrf.mxu2  ;;  %v3303_v21 = vmax.f32 %v3047_v59, 0.0  ;;  %v5093_v54 = vpop.f32.mrf.mxu3  ;;  %v5282_v50 = vmax.f32 %v4776_v18, 0.0  ;;  %v3686_v34 = vpack.c.bf16 %v3430_v32, %v3430_v32  ;;  %v1144_v16 = vpack.c.bf16 %v888_v2, %v888_v2  ;;  %v7858_v18 = vld [vmem:[#allocation9 + $0x60] sm:$0xff] }
 0x448   : > { %v2887_v24 = vadd.f32 %v9936_v4, %v2574_v1  ;;  %v5094_v7 = vadd.f32 %v10120_v27, %v5093_v54  ;;  %v1145_v54 = vpack.c.bf16 %v889_v28, %v889_v28 }
 0x449   : > { %v3559_v52 = vpack.c.bf16 %v3303_v21, %v3303_v21  ;;  %v6112_v29 = vpop.xlane.xlu0 %6111  ;;  %v5858_v48 = vpop.xlane.xlu2 %5857  ;;  %v5542_v57 = vmul.f32 %v10161_v45, %v5282_v50  ;;  %v4218_v1 = vunpack.c.l.b16 %v3686_v34 }
 0x44a   : > { %v3175_v8 = vadd.f32 %v7857_v63, %v2887_v24  ;;  %v5409_v40 = vmax.f32 %v5094_v7, 0.0  ;;  %v6424_v38 = vadd.f32 %v9591_v60, %v6112_v29  ;;  %v6297_v11 = vadd.f32 %v9591_v60, %v5858_v48  ;;  %v2257_v19 = vpop.f32.mrf.mxu0 }
 0x44b   : > { %v4091_v26 = vunpack.c.l.b16 %v3559_v52  ;;  %v2760_v55 = vadd.f32 %v9933_v33, %v2257_v19  ;;  %v1672_v19 = vunpack.c.l.b16 %v1144_v16  ;;  %v1673_v28 = vunpack.c.l.b16 %v1145_v54 }
 0x44c   : > { %v3431_v46 = vmax.f32 %v3175_v8, 0.0  ;;  %2296 = vmatmul.bf16.gmra.mxu0 %v1736_v0  ;;  %2616 = vmatmul.bf16.gmra.mxu2 %v1800_v6  ;;  %v5669_v51 = vmul.f32 %v10161_v45, %v5409_v40  ;;  %v7156_v47 = vperm.slane %v6424_v38, %v9797_v5  ;;  %v6910_v53 = vperm.slane %v6297_v11, %v9805_v58  ;;  %v4778_v61 = vpop.f32.mrf.mxu1 }
 0x44d   : > { %v4779_v3 = vadd.f32 %v10120_v27, %v4778_v61  ;;  %v4293_v37 = vpack.c.b16 %v4091_v26, %v4090_v20  ;;  %v3048_v0 = vadd.f32 %v7858_v18, %v2760_v55  ;;  %v1544_v8 = vunpack.c.l.b16 %v1016_v35  ;;  %v7859_v55 = vld [vmem:[#allocation9 + $0x68] sm:$0xff] }
 0x44e   : > { %v3687_v43 = vpack.c.bf16 %v3431_v46, %v3431_v46  ;;  %v7157_v63 = vsel %vm11352_vm12, %v7156_v47, %v7155_v36  ;;  %v6911_v59 = vsel %vm11351_vm13, %v6910_v53, %v6909_v41  ;;  %6141 = vadd.xlane.f32.xlu0 %v5669_v51  ;;  %5887 = vadd.xlane.f32.xlu2 %v5542_v57  ;;  %v1545_v41 = vunpack.c.l.b16 %v1017_v10 }
 0x44f   : > { %v2577_v31 = vpop.f32.mrf.mxu2  ;;  %4817 = vmatmul.bf16.gmra.mxu1 %v4293_v37  ;;  %v5095_v24 = vpop.f32.mrf.mxu3  ;;  %v5283_v6 = vmax.f32 %v4779_v3, 0.0  ;;  %v3304_v29 = vmax.f32 %v3048_v0, 0.0 }
 0x450   : > { %v4219_v32 = vunpack.c.l.b16 %v3687_v43  ;;  %v2888_v21 = vadd.f32 %v9936_v4, %v2577_v31  ;;  %v5096_v50 = vadd.f32 %v10120_v27, %v5095_v24  ;;  %v1737_v53 = vpack.c.b16 %v1545_v41, %v1544_v8 }
 0x451   : > { %v6114_v7 = vpop.xlane.xlu1 %6113  ;;  %v5860_v52 = vpop.xlane.xlu0 %5859  ;;  %v5543_v34 = vmul.f32 %v10161_v45, %v5283_v6  ;;  %v3560_v61 = vpack.c.bf16 %v3304_v29, %v3304_v29  ;;  %v1801_v31 = vpack.c.b16 %v1673_v28, %v1672_v19 }
 0x452   : > { %v4357_v36 = vpack.c.b16 %v4219_v32, %v4218_v1  ;;  %v5410_v48 = vmax.f32 %v5096_v50, 0.0  ;;  %v6425_v2 = vadd.f32 %v9591_v60, %v6114_v7  ;;  %v6298_v20 = vadd.f32 %v9591_v60, %v5860_v52  ;;  %v2259_v40 = vpop.f32.mrf.mxu0 }
 0x453   : > { %v3176_v38 = vadd.f32 %v7858_v18, %v2888_v21  ;;  %v2761_v11 = vadd.f32 %v9933_v33, %v2259_v40  ;;  %v4092_v50 = vunpack.c.l.b16 %v3560_v61 }
 0x454   : > { %v7158_v26 = vperm.slane %v6425_v2, %v9805_v58  ;;  %v6912_v46 = vperm.slane %v6298_v20, %v9850_v17  ;;  %v4780_v35 = vpop.f32.mrf.mxu1  ;;  %5137 = vmatmul.bf16.gmra.mxu3 %v4357_v36  ;;  %v5670_v10 = vmul.f32 %v10161_v45, %v5410_v48 }
 0x455   : > { %v3049_v51 = vadd.f32 %v7859_v55, %v2761_v11  ;;  %v4781_v47 = vadd.f32 %v10120_v27, %v4780_v35  ;;  %v3432_v37 = vmax.f32 %v3176_v38, 0.0 }
 0x456   : > { %v7159_v57 = vsel %vm11351_vm13, %v7158_v26, %v7157_v63  ;;  %v6913_v43 = vsel %vm11349_vm14, %v6912_v46, %v6911_v59  ;;  %6143 = vadd.xlane.f32.xlu1 %v5670_v10  ;;  %5889 = vadd.xlane.f32.xlu0 %v5543_v34  ;;  %v7860_v46 = vld [vmem:[#allocation9 + $0x70] sm:$0xff] }
 0x457   : > { %v2579_v3 = vpop.f32.mrf.mxu2  ;;  %v3305_v16 = vmax.f32 %v3049_v51, 0.0  ;;  %v5098_v0 = vpop.f32.mrf.mxu3  ;;  %v5284_v1 = vmax.f32 %v4781_v47, 0.0  ;;  %v3688_v36 = vpack.c.bf16 %v3432_v37, %v3432_v37 }
 0x458   : > { %v2889_v18 = vadd.f32 %v9936_v4, %v2579_v3  ;;  %v5099_v32 = vadd.f32 %v10120_v27, %v5098_v0 }
 0x459   : > { %v3561_v21 = vpack.c.bf16 %v3305_v16, %v3305_v16  ;;  %v6116_v54 = vpop.xlane.xlu2 %6115  ;;  %v5862_v6 = vpop.xlane.xlu1 %5861  ;;  %v5544_v38 = vmul.f32 %v10161_v45, %v5284_v1 }
 0x45a   : > { %v3177_v24 = vadd.f32 %v7859_v55, %v2889_v18  ;;  %v5411_v63 = vmax.f32 %v5099_v32, 0.0  ;;  %v6426_v59 = vadd.f32 %v9591_v60, %v6116_v54  ;;  %v6299_v7 = vadd.f32 %v9591_v60, %v5862_v6  ;;  %v2262_v52 = vpop.f32.mrf.mxu0 }
 0x45b   : > { %v4093_v8 = vunpack.c.l.b16 %v3561_v21  ;;  %v2762_v29 = vadd.f32 %v9933_v33, %v2262_v52  ;;  %v4220_v55 = vunpack.c.l.b16 %v3688_v36 }
 0x45c   : > { %v3433_v41 = vmax.f32 %v3177_v24, 0.0  ;;  %2301 = vmatmul.bf16.gmra.mxu0 %v1737_v53  ;;  %2621 = vmatmul.bf16.gmra.mxu2 %v1801_v31  ;;  %v5671_v48 = vmul.f32 %v10161_v45, %v5411_v63  ;;  %v7160_v2 = vperm.slane %v6426_v59, %v9850_v17  ;;  %v6914_v20 = vperm.slane %v6299_v7, %v9858_v44  ;;  %v4783_v40 = vpop.f32.mrf.mxu1  ;;  %v7861_v59 = vld [vmem:[#allocation9 + $0x78] sm:$0xff] }
 0x45d   : > { %v4784_v19 = vadd.f32 %v10120_v27, %v4783_v40  ;;  %v4294_v28 = vpack.c.b16 %v4093_v8, %v4092_v50  ;;  %v3050_v35 = vadd.f32 %v7860_v46, %v2762_v29 }
 0x45e   : > { %v3689_v11 = vpack.c.bf16 %v3433_v41, %v3433_v41  ;;  %v7161_v34 = vsel %vm11349_vm14, %v7160_v2, %v7159_v57  ;;  %v6915_v26 = vsel %vm11350_vm15, %v6914_v20, %v6913_v43  ;;  %6145 = vadd.xlane.f32.xlu2 %v5671_v48  ;;  %5891 = vadd.xlane.f32.xlu1 %v5544_v38 }
 0x45f   : > { %v2582_v10 = vpop.f32.mrf.mxu2  ;;  %4822 = vmatmul.bf16.gmra.mxu1 %v4294_v28  ;;  %v5100_v53 = vpop.f32.mrf.mxu3  ;;  %v5285_v61 = vmax.f32 %v4784_v19, 0.0  ;;  %v3306_v57 = vmax.f32 %v3050_v35, 0.0 }
 0x460   : > { %v4221_v51 = vunpack.c.l.b16 %v3689_v11  ;;  %v2890_v47 = vadd.f32 %v9936_v4, %v2582_v10  ;;  %v5101_v3 = vadd.f32 %v10120_v27, %v5100_v53 }
 0x461   : > { %v6118_v37 = vpop.xlane.xlu0 %6117  ;;  %v5864_v16 = vpop.xlane.xlu2 %5863  ;;  %v5545_v24 = vmul.f32 %v10161_v45, %v5285_v61  ;;  %v3562_v36 = vpack.c.bf16 %v3306_v57, %v3306_v57 }
 0x462   : > { %v4358_v18 = vpack.c.b16 %v4221_v51, %v4220_v55  ;;  %v5412_v0 = vmax.f32 %v5101_v3, 0.0  ;;  %v6427_v43 = vadd.f32 %v9591_v60, %v6118_v37  ;;  %v6300_v31 = vadd.f32 %v9591_v60, %v5864_v16  ;;  %v2264_v1 = vpop.f32.mrf.mxu0 }
 0x463   : > { %v3178_v32 = vadd.f32 %v7860_v46, %v2890_v47  ;;  %v2763_v21 = vadd.f32 %v9933_v33, %v2264_v1  ;;  %v4094_v10 = vunpack.c.l.b16 %v3562_v36 }
 0x464   : > { %v7162_v54 = vperm.slane %v6427_v43, %v9858_v44  ;;  %v6916_v6 = vperm.slane %v6300_v31, %v9903_v56  ;;  %v4785_v50 = vpop.f32.mrf.mxu1  ;;  %5142 = vmatmul.bf16.gmra.mxu3 %v4358_v18  ;;  %v5672_v63 = vmul.f32 %v10161_v45, %v5412_v0 }
 0x465   : > { %v3051_v7 = vadd.f32 %v7861_v59, %v2763_v21  ;;  %v4786_v52 = vadd.f32 %v10120_v27, %v4785_v50  ;;  %v3434_v48 = vmax.f32 %v3178_v32, 0.0  ;;  %v7862_v50 = vld [vmem:[#allocation9 + $0x80] sm:$0xff] }
 0x466   : > { %v7163_v8 = vsel %vm11350_vm15, %v7162_v54, %v7161_v34  ;;  %v6917_v41 = vsel %vm11347_vm0, %v6916_v6, %v6915_v26  ;;  %6147 = vadd.xlane.f32.xlu0 %v5672_v63  ;;  %5893 = vadd.xlane.f32.xlu2 %v5545_v24 }
 0x467   : > { %v2584_v29 = vpop.f32.mrf.mxu2  ;;  %v3307_v2 = vmax.f32 %v3051_v7, 0.0  ;;  %v5103_v40 = vpop.f32.mrf.mxu3  ;;  %v5286_v38 = vmax.f32 %v4786_v52, 0.0  ;;  %v3690_v47 = vpack.c.bf16 %v3434_v48, %v3434_v48 }
 0x468   : > { %v2891_v20 = vadd.f32 %v9936_v4, %v2584_v29  ;;  %v5104_v11 = vadd.f32 %v10120_v27, %v5103_v40 }
 0x469   : > { %v3563_v19 = vpack.c.bf16 %v3307_v2, %v3307_v2  ;;  %v6120_v46 = vpop.xlane.xlu1 %6119  ;;  %v5866_v35 = vpop.xlane.xlu0 %5865  ;;  %v5546_v0 = vmul.f32 %v10161_v45, %v5286_v38  ;;  %v4222_v54 = vunpack.c.l.b16 %v3690_v47 }
 0x46a   : > { %v3179_v28 = vadd.f32 %v7861_v59, %v2891_v20  ;;  %v5413_v55 = vmax.f32 %v5104_v11, 0.0  ;;  %v6428_v34 = vadd.f32 %v9591_v60, %v6120_v46  ;;  %v6301_v26 = vadd.f32 %v9591_v60, %v5866_v35  ;;  %v2267_v51 = vpop.f32.mrf.mxu0 }
 0x46b   : > { %v4095_v53 = vunpack.c.l.b16 %v3563_v19  ;;  %v2764_v3 = vadd.f32 %v9933_v33, %v2267_v51 }
 0x46c   : > { %v3435_v61 = vmax.f32 %v3179_v28, 0.0  ;;  %v5673_v37 = vmul.f32 %v10161_v45, %v5413_v55  ;;  %v7164_v16 = vperm.slane %v6428_v34, %v9903_v56  ;;  %v6918_v18 = vperm.slane %v6301_v26, %v9909_v23  ;;  %v4788_v57 = vpop.f32.mrf.mxu1  ;;  %v7863_v34 = vld [vmem:[#allocation9 + $0x88] sm:$0xff] }
 0x46d   : > { %v4789_v31 = vadd.f32 %v10120_v27, %v4788_v57  ;;  %v4295_v1 = vpack.c.b16 %v4095_v53, %v4094_v10  ;;  %v3052_v63 = vadd.f32 %v7862_v50, %v2764_v3 }
 0x46e   : > { %v3691_v43 = vpack.c.bf16 %v3435_v61, %v3435_v61  ;;  %v7165_v32 = vsel %vm11347_vm0, %v7164_v16, %v7163_v8  ;;  %v6919_v21 = vsel %vm6792_vm3, %v6918_v18, %v6917_v41  ;;  %6149 = vadd.xlane.f32.xlu1 %v5673_v37  ;;  %5895 = vadd.xlane.f32.xlu0 %v5546_v0 }
 0x46f   : > { %v2587_v24 = vpop.f32.mrf.mxu2  ;;  %4827 = vmatmul.bf16.gmra.mxu1 %v4295_v1  ;;  %v5105_v7 = vpop.f32.mrf.mxu3  ;;  %v5287_v52 = vmax.f32 %v4789_v31, 0.0  ;;  %v3308_v38 = vmax.f32 %v3052_v63, 0.0 }
 0x470   : > { %v4223_v6 = vunpack.c.l.b16 %v3691_v43  ;;  %v2892_v59 = vadd.f32 %v9936_v4, %v2587_v24  ;;  %v5106_v36 = vadd.f32 %v10120_v27, %v5105_v7 }
 0x471   : > { %v6122_v29 = vpop.xlane.xlu2 %6121  ;;  %v5868_v48 = vpop.xlane.xlu1 %5867  ;;  %v5547_v28 = vmul.f32 %v10161_v45, %v5287_v52  ;;  %v3564_v3 = vpack.c.bf16 %v3308_v38, %v3308_v38 }
 0x472   : > { %v4359_v2 = vpack.c.b16 %v4223_v6, %v4222_v54  ;;  %v5414_v8 = vmax.f32 %v5106_v36, 0.0  ;;  %v6429_v41 = vadd.f32 %v9591_v60, %v6122_v29  ;;  %v6302_v20 = vadd.f32 %v9591_v60, %v5868_v48  ;;  %v2269_v40 = vpop.f32.mrf.mxu0 }
 0x473   : > { %v3180_v11 = vadd.f32 %v7862_v50, %v2892_v59  ;;  %v2765_v19 = vadd.f32 %v9933_v33, %v2269_v40  ;;  %v4096_v6 = vunpack.c.l.b16 %v3564_v3 }
 0x474   : > { %v7166_v46 = vperm.slane %v6429_v41, %v9909_v23  ;;  %v6920_v35 = vperm.slane %v6302_v20, %v9956_v12  ;;  %v4790_v10 = vpop.f32.mrf.mxu1  ;;  %5147 = vmatmul.bf16.gmra.mxu3 %v4359_v2  ;;  %v5674_v55 = vmul.f32 %v10161_v45, %v5414_v8  ;;  %v7864_v8 = vld [vmem:[#allocation9 + $0x90] sm:$0xff] }
 0x475   : > { %v3053_v26 = vadd.f32 %v7863_v34, %v2765_v19  ;;  %v4791_v51 = vadd.f32 %v10120_v27, %v4790_v10  ;;  %v3436_v37 = vmax.f32 %v3180_v11, 0.0 }
 0x476   : > { %v7167_v47 = vsel %vm6792_vm3, %v7166_v46, %v7165_v32  ;;  %v10270_v53 = vsel %vm6796_vm1, %v6920_v35, %v6919_v21  ;;  %6151 = vadd.xlane.f32.xlu2 %v5674_v55  ;;  %5897 = vadd.xlane.f32.xlu1 %v5547_v28 }
 0x477   : > { %v2589_v61 = vpop.f32.mrf.mxu2  ;;  %v3309_v16 = vmax.f32 %v3053_v26, 0.0  ;;  %v5108_v18 = vpop.f32.mrf.mxu3  ;;  %v5288_v57 = vmax.f32 %v4791_v51, 0.0  ;;  %v3692_v50 = vpack.c.bf16 %v3436_v37, %v3436_v37 }
 0x478   : > { %v2893_v0 = vadd.f32 %v9936_v4, %v2589_v61  ;;  %v5109_v43 = vadd.f32 %v10120_v27, %v5108_v18 }
 0x479   : > { %v3565_v31 = vpack.c.bf16 %v3309_v16, %v3309_v16  ;;  %v6124_v1 = vpop.xlane.xlu0 %6123  ;;  %v5548_v48 = vmul.f32 %v10161_v45, %v5288_v57  ;;  %v5870_v2 = vpop.xlane.xlu2 %5869  ;;  %v4224_v28 = vunpack.c.l.b16 %v3692_v50 }
 0x47a   : > { %v3181_v24 = vadd.f32 %v7863_v34, %v2893_v0  ;;  %v5415_v54 = vmax.f32 %v5109_v43, 0.0  ;;  %v6430_v32 = vadd.f32 %v9591_v60, %v6124_v1  ;;  %v2272_v21 = vpop.f32.mrf.mxu0  ;;  %v6303_v55 = vadd.f32 %v9591_v60, %v5870_v2 }
 0x47b   : > { %v4097_v63 = vunpack.c.l.b16 %v3565_v31  ;;  %v2766_v59 = vadd.f32 %v9933_v33, %v2272_v21  ;;  %v7865_v21 = vld [vmem:[#allocation9 + $0x98] sm:$0xff] }
 0x47c   : > { %v3437_v7 = vmax.f32 %v3181_v24, 0.0  ;;  %v5675_v52 = vmul.f32 %v10161_v45, %v5415_v54  ;;  %v7168_v36 = vperm.slane %v6430_v32, %v9956_v12  ;;  %v4793_v29 = vpop.f32.mrf.mxu1  ;;  %v6922_v43 = vperm.slane %v6303_v55, %v9586_v9 }
 0x47d   : > { %v3054_v41 = vadd.f32 %v7864_v8, %v2766_v59  ;;  %v4794_v20 = vadd.f32 %v10120_v27, %v4793_v29  ;;  %v4296_v40 = vpack.c.b16 %v4097_v63, %v4096_v6 }
 0x47e   : > { %v3693_v38 = vpack.c.bf16 %v3437_v7, %v3437_v7  ;;  %v10281_v11 = vsel %vm6796_vm1, %v7168_v36, %v7167_v47  ;;  %6153 = vadd.xlane.f32.xlu0 %v5675_v52  ;;  %5899 = vadd.xlane.f32.xlu2 %v5548_v48 }
 0x47f   : > { %v2592_v19 = vpop.f32.mrf.mxu2  ;;  %4832 = vmatmul.bf16.gmra.mxu1 %v4296_v40  ;;  %v5110_v35 = vpop.f32.mrf.mxu3  ;;  %v5289_v34 = vmax.f32 %v4794_v20, 0.0  ;;  %v3310_v51 = vmax.f32 %v3054_v41, 0.0 }
 0x480   : > { %v2894_v46 = vadd.f32 %v9936_v4, %v2592_v19  ;;  %v4225_v10 = vunpack.c.l.b16 %v3693_v38  ;;  %v5111_v26 = vadd.f32 %v10120_v27, %v5110_v35 }
 0x481   : > { %v6126_v61 = vpop.xlane.xlu1 %6125  ;;  %v5872_v3 = vpop.xlane.xlu0 %5871  ;;  %v5549_v31 = vmul.f32 %v10161_v45, %v5289_v34  ;;  %v3566_v32 = vpack.c.bf16 %v3310_v51, %v3310_v51 }
 0x482   : > { %v5416_v37 = vmax.f32 %v5111_v26, 0.0  ;;  %v6304_v47 = vadd.f32 %v9591_v60, %v5872_v3  ;;  %v2274_v16 = vpop.f32.mrf.mxu0  ;;  %v4360_v18 = vpack.c.b16 %v4225_v10, %v4224_v28  ;;  %v3182_v57 = vadd.f32 %v7864_v8, %v2894_v46 }
 0x483   : > { %v2767_v0 = vadd.f32 %v9933_v33, %v2274_v16  ;;  %v6431_v63 = vadd.f32 %v9591_v60, %v6126_v61  ;;  %v4098_v41 = vunpack.c.l.b16 %v3566_v32 }
 0x484   : > { %v6923_v1 = vperm.slane %v6304_v47, %v9594_v49  ;;  %v4795_v24 = vpop.f32.mrf.mxu1  ;;  %5152 = vmatmul.bf16.gmra.mxu3 %v4360_v18  ;;  %v5676_v54 = vmul.f32 %v10161_v45, %v5416_v37  ;;  %v3438_v52 = vmax.f32 %v3182_v57, 0.0 }
 0x485   : > { %v3055_v6 = vadd.f32 %v7865_v21, %v2767_v0  ;;  %v4796_v50 = vadd.f32 %v10120_v27, %v4795_v24  ;;  %v7170_v28 = vperm.slane %v6431_v63, %v9586_v9  ;;  %v7866_v24 = vld [vmem:[#allocation9 + $0xa0] sm:$0xff] }
 0x486   : > { %v6924_v59 = vsel %vm6740_vm4, %v6923_v1, %v6922_v43  ;;  %6155 = vadd.xlane.f32.xlu1 %v5676_v54  ;;  %5901 = vadd.xlane.f32.xlu0 %v5549_v31  ;;  %v3694_v34 = vpack.c.bf16 %v3438_v52, %v3438_v52 }
 0x487   : > { %v2594_v7 = vpop.f32.mrf.mxu2  ;;  %v3311_v36 = vmax.f32 %v3055_v6, 0.0  ;;  %v5113_v48 = vpop.f32.mrf.mxu3  ;;  %v5290_v2 = vmax.f32 %v4796_v50, 0.0 }
 0x488   : > { %v2895_v29 = vadd.f32 %v9936_v4, %v2594_v7  ;;  %v5114_v8 = vadd.f32 %v10120_v27, %v5113_v48 }
 0x489   : > { %v3567_v20 = vpack.c.bf16 %v3311_v36, %v3311_v36  ;;  %v6128_v38 = vpop.xlane.xlu2 %6127  ;;  %v5874_v19 = vpop.xlane.xlu1 %5873  ;;  %v5550_v18 = vmul.f32 %v10161_v45, %v5290_v2 }
 0x48a   : > { %v3183_v40 = vadd.f32 %v7865_v21, %v2895_v29  ;;  %v5417_v46 = vmax.f32 %v5114_v8, 0.0  ;;  %v6432_v35 = vadd.f32 %v9591_v60, %v6128_v38  ;;  %v6305_v10 = vadd.f32 %v9591_v60, %v5874_v19  ;;  %v2277_v55 = vpop.f32.mrf.mxu0 }
 0x48b   : > { %v4099_v26 = vunpack.c.l.b16 %v3567_v20  ;;  %v2768_v61 = vadd.f32 %v9933_v33, %v2277_v55  ;;  %v4226_v21 = vunpack.c.l.b16 %v3694_v34  ;;  %v7867_v55 = vld [vmem:[#allocation9 + $0xa8] sm:$0xff] }
 0x48c   : > { %v3439_v51 = vmax.f32 %v3183_v40, 0.0  ;;  %v5677_v3 = vmul.f32 %v10161_v45, %v5417_v46  ;;  %v7171_v37 = vperm.slane %v6432_v35, %v9594_v49  ;;  %v6925_v47 = vperm.slane %v6305_v10, %v9600_v39  ;;  %v4798_v16 = vpop.f32.mrf.mxu1 }
 0x48d   : > { %v4799_v0 = vadd.f32 %v10120_v27, %v4798_v16  ;;  %v4297_v43 = vpack.c.b16 %v4099_v26, %v4098_v41  ;;  %v3056_v54 = vadd.f32 %v7866_v24, %v2768_v61 }
 0x48e   : > { %v3695_v57 = vpack.c.bf16 %v3439_v51, %v3439_v51  ;;  %v7172_v31 = vsel %vm6740_vm4, %v7171_v37, %v7170_v28  ;;  %v6926_v1 = vsel %vm6744_vm5, %v6925_v47, %v6924_v59  ;;  %6157 = vadd.xlane.f32.xlu2 %v5677_v3  ;;  %5903 = vadd.xlane.f32.xlu1 %v5550_v18 }
 0x48f   : > { %v2597_v32 = vpop.f32.mrf.mxu2  ;;  %4837 = vmatmul.bf16.gmra.mxu1 %v4297_v43  ;;  %v5115_v63 = vpop.f32.mrf.mxu3  ;;  %v5291_v7 = vmax.f32 %v4799_v0, 0.0  ;;  %v3312_v2 = vmax.f32 %v3056_v54, 0.0 }
 0x490   : > { %v4227_v6 = vunpack.c.l.b16 %v3695_v57  ;;  %v2896_v50 = vadd.f32 %v9936_v4, %v2597_v32  ;;  %v5116_v52 = vadd.f32 %v10120_v27, %v5115_v63 }
 0x491   : > { %v6130_v36 = vpop.xlane.xlu0 %6129  ;;  %v5876_v29 = vpop.xlane.xlu2 %5875  ;;  %v5551_v19 = vmul.f32 %v10161_v45, %v5291_v7  ;;  %v3568_v51 = vpack.c.bf16 %v3312_v2, %v3312_v2 }
 0x492   : > { %v4361_v48 = vpack.c.b16 %v4227_v6, %v4226_v21  ;;  %v5418_v8 = vmax.f32 %v5116_v52, 0.0  ;;  %v6433_v59 = vadd.f32 %v9591_v60, %v6130_v36  ;;  %v6306_v41 = vadd.f32 %v9591_v60, %v5876_v29  ;;  %v2279_v20 = vpop.f32.mrf.mxu0 }
 0x493   : > { %v3184_v40 = vadd.f32 %v7866_v24, %v2896_v50  ;;  %v2769_v38 = vadd.f32 %v9933_v33, %v2279_v20  ;;  %v4100_v6 = vunpack.c.l.b16 %v3568_v51 }
 0x494   : > { %v7173_v28 = vperm.slane %v6433_v59, %v9600_v39  ;;  %v6927_v46 = vperm.slane %v6306_v41, %v9607_v42  ;;  %v4800_v35 = vpop.f32.mrf.mxu1  ;;  %5157 = vmatmul.bf16.gmra.mxu3 %v4361_v48  ;;  %v5678_v10 = vmul.f32 %v10161_v45, %v5418_v8 }
 0x495   : > { %v3057_v34 = vadd.f32 %v7867_v55, %v2769_v38  ;;  %v4801_v26 = vadd.f32 %v10120_v27, %v4800_v35  ;;  %v3440_v47 = vmax.f32 %v3184_v40, 0.0 }
 0x496   : > { %v7174_v61 = vsel %vm6744_vm5, %v7173_v28, %v7172_v31  ;;  %v6928_v3 = vsel %vm6748_vm6, %v6927_v46, %v6926_v1  ;;  %6159 = vadd.xlane.f32.xlu0 %v5678_v10  ;;  %5905 = vadd.xlane.f32.xlu2 %v5551_v19  ;;  %v7868_v46 = vld [vmem:[#allocation9 + $0xb0] sm:$0xff] }
 0x497   : > { %v2599_v37 = vpop.f32.mrf.mxu2  ;;  %v3313_v16 = vmax.f32 %v3057_v34, 0.0  ;;  %v5118_v57 = vpop.f32.mrf.mxu3  ;;  %v5292_v0 = vmax.f32 %v4801_v26, 0.0  ;;  %v3696_v7 = vpack.c.bf16 %v3440_v47, %v3440_v47 }
 0x498   : > { %v2897_v18 = vadd.f32 %v9936_v4, %v2599_v37  ;;  %v5119_v43 = vadd.f32 %v10120_v27, %v5118_v57 }
 0x499   : > { %v3569_v24 = vpack.c.bf16 %v3313_v16, %v3313_v16  ;;  %v6132_v32 = vpop.xlane.xlu1 %6131  ;;  %v5878_v21 = vpop.xlane.xlu0 %5877  ;;  %v5552_v41 = vmul.f32 %v10161_v45, %v5292_v0 }
 0x49a   : > { %v3185_v54 = vadd.f32 %v7867_v55, %v2897_v18  ;;  %v5419_v50 = vmax.f32 %v5119_v43, 0.0  ;;  %v6434_v31 = vadd.f32 %v9591_v60, %v6132_v32  ;;  %v6307_v1 = vadd.f32 %v9591_v60, %v5878_v21  ;;  %v2282_v63 = vpop.f32.mrf.mxu0 }
 0x49b   : > { %v4101_v52 = vunpack.c.l.b16 %v3569_v24  ;;  %v2770_v29 = vadd.f32 %v9933_v33, %v2282_v63  ;;  %v4228_v55 = vunpack.c.l.b16 %v3696_v7  ;;  %v10344_v7 = vld [vmem:[%s11305_s6] ss:$0 sm:$0xff] }
 0x49c   : > { %v3441_v36 = vmax.f32 %v3185_v54, 0.0  ;;  %v5679_v48 = vmul.f32 %v10161_v45, %v5419_v50  ;;  %v7175_v2 = vperm.slane %v6434_v31, %v9607_v42  ;;  %v6929_v8 = vperm.slane %v6307_v1, %v9611_v15  ;;  %v4803_v59 = vpop.f32.mrf.mxu1  ;;  %v7869_v1 = vld [vmem:[#allocation9 + $0xb8] sm:$0xff] }
 0x49d   : > { %v4804_v40 = vadd.f32 %v10120_v27, %v4803_v59  ;;  %v4298_v38 = vpack.c.b16 %v4101_v52, %v4100_v6  ;;  %v3058_v35 = vadd.f32 %v7868_v46, %v2770_v29 }
 0x49e   : > { %v3697_v20 = vpack.c.bf16 %v3441_v36, %v3441_v36  ;;  %v7176_v19 = vsel %vm6748_vm6, %v7175_v2, %v7174_v61  ;;  %v6930_v28 = vsel %vm6752_vm7, %v6929_v8, %v6928_v3  ;;  %6161 = vadd.xlane.f32.xlu1 %v5679_v48  ;;  %5907 = vadd.xlane.f32.xlu0 %v5552_v41 }
 0x49f   : > { %v2602_v10 = vpop.f32.mrf.mxu2  ;;  %4842 = vmatmul.bf16.gmra.mxu1 %v4298_v38  ;;  %v5120_v51 = vpop.f32.mrf.mxu3  ;;  %v5293_v37 = vmax.f32 %v4804_v40, 0.0  ;;  %v3314_v61 = vmax.f32 %v3058_v35, 0.0 }
 0x4a0   : > { %v4229_v34 = vunpack.c.l.b16 %v3697_v20  ;;  %v2898_v26 = vadd.f32 %v9936_v4, %v2602_v10  ;;  %v5121_v47 = vadd.f32 %v10120_v27, %v5120_v51 }
 0x4a1   : > { %v6134_v16 = vpop.xlane.xlu2 %6133  ;;  %v5880_v18 = vpop.xlane.xlu1 %5879  ;;  %v5553_v21 = vmul.f32 %v10161_v45, %v5293_v37  ;;  %v3570_v36 = vpack.c.bf16 %v3314_v61, %v3314_v61 }
 0x4a2   : > { %v4362_v57 = vpack.c.b16 %v4229_v34, %v4228_v55  ;;  %v5420_v0 = vmax.f32 %v5121_v47, 0.0  ;;  %v6435_v3 = vadd.f32 %v9591_v60, %v6134_v16  ;;  %v6308_v43 = vadd.f32 %v9591_v60, %v5880_v18  ;;  %v2284_v24 = vpop.f32.mrf.mxu0 }
 0x4a3   : > { %v3186_v54 = vadd.f32 %v7868_v46, %v2898_v26  ;;  %v2771_v32 = vadd.f32 %v9933_v33, %v2284_v24  ;;  %v4102_v34 = vunpack.c.l.b16 %v3570_v36 }
 0x4a4   : > { %v7177_v6 = vperm.slane %v6435_v3, %v9611_v15  ;;  %v6931_v50 = vperm.slane %v6308_v43, %v9614_v22  ;;  %v4805_v27 = vpop.f32.mrf.mxu1  ;;  %5162 = vmatmul.bf16.gmra.mxu3 %v4362_v57  ;;  %v5680_v31 = vmul.f32 %v10161_v45, %v5420_v0 }
 0x4a5   : > { %v3059_v63 = vadd.f32 %v7869_v1, %v2771_v32  ;;  %v4806_v52 = vadd.f32 %v10344_v7, %v4805_v27  ;;  %v3442_v8 = vmax.f32 %v3186_v54, 0.0 }
 0x4a6   : > { %v7178_v29 = vsel %vm6752_vm7, %v7177_v6, %v7176_v19  ;;  %v6932_v48 = vsel %vm6756_vm8, %v6931_v50, %v6930_v28  ;;  %6163 = vadd.xlane.f32.xlu2 %v5680_v31  ;;  %5909 = vadd.xlane.f32.xlu1 %v5553_v21  ;;  %v7871_v50 = vld [vmem:[#allocation9 + $0xc0] sm:$0xff] }
 0x4a7   : > { %v2604_v2 = vpop.f32.mrf.mxu2  ;;  %v3315_v59 = vmax.f32 %v3059_v63, 0.0  ;;  %v5123_v20 = vpop.f32.mrf.mxu3  ;;  %v5294_v40 = vmax.f32 %v4806_v52, 0.0  ;;  %v3698_v37 = vpack.c.bf16 %v3442_v8, %v3442_v8 }
 0x4a8   : > { %v2899_v41 = vadd.f32 %v9936_v4, %v2604_v2  ;;  %v5124_v38 = vadd.f32 %v10344_v7, %v5123_v20 }
 0x4a9   : > { %v3571_v46 = vpack.c.bf16 %v3315_v59, %v3315_v59  ;;  %v6136_v10 = vpop.xlane.xlu0 %6135  ;;  %v5882_v55 = vpop.xlane.xlu2 %5881  ;;  %v5554_v43 = vmul.f32 %v10161_v45, %v5294_v40 }
 0x4aa   : > { %v3187_v35 = vadd.f32 %v7869_v1, %v2899_v41  ;;  %v5421_v26 = vmax.f32 %v5124_v38, 0.0  ;;  %v6436_v19 = vadd.f32 %v9591_v60, %v6136_v10  ;;  %v6309_v28 = vadd.f32 %v9591_v60, %v5882_v55  ;;  %v2287_v51 = vpop.f32.mrf.mxu0 }
 0x4ab   : > { %v4103_v47 = vunpack.c.l.b16 %v3571_v46  ;;  %v2772_v18 = vadd.f32 %v9933_v33, %v2287_v51  ;;  %v4230_v1 = vunpack.c.l.b16 %v3698_v37  ;;  %v7872_v51 = vld [vmem:[#allocation9 + $0xc8] sm:$0xff] }
 0x4ac   : > { %v3443_v16 = vmax.f32 %v3187_v35, 0.0  ;;  %v5681_v57 = vmul.f32 %v10161_v45, %v5421_v26  ;;  %v7179_v61 = vperm.slane %v6436_v19, %v9614_v22  ;;  %v6933_v0 = vperm.slane %v6309_v28, %v9634_v62  ;;  %v4808_v3 = vpop.f32.mrf.mxu1 }
 0x4ad   : > { %v4809_v54 = vadd.f32 %v10344_v7, %v4808_v3  ;;  %v4299_v32 = vpack.c.b16 %v4103_v47, %v4102_v34  ;;  %v3060_v27 = vadd.f32 %v7871_v50, %v2772_v18 }
 0x4ae   : > { %v3699_v24 = vpack.c.bf16 %v3443_v16, %v3443_v16  ;;  %v7180_v21 = vsel %vm6756_vm8, %v7179_v61, %v7178_v29  ;;  %v6934_v6 = vsel %vm6760_vm9, %v6933_v0, %v6932_v48  ;;  %6165 = vadd.xlane.f32.xlu0 %v5681_v57  ;;  %5911 = vadd.xlane.f32.xlu2 %v5554_v43 }
 0x4af   : > { %v2607_v31 = vpop.f32.mrf.mxu2  ;;  %4847 = vmatmul.bf16.gmra.mxu1 %v4299_v32  ;;  %v5125_v36 = vpop.f32.mrf.mxu3  ;;  %v5295_v2 = vmax.f32 %v4809_v54, 0.0  ;;  %v3316_v29 = vmax.f32 %v3060_v27, 0.0 }
 0x4b0   : > { %v4231_v63 = vunpack.c.l.b16 %v3699_v24  ;;  %v2900_v52 = vadd.f32 %v9936_v4, %v2607_v31  ;;  %v5126_v8 = vadd.f32 %v10344_v7, %v5125_v36 }
 0x4b1   : > { %v6138_v59 = vpop.xlane.xlu1 %6137  ;;  %v5884_v41 = vpop.xlane.xlu0 %5883  ;;  %v5555_v55 = vmul.f32 %v10161_v45, %v5295_v2  ;;  %v3572_v16 = vpack.c.bf16 %v3316_v29, %v3316_v29 }
 0x4b2   : > { %v4363_v20 = vpack.c.b16 %v4231_v63, %v4230_v1  ;;  %v5422_v40 = vmax.f32 %v5126_v8, 0.0  ;;  %v6437_v48 = vadd.f32 %v9591_v60, %v6138_v59  ;;  %v6310_v38 = vadd.f32 %v9591_v60, %v5884_v41  ;;  %v2289_v46 = vpop.f32.mrf.mxu0  ;;  %v10381_v41 = vld [vmem:[%s11306_s7] ss:$0 sm:$0xff] }
 0x4b3   : > { %v3188_v35 = vadd.f32 %v7871_v50, %v2900_v52  ;;  %v2773_v10 = vadd.f32 %v9933_v33, %v2289_v46  ;;  %v4104_v1 = vunpack.c.l.b16 %v3572_v16 }
 0x4b4   : > { %v7181_v34 = vperm.slane %v6437_v48, %v9634_v62  ;;  %v6935_v26 = vperm.slane %v6310_v38, %v9661_v13  ;;  %v4810_v19 = vpop.f32.mrf.mxu1  ;;  %5167 = vmatmul.bf16.gmra.mxu3 %v4363_v20  ;;  %v5682_v28 = vmul.f32 %v10161_v45, %v5422_v40 }
 0x4b5   : > { %v3061_v37 = vadd.f32 %v7872_v51, %v2773_v10  ;;  %v4811_v47 = vadd.f32 %v10344_v7, %v4810_v19  ;;  %v3444_v0 = vmax.f32 %v3188_v35, 0.0 }
 0x4b6   : > { %v7182_v18 = vsel %vm6760_vm9, %v7181_v34, %v7180_v21  ;;  %v6936_v57 = vsel %vm6764_vm10, %v6935_v26, %v6934_v6  ;;  %6167 = vadd.xlane.f32.xlu1 %v5682_v28  ;;  %5913 = vadd.xlane.f32.xlu0 %v5555_v55  ;;  %v7874_v26 = vld [vmem:[#allocation9 + $0xd0] sm:$0xff] }
 0x4b7   : > { %v2609_v61 = vpop.f32.mrf.mxu2  ;;  %v3317_v3 = vmax.f32 %v3061_v37, 0.0  ;;  %v5128_v24 = vpop.f32.mrf.mxu3  ;;  %v5296_v54 = vmax.f32 %v4811_v47, 0.0  ;;  %v3700_v36 = vpack.c.bf16 %v3444_v0, %v3444_v0 }
 0x4b8   : > { %v2901_v43 = vadd.f32 %v9936_v4, %v2609_v61  ;;  %v5129_v45 = vadd.f32 %v10344_v7, %v5128_v24 }
 0x4b9   : > { %v3573_v32 = vpack.c.bf16 %v3317_v3, %v3317_v3  ;;  %v6140_v27 = vpop.xlane.xlu2 %6139  ;;  %v5886_v31 = vpop.xlane.xlu1 %5885  ;;  %v5556_v38 = vmul.f32 %v10381_v41, %v5296_v54 }
 0x4ba   : > { %v3189_v50 = vadd.f32 %v7872_v51, %v2901_v43  ;;  %v5423_v63 = vmax.f32 %v5129_v45, 0.0  ;;  %v6438_v21 = vadd.f32 %v9591_v60, %v6140_v27  ;;  %v6311_v6 = vadd.f32 %v9591_v60, %v5886_v31  ;;  %v2292_v52 = vpop.f32.mrf.mxu0  ;;  %v11502_v31 = vld [vmem:[#allocation69_spill] sm:$0xff] }
 0x4bb   : > { %v4105_v2 = vunpack.c.l.b16 %v3573_v32  ;;  %v2774_v59 = vadd.f32 %v9933_v33, %v2292_v52  ;;  %v4232_v51 = vunpack.c.l.b16 %v3700_v36 }
 0x4bc   : > { %v3445_v8 = vmax.f32 %v3189_v50, 0.0  ;;  %v5683_v20 = vmul.f32 %v10381_v41, %v5423_v63  ;;  %v7183_v29 = vperm.slane %v6438_v21, %v9661_v13  ;;  %v6937_v40 = vperm.slane %v6311_v6, %v9738_v25  ;;  %v4813_v48 = vpop.f32.mrf.mxu1  ;;  %v11501_v50 = vld [vmem:[#allocation67_spill] sm:$0xff] }
 0x4bd   : > { %v4814_v35 = vadd.f32 %v10344_v7, %v4813_v48  ;;  %v4300_v10 = vpack.c.b16 %v4105_v2, %v4104_v1  ;;  %v3062_v19 = vadd.f32 %v7874_v26, %v2774_v59  ;;  %v10396_v27 = vadd.f32 %v9591_v60, %v11501_v50  ;;  %v11503_v59 = vld [vmem:[#allocation71_spill] sm:$0xff] }
 0x4be   : > { %v3701_v46 = vpack.c.bf16 %v3445_v8, %v3445_v8  ;;  %v7184_v55 = vsel %vm6764_vm10, %v7183_v29, %v7182_v18  ;;  %v6938_v34 = vsel %vm6768_vm11, %v6937_v40, %v6936_v57  ;;  %6169 = vadd.xlane.f32.xlu2 %v5683_v20  ;;  %5915 = vadd.xlane.f32.xlu1 %v5556_v38  ;;  %v7875_v29 = vld [vmem:[#allocation9 + $0xd8] sm:$0xff] }
 0x4bf   : > { %v2612_v28 = vpop.f32.mrf.mxu2  ;;  %4852 = vmatmul.bf16.gmra.mxu1 %v4300_v10  ;;  %v5130_v16 = vpop.f32.mrf.mxu3  ;;  %v5297_v61 = vmax.f32 %v4814_v35, 0.0  ;;  %v3318_v18 = vmax.f32 %v3062_v19, 0.0  ;;  %v10400_v1 = vadd.f32 %v9591_v60, %v11502_v31  ;;  %v6241_v20 = vadd.f32 %v9591_v60, %v11503_v59 }
 0x4c0   : > { %v4233_v37 = vunpack.c.l.b16 %v3701_v46  ;;  %v2902_v47 = vadd.f32 %v9936_v4, %v2612_v28  ;;  %v5131_v0 = vadd.f32 %v10344_v7, %v5130_v16 }
 0x4c1   : > { %v6142_v3 = vpop.xlane.xlu0 %6141  ;;  %v5888_v43 = vpop.xlane.xlu2 %5887  ;;  %v5557_v6 = vmul.f32 %v10381_v41, %v5297_v61  ;;  %v3574_v38 = vpack.c.bf16 %v3318_v18, %v3318_v18 }
 0x4c2   : > { %v4364_v24 = vpack.c.b16 %v4233_v37, %v4232_v51  ;;  %v5424_v54 = vmax.f32 %v5131_v0, 0.0  ;;  %v6439_v57 = vadd.f32 %v9591_v60, %v6142_v3  ;;  %v6312_v45 = vadd.f32 %v9591_v60, %v5888_v43  ;;  %v2294_v32 = vpop.f32.mrf.mxu0 }
 0x4c3   : > { %v3190_v63 = vadd.f32 %v7874_v26, %v2902_v47  ;;  %v2775_v21 = vadd.f32 %v9933_v33, %v2294_v32  ;;  %v6798_v37 = vperm.slane %v10396_v27, %v9586_v9  ;;  %v6799_v47 = vperm.slane %v10400_v1, %v9594_v49 }
 0x4c4   : > { %v7185_v52 = vperm.slane %v6439_v57, %v9738_v25  ;;  %v6939_v36 = vperm.slane %v6312_v45, %v9797_v5  ;;  %v4815_v2 = vpop.f32.mrf.mxu1  ;;  %5172 = vmatmul.bf16.gmra.mxu3 %v4364_v24  ;;  %v5684_v8 = vmul.f32 %v10381_v41, %v5424_v54  ;;  %v4106_v54 = vunpack.c.l.b16 %v3574_v38 }
 0x4c5   : > { %v3063_v40 = vadd.f32 %v7875_v29, %v2775_v21  ;;  %v4816_v48 = vadd.f32 %v10344_v7, %v4815_v2  ;;  %v3446_v26 = vmax.f32 %v3190_v63, 0.0 }
 0x4c6   : > { %v7186_v46 = vsel %vm6768_vm11, %v7185_v52, %v7184_v55  ;;  %v6940_v35 = vsel %vm11352_vm12, %v6939_v36, %v6938_v34  ;;  %6171 = vadd.xlane.f32.xlu0 %v5684_v8  ;;  %5917 = vadd.xlane.f32.xlu2 %v5557_v6  ;;  %v6801_v55 = vperm.slane %v6241_v20, %v9600_v39  ;;  %v11504_v34 = vld [vmem:[#allocation73_spill] sm:$0xff]  ;;  %v11505_v8 = vld [vmem:[#allocation75_spill] sm:$0xff] }
 0x4c7   : > { %v2614_v10 = vpop.f32.mrf.mxu2  ;;  %v3319_v19 = vmax.f32 %v3063_v40, 0.0  ;;  %v5133_v51 = vpop.f32.mrf.mxu3  ;;  %v5298_v16 = vmax.f32 %v4816_v48, 0.0  ;;  %v6242_v0 = vadd.f32 %v9591_v60, %v11504_v34  ;;  %v3702_v27 = vpack.c.bf16 %v3446_v26, %v3446_v26 }
 0x4c8   : > { %v2903_v28 = vadd.f32 %v9936_v4, %v2614_v10  ;;  %v5134_v61 = vadd.f32 %v10344_v7, %v5133_v51  ;;  %v6243_v59 = vadd.f32 %v9591_v60, %v11505_v8  ;;  %v7876_v10 = vld [vmem:[#allocation9 + $0xe0] sm:$0xff]  ;;  %v6800_v34 = vsel %vm6740_vm4, %v6799_v47, %v6798_v37  ;;  %v11506_v37 = vld [vmem:[#allocation77_spill] sm:$0xff] }
 0x4c9   : > { %v3575_v3 = vpack.c.bf16 %v3319_v19, %v3319_v19  ;;  %v6144_v24 = vpop.xlane.xlu1 %6143  ;;  %v5890_v18 = vpop.xlane.xlu0 %5889  ;;  %v5558_v21 = vmul.f32 %v10381_v41, %v5298_v16  ;;  %v6244_v47 = vadd.f32 %v9591_v60, %v11506_v37 }
 0x4ca   : > { %v3191_v43 = vadd.f32 %v7875_v29, %v2903_v28  ;;  %v5425_v57 = vmax.f32 %v5134_v61, 0.0  ;;  %v6440_v45 = vadd.f32 %v9591_v60, %v6144_v24  ;;  %v6313_v32 = vadd.f32 %v9591_v60, %v5890_v18  ;;  %v2297_v50 = vpop.f32.mrf.mxu0 }
 0x4cb   : > { %v4107_v31 = vunpack.c.l.b16 %v3575_v3  ;;  %v2776_v63 = vadd.f32 %v9933_v33, %v2297_v50  ;;  %v4234_v28 = vunpack.c.l.b16 %v3702_v27  ;;  %v6805_v24 = vperm.slane %v6243_v59, %v9611_v15  ;;  %v11508_v59 = vld [vmem:[#allocation81_spill] sm:$0xff] }
 0x4cc   : > { %v3447_v1 = vmax.f32 %v3191_v43, 0.0  ;;  %v5685_v6 = vmul.f32 %v10381_v41, %v5425_v57  ;;  %v7187_v52 = vperm.slane %v6440_v45, %v9797_v5  ;;  %v6941_v36 = vperm.slane %v6313_v32, %v9805_v58  ;;  %v4818_v2 = vpop.f32.mrf.mxu1 }
 0x4cd   : > { %v4819_v29 = vadd.f32 %v10344_v7, %v4818_v2  ;;  %v4301_v40 = vpack.c.b16 %v4107_v31, %v4106_v54  ;;  %v3064_v26 = vadd.f32 %v7876_v10, %v2776_v63 }
 0x4ce   : > { %v3703_v20 = vpack.c.bf16 %v3447_v1, %v3447_v1  ;;  %v7188_v48 = vsel %vm11352_vm12, %v7187_v52, %v7186_v46  ;;  %v6942_v38 = vsel %vm11351_vm13, %v6941_v36, %v6940_v35  ;;  %6173 = vadd.xlane.f32.xlu1 %v5685_v6  ;;  %5919 = vadd.xlane.f32.xlu0 %v5558_v21  ;;  %v11507_v1 = vld [vmem:[#allocation79_spill] sm:$0xff] }
 0x4cf   : > { %v2617_v19 = vpop.f32.mrf.mxu2  ;;  %4857 = vmatmul.bf16.gmra.mxu1 %v4301_v40  ;;  %v5135_v61 = vpop.f32.mrf.mxu3  ;;  %v5299_v3 = vmax.f32 %v4819_v29, 0.0  ;;  %v6802_v46 = vsel %vm6744_vm5, %v6801_v55, %v6800_v34  ;;  %v6803_v35 = vperm.slane %v6242_v0, %v9607_v42  ;;  %v3320_v45 = vmax.f32 %v3064_v26, 0.0  ;;  %v7877_v29 = vld [vmem:[#allocation9 + $0xe8] sm:$0xff] }
 0x4d0   : > { %v4235_v51 = vunpack.c.l.b16 %v3703_v20  ;;  %v2904_v16 = vadd.f32 %v9936_v4, %v2617_v19  ;;  %v5136_v43 = vadd.f32 %v10344_v7, %v5135_v61  ;;  %v10445_v55 = vadd.f32 %v9591_v60, %v11507_v1 }
 0x4d1   : > { %v6146_v18 = vpop.xlane.xlu2 %6145  ;;  %v5892_v54 = vpop.xlane.xlu1 %5891  ;;  %v5559_v21 = vmul.f32 %v10381_v41, %v5299_v3  ;;  %v6804_v8 = vsel %vm6748_vm6, %v6803_v35, %v6802_v46  ;;  %v6246_v20 = vadd.f32 %v9591_v60, %v11508_v59  ;;  %v3576_v26 = vpack.c.bf16 %v3320_v45, %v3320_v45  ;;  %v11510_v59 = vld [vmem:[#allocation85_spill] sm:$0xff] }
 0x4d2   : > { %v4365_v57 = vpack.c.b16 %v4235_v51, %v4234_v28  ;;  %v5426_v32 = vmax.f32 %v5136_v43, 0.0  ;;  %v6441_v50 = vadd.f32 %v9591_v60, %v6146_v18  ;;  %v6314_v27 = vadd.f32 %v9591_v60, %v5892_v54  ;;  %v2299_v31 = vpop.f32.mrf.mxu0  ;;  %v11509_v54 = vld [vmem:[#allocation83_spill] sm:$0xff] }
 0x4d3   : > { %v3192_v0 = vadd.f32 %v7876_v10, %v2904_v16  ;;  %v2777_v63 = vadd.f32 %v9933_v33, %v2299_v31  ;;  %v6806_v16 = vsel %vm6752_vm7, %v6805_v24, %v6804_v8  ;;  %v6807_v46 = vperm.slane %v6244_v47, %v9614_v22 }
 0x4d4   : > { %v5686_v6 = vmul.f32 %v10381_v41, %v5426_v32  ;;  %v7189_v52 = vperm.slane %v6441_v50, %v9805_v58  ;;  %v6943_v36 = vperm.slane %v6314_v27, %v9850_v17  ;;  %v4820_v2 = vpop.f32.mrf.mxu1  ;;  %5177 = vmatmul.bf16.gmra.mxu3 %v4365_v57  ;;  %v6809_v35 = vperm.slane %v10445_v55, %v9634_v62 }
 0x4d5   : > { %v3065_v40 = vadd.f32 %v7877_v29, %v2777_v63  ;;  %v4821_v10 = vadd.f32 %v10344_v7, %v4820_v2  ;;  %v3448_v61 = vmax.f32 %v3192_v0, 0.0  ;;  %v6247_v57 = vadd.f32 %v9591_v60, %v11509_v54 }
 0x4d6   : > { %v7190_v19 = vsel %vm11351_vm13, %v7189_v52, %v7188_v48  ;;  %v6944_v28 = vsel %vm11349_vm14, %v6943_v36, %v6942_v38  ;;  %6175 = vadd.xlane.f32.xlu2 %v5686_v6  ;;  %5921 = vadd.xlane.f32.xlu1 %v5559_v21  ;;  %v6811_v38 = vperm.slane %v6246_v20, %v9661_v13  ;;  %v4108_v27 = vunpack.c.l.b16 %v3576_v26 }
 0x4d7   : > { %v2619_v51 = vpop.f32.mrf.mxu2  ;;  %v3321_v34 = vmax.f32 %v3065_v40, 0.0  ;;  %v5138_v43 = vpop.f32.mrf.mxu3  ;;  %v5300_v18 = vmax.f32 %v4821_v10, 0.0  ;;  %v3704_v55 = vpack.c.bf16 %v3448_v61, %v3448_v61  ;;  %v6248_v20 = vadd.f32 %v9591_v60, %v11510_v59 }
 0x4d8   : > { %v2905_v3 = vadd.f32 %v9936_v4, %v2619_v51  ;;  %v5139_v48 = vadd.f32 %v10344_v7, %v5138_v43  ;;  %v6808_v26 = vsel %vm6756_vm8, %v6807_v46, %v6806_v16 }
 0x4d9   : > { %v3577_v45 = vpack.c.bf16 %v3321_v34, %v3321_v34  ;;  %v6148_v32 = vpop.xlane.xlu0 %6147  ;;  %v5894_v50 = vpop.xlane.xlu2 %5893  ;;  %v5560_v6 = vmul.f32 %v10381_v41, %v5300_v18  ;;  %v7878_v18 = vld [vmem:[#allocation9 + $0xf0] sm:$0xff]  ;;  %v6815_v46 = vperm.slane %v6248_v20, %v9797_v5 }
 0x4da   : > { %v3193_v24 = vadd.f32 %v7877_v29, %v2905_v3  ;;  %v5427_v31 = vmax.f32 %v5139_v48, 0.0  ;;  %v6442_v37 = vadd.f32 %v9591_v60, %v6148_v32  ;;  %v6315_v47 = vadd.f32 %v9591_v60, %v5894_v50  ;;  %v2302_v1 = vpop.f32.mrf.mxu0 }
 0x4db   : > { %v4109_v0 = vunpack.c.l.b16 %v3577_v45  ;;  %v2778_v21 = vadd.f32 %v9933_v33, %v2302_v1  ;;  %v4236_v3 = vunpack.c.l.b16 %v3704_v55 }
 0x4dc   : > { %v3449_v63 = vmax.f32 %v3193_v24, 0.0  ;;  %v5687_v52 = vmul.f32 %v10381_v41, %v5427_v31  ;;  %v7191_v36 = vperm.slane %v6442_v37, %v9850_v17  ;;  %v6945_v2 = vperm.slane %v6315_v47, %v9858_v44  ;;  %v4823_v8 = vpop.f32.mrf.mxu1  ;;  %v11511_v37 = vld [vmem:[#allocation87_spill] sm:$0xff] }
 0x4dd   : > { %v4824_v40 = vadd.f32 %v10344_v7, %v4823_v8  ;;  %v4302_v10 = vpack.c.b16 %v4109_v0, %v4108_v27  ;;  %v3066_v48 = vadd.f32 %v7878_v18, %v2778_v21  ;;  %v6810_v24 = vsel %vm6760_vm9, %v6809_v35, %v6808_v26 }
 0x4de   : > { %v3705_v29 = vpack.c.bf16 %v3449_v63, %v3449_v63  ;;  %v7192_v51 = vsel %vm11349_vm14, %v7191_v36, %v7190_v19  ;;  %v6946_v61 = vsel %vm11350_vm15, %v6945_v2, %v6944_v28  ;;  %6177 = vadd.xlane.f32.xlu0 %v5687_v52  ;;  %5923 = vadd.xlane.f32.xlu2 %v5560_v6  ;;  %v11512_v63 = vld [vmem:[#allocation89_spill] sm:$0xff] }
 0x4df   : > { %v2622_v34 = vpop.f32.mrf.mxu2  ;;  %4862 = vmatmul.bf16.gmra.mxu1 %v4302_v10  ;;  %v5140_v45 = vpop.f32.mrf.mxu3  ;;  %v5301_v32 = vmax.f32 %v4824_v40, 0.0  ;;  %v6812_v19 = vsel %vm6764_vm10, %v6811_v38, %v6810_v24  ;;  %v6813_v28 = vperm.slane %v6247_v57, %v9738_v25  ;;  %v10488_v47 = vadd.f32 %v9591_v60, %v11511_v37  ;;  %v7879_v10 = vld [vmem:[#allocation9 + $0xf8] sm:$0xff] }
 0x4e0   : > { %v4237_v43 = vunpack.c.l.b16 %v3705_v29  ;;  %v2906_v54 = vadd.f32 %v9936_v4, %v2622_v34  ;;  %v5141_v16 = vadd.f32 %v10344_v7, %v5140_v45  ;;  %v10494_v38 = vadd.f32 %v9591_v60, %v11512_v63  ;;  %v11513_v29 = vld [vmem:[#allocation91_spill] sm:$0xff] }
 0x4e1   : > { %v6150_v50 = vpop.xlane.xlu1 %6149  ;;  %v5896_v27 = vpop.xlane.xlu0 %5895  ;;  %v3322_v57 = vmax.f32 %v3066_v48, 0.0  ;;  %v5561_v52 = vmul.f32 %v10381_v41, %v5301_v32  ;;  %v6814_v20 = vsel %vm6768_vm11, %v6813_v28, %v6812_v19  ;;  %v6251_v40 = vadd.f32 %v9591_v60, %v11513_v29 }
 0x4e2   : > { %v4366_v31 = vpack.c.b16 %v4237_v43, %v4236_v3  ;;  %v5428_v1 = vmax.f32 %v5141_v16, 0.0  ;;  %v6443_v55 = vadd.f32 %v9591_v60, %v6150_v50  ;;  %v6316_v35 = vadd.f32 %v9591_v60, %v5896_v27  ;;  %v2304_v0 = vpop.f32.mrf.mxu0 }
 0x4e3   : > { %v3194_v21 = vadd.f32 %v7878_v18, %v2906_v54  ;;  %v2779_v6 = vadd.f32 %v9933_v33, %v2304_v0  ;;  %v6816_v33 = vsel %vm11352_vm12, %v6815_v46, %v6814_v20  ;;  %v3578_v48 = vpack.c.bf16 %v3322_v57, %v3322_v57  ;;  %v11514_v46 = vld [vmem:[#allocation93_spill] sm:$0xff] }
 0x4e4   : > { %v5688_v36 = vmul.f32 %v10381_v41, %v5428_v1  ;;  %v7193_v2 = vperm.slane %v6443_v55, %v9858_v44  ;;  %v6947_v8 = vperm.slane %v6316_v35, %v9903_v56  ;;  %v4825_v59 = vpop.f32.mrf.mxu1  ;;  %5182 = vmatmul.bf16.gmra.mxu3 %v4366_v31  ;;  %v6817_v16 = vperm.slane %v10488_v47, %v9805_v58 }
 0x4e5   : > { %v3067_v26 = vadd.f32 %v7879_v10, %v2779_v6  ;;  %v4826_v34 = vadd.f32 %v10344_v7, %v4825_v59  ;;  %v3450_v54 = vmax.f32 %v3194_v21, 0.0  ;;  %v6819_v19 = vperm.slane %v10494_v38, %v9850_v17  ;;  %v11516_v59 = vld [vmem:[#allocation97_spill] sm:$0xff] }
 0x4e6   : > { %v7194_v3 = vsel %vm11350_vm15, %v7193_v2, %v7192_v51  ;;  %v6948_v43 = vsel %vm11347_vm0, %v6947_v8, %v6946_v61  ;;  %6179 = vadd.xlane.f32.xlu1 %v5688_v36  ;;  %5925 = vadd.xlane.f32.xlu0 %v5561_v52  ;;  %v6821_v61 = vperm.slane %v6251_v40, %v9858_v44  ;;  %v4110_v63 = vunpack.c.l.b16 %v3578_v48 }
 0x4e7   : > { %v2624_v18 = vpop.f32.mrf.mxu2  ;;  %v3323_v45 = vmax.f32 %v3067_v26, 0.0  ;;  %v5143_v32 = vpop.f32.mrf.mxu3  ;;  %v5302_v28 = vmax.f32 %v4826_v34, 0.0  ;;  %v6252_v50 = vadd.f32 %v9591_v60, %v11514_v46  ;;  %v3706_v38 = vpack.c.bf16 %v3450_v54, %v3450_v54 }
 0x4e8   : > { %v2907_v24 = vadd.f32 %v9936_v4, %v2624_v18  ;;  %v5144_v51 = vadd.f32 %v10344_v7, %v5143_v32  ;;  %v11515_v4 = vld [vmem:[#allocation95_spill] sm:$0xff]  ;;  %v6254_v20 = vadd.f32 %v9591_v60, %v11516_v59  ;;  %v6818_v48 = vsel %vm11351_vm13, %v6817_v16, %v6816_v33 }
 0x4e9   : > { %v3579_v27 = vpack.c.bf16 %v3323_v45, %v3323_v45  ;;  %v6152_v37 = vpop.xlane.xlu2 %6151  ;;  %v5898_v1 = vpop.xlane.xlu1 %5897  ;;  %v6253_v55 = vadd.f32 %v9591_v60, %v11515_v4  ;;  %v5562_v6 = vmul.f32 %v10381_v41, %v5302_v28  ;;  %v6823_v26 = vperm.slane %v6252_v50, %v9903_v56 }
 0x4ea   : > { %v3195_v31 = vadd.f32 %v7879_v10, %v2907_v24  ;;  %v5429_v35 = vmax.f32 %v5144_v51, 0.0  ;;  %v6444_v47 = vadd.f32 %v9591_v60, %v6152_v37  ;;  %v6317_v0 = vadd.f32 %v9591_v60, %v5898_v1 }
 0x4eb   : > { %v4111_v57 = vunpack.c.l.b16 %v3579_v27  ;;  %v6825_v54 = vperm.slane %v6253_v55, %v9909_v23  ;;  %v4238_v45 = vunpack.c.l.b16 %v3706_v38  ;;  %v6820_v28 = vsel %vm11349_vm14, %v6819_v19, %v6818_v48 }
 0x4ec   : > { %v3451_v21 = vmax.f32 %v3195_v31, 0.0  ;;  %v5689_v52 = vmul.f32 %v10381_v41, %v5429_v35  ;;  %v7195_v36 = vperm.slane %v6444_v47, %v9903_v56  ;;  %v6949_v2 = vperm.slane %v6317_v0, %v9909_v23  ;;  %v4828_v8 = vpop.f32.mrf.mxu1 }
 0x4ed   : > { %v4829_v40 = vadd.f32 %v10344_v7, %v4828_v8  ;;  %v4303_v10 = vpack.c.b16 %v4111_v57, %v4110_v63  ;;  %v6822_v50 = vsel %vm11350_vm15, %v6821_v61, %v6820_v28 }
 0x4ee   : > { %v3707_v29 = vpack.c.bf16 %v3451_v21, %v3451_v21  ;;  %v7196_v34 = vsel %vm11347_vm0, %v7195_v36, %v7194_v3  ;;  %v6950_v18 = vsel %vm6792_vm3, %v6949_v2, %v6948_v43  ;;  %6181 = vadd.xlane.f32.xlu2 %v5689_v52  ;;  %5927 = vadd.xlane.f32.xlu1 %v5562_v6 }
 0x4ef   : > { %4867 = vmatmul.bf16.gmra.mxu1 %v4303_v10  ;;  %v5145_v32 = vpop.f32.mrf.mxu3  ;;  %v5303_v51 = vmax.f32 %v4829_v40, 0.0  ;;  %v6827_v3 = vperm.slane %v6254_v20, %v9956_v12  ;;  %v6824_v33 = vsel %vm11347_vm0, %v6823_v26, %v6822_v50  ;;  %vm11517_vm0 = vcmask 1042434  }
 0x4f0   : > { %v4239_v24 = vunpack.c.l.b16 %v3707_v29  ;;  %v5146_v46 = vadd.f32 %v10344_v7, %v5145_v32  ;;  %v6826_v4 = vsel %vm6792_vm3, %v6825_v54, %v6824_v33 }
 0x4f1   : > { %v6154_v43 = vpop.xlane.xlu0 %6153  ;;  %v5900_v27 = vpop.xlane.xlu2 %5899  ;;  %v5563_v19 = vmul.f32 %v10381_v41, %v5303_v51  ;;  %v6828_v0 = vsel %vm6796_vm1, %v6827_v3, %v6826_v4 }
 0x4f2   : > { %v4367_v31 = vpack.c.b16 %v4239_v24, %v4238_v45  ;;  %v5430_v16 = vmax.f32 %v5146_v46, 0.0  ;;  %v6445_v37 = vadd.f32 %v9591_v60, %v6154_v43  ;;  %v6318_v1 = vadd.f32 %v9591_v60, %v5900_v27 }
 0x4f3   : > { %v7274_v38 = vsel %vm11348_vm2, %v9976_v14, %v6828_v0 }
 0x4f4   : > { %v5690_v55 = vmul.f32 %v10381_v41, %v5430_v16  ;;  %v7197_v61 = vperm.slane %v6445_v37, %v9909_v23  ;;  %v6951_v35 = vperm.slane %v6318_v1, %v9956_v12  ;;  %v4830_v47 = vpop.f32.mrf.mxu1  ;;  %5187 = vmatmul.bf16.gmra.mxu3 %v4367_v31 }
 0x4f5   : > { %v4831_v63 = vadd.f32 %v10344_v7, %v4830_v47 }
 0x4f6   : > { %v7198_v57 = vsel %vm6792_vm3, %v7197_v61, %v7196_v34  ;;  %v6952_v21 = vsel %vm6796_vm1, %v6951_v35, %v6950_v18  ;;  %6183 = vadd.xlane.f32.xlu1 %v5690_v55  ;;  %5929 = vadd.xlane.f32.xlu2 %v5563_v19 }
 0x4f7   : > { %v10552_v6 = vsel %vm11517_vm0, %v6952_v21, %v7274_v38  ;;  %v5304_v52 = vmax.f32 %v4831_v63, 0.0  ;;  %v5148_v36 = vpop.f32.mrf.mxu3  ;;  %vm11550_vm0 = vcmask 917312  }
 0x4f8   : > { %v5149_v8 = vadd.f32 %v10344_v7, %v5148_v36  ;;  %vm11553_vm2 = vmmov %vm11550_vm0 }
 0x4f9   : > { %v5564_v2 = vmul.f32 %v10381_v41, %v5304_v52  ;;  %v6156_v59 = vpop.xlane.xlu1 %6155  ;;  %v5902_v10 = vpop.xlane.xlu0 %5901 }
 0x4fa   : > { %v6446_v20 = vadd.f32 %v9591_v60, %v6156_v59  ;;  %v5431_v40 = vmax.f32 %v5149_v8, 0.0  ;;  %v6319_v54 = vadd.f32 %v9591_v60, %v5902_v10 }
 0x4fb   : > { %5931 = vadd.xlane.f32.xlu0 %v5564_v2 }
 0x4fc   : > { %v7199_v14 = vperm.slane %v6446_v20, %v9956_v12  ;;  %v4833_v29 = vpop.f32.mrf.mxu1  ;;  %v5691_v45 = vmul.f32 %v10381_v41, %v5431_v40  ;;  %v6953_v46 = vperm.slane %v6319_v54, %v9586_v9 }
 0x4fd   : > { %v4834_v26 = vadd.f32 %v10344_v7, %v4833_v29 }
 0x4fe   : > { %v10560_v34 = vsel %vm6796_vm1, %v7199_v14, %v7198_v57 }
 0x4ff   : > { %11518 = vst [vmem:[#allocation32_spill] sm:$0xff] %v10560_v34  ;;  %v5305_v18 = vmax.f32 %v4834_v26, 0.0  ;;  %v10562_v48 = vpop.f32.mrf.mxu3 }
 0x501   : > { %v5565_v24 = vmul.f32 %v10381_v41, %v5305_v18  ;;  %v6158_v32 = vpop.xlane.xlu2 %6157  ;;  %v5904_v28 = vpop.xlane.xlu1 %5903 }
 0x502   : > { %v6320_v51 = vadd.f32 %v9591_v60, %v5904_v28  ;;  %v6447_v16 = vadd.f32 %v9591_v60, %v6158_v32 }
 0x503   : > { %6185 = vadd.xlane.f32.xlu0 %v5691_v45  ;;  %5933 = vadd.xlane.f32.xlu1 %v5565_v24 }
 0x504   : > { %v6954_v50 = vperm.slane %v6320_v51, %v9594_v49  ;;  %v4835_v3 = vpop.f32.mrf.mxu1  ;;  %v7201_v35 = vperm.slane %v6447_v16, %v9586_v9 }
 0x505   : > { %v4836_v43 = vadd.f32 %v10344_v7, %v4835_v3 }
 0x506   : > { %v6955_v27 = vsel %vm6740_vm4, %v6954_v50, %v6953_v46 }
 0x507   : > { %v5306_v31 = vmax.f32 %v4836_v43, 0.0  ;;  %v5153_v33 = vpop.f32.mrf.mxu3 }
 0x508   : > { %v5154_v1 = vadd.f32 %v10344_v7, %v5153_v33 }
 0x509   : > { %v5566_v37 = vmul.f32 %v10381_v41, %v5306_v31  ;;  %v6160_v4 = vpop.xlane.xlu0 %6159  ;;  %v5906_v19 = vpop.xlane.xlu2 %5905 }
 0x50a   : > { %v6448_v55 = vadd.f32 %v9591_v60, %v6160_v4  ;;  %v6321_v61 = vadd.f32 %v9591_v60, %v5906_v19  ;;  %v5433_v38 = vmax.f32 %v5154_v1, 0.0 }
 0x50b   : > { %5935 = vadd.xlane.f32.xlu2 %v5566_v37 }
 0x50c   : > { %v7202_v47 = vperm.slane %v6448_v55, %v9594_v49  ;;  %v6956_v0 = vperm.slane %v6321_v61, %v9600_v39  ;;  %v4838_v63 = vpop.f32.mrf.mxu1  ;;  %v5693_v8 = vmul.f32 %v10381_v41, %v5433_v38 }
 0x50d   : > { %v4839_v57 = vadd.f32 %v10344_v7, %v4838_v63 }
 0x50e   : > { %v7203_v21 = vsel %vm6740_vm4, %v7202_v47, %v7201_v35  ;;  %v6957_v52 = vsel %vm6744_vm5, %v6956_v0, %v6955_v27 }
 0x50f   : > { %v5307_v36 = vmax.f32 %v4839_v57, 0.0  ;;  %v5155_v2 = vpop.f32.mrf.mxu3 }
 0x510   : > { %v5156_v20 = vadd.f32 %v10344_v7, %v5155_v2 }
 0x511   : > { %v5567_v59 = vmul.f32 %v10381_v41, %v5307_v36  ;;  %v6162_v14 = vpop.xlane.xlu1 %6161  ;;  %v5908_v29 = vpop.xlane.xlu0 %5907  ;;  %v11519_v36 = vld [vmem:[#allocation41_spill] sm:$0xff] }
 0x512   : > { %v6449_v40 = vadd.f32 %v9591_v60, %v6162_v14  ;;  %v6322_v10 = vadd.f32 %v9591_v60, %v5908_v29  ;;  %v5434_v45 = vmax.f32 %v5156_v20, 0.0  ;;  %v6224_v2 = vadd.f32 %v9591_v60, %v11519_v36  ;;  %v11520_v20 = vld [vmem:[#allocation39_spill] sm:$0xff] }
 0x513   : > { %6189 = vadd.xlane.f32.xlu2 %v5693_v8  ;;  %5937 = vadd.xlane.f32.xlu0 %v5567_v59  ;;  %v6225_v14 = vadd.f32 %v9591_v60, %v11520_v20  ;;  %v11521_v29 = vld [vmem:[#allocation43_spill] sm:$0xff] }
 0x514   : > { %v7204_v26 = vperm.slane %v6449_v40, %v9600_v39  ;;  %v6958_v18 = vperm.slane %v6322_v10, %v9607_v42  ;;  %v4840_v54 = vpop.f32.mrf.mxu1  ;;  %v5694_v50 = vmul.f32 %v10381_v41, %v5434_v45  ;;  %v6352_v40 = vadd.f32 %v9591_v60, %v11521_v29  ;;  %v11522_v10 = vld [vmem:[#allocation26_spill] sm:$0xff] }
 0x515   : > { %v4841_v24 = vadd.f32 %v10344_v7, %v4840_v54 }
 0x516   : > { %v7205_v32 = vsel %vm6744_vm5, %v7204_v26, %v7203_v21  ;;  %v6959_v28 = vsel %vm6748_vm6, %v6958_v18, %v6957_v52  ;;  %v6223_v26 = vadd.f32 %v9591_v60, %v11522_v10  ;;  %v11523_v18 = vld [vmem:[#allocation27_spill] sm:$0xff] }
 0x517   : > { %v5308_v51 = vmax.f32 %v4841_v24, 0.0  ;;  %v5158_v46 = vpop.f32.mrf.mxu3  ;;  %v6351_v54 = vadd.f32 %v9591_v60, %v11523_v18 }
 0x518   : > { %v5159_v43 = vadd.f32 %v10344_v7, %v5158_v46 }
 0x519   : > { %v5568_v3 = vmul.f32 %v10381_v41, %v5308_v51  ;;  %v6164_v27 = vpop.xlane.xlu2 %6163  ;;  %v5910_v31 = vpop.xlane.xlu1 %5909 }
 0x51a   : > { %v6450_v33 = vadd.f32 %v9591_v60, %v6164_v27  ;;  %v6323_v16 = vadd.f32 %v9591_v60, %v5910_v31  ;;  %v5435_v19 = vmax.f32 %v5159_v43, 0.0  ;;  %v11525_v43 = vld [vmem:[#allocation45_spill] sm:$0xff] }
 0x51b   : > { %5939 = vadd.xlane.f32.xlu1 %v5568_v3  ;;  %6191 = vadd.xlane.f32.xlu0 %v5694_v50  ;;  %v6739_v3 = vperm.slane %v6224_v2, %v9594_v49  ;;  %v6353_v27 = vadd.f32 %v9591_v60, %v11525_v43 }
 0x51c   : > { %v7206_v37 = vperm.slane %v6450_v33, %v9607_v42  ;;  %v6960_v1 = vperm.slane %v6323_v16, %v9611_v15  ;;  %v4843_v4 = vpop.f32.mrf.mxu1  ;;  %v5695_v63 = vmul.f32 %v10381_v41, %v5435_v19  ;;  %v6743_v16 = vperm.slane %v6225_v14, %v9600_v39 }
 0x51d   : > { %v4844_v55 = vadd.f32 %v10344_v7, %v4843_v4  ;;  %v7018_v20 = vperm.slane %v6353_v27, %v9600_v39  ;;  %v11530_v27 = vld [vmem:[#allocation46_spill] sm:$0xff] }
 0x51e   : > { %v7207_v61 = vsel %vm6748_vm6, %v7206_v37, %v7205_v32  ;;  %v6961_v35 = vsel %vm6752_vm7, %v6960_v1, %v6959_v28  ;;  %v11524_v28 = vld [vmem:[#allocation42_spill] sm:$0xff]  ;;  %v7016_v37 = vperm.slane %v6352_v40, %v9594_v49  ;;  %v11526_v1 = vld [vmem:[#allocation44_spill] sm:$0xff] }
 0x51f   : > { %v5309_v47 = vmax.f32 %v4844_v55, 0.0  ;;  %v5160_v0 = vpop.f32.mrf.mxu3  ;;  %v6226_v51 = vadd.f32 %v9591_v60, %v11524_v28  ;;  %v6354_v4 = vadd.f32 %v9591_v60, %v11526_v1 }
 0x520   : > { %v5161_v57 = vadd.f32 %v10344_v7, %v5160_v0  ;;  %v7015_v0 = vperm.slane %v6351_v54, %v9586_v9 }
 0x521   : > { %v5569_v38 = vmul.f32 %v10381_v41, %v5309_v47  ;;  %v6166_v21 = vpop.xlane.xlu0 %6165  ;;  %v5912_v52 = vpop.xlane.xlu2 %5911  ;;  %v6737_v47 = vperm.slane %v6223_v26, %v9586_v9  ;;  %v7020_v26 = vperm.slane %v6354_v4, %v9607_v42 }
 0x522   : > { %v6451_v8 = vadd.f32 %v9591_v60, %v6166_v21  ;;  %v6324_v59 = vadd.f32 %v9591_v60, %v5912_v52  ;;  %v5436_v46 = vmax.f32 %v5161_v57, 0.0  ;;  %v11528_v57 = vld [vmem:[#allocation30_spill] sm:$0xff]  ;;  %v7017_v10 = vsel %vm6740_vm4, %v7016_v37, %v7015_v0 }
 0x523   : > { %6193 = vadd.xlane.f32.xlu1 %v5695_v63  ;;  %5941 = vadd.xlane.f32.xlu2 %v5569_v38  ;;  %v11527_v63 = vld [vmem:[#allocation40_spill] sm:$0xff]  ;;  %v7019_v43 = vsel %vm6744_vm5, %v7018_v20, %v7017_v10 }
 0x524   : > { %v7208_v45 = vperm.slane %v6451_v8, %v9611_v15  ;;  %v6962_v24 = vperm.slane %v6324_v59, %v9614_v22  ;;  %v4845_v32 = vpop.f32.mrf.mxu1  ;;  %v6227_v38 = vadd.f32 %v9591_v60, %v11527_v63  ;;  %v5696_v21 = vmul.f32 %v10381_v41, %v5436_v46 }
 0x525   : > { %v4846_v50 = vadd.f32 %v10344_v7, %v4845_v32  ;;  %v6741_v59 = vsel %vm6740_vm4, %v6739_v3, %v6737_v47  ;;  %v7021_v4 = vsel %vm6748_vm6, %v7020_v26, %v7019_v43  ;;  %v11532_v47 = vld [vmem:[#allocation48_spill] sm:$0xff]  ;;  %v11537_v43 = vld [vmem:[#allocation53_spill] sm:$0xff] }
 0x526   : > { %v7209_v31 = vsel %vm6752_vm7, %v7208_v45, %v7207_v61  ;;  %v6963_v33 = vsel %vm6756_vm8, %v6962_v24, %v6961_v35  ;;  %v6355_v61 = vadd.f32 %v9591_v60, %v11528_v57  ;;  %v6747_v35 = vperm.slane %v6226_v51, %v9607_v42  ;;  %v11529_v51 = vld [vmem:[#allocation31_spill] sm:$0xff] }
 0x527   : > { %v5310_v19 = vmax.f32 %v4846_v50, 0.0  ;;  %v5163_v55 = vpop.f32.mrf.mxu3  ;;  %v6745_v40 = vsel %vm6744_vm5, %v6743_v16, %v6741_v59  ;;  %v6751_v18 = vperm.slane %v6227_v38, %v9611_v15  ;;  %v6228_v46 = vadd.f32 %v9591_v60, %v11529_v51 }
 0x528   : > { %v5164_v36 = vadd.f32 %v10344_v7, %v5163_v55  ;;  %v7022_v54 = vperm.slane %v6355_v61, %v9611_v15  ;;  %v6749_v28 = vsel %vm6748_vm6, %v6747_v35, %v6745_v40  ;;  %v6356_v16 = vadd.f32 %v9591_v60, %v11530_v27  ;;  %v11533_v61 = vld [vmem:[#allocation49_spill] sm:$0xff] }
 0x529   : > { %v5570_v52 = vmul.f32 %v10381_v41, %v5310_v19  ;;  %v6168_v2 = vpop.xlane.xlu1 %6167  ;;  %v5914_v8 = vpop.xlane.xlu0 %5913  ;;  %v11531_v19 = vld [vmem:[#allocation47_spill] sm:$0xff]  ;;  %v6357_v0 = vadd.f32 %v9591_v60, %v11532_v47  ;;  %v6230_v35 = vadd.f32 %v9591_v60, %v11533_v61  ;;  %v6232_v27 = vadd.f32 %v9591_v60, %v11537_v43 }
 0x52a   : > { %v6452_v14 = vadd.f32 %v9591_v60, %v6168_v2  ;;  %v6325_v29 = vadd.f32 %v9591_v60, %v5914_v8  ;;  %v5437_v50 = vmax.f32 %v5164_v36, 0.0  ;;  %v6229_v55 = vadd.f32 %v9591_v60, %v11531_v19  ;;  %v10679_v2 = vld [vmem:[%s11305_s6] ss:$0 sm:$0xff] }
 0x52b   : > { %5943 = vadd.xlane.f32.xlu0 %v5570_v52  ;;  %6195 = vadd.xlane.f32.xlu2 %v5696_v21  ;;  %v7023_v57 = vsel %vm6752_vm7, %v7022_v54, %v7021_v4  ;;  %v6755_v21 = vperm.slane %v6228_v46, %v9614_v22  ;;  %v7026_v54 = vperm.slane %v6357_v0, %v9634_v62 }
 0x52c   : > { %v7210_v45 = vperm.slane %v6452_v14, %v9614_v22  ;;  %v6964_v24 = vperm.slane %v6325_v29, %v9634_v62  ;;  %v4848_v32 = vpop.f32.mrf.mxu1  ;;  %v5697_v52 = vmul.f32 %v10381_v41, %v5437_v50  ;;  %v7024_v14 = vperm.slane %v6356_v16, %v9614_v22  ;;  %v11535_v29 = vld [vmem:[#allocation51_spill] sm:$0xff] }
 0x52d   : > { %v4849_v3 = vadd.f32 %v10344_v7, %v4848_v32  ;;  %v6753_v7 = vsel %vm6752_vm7, %v6751_v18, %v6749_v28  ;;  %v6231_v40 = vadd.f32 %v9591_v60, %v11535_v29  ;;  %v6759_v18 = vperm.slane %v6229_v55, %v9634_v62 }
 0x52e   : > { %v7211_v37 = vsel %vm6756_vm8, %v7210_v45, %v7209_v31  ;;  %v6965_v1 = vsel %vm6760_vm9, %v6964_v24, %v6963_v33  ;;  %v11534_v31 = vld [vmem:[#allocation50_spill] sm:$0xff]  ;;  %v11536_v45 = vld [vmem:[#allocation52_spill] sm:$0xff]  ;;  %v6763_v32 = vperm.slane %v6230_v35, %v9661_v13  ;;  %v7025_v19 = vsel %vm6756_vm8, %v7024_v14, %v7023_v57 }
 0x52f   : > { %v5311_v63 = vmax.f32 %v4849_v3, 0.0  ;;  %v5165_v38 = vpop.f32.mrf.mxu3  ;;  %v6358_v33 = vadd.f32 %v9591_v60, %v11534_v31  ;;  %v6359_v24 = vadd.f32 %v9591_v60, %v11536_v45  ;;  %v6757_v3 = vsel %vm6756_vm8, %v6755_v21, %v6753_v7  ;;  %v11538_v21 = vld [vmem:[#allocation54_spill] sm:$0xff]  ;;  %v11541_v45 = vld [vmem:[#allocation57_spill] sm:$0xff] }
 0x530   : > { %v5166_v8 = vadd.f32 %v10679_v2, %v5165_v38  ;;  %v6767_v55 = vperm.slane %v6231_v40, %v9738_v25  ;;  %v7027_v38 = vsel %vm6760_vm9, %v7026_v54, %v7025_v19  ;;  %v6360_v57 = vadd.f32 %v9591_v60, %v11538_v21  ;;  %v11540_v40 = vld [vmem:[#allocation56_spill] sm:$0xff]  ;;  %v11545_v21 = vld [vmem:[#allocation61_spill] sm:$0xff] }
 0x531   : > { %v5571_v36 = vmul.f32 %v10381_v41, %v5311_v63  ;;  %v6170_v59 = vpop.xlane.xlu2 %6169  ;;  %v5916_v20 = vpop.xlane.xlu1 %5915  ;;  %v7028_v28 = vperm.slane %v6358_v33, %v9661_v13  ;;  %v6761_v63 = vsel %vm6760_vm9, %v6759_v18, %v6757_v3  ;;  %v7030_v7 = vperm.slane %v6359_v24, %v9738_v25 }
 0x532   : > { %v6453_v10 = vadd.f32 %v9591_v60, %v6170_v59  ;;  %v6326_v26 = vadd.f32 %v9591_v60, %v5916_v20  ;;  %v5438_v16 = vmax.f32 %v5166_v8, 0.0  ;;  %v6765_v31 = vsel %vm6764_vm10, %v6763_v32, %v6761_v63  ;;  %v11542_v32 = vld [vmem:[#allocation58_spill] sm:$0xff] }
 0x533   : > { %6197 = vadd.xlane.f32.xlu0 %v5697_v52  ;;  %5945 = vadd.xlane.f32.xlu1 %v5571_v36  ;;  %v7029_v33 = vsel %vm6764_vm10, %v7028_v28, %v7027_v38  ;;  %v11539_v52 = vld [vmem:[#allocation55_spill] sm:$0xff]  ;;  %v6769_v29 = vsel %vm6768_vm11, %v6767_v55, %v6765_v31  ;;  %v6234_v24 = vadd.f32 %v9591_v60, %v11541_v45  ;;  %v11544_v38 = vld [vmem:[#allocation60_spill] sm:$0xff] }
 0x534   : > { %v7212_v51 = vperm.slane %v6453_v10, %v9634_v62  ;;  %v6966_v46 = vperm.slane %v6326_v26, %v9661_v13  ;;  %v4850_v50 = vpop.f32.mrf.mxu1  ;;  %v5698_v36 = vmul.f32 %v10381_v41, %v5438_v16  ;;  %v6361_v10 = vadd.f32 %v9591_v60, %v11540_v40  ;;  %v11543_v16 = vld [vmem:[#allocation59_spill] sm:$0xff] }
 0x535   : > { %v4851_v4 = vadd.f32 %v10679_v2, %v4850_v50  ;;  %v7031_v54 = vsel %vm6768_vm11, %v7030_v7, %v7029_v33  ;;  %v6362_v28 = vadd.f32 %v9591_v60, %v11542_v32  ;;  %v6363_v7 = vadd.f32 %v9591_v60, %v11544_v38  ;;  %v11549_v38 = vld [vmem:[#allocation101_spill] sm:$0xff] }
 0x536   : > { %v7213_v47 = vsel %vm6760_vm9, %v7212_v51, %v7211_v37  ;;  %v6967_v0 = vsel %vm6764_vm10, %v6966_v46, %v6965_v1  ;;  %v6233_v37 = vadd.f32 %v9591_v60, %v11539_v52  ;;  %v6771_v1 = vperm.slane %v6232_v27, %v9797_v5 }
 0x537   : > { %v5312_v61 = vmax.f32 %v4851_v4, 0.0  ;;  %v5168_v35 = vpop.f32.mrf.mxu3  ;;  %v7032_v51 = vperm.slane %v6360_v57, %v9797_v5  ;;  %v6235_v4 = vadd.f32 %v9591_v60, %v11543_v16  ;;  %v7034_v63 = vperm.slane %v6361_v10, %v9805_v58  ;;  %v11548_v16 = vld [vmem:[#allocation65_spill] sm:$0xff] }
 0x538   : > { %v5169_v59 = vadd.f32 %v10679_v2, %v5168_v35  ;;  %v6775_v46 = vperm.slane %v6233_v37, %v9805_v58  ;;  %v6773_v27 = vsel %vm11352_vm12, %v6771_v1, %v6769_v29  ;;  %v6779_v31 = vperm.slane %v6234_v24, %v9850_v17 }
 0x539   : > { %v5572_v8 = vmul.f32 %v10381_v41, %v5312_v61  ;;  %v6172_v20 = vpop.xlane.xlu0 %6171  ;;  %v5918_v14 = vpop.xlane.xlu2 %5917  ;;  %v7036_v33 = vperm.slane %v6362_v28, %v9850_v17  ;;  %v6236_v57 = vadd.f32 %v9591_v60, %v11545_v21  ;;  %v7033_v1 = vsel %vm11352_vm12, %v7032_v51, %v7031_v54 }
 0x53a   : > { %v6454_v26 = vadd.f32 %v9591_v60, %v6172_v20  ;;  %v6327_v18 = vadd.f32 %v9591_v60, %v5918_v14  ;;  %v5439_v19 = vmax.f32 %v5169_v59, 0.0  ;;  %v11547_v20 = vld [vmem:[#allocation63_spill] sm:$0xff]  ;;  %v7038_v54 = vperm.slane %v6363_v7, %v9858_v44 }
 0x53b   : > { %5947 = vadd.xlane.f32.xlu2 %v5572_v8  ;;  %6199 = vadd.xlane.f32.xlu1 %v5698_v36  ;;  %v6777_v36 = vsel %vm11351_vm13, %v6775_v46, %v6773_v27  ;;  %v11546_v8 = vld [vmem:[#allocation62_spill] sm:$0xff]  ;;  %v6787_v51 = vperm.slane %v6236_v57, %v9903_v56  ;;  %v6256_v7 = vadd.f32 %v9591_v60, %v11549_v38  ;;  %v11551_v57 = vld [vmem:[#allocation64_spill] sm:$0xff] }
 0x53c   : > { %v7214_v50 = vperm.slane %v6454_v26, %v9661_v13  ;;  %v6968_v3 = vperm.slane %v6327_v18, %v9738_v25  ;;  %v4853_v43 = vpop.f32.mrf.mxu1  ;;  %v6364_v59 = vadd.f32 %v9591_v60, %v11546_v8  ;;  %v5699_v14 = vmul.f32 %v10381_v41, %v5439_v19 }
 0x53d   : > { %v4854_v55 = vadd.f32 %v10679_v2, %v4853_v43  ;;  %v7035_v18 = vsel %vm11351_vm13, %v7034_v63, %v7033_v1  ;;  %v6781_v32 = vsel %vm11349_vm14, %v6779_v31, %v6777_v36 }
 0x53e   : > { %v7215_v61 = vsel %vm6764_vm10, %v7214_v50, %v7213_v47  ;;  %v6969_v35 = vsel %vm6768_vm11, %v6968_v3, %v6967_v0  ;;  %v6237_v47 = vadd.f32 %v9591_v60, %v11547_v20  ;;  %v6783_v0 = vperm.slane %v6235_v4, %v9858_v44 }
 0x53f   : > { %v5313_v52 = vmax.f32 %v4854_v55, 0.0  ;;  %v5170_v37 = vpop.f32.mrf.mxu3  ;;  %v7037_v28 = vsel %vm11349_vm14, %v7036_v33, %v7035_v18  ;;  %v10767_v4 = vadd.f32 %v9591_v60, %v11548_v16 }
 0x540   : > { %v5171_v40 = vadd.f32 %v10679_v2, %v5170_v37  ;;  %v6791_v46 = vperm.slane %v6237_v47, %v9909_v23  ;;  %v6785_v27 = vsel %vm11350_vm15, %v6783_v0, %v6781_v32  ;;  %v7039_v63 = vsel %vm11350_vm15, %v7038_v54, %v7037_v28  ;;  %v11552_v37 = vld [vmem:[#allocation99_spill] sm:$0xff] }
 0x541   : > { %v5573_v29 = vmul.f32 %v10381_v41, %v5313_v52  ;;  %v6174_v10 = vpop.xlane.xlu1 %6173  ;;  %v5920_v26 = vpop.xlane.xlu0 %5919  ;;  %v7040_v41 = vperm.slane %v6364_v59, %v9903_v56  ;;  %v6789_v21 = vsel %vm11550_vm0, %v6787_v51, %v6785_v27  ;;  %v10778_v52 = vadd.f32 %v9591_v60, %v11551_v57  ;;  %v11555_v47 = vld [vmem:[#allocation103_spill] sm:$0xff] }
 0x542   : > { %v6455_v45 = vadd.f32 %v9591_v60, %v6174_v10  ;;  %v6328_v24 = vadd.f32 %v9591_v60, %v5920_v26  ;;  %v5440_v19 = vmax.f32 %v5171_v40, 0.0  ;;  %v6255_v1 = vadd.f32 %v9591_v60, %v11552_v37 }
 0x543   : > { %6201 = vadd.xlane.f32.xlu2 %v5699_v14  ;;  %5949 = vadd.xlane.f32.xlu0 %v5573_v29  ;;  %v10783_v59 = vsel %vm11553_vm2, %v7040_v41, %v7039_v63  ;;  %v10786_v20 = vsel %vm6792_vm3, %v6791_v46, %v6789_v21  ;;  %v6257_v0 = vadd.f32 %v9591_v60, %v11555_v47  ;;  %v10797_v29 = vld [vmem:[%s11306_s7] ss:$0 sm:$0xff]  ;;  %v11558_v63 = vld [vmem:[#allocation66_spill] sm:$0xff]  ;;  %vm11579_vm2 = vmmov %vm11550_vm0 }
 0x544   : > { %v7216_v50 = vperm.slane %v6455_v45, %v9738_v25  ;;  %v6970_v3 = vperm.slane %v6328_v24, %v9797_v5  ;;  %v4855_v43 = vpop.f32.mrf.mxu1  ;;  %v6795_v14 = vperm.slane %v10767_v4, %v9956_v12  ;;  %v5700_v40 = vmul.f32 %v10797_v29, %v5440_v19  ;;  %v11556_v45 = vld [vmem:[#allocation100_spill] sm:$0xff]  ;;  %v11560_v47 = vld [vmem:[#allocation106_spill] sm:$0xff] }
 0x545   : > { %v4856_v55 = vadd.f32 %v10679_v2, %v4855_v43  ;;  %v6383_v24 = vadd.f32 %v9591_v60, %v11556_v45  ;;  %v6830_v32 = vperm.slane %v6256_v7, %v9594_v49  ;;  %v7042_v41 = vperm.slane %v10778_v52, %v9909_v23  ;;  %v11559_v7 = vld [vmem:[#allocation105_spill] sm:$0xff] }
 0x546   : > { %v7217_v31 = vsel %vm6768_vm11, %v7216_v50, %v7215_v61  ;;  %v6971_v33 = vsel %vm11352_vm12, %v6970_v3, %v6969_v35  ;;  %v11554_v61 = vld [vmem:[#allocation102_spill] sm:$0xff]  ;;  %v6829_v46 = vperm.slane %v6255_v1, %v9586_v9  ;;  %v11557_v50 = vld [vmem:[#allocation104_spill] sm:$0xff]  ;;  %v6832_v27 = vperm.slane %v6257_v0, %v9600_v39 }
 0x547   : > { %v5314_v36 = vmax.f32 %v4856_v55, 0.0  ;;  %v5173_v8 = vpop.f32.mrf.mxu3  ;;  %v6384_v35 = vadd.f32 %v9591_v60, %v11554_v61  ;;  %v6385_v3 = vadd.f32 %v9591_v60, %v11557_v50  ;;  %v10818_v38 = vadd.f32 %v9591_v60, %v11558_v63 }
 0x548   : > { %v5174_v26 = vadd.f32 %v10679_v2, %v5173_v8  ;;  %v6258_v21 = vadd.f32 %v9591_v60, %v11559_v7  ;;  %v7077_v1 = vperm.slane %v6383_v24, %v9586_v9  ;;  %v6386_v0 = vadd.f32 %v9591_v60, %v11560_v47  ;;  %v11562_v24 = vld [vmem:[#allocation108_spill] sm:$0xff] }
 0x549   : > { %v5574_v10 = vmul.f32 %v10797_v29, %v5314_v36  ;;  %v6176_v18 = vpop.xlane.xlu2 %6175  ;;  %v5922_v54 = vpop.xlane.xlu1 %5921  ;;  %v7078_v43 = vperm.slane %v6384_v35, %v9594_v49  ;;  %v6831_v36 = vsel %vm6740_vm4, %v6830_v32, %v6829_v46  ;;  %v7080_v35 = vperm.slane %v6385_v3, %v9600_v39 }
 0x54a   : > { %v6456_v28 = vadd.f32 %v9591_v60, %v6176_v18  ;;  %v6329_v51 = vadd.f32 %v9591_v60, %v5922_v54  ;;  %v5441_v57 = vmax.f32 %v5174_v26, 0.0  ;;  %v6833_v45 = vsel %vm6744_vm5, %v6832_v27, %v6831_v36  ;;  %v11565_v27 = vld [vmem:[#allocation111_spill] sm:$0xff] }
 0x54b   : > { %5951 = vadd.xlane.f32.xlu1 %v5574_v10  ;;  %6203 = vadd.xlane.f32.xlu0 %v5700_v40  ;;  %v11561_v40 = vld [vmem:[#allocation107_spill] sm:$0xff]  ;;  %v7079_v54 = vsel %vm6740_vm4, %v7078_v43, %v7077_v1  ;;  %v6387_v32 = vadd.f32 %v9591_v60, %v11562_v24  ;;  %v11566_v24 = vld [vmem:[#allocation112_spill] sm:$0xff] }
 0x54c   : > { %v7218_v16 = vperm.slane %v6456_v28, %v9797_v5  ;;  %v6972_v19 = vperm.slane %v6329_v51, %v9805_v58  ;;  %v4858_v55 = vpop.f32.mrf.mxu1  ;;  %v6259_v10 = vadd.f32 %v9591_v60, %v11561_v40  ;;  %v6834_v28 = vperm.slane %v6258_v21, %v9607_v42 }
 0x54d   : > { %v4859_v37 = vadd.f32 %v10679_v2, %v4858_v55  ;;  %v5701_v51 = vmul.f32 %v10797_v29, %v5441_v57  ;;  %v6261_v55 = vadd.f32 %v9591_v60, %v11565_v27  ;;  %v7081_v21 = vsel %vm6744_vm5, %v7080_v35, %v7079_v54 }
 0x54e   : > { %v7219_v8 = vsel %vm11352_vm12, %v7218_v16, %v7217_v31  ;;  %v6973_v61 = vsel %vm11351_vm13, %v6972_v19, %v6971_v33  ;;  %v11563_v31 = vld [vmem:[#allocation109_spill] sm:$0xff]  ;;  %v11564_v19 = vld [vmem:[#allocation110_spill] sm:$0xff]  ;;  %v7082_v57 = vperm.slane %v6386_v0, %v9607_v42  ;;  %v7084_v1 = vperm.slane %v6387_v32, %v9611_v15 }
 0x54f   : > { %v5315_v18 = vmax.f32 %v4859_v37, 0.0  ;;  %v5175_v26 = vpop.f32.mrf.mxu3  ;;  %v6260_v33 = vadd.f32 %v9591_v60, %v11563_v31  ;;  %v6388_v43 = vadd.f32 %v9591_v60, %v11564_v19  ;;  %v6836_v37 = vperm.slane %v6259_v10, %v9611_v15 }
 0x550   : > { %v5176_v50 = vadd.f32 %v10679_v2, %v5175_v26  ;;  %v6835_v26 = vsel %vm6748_vm6, %v6834_v28, %v6833_v45  ;;  %v6389_v35 = vadd.f32 %v9591_v60, %v11566_v24  ;;  %v6840_v31 = vperm.slane %v6261_v55, %v9634_v62  ;;  %v11569_v55 = vld [vmem:[#allocation115_spill] sm:$0xff] }
 0x551   : > { %v5575_v46 = vmul.f32 %v10797_v29, %v5315_v18  ;;  %v6178_v3 = vpop.xlane.xlu0 %6177  ;;  %v5924_v16 = vpop.xlane.xlu2 %5923  ;;  %v6838_v36 = vperm.slane %v6260_v33, %v9614_v22  ;;  %v7086_v10 = vperm.slane %v6388_v43, %v9614_v22  ;;  %v11568_v43 = vld [vmem:[#allocation114_spill] sm:$0xff] }
 0x552   : > { %v6457_v63 = vadd.f32 %v9591_v60, %v6178_v3  ;;  %v6330_v7 = vadd.f32 %v9591_v60, %v5924_v16  ;;  %v5442_v54 = vmax.f32 %v5176_v50, 0.0  ;;  %v11567_v3 = vld [vmem:[#allocation113_spill] sm:$0xff]  ;;  %v6390_v27 = vadd.f32 %v9591_v60, %v11568_v43 }
 0x553   : > { %6205 = vadd.xlane.f32.xlu1 %v5701_v51  ;;  %5953 = vadd.xlane.f32.xlu2 %v5575_v46  ;;  %v7083_v51 = vsel %vm6748_vm6, %v7082_v57, %v7081_v21  ;;  %v6837_v46 = vsel %vm6752_vm7, %v6836_v37, %v6835_v26  ;;  %v6262_v45 = vadd.f32 %v9591_v60, %v11567_v3  ;;  %v11570_v26 = vld [vmem:[#allocation116_spill] sm:$0xff] }
 0x554   : > { %v7220_v47 = vperm.slane %v6457_v63, %v9805_v58  ;;  %v6974_v40 = vperm.slane %v6330_v7, %v9850_v17  ;;  %v4860_v18 = vpop.f32.mrf.mxu1  ;;  %v7085_v50 = vsel %vm6752_vm7, %v7084_v1, %v7083_v51  ;;  %v6839_v19 = vsel %vm6756_vm8, %v6838_v36, %v6837_v46 }
 0x555   : > { %v4861_v0 = vadd.f32 %v10679_v2, %v4860_v18  ;;  %v5702_v63 = vmul.f32 %v10797_v29, %v5442_v54  ;;  %v7087_v1 = vsel %vm6756_vm8, %v7086_v10, %v7085_v50  ;;  %v6841_v36 = vsel %vm6760_vm9, %v6840_v31, %v6839_v19  ;;  %v11573_v19 = vld [vmem:[#allocation119_spill] sm:$0xff] }
 0x556   : > { %v7221_v32 = vsel %vm11351_vm13, %v7220_v47, %v7219_v8  ;;  %v6975_v33 = vsel %vm11349_vm14, %v6974_v40, %v6973_v61  ;;  %v6263_v8 = vadd.f32 %v9591_v60, %v11569_v55  ;;  %v7088_v61 = vperm.slane %v6389_v35, %v9634_v62  ;;  %v11571_v35 = vld [vmem:[#allocation117_spill] sm:$0xff]  ;;  %v11574_v55 = vld [vmem:[#allocation120_spill] sm:$0xff] }
 0x557   : > { %v5316_v28 = vmax.f32 %v4861_v0, 0.0  ;;  %v5178_v16 = vpop.f32.mrf.mxu3  ;;  %v6842_v18 = vperm.slane %v6262_v45, %v9661_v13  ;;  %v6391_v24 = vadd.f32 %v9591_v60, %v11570_v26  ;;  %v6264_v54 = vadd.f32 %v9591_v60, %v11571_v35  ;;  %v11572_v45 = vld [vmem:[#allocation118_spill] sm:$0xff]  ;;  %v11575_v26 = vld [vmem:[#allocation121_spill] sm:$0xff] }
 0x558   : > { %v5179_v21 = vadd.f32 %v10679_v2, %v5178_v16  ;;  %v7090_v0 = vperm.slane %v6390_v27, %v9661_v13  ;;  %v6844_v10 = vperm.slane %v6263_v8, %v9738_v25  ;;  %v7089_v3 = vsel %vm6760_vm9, %v7088_v61, %v7087_v1 }
 0x559   : > { %v5576_v7 = vmul.f32 %v10797_v29, %v5316_v28  ;;  %v6180_v57 = vpop.xlane.xlu1 %6179  ;;  %v5926_v37 = vpop.xlane.xlu0 %5925  ;;  %v6392_v28 = vadd.f32 %v9591_v60, %v11572_v45  ;;  %v6265_v43 = vadd.f32 %v9591_v60, %v11573_v19  ;;  %v6393_v27 = vadd.f32 %v9591_v60, %v11574_v55  ;;  %v11576_v45 = vld [vmem:[#allocation28_spill] sm:$0xff] }
 0x55a   : > { %v6458_v47 = vadd.f32 %v9591_v60, %v6180_v57  ;;  %v6331_v40 = vadd.f32 %v9591_v60, %v5926_v37  ;;  %v5443_v16 = vmax.f32 %v5179_v21, 0.0  ;;  %v7092_v61 = vperm.slane %v6391_v24, %v9738_v25 }
 0x55b   : > { %5955 = vadd.xlane.f32.xlu0 %v5576_v7  ;;  %6207 = vadd.xlane.f32.xlu2 %v5702_v63  ;;  %v6843_v7 = vsel %vm6764_vm10, %v6842_v18, %v6841_v36  ;;  %v6846_v57 = vperm.slane %v6264_v54, %v9797_v5  ;;  %v7044_v1 = vperm.slane %v10818_v38, %v9956_v12 }
 0x55c   : > { %v7222_v31 = vperm.slane %v6458_v47, %v9850_v17  ;;  %v6976_v51 = vperm.slane %v6331_v40, %v9858_v44  ;;  %v4863_v46 = vpop.f32.mrf.mxu1  ;;  %v7091_v47 = vsel %vm6764_vm10, %v7090_v0, %v7089_v3  ;;  %v6845_v40 = vsel %vm6768_vm11, %v6844_v10, %v6843_v7 }
 0x55d   : > { %v4864_v50 = vadd.f32 %v10679_v2, %v4863_v46  ;;  %v5703_v36 = vmul.f32 %v10797_v29, %v5443_v16  ;;  %v7093_v46 = vsel %vm6768_vm11, %v7092_v61, %v7091_v47  ;;  %v6847_v3 = vsel %vm11352_vm12, %v6846_v57, %v6845_v40  ;;  %v11578_v61 = vld [vmem:[#allocation125_spill] sm:$0xff] }
 0x55e   : > { %v7223_v8 = vsel %vm11349_vm14, %v7222_v31, %v7221_v32  ;;  %v6977_v63 = vsel %vm11350_vm15, %v6976_v51, %v6975_v33  ;;  %v6266_v32 = vadd.f32 %v9591_v60, %v11575_v26  ;;  %v7094_v33 = vperm.slane %v6392_v28, %v9797_v5 }
 0x55f   : > { %v5317_v37 = vmax.f32 %v4864_v50, 0.0  ;;  %v5180_v21 = vpop.f32.mrf.mxu3  ;;  %v6848_v31 = vperm.slane %v6265_v43, %v9805_v58  ;;  %v7096_v51 = vperm.slane %v6393_v27, %v9805_v58  ;;  %v6267_v28 = vadd.f32 %v9591_v60, %v11576_v45  ;;  %v11577_v50 = vld [vmem:[#allocation123_spill] sm:$0xff] }
 0x560   : > { %v5181_v24 = vadd.f32 %v10679_v2, %v5180_v21  ;;  %v6850_v16 = vperm.slane %v6266_v32, %v9850_v17  ;;  %v6268_v19 = vadd.f32 %v9591_v60, %v11577_v50  ;;  %v7095_v7 = vsel %vm11352_vm12, %v7094_v33, %v7093_v46  ;;  %v11581_v33 = vld [vmem:[#allocation127_spill] sm:$0xff]  ;;  %v11582_v46 = vld [vmem:[#allocation29_spill] sm:$0xff] }
 0x561   : > { %v5577_v18 = vmul.f32 %v10797_v29, %v5317_v37  ;;  %v6182_v35 = vpop.xlane.xlu2 %6181  ;;  %v5928_v54 = vpop.xlane.xlu1 %5927  ;;  %v6269_v57 = vadd.f32 %v9591_v60, %v11578_v61  ;;  %v6849_v47 = vsel %vm11351_vm13, %v6848_v31, %v6847_v3  ;;  %v7097_v40 = vsel %vm11351_vm13, %v7096_v51, %v7095_v7 }
 0x562   : > { %v6459_v0 = vadd.f32 %v9591_v60, %v6182_v35  ;;  %v6332_v10 = vadd.f32 %v9591_v60, %v5928_v54  ;;  %v5444_v37 = vmax.f32 %v5181_v24, 0.0  ;;  %v6852_v35 = vperm.slane %v6267_v28, %v9858_v44 }
 0x563   : > { %6209 = vadd.xlane.f32.xlu0 %v5703_v36  ;;  %5957 = vadd.xlane.f32.xlu1 %v5577_v18  ;;  %v11580_v36 = vld [vmem:[#allocation122_spill] sm:$0xff]  ;;  %v6270_v54 = vadd.f32 %v9591_v60, %v11581_v33  ;;  %v6395_v31 = vadd.f32 %v9591_v60, %v11582_v46  ;;  %v6854_v51 = vperm.slane %v6268_v19, %v9903_v56  ;;  %vm7268_vm13 = vcmask 1045509  }
 0x564   : > { %v7224_v43 = vperm.slane %v6459_v0, %v9858_v44  ;;  %v6978_v55 = vperm.slane %v6332_v10, %v9903_v56  ;;  %v4865_v27 = vpop.f32.mrf.mxu1  ;;  %v6394_v18 = vadd.f32 %v9591_v60, %v11580_v36  ;;  %v6851_v10 = vsel %vm11349_vm14, %v6850_v16, %v6849_v47 }
 0x565   : > { %v4866_v21 = vadd.f32 %v10679_v2, %v4865_v27  ;;  %v6856_v45 = vperm.slane %v6269_v57, %v9909_v23  ;;  %v5704_v28 = vmul.f32 %v10797_v29, %v5444_v37  ;;  %v11584_v27 = vld [vmem:[#allocation126_spill] sm:$0xff]  ;;  %v6853_v47 = vsel %vm11350_vm15, %v6852_v35, %v6851_v10 }
 0x566   : > { %v7225_v26 = vsel %vm11350_vm15, %v7224_v43, %v7223_v8  ;;  %v6979_v32 = vsel %vm11579_vm2, %v6978_v55, %v6977_v63  ;;  %v11583_v63 = vld [vmem:[#allocation124_spill] sm:$0xff]  ;;  %v6397_v16 = vadd.f32 %v9591_v60, %v11584_v27  ;;  %v6858_v57 = vperm.slane %v6270_v54, %v9956_v12  ;;  %vm11586_vm2 = vmmov %vm11550_vm0 }
 0x567   : > { %v5318_v0 = vmax.f32 %v4866_v21, 0.0  ;;  %v5183_v24 = vpop.f32.mrf.mxu3  ;;  %v6396_v3 = vadd.f32 %v9591_v60, %v11583_v63  ;;  %v7098_v21 = vperm.slane %v6394_v18, %v9850_v17  ;;  %v7100_v37 = vperm.slane %v6395_v31, %v9858_v44  ;;  %v11585_v18 = vld [vmem:[#allocation128_spill] sm:$0xff] }
 0x568   : > { %v5184_v8 = vadd.f32 %v10679_v2, %v5183_v24  ;;  %v6855_v46 = vsel %vm11550_vm0, %v6854_v51, %v6853_v47  ;;  %v6398_v35 = vadd.f32 %v9591_v60, %v11585_v18  ;;  %v7104_v31 = vperm.slane %v6397_v16, %v9909_v23 }
 0x569   : > { %v5578_v50 = vmul.f32 %v10797_v29, %v5318_v0  ;;  %v6184_v43 = vpop.xlane.xlu1 %6183  ;;  %v5930_v55 = vpop.xlane.xlu2 %5929  ;;  %v6857_v10 = vsel %vm6792_vm3, %v6856_v45, %v6855_v46  ;;  %v6797_v51 = vsel %vm6796_vm1, %v6795_v14, %v10786_v20  ;;  %v5151_v38 = vadd.f32 %v10679_v2, %v10562_v48 }
 0x56a   : > { %v5445_v7 = vmax.f32 %v5184_v8, 0.0  ;;  %v6460_v61 = vadd.f32 %v9591_v60, %v6184_v43  ;;  %v6333_v19 = vadd.f32 %v9591_v60, %v5930_v55  ;;  %v7102_v8 = vperm.slane %v6396_v3, %v9903_v56 }
 0x56b   : > { %5959 = vadd.xlane.f32.xlu2 %v5578_v50  ;;  %6211 = vadd.xlane.f32.xlu1 %v5704_v28  ;;  %v7099_v3 = vsel %vm11349_vm14, %v7098_v21, %v7097_v40  ;;  %v6859_v43 = vsel %vm6796_vm1, %v6858_v57, %v6857_v10  ;;  %v7106_v40 = vperm.slane %v6398_v35, %v9956_v12  ;;  %vm7266_vm14 = vcmask 1044484  }
 0x56c   : > { %v5705_v36 = vmul.f32 %v10797_v29, %v5445_v7  ;;  %v7226_v33 = vperm.slane %v6460_v61, %v9903_v56  ;;  %v6980_v0 = vperm.slane %v6333_v19, %v9909_v23  ;;  %v4868_v24 = vpop.f32.mrf.mxu1  ;;  %vm7270_vm12 = vcmask 1046534  }
 0x56d   : > { %v4869_v54 = vadd.f32 %v10679_v2, %v4868_v24 }
 0x56e   : > { %v7227_v63 = vsel %vm11586_vm2, %v7226_v33, %v7225_v26  ;;  %v6981_v28 = vsel %vm6792_vm3, %v6980_v0, %v6979_v32  ;;  %v5932_v50 = vpop.xlane.xlu0 %5931  ;;  %6213 = vadd.xlane.f32.xlu0 %v5705_v36  ;;  %v7043_v26 = vsel %vm6792_vm3, %v7042_v41, %v10783_v59  ;;  %v7101_v32 = vsel %vm11350_vm15, %v7100_v37, %v7099_v3 }
 0x56f   : > { %v6334_v45 = vadd.f32 %v9591_v60, %v5932_v50  ;;  %v5185_v55 = vpop.f32.mrf.mxu3  ;;  %v5319_v27 = vmax.f32 %v4869_v54, 0.0  ;;  %v7045_v20 = vsel %vm6796_vm1, %v7044_v1, %v7043_v26  ;;  %v7103_v14 = vsel %vm11550_vm0, %v7102_v8, %v7101_v32 }
 0x570   : > { %v5186_v4 = vadd.f32 %v10679_v2, %v5185_v55  ;;  %v7105_v52 = vsel %vm6792_vm3, %v7104_v31, %v7103_v14  ;;  %vm11587_vm2 = vcmask 1041409   ;;  %vm11588_vm15 = vcmask 1042434  }
 0x571   : > { %v6982_v16 = vperm.slane %v6334_v45, %v9956_v12  ;;  %v7263_v59 = vsel %vm11587_vm2, %v6859_v43, %v6797_v51  ;;  %v5579_v61 = vmul.f32 %v10797_v29, %v5319_v27  ;;  %vm11589_vm0 = vcmask 1043459  }
 0x572   : > { %v5446_v41 = vmax.f32 %v5186_v4, 0.0  ;;  %v7264_v7 = vsel %vm11588_vm15, %v10270_v53, %v7263_v59  ;;  %v7107_v57 = vsel %vm6796_vm1, %v7106_v40, %v7105_v52  ;;  %v5432_v8 = vmax.f32 %v5151_v38, 0.0 }
 0x573   : > { %v6983_v1 = vsel %vm6796_vm1, %v6982_v16, %v6981_v28  ;;  %vm11605_vm15 = vcmask 654912   ;;  %vm11606_vm2 = vcmask 720512  }
 0x574   : > { %v7265_v19 = vsel %vm11589_vm0, %v6983_v1, %v7264_v7  ;;  %v5706_v21 = vmul.f32 %v10797_v29, %v5446_v41  ;;  %v4870_v47 = vpop.f32.mrf.mxu1  ;;  %v5692_v31 = vmul.f32 %v10797_v29, %v5432_v8  ;;  %v11590_v1 = vld [vmem:[#allocation70_spill] sm:$0xff]  ;;  %vm11607_vm0 = vcmask 786112  }
 0x575   : > { %v7267_v37 = vsel %vm7266_vm14, %v7045_v20, %v7265_v19  ;;  %v4871_v53 = vadd.f32 %v10679_v2, %v4870_v47  ;;  %v11591_v19 = vld [vmem:[#allocation72_spill] sm:$0xff]  ;;  %v11595_v8 = vld [vmem:[#allocation78_spill] sm:$0xff] }
 0x576   : > { %v6186_v36 = vpop.xlane.xlu0 %6185  ;;  %6215 = vadd.xlane.f32.xlu2 %v5706_v21  ;;  %5961 = vadd.xlane.f32.xlu0 %v5579_v61  ;;  %v7269_v48 = vsel %vm7268_vm13, %v7107_v57, %v7267_v37  ;;  %v11020_v26 = vpop.xlane.xlu1 %5933  ;;  %v6368_v61 = vadd.f32 %v9591_v60, %v11590_v1  ;;  %v6369_v21 = vadd.f32 %v9591_v60, %v11591_v19  ;;  %v11592_v47 = vld [vmem:[#allocation68_spill] sm:$0xff]  ;;  %v11593_v37 = vld [vmem:[#allocation74_spill] sm:$0xff] }
 0x577   : > { %v5320_v33 = vmax.f32 %v4871_v53, 0.0  ;;  %v6461_v0 = vadd.f32 %v9591_v60, %v6186_v36  ;;  %v5188_v24 = vpop.f32.mrf.mxu3  ;;  %v11008_v46 = vsel %vm7270_vm12, %v10281_v11, %v7269_v48  ;;  %v6367_v57 = vadd.f32 %v9591_v60, %v11592_v47  ;;  %v11599_v47 = vld [vmem:[#allocation86_spill] sm:$0xff] }
 0x578   : > { %v5189_v54 = vadd.f32 %v10679_v2, %v5188_v24  ;;  %v6370_v53 = vadd.f32 %v9591_v60, %v11593_v37  ;;  %v7047_v24 = vperm.slane %v6368_v61, %v9594_v49  ;;  %v6376_v37 = vadd.f32 %v9591_v60, %v11599_v47 }
 0x579   : > { %v5580_v18 = vmul.f32 %v10797_v29, %v5320_v33  ;;  %v7228_v35 = vperm.slane %v6461_v0, %v9909_v23  ;;  %v11594_v33 = vld [vmem:[#allocation76_spill] sm:$0xff] }
 0x57a   : > { %v5447_v28 = vmax.f32 %v5189_v54, 0.0  ;;  %v6371_v0 = vadd.f32 %v9591_v60, %v11594_v33  ;;  %v11596_v54 = vld [vmem:[#allocation80_spill] sm:$0xff] }
 0x57b   : > { %v11014_v10 = vsel %vm6792_vm3, %v7228_v35, %v7227_v63  ;;  %5963 = vadd.xlane.f32.xlu1 %v5580_v18  ;;  %v6372_v18 = vadd.f32 %v9591_v60, %v11595_v8  ;;  %v7049_v35 = vperm.slane %v6369_v21, %v9600_v39  ;;  %v11600_v33 = vld [vmem:[#allocation88_spill] sm:$0xff] }
 0x57c   : > { %v5707_v11 = vmul.f32 %v10797_v29, %v5447_v28  ;;  %v7046_v28 = vperm.slane %v6367_v57, %v9586_v9  ;;  %v6377_v8 = vadd.f32 %v9591_v60, %v11600_v33 }
 0x57d   : > { %v7055_v21 = vperm.slane %v6372_v18, %v9614_v22 }
 0x57e   : > { %6187 = vadd.xlane.f32.xlu2 %v5692_v31  ;;  %v5936_v45 = vpop.xlane.xlu2 %5935  ;;  %v6373_v31 = vadd.f32 %v9591_v60, %v11596_v54  ;;  %v7048_v19 = vsel %vm6740_vm4, %v7047_v24, %v7046_v28  ;;  %v11602_v28 = vld [vmem:[#allocation92_spill] sm:$0xff] }
 0x57f   : > { %v5190_v50 = vpop.f32.mrf.mxu3  ;;  %v7050_v57 = vsel %vm6744_vm5, %v7049_v35, %v7048_v19  ;;  %v6379_v47 = vadd.f32 %v9591_v60, %v11602_v28  ;;  %v11603_v19 = vld [vmem:[#allocation94_spill] sm:$0xff]  ;;  %v6336_v28 = vadd.f32 %v9591_v60, %v5936_v45 }
 0x580   : > { %v5191_v51 = vadd.f32 %v10679_v2, %v5190_v50  ;;  %v7051_v50 = vperm.slane %v6370_v53, %v9607_v42  ;;  %v7057_v53 = vperm.slane %v6373_v31, %v9634_v62  ;;  %v7063_v31 = vperm.slane %v6376_v37, %v9797_v5 }
 0x581   : > { %v6380_v33 = vadd.f32 %v9591_v60, %v11603_v19 }
 0x582   : > { %v5448_v3 = vmax.f32 %v5191_v51, 0.0  ;;  %v11597_v51 = vld [vmem:[#allocation82_spill] sm:$0xff] }
 0x583   : > { %6217 = vadd.xlane.f32.xlu1 %v5707_v11  ;;  %v6374_v11 = vadd.f32 %v9591_v60, %v11597_v51  ;;  %v11601_v51 = vld [vmem:[#allocation90_spill] sm:$0xff] }
 0x584   : > { %v5708_v43 = vmul.f32 %v10797_v29, %v5448_v3  ;;  %v7053_v3 = vperm.slane %v6371_v0, %v9611_v15  ;;  %v7052_v0 = vsel %vm6748_vm6, %v7051_v50, %v7050_v57 }
 0x585   : > { %v7059_v54 = vperm.slane %v6374_v11, %v9661_v13 }
 0x586   : > { %6219 = vadd.xlane.f32.xlu0 %v5708_v43  ;;  %v5938_v55 = vpop.xlane.xlu0 %5937  ;;  %v11022_v63 = vpop.xlane.xlu2 %6189  ;;  %v11598_v43 = vld [vmem:[#allocation84_spill] sm:$0xff]  ;;  %v7054_v24 = vsel %vm6752_vm7, %v7053_v3, %v7052_v0  ;;  %v7065_v3 = vperm.slane %v6377_v8, %v9805_v58 }
 0x587   : > { %v6375_v1 = vadd.f32 %v9591_v60, %v11598_v43  ;;  %v6378_v43 = vadd.f32 %v9591_v60, %v11601_v51  ;;  %v7056_v35 = vsel %vm6756_vm8, %v7055_v21, %v7054_v24  ;;  %v11604_v0 = vld [vmem:[#allocation96_spill] sm:$0xff]  ;;  %v7069_v24 = vperm.slane %v6379_v47, %v9858_v44 }
 0x588   : > { %v7058_v57 = vsel %vm6760_vm9, %v7057_v53, %v7056_v35  ;;  %v7071_v53 = vperm.slane %v6380_v33, %v9903_v56  ;;  %v6337_v8 = vadd.f32 %v9591_v60, %v5938_v55  ;;  %v6985_v55 = vperm.slane %v6336_v28, %v9594_v49 }
 0x589   : > { %v7061_v18 = vperm.slane %v6375_v1, %v9738_v25  ;;  %v6381_v1 = vadd.f32 %v9591_v60, %v11604_v0  ;;  %v7060_v51 = vsel %vm6764_vm10, %v7059_v54, %v7058_v57  ;;  %v7067_v21 = vperm.slane %v6378_v43, %v9850_v17 }
 0x58a   : > { %v6335_v54 = vadd.f32 %v9591_v60, %v11020_v26  ;;  %v6987_v57 = vperm.slane %v6337_v8, %v9600_v39 }
 0x58b   : > { %v7062_v37 = vsel %vm6768_vm11, %v7061_v18, %v7060_v51  ;;  %v7073_v0 = vperm.slane %v6381_v1, %v9909_v23  ;;  %v11608_v18 = vld [vmem:[#allocation98_spill] sm:$0xff] }
 0x58c   : > { %v7064_v34 = vsel %vm11605_vm15, %v7063_v31, %v7062_v37  ;;  %v11124_v47 = vadd.f32 %v9591_v60, %v11608_v18  ;;  %vm11609_vm15 = vcmask 851712  }
 0x58d   : > { %v7066_v35 = vsel %vm11606_vm2, %v7065_v3, %v7064_v34  ;;  %v6463_v34 = vadd.f32 %v9591_v60, %v11022_v63  ;;  %vm11610_vm2 = vcmask 917312  }
 0x58e   : > { %v11024_v32 = vpop.xlane.xlu0 %6191  ;;  %v11026_v27 = vpop.xlane.xlu1 %5939  ;;  %v7068_v43 = vsel %vm11607_vm0, %v7067_v21, %v7066_v35  ;;  %v6984_v21 = vperm.slane %v6335_v54, %v9586_v9  ;;  %v7075_v37 = vperm.slane %v11124_v47, %v9956_v12  ;;  %vm11611_vm0 = vcmask 654912  }
 0x58f   : > { %v6338_v45 = vadd.f32 %v9591_v60, %v11026_v27  ;;  %v7070_v31 = vsel %vm11609_vm15, %v7069_v24, %v7068_v43  ;;  %v6464_v63 = vadd.f32 %v9591_v60, %v11024_v32  ;;  %v7232_v8 = vperm.slane %v6463_v34, %v9586_v9 }
 0x590   : > { %v7072_v26 = vsel %vm11610_vm2, %v7071_v53, %v7070_v31  ;;  %v6986_v53 = vsel %vm6740_vm4, %v6985_v55, %v6984_v21 }
 0x591   : > { %v7074_v27 = vsel %vm6792_vm3, %v7073_v0, %v7072_v26  ;;  %v6989_v24 = vperm.slane %v6338_v45, %v9607_v42  ;;  %v6988_v35 = vsel %vm6744_vm5, %v6987_v57, %v6986_v53 }
 0x593   : > { %v6990_v47 = vsel %vm6748_vm6, %v6989_v24, %v6988_v35 }
 0x596   : > { %v11028_v4 = vpop.xlane.xlu2 %5941  ;;  %v11032_v20 = vpop.xlane.xlu1 %6193 }
 0x597   : > { %v6339_v33 = vadd.f32 %v9591_v60, %v11028_v4 }
 0x599   : > { %v6991_v32 = vperm.slane %v6339_v33, %v9611_v15 }
 0x59e   : > { %v11030_v2 = vpop.xlane.xlu0 %5943  ;;  %v11034_v14 = vpop.xlane.xlu2 %6195 }
 0x59f   : > { %v6340_v3 = vadd.f32 %v9591_v60, %v11030_v2  ;;  %v6465_v2 = vadd.f32 %v9591_v60, %v11032_v20  ;;  %v6466_v54 = vadd.f32 %v9591_v60, %v11034_v14 }
 0x5a1   : > { %v6993_v0 = vperm.slane %v6340_v3, %v9614_v22  ;;  %v7235_v45 = vperm.slane %v6465_v2, %v9600_v39  ;;  %v7237_v34 = vperm.slane %v6466_v54, %v9607_v42 }
 0x5a6   : > { %v11036_v29 = vpop.xlane.xlu0 %6197  ;;  %v11038_v40 = vpop.xlane.xlu1 %5945 }
 0x5a7   : > { %v6341_v4 = vadd.f32 %v9591_v60, %v11038_v40  ;;  %v6467_v9 = vadd.f32 %v9591_v60, %v11036_v29 }
 0x5a9   : > { %v6995_v43 = vperm.slane %v6341_v4, %v9634_v62 }
 0x5ae   : > { %v11040_v16 = vpop.xlane.xlu2 %5947  ;;  %v11044_v59 = vpop.xlane.xlu1 %6199 }
 0x5af   : > { %v6342_v28 = vadd.f32 %v9591_v60, %v11040_v16  ;;  %v7233_v16 = vperm.slane %v6464_v63, %v9594_v49  ;;  %v6992_v49 = vsel %vm6752_vm7, %v6991_v32, %v6990_v47  ;;  %v6468_v29 = vadd.f32 %v9591_v60, %v11044_v59 }
 0x5b1   : > { %v6997_v14 = vperm.slane %v6342_v28, %v9661_v13  ;;  %v7241_v24 = vperm.slane %v6468_v29, %v9614_v22 }
 0x5b6   : > { %v11042_v52 = vpop.xlane.xlu0 %5949  ;;  %v11046_v41 = vpop.xlane.xlu2 %6201 }
 0x5b7   : > { %v6343_v40 = vadd.f32 %v9591_v60, %v11042_v52  ;;  %v6469_v42 = vadd.f32 %v9591_v60, %v11046_v41 }
 0x5b9   : > { %v6999_v31 = vperm.slane %v6343_v40, %v9738_v25  ;;  %v7243_v54 = vperm.slane %v6469_v42, %v9634_v62 }
 0x5be   : > { %v11048_v7 = vpop.xlane.xlu0 %6203  ;;  %v11050_v38 = vpop.xlane.xlu1 %5951 }
 0x5bf   : > { %v6344_v20 = vadd.f32 %v9591_v60, %v11050_v38 }
 0x5c1   : > { %v7001_v39 = vperm.slane %v6344_v20, %v9797_v5 }
 0x5c6   : > { %v11060_v36 = vpop.xlane.xlu2 %5953  ;;  %v11079_v61 = vpop.xlane.xlu1 %6205 }
 0x5c7   : > { %v6345_v52 = vadd.f32 %v9591_v60, %v11060_v36  ;;  %v6994_v36 = vsel %vm6756_vm8, %v6993_v0, %v6992_v49  ;;  %v6471_v40 = vadd.f32 %v9591_v60, %v11079_v61 }
 0x5c8   : > { %v6996_v3 = vsel %vm6760_vm9, %v6995_v43, %v6994_v36 }
 0x5c9   : > { %v7003_v59 = vperm.slane %v6345_v52, %v9805_v58  ;;  %v6998_v63 = vsel %vm6764_vm10, %v6997_v14, %v6996_v3 }
 0x5ce   : > { %v11062_v48 = vpop.xlane.xlu0 %5955  ;;  %v11101_v50 = vpop.xlane.xlu2 %6207 }
 0x5cf   : > { %v6346_v38 = vadd.f32 %v9591_v60, %v11062_v48  ;;  %v7239_v48 = vperm.slane %v6467_v9, %v9611_v15  ;;  %v7000_v15 = vsel %vm6768_vm11, %v6999_v31, %v6998_v63  ;;  %v7076_v9 = vsel %vm6796_vm1, %v7075_v37, %v7074_v27 }
 0x5d0   : > { %v7002_v53 = vsel %vm11611_vm0, %v7001_v39, %v7000_v15 }
 0x5d1   : > { %v7005_v4 = vperm.slane %v6346_v38, %v9850_v17 }
 0x5d6   : > { %v11103_v11 = vpop.xlane.xlu0 %6209  ;;  %v5958_v19 = vpop.xlane.xlu1 %5957 }
 0x5d7   : > { %v6347_v55 = vadd.f32 %v9591_v60, %v5958_v19  ;;  %v7234_v19 = vsel %vm6740_vm4, %v7233_v16, %v7232_v8  ;;  %v6470_v8 = vadd.f32 %v9591_v60, %v11048_v7  ;;  %vm11612_vm4 = vcmask 720512  }
 0x5d8   : > { %v7004_v22 = vsel %vm11612_vm4, %v7003_v59, %v7002_v53  ;;  %v6472_v7 = vadd.f32 %v9591_v60, %v11101_v50  ;;  %v6473_v47 = vadd.f32 %v9591_v60, %v11103_v11  ;;  %v7247_v50 = vperm.slane %v6471_v40, %v9738_v25 }
 0x5d9   : > { %v7007_v2 = vperm.slane %v6347_v55, %v9858_v44  ;;  %v7245_v52 = vperm.slane %v6470_v8, %v9661_v13 }
 0x5da   : > { %v7249_v49 = vperm.slane %v6472_v7, %v9797_v5  ;;  %v7251_v36 = vperm.slane %v6473_v47, %v9805_v58 }
 0x5de   : > { %v5960_v1 = vpop.xlane.xlu2 %5959  ;;  %v6212_v18 = vpop.xlane.xlu1 %6211 }
 0x5df   : > { %v6348_v33 = vadd.f32 %v9591_v60, %v5960_v1  ;;  %v7236_v1 = vsel %vm6744_vm5, %v7235_v45, %v7234_v19  ;;  %vm11613_vm5 = vcmask 786112   ;;  %v6474_v38 = vadd.f32 %v9591_v60, %v6212_v18 }
 0x5e0   : > { %v7238_v28 = vsel %vm6748_vm6, %v7237_v34, %v7236_v1  ;;  %v7006_v20 = vsel %vm11613_vm5, %v7005_v4, %v7004_v22  ;;  %vm11614_vm6 = vmmov %vm11609_vm15  ;;  %vm7272_vm15 = vcmask 1047559  }
 0x5e1   : > { %v11138_v51 = vpop.xlane.xlu0 %6213  ;;  %v7009_v32 = vperm.slane %v6348_v33, %v9903_v56  ;;  %v7240_v41 = vsel %vm6752_vm7, %v7239_v48, %v7238_v28  ;;  %v7008_v61 = vsel %vm11614_vm6, %v7007_v2, %v7006_v20  ;;  %vm11615_vm7 = vmmov %vm11610_vm2  ;;  %v11617_v48 = vld [vmem:[#allocation32_spill] sm:$0xff] }
 0x5e2   : > { %v7242_v43 = vsel %vm6756_vm8, %v7241_v24, %v7240_v41  ;;  %v6475_v11 = vadd.f32 %v9591_v60, %v11138_v51  ;;  %vm11616_vm8 = vcmask 1043459   ;;  %v7253_v51 = vperm.slane %v6474_v38, %v9850_v17 }
 0x5e3   : > { %v7010_v62 = vsel %vm11615_vm7, %v7009_v32, %v7008_v61  ;;  %v7244_v13 = vsel %vm6760_vm9, %v7243_v54, %v7242_v43  ;;  %vm11618_vm9 = vmmov %vm11611_vm0 }
 0x5e4   : > { %v7246_v55 = vsel %vm6764_vm10, %v7245_v52, %v7244_v13  ;;  %vm11619_vm10 = vmmov %vm11612_vm4 }
 0x5e5   : > { %v7248_v5 = vsel %vm6768_vm11, %v7247_v50, %v7246_v55  ;;  %vm11620_vm11 = vmmov %vm11613_vm5 }
 0x5e6   : > { %v7250_v59 = vsel %vm11618_vm9, %v7249_v49, %v7248_v5 }
 0x5e9   : > { %v6216_v26 = vpop.xlane.xlu2 %6215  ;;  %v5962_v57 = vpop.xlane.xlu0 %5961 }
 0x5ea   : > { %v6349_v21 = vadd.f32 %v9591_v60, %v5962_v57  ;;  %v6476_v31 = vadd.f32 %v9591_v60, %v6216_v26  ;;  %v7255_v26 = vperm.slane %v6475_v11, %v9858_v44  ;;  %v7252_v44 = vsel %vm11619_vm10, %v7251_v36, %v7250_v59 }
 0x5ec   : > { %v7011_v35 = vperm.slane %v6349_v21, %v9909_v23  ;;  %v7257_v17 = vperm.slane %v6476_v31, %v9903_v56 }
 0x5ee   : > { %v5964_v0 = vpop.xlane.xlu1 %5963  ;;  %v7012_v27 = vsel %vm6792_vm3, %v7011_v35, %v7010_v62 }
 0x5ef   : > { %v6350_v16 = vadd.f32 %v9591_v60, %v5964_v0 }
 0x5f1   : > { %v7013_v45 = vperm.slane %v6350_v16, %v9956_v12  ;;  %v6188_v14 = vpop.xlane.xlu2 %6187 }
 0x5f2   : > { %v6462_v37 = vadd.f32 %v9591_v60, %v6188_v14 }
 0x5f3   : > { %v7014_v29 = vsel %vm6796_vm1, %v7013_v45, %v7012_v27 }
 0x5f4   : > { %v7276_v25 = vsel %vm11616_vm8, %v7014_v29, %v10552_v6  ;;  %v7230_v18 = vperm.slane %v6462_v37, %v9956_v12 }
 0x5f5   : > { %v7277_v34 = vsel %vm7266_vm14, %v7076_v9, %v7276_v25 }
 0x5f6   : > { %v7231_v39 = vsel %vm6796_vm1, %v7230_v18, %v11014_v10  ;;  %v6218_v33 = vpop.xlane.xlu1 %6217  ;;  %v7278_v6 = vsel %vm7268_vm13, %v9995_v30, %v7277_v34  ;;  %v7254_v10 = vsel %vm11620_vm11, %v7253_v51, %v7252_v44  ;;  %vm11623_vm13 = vmmov %vm11610_vm2 }
 0x5f7   : > { %v7273_v57 = vsel %vm7272_vm15, %v7231_v39, %v11008_v46  ;;  %v6477_v58 = vadd.f32 %v9591_v60, %v6218_v33  ;;  %v7279_v3 = vsel %vm7270_vm12, %v11617_v48, %v7278_v6  ;;  %vm11621_vm12 = vmmov %vm11614_vm6 }
 0x5f8   : > { %7283 = vst [vmem:[%s482_s14] sm:$0xff] %v7273_v57  ;;  %v7256_v19 = vsel %vm11621_vm12, %v7255_v26, %v7254_v10 }
 0x5f9   : > { %v7259_v30 = vperm.slane %v6477_v58, %v9909_v23  ;;  %v6220_v46 = vpop.xlane.xlu0 %6219  ;;  %v7258_v56 = vsel %vm11623_vm13, %v7257_v17, %v7256_v19 }
 0x5fa   : > { %v6478_v21 = vadd.f32 %v9591_v60, %v6220_v46 }
 0x5fb   : > { %v7260_v42 = vsel %vm6792_vm3, %v7259_v30, %v7258_v56 }
 0x5fc   : > { %v7261_v63 = vperm.slane %v6478_v21, %v9956_v12 }
 0x5fe   : > { %v7262_v4 = vsel %vm6796_vm1, %v7261_v63, %v7260_v42 }
 0x5ff   : > { %v7280_v23 = vsel %vm7272_vm15, %v7262_v4, %v7279_v3 }
 0x600   : > { %7284 = vst [vmem:[%s482_s14 + $0x8] sm:$0xff] %v7280_v23 }
 0x601   : > { %8089 = shalt.err (!%p8086_p13)
}
 0x602   : > { %7672 = dma.vmem_to_hbm [thread:$0]  (%p8311_p2), %s7302_s8, 256, %s7304_s20, %s7286_s22  }
 0x603 PF: > { %s11624_s23 = sld [smem:[#allocation20_spill]]  ;;  %p7695_p0 = pnand %p7454_p6, %p8318_p7 }
 0x604   : > { %s11625_s25 = sld [smem:[#allocation22_spill]] }
 0x605   : > { %p7696_p4 = pneg %p7695_p0 }
 0x609   : > { %s7315_s29 = sand.u32 1, %s11624_s23  }
 0x60a   : > { %s7316_s11 = scalar_lea.sflag [#allocation5], %s7315_s29 }
 0x60b   : > { %8135 = dma.done.wait (%p7696_p4), %s7316_s11, 256  }
 0x60c   : > { %8137 = vsyncadd (%p7696_p4), %s7316_s11, 4294967040  ;;  %s28_s16 = sadd.s32 1, %s11625_s25   ;;  %s11626_s24 = sld [smem:[#allocation21_spill]] }
 0x60d   : > { %p25_p9 = scmp.ge.s32.totalorder %s28_s16, 4   ;;  %s11627_s13 = sld [smem:[#allocation25_spill]] }
 0x60e   : > { %s11628_s4 = sld [smem:[#allocation23_spill]]  ;;  %s11629_s11 = smov %s8144_s12 }
 0x60f   : > { %s11631_s14 = smov %s8156_s15 }
 0x610   :  { %27 = sbr.rel (!%p25_p9) target bundleno = 15 (0xf), region = 130 }
 0x612   : > { %s11630_s12 = smov %s11626_s24 }
 0x614   : > { %s11632_s15 = smov %s11628_s4 }
 0x615   :  { %7322 = vsyncpa [#allocation4], 1 }
 0x616   :  { %7324 = vsyncpa [#allocation4 + $0x1], 1 }
 0x617   :  { %7325 = vsyncpa [#allocation7], 1 }
 0x618   :  { %7326 = vsyncpa [#allocation11], 1 }
 0x619   :  { %7327 = vsyncpa [#allocation5], 1 }
 0x61a   :  { %7329 = vsyncpa [#allocation5 + $0x1], 1 }

</bundles_post_ra>
